<compile_context>
chip_gen: v7x
topology: tpu7x:2x2x1
jax: 0.10.0
libtpu: 0.0.40
codegen_flags: <defaults>
</compile_context>

<pallas_src>
import functools

import jax
import jax.numpy as jnp
from jax import lax
from jax.experimental import pallas as pl
from jax.experimental.pallas import tpu as pltpu

HIDDEN = 16           # hidden_channels in the PyTorch module
NUM_LAYERS = 4
HEAD_HIDDEN = 128
HEAD_LANES = 128      # lane-dense padded action dim for the output store
LN_EPS = 1e-5         # torch.nn.LayerNorm default
GEN_EPS = 1e-7        # GENConv message eps
NEG_INF = -1e30


# ----------------------------- fused kernel ---------------------------------

def _actor_dqn_kernel(
    # per-graph-batch data (leading block dim of 1 = current grid step)
    x_ref, ea_ref, src_ref, dstc_ref, dstr_ref, batch_ref, invc_ref,
    # packed parameters (VMEM-resident across grid steps; t in SMEM)
    enc_n_ref, enc_e_ref, t_ref,
    cw1_ref, cv1_ref, cw2_ref, cv2_ref, head_in_ref, head_out_ref,
    # output (lane-dense, padded to HEAD_LANES)
    out_ref,
    *, n_nodes, n_edges, n_graphs, num_layers, channels,
    in_feat, edge_feat, head_hidden):
  f32 = jnp.float32
  C, N, E, B = channels, n_nodes, n_edges, n_graphs

  def layer_norm(h, g, b):
    # independent sums -> var = E[x^2] - mu^2 (two non-dependent XLU reduces)
    inv_w = 1.0 / h.shape[-1]
    s1 = jnp.sum(h, axis=-1, keepdims=True)
    s2 = jnp.sum(h * h, axis=-1, keepdims=True)
    mu = s1 * inv_w
    var = jnp.maximum(s2 * inv_w - mu * mu, 0.0)
    return (h - mu) * lax.rsqrt(var + LN_EPS) * g + b

  # ---- current graph-batch data ----
  x = x_ref[0]               # [N, F]
  ea = ea_ref[0]             # [E, Fe]
  src_col = src_ref[0]       # [E, 1]
  dst_col = dstc_ref[0]      # [E, 1]
  dst_row = dstr_ref[0]      # [1, E]
  batch_col = batch_ref[0]   # [N, 1]
  inv_counts = invc_ref[0]   # [B, 1]  (precomputed 1/count on host)

  # ---- one-hot / mask construction (iota compares, never touches HBM) ----
  src_oh = (src_col == lax.broadcasted_iota(jnp.int32, (E, N), 1)).astype(f32)     # [E,N]
  dst_oh_en = (dst_col == lax.broadcasted_iota(jnp.int32, (E, N), 1)).astype(f32)  # [E,N]
  dst_oh_ne = (dst_row == lax.broadcasted_iota(jnp.int32, (N, E), 0)).astype(f32)  # [N,E]
  dst_mask3 = (dst_col == lax.broadcasted_iota(jnp.int32, (N, E, 1), 0))           # [N,E,1]
  bmask3 = (batch_col == lax.broadcasted_iota(jnp.int32, (B, N, 1), 0))            # [B,N,1]

  # ---- encoders (packed [K_in+1, C] slabs: weight rows then bias row) ----
  h = (jnp.dot(x, enc_n_ref[:in_feat, :], preferred_element_type=f32)
       + enc_n_ref[in_feat:in_feat + 1, :])                          # [N, C]
  e_feat = (jnp.dot(ea, enc_e_ref[:edge_feat, :], preferred_element_type=f32)
            + enc_e_ref[edge_feat:edge_feat + 1, :])                 # [E, C]

  def gen_conv(hx, l):
    # GENConv(aggr='softmax', learn_t): message = relu(x_src + edge_attr) + eps
    # TODO(synk): one-hot MXU gather is O(E*N*C); switch to jnp.take / DMA gather
    #             once N grows past ~128-256.
    xj = jnp.dot(src_oh, hx, preferred_element_type=f32)             # [E, C]
    m = jnp.maximum(xj + e_feat, 0.0) + GEN_EPS                      # [E, C]
    s = m * t_ref[l]                                                 # [E, C]
    # per-destination max (the only [N,E,C] pass; no exp here)
    seg_max = jnp.max(jnp.where(dst_mask3, s[None, :, :], NEG_INF), axis=1)   # [N, C]
    # gather max back to edges, exp in edge space, scatter via MXU matmuls
    seg_max_e = jnp.dot(dst_oh_en, seg_max, preferred_element_type=f32)       # [E, C]
    w = jnp.exp(jnp.minimum(s - seg_max_e, 0.0))                              # [E, C]
    z = jnp.dot(dst_oh_ne, w, preferred_element_type=f32)                     # [N, C]
    num = jnp.dot(dst_oh_ne, w * m, preferred_element_type=f32)               # [N, C]
    agg = num * pl.reciprocal(jnp.maximum(z, 1e-16), approx=True)   # 0 if no in-edges
    out = agg + hx                                                  # root/self add
    # GENConv MLP([C, 2C, C], norm='layer'): Lin -> LayerNorm -> ReLU -> Lin
    hm = (jnp.dot(out, cw1_ref[l], preferred_element_type=f32)
          + cv1_ref[l, 0:1, :])
    hm = jnp.maximum(layer_norm(hm, cv1_ref[l, 1:2, :], cv1_ref[l, 2:3, :]), 0.0)
    return (jnp.dot(hm, cw2_ref[l], preferred_element_type=f32)
            + cv2_ref[l, 0:1, :])

  # layer 0: bare GENConv (as in ActorDQN.forward)
  h = gen_conv(h, 0)
  # layers 1..L-1: DeepGCNLayer block='res+': x + conv(dropout(relu(norm(x))))
  for l in range(1, num_layers):
    hn = jnp.maximum(layer_norm(h, cv2_ref[l, 1:2, :], cv2_ref[l, 2:3, :]), 0.0)
    # TODO(synk): dropout(p=0.1) inside res+ treated as identity (inference mode).
    h = h + gen_conv(hn, l)

  # final norm + ReLU uses layers[0].norm / layers[0].act
  h = jnp.maximum(layer_norm(h, cv2_ref[0, 1:2, :], cv2_ref[0, 2:3, :]), 0.0)
  # TODO(synk): F.dropout(p=0.1) before pooling treated as identity (inference mode).

  # ---- pooled = [global_max_pool || global_mean_pool] ----
  # h >= 0 after ReLU, so a 0-filled masked tensor is exact for both reductions.
  hg = jnp.where(bmask3, h[None, :, :], 0.0)                        # [B, N, C]
  max_pool = jnp.max(hg, axis=1)                                    # [B, C]
  mean_pool = jnp.sum(hg, axis=1) * inv_counts                      # [B, C]

  # ---- action head (act_in split into max/mean halves; act_out lane-padded) ----
  a = (jnp.dot(max_pool, head_in_ref[0:C, :], preferred_element_type=f32)
       + jnp.dot(mean_pool, head_in_ref[C:2 * C, :], preferred_element_type=f32)
       + head_in_ref[2 * C:2 * C + 1, :])
  a = jnp.maximum(a, 0.0)                                           # [B, 128]
  out = (jnp.dot(a, head_out_ref[:head_hidden, :], preferred_element_type=f32)
         + head_out_ref[head_hidden:head_hidden + 1, :])            # [B, 128], no tanh
  out_ref[0] = out


# ----------------------------- wrapper ---------------------------------------

@functools.partial(jax.jit, static_argnames=("num_graphs", "action_shape"))
def actor_dqn_forward(params, x, edge_attr, src, dst, batch, num_graphs, action_shape):
  G, n_nodes, in_feat = x.shape
  _, n_edges, edge_feat = edge_attr.shape
  num_layers = params["conv_w1"].shape[0]
  channels = params["conv_w1"].shape[1]
  head_hidden = params["head_in"].shape[1]

  src_col = src.astype(jnp.int32).reshape(G, n_edges, 1)
  dst_col = dst.astype(jnp.int32).reshape(G, n_edges, 1)
  dst_row = dst.astype(jnp.int32).reshape(G, 1, n_edges)
  batch_col = batch.astype(jnp.int32).reshape(G, n_nodes, 1)

  # 1/|graph| precomputed outside the kernel (depends only on `batch`)
  gid = jnp.arange(num_graphs, dtype=jnp.int32)
  counts = jnp.sum(batch.astype(jnp.int32)[:, None, :] == gid[None, :, None],
                   axis=-1).astype(jnp.float32)                     # [G, B]
  inv_counts = (1.0 / jnp.maximum(counts, 1.0)).reshape(G, num_graphs, 1)

  data_args = (x.astype(jnp.float32), edge_attr.astype(jnp.float32),
               src_col, dst_col, dst_row, batch_col, inv_counts)
  param_args = (params["enc_node"], params["enc_edge"], params["t"],
                params["conv_w1"], params["conv_vec1"],
                params["conv_w2"], params["conv_vec2"],
                params["head_in"], params["head_out"])

  def data_spec(a):
    nd = a.ndim
    return pl.BlockSpec((1,) + a.shape[1:], lambda g: (g,) + (0,) * (nd - 1))

  def const_spec(a):
    nd = a.ndim
    return pl.BlockSpec(a.shape, lambda g: (0,) * nd)

  in_specs = (
      [data_spec(a) for a in data_args]
      + [const_spec(params["enc_node"]), const_spec(params["enc_edge"]),
         pl.BlockSpec(memory_space=pltpu.MemorySpace.SMEM),   # t: per-layer scalars
         const_spec(params["conv_w1"]), const_spec(params["conv_vec1"]),
         const_spec(params["conv_w2"]), const_spec(params["conv_vec2"]),
         const_spec(params["head_in"]), const_spec(params["head_out"])])

  kernel = functools.partial(
      _actor_dqn_kernel,
      n_nodes=n_nodes, n_edges=n_edges, n_graphs=num_graphs,
      num_layers=num_layers, channels=channels,
      in_feat=in_feat, edge_feat=edge_feat, head_hidden=head_hidden)

  out_padded = pl.pallas_call(
      kernel,
      out_shape=jax.ShapeDtypeStruct((G, num_graphs, HEAD_LANES), jnp.float32),
      grid=(G,),
      in_specs=in_specs,
      out_specs=pl.BlockSpec((1, num_graphs, HEAD_LANES), lambda g: (g, 0, 0)),
      compiler_params=pltpu.CompilerParams(dimension_semantics=("parallel",)),
  )(*data_args, *param_args)

  return out_padded[..., :action_shape]


# --------------------------- deterministic init ------------------------------

def init_params(key, input_shape, edge_shape, action_shape, init_w=0.003):
  keys = iter(jax.random.split(key, 32))
  C, L, H = HIDDEN, NUM_LAYERS, HEAD_HIDDEN

  def uni(shape, bound):
    return jax.random.uniform(next(keys), shape, jnp.float32, -bound, bound)

  def linear(kin, kout, bound=None):
    b = bound if bound is not None else float(kin) ** -0.5
    return uni((kin, kout), b), uni((1, kout), b)    # weight stored [K_in, K_out]

  p = {}
  nw, nb = linear(input_shape, C)
  ew, eb = linear(edge_shape, C)
  p["enc_node"] = jnp.concatenate([nw, nb], axis=0)            # [F+1, C]
  p["enc_edge"] = jnp.concatenate([ew, eb], axis=0)            # [Fe+1, C]
  p["t"] = jnp.ones((L,), jnp.float32)                         # learn_t init 1.0

  w1s, v1s, w2s, v2s = [], [], [], []
  for _ in range(L):
    w1, b1 = linear(C, 2 * C)
    w2, b2 = linear(2 * C, C)
    # packed per-layer vectors: [b1, ln_gamma, ln_beta] and [b2, norm_gamma, norm_beta]
    v1 = jnp.concatenate([b1, jnp.ones((1, 2 * C), jnp.float32),
                          jnp.zeros((1, 2 * C), jnp.float32)], axis=0)      # [3, 2C]
    v2 = jnp.concatenate([b2, jnp.ones((1, C), jnp.float32),
                          jnp.zeros((1, C), jnp.float32)], axis=0)          # [3, C]
    w1s.append(w1); v1s.append(v1); w2s.append(w2); v2s.append(v2)
  p["conv_w1"] = jnp.stack(w1s)                                # [L, C, 2C]
  p["conv_vec1"] = jnp.stack(v1s)                              # [L, 3, 2C]
  p["conv_w2"] = jnp.stack(w2s)                                # [L, 2C, C]
  p["conv_vec2"] = jnp.stack(v2s)                              # [L, 3, C]

  iw, ib = linear(2 * C, H)
  p["head_in"] = jnp.concatenate([iw, ib], axis=0)             # [2C+1, 128]
  ow, ob = linear(H, action_shape, bound=init_w)
  ow_pad = jnp.zeros((H, HEAD_LANES), jnp.float32).at[:, :action_shape].set(ow)
  ob_pad = jnp.zeros((1, HEAD_LANES), jnp.float32).at[:, :action_shape].set(ob)
  p["head_out"] = jnp.concatenate([ow_pad, ob_pad], axis=0)    # [H+1, 128] (lane-padded)
  return p


# --------------------------------- main --------------------------------------

if __name__ == "__main__":
  input_shape, edge_shape, action_shape = 8, 6, 4
  G, N_NODES, N_EDGES, N_GRAPHS = 4, 16, 32, 2   # G independent graph-batches

  key = jax.random.PRNGKey(0)
  k_p, k_x, k_e, k_s, k_d = jax.random.split(key, 5)

  params = init_params(k_p, input_shape, edge_shape, action_shape)

  x = jax.random.normal(k_x, (G, N_NODES, input_shape), jnp.float32)
  edge_attr = jax.random.normal(k_e, (G, N_EDGES, edge_shape), jnp.float32)
  batch1 = jnp.concatenate([jnp.zeros(N_NODES // 2, jnp.int32),
                            jnp.ones(N_NODES // 2, jnp.int32)])
  batch = jnp.tile(batch1[None, :], (G, 1))
  # edges kept within their graph
  half_n, half_e = N_NODES // 2, N_EDGES // 2
  src0 = jax.random.randint(k_s, (G, half_e), 0, half_n)
  dst0 = jax.random.randint(k_d, (G, half_e), 0, half_n)
  src = jnp.concatenate([src0, src0 + half_n], axis=1).astype(jnp.int32)
  dst = jnp.concatenate([dst0, dst0 + half_n], axis=1).astype(jnp.int32)

  out = actor_dqn_forward(params, x, edge_attr, src, dst, batch,
                          num_graphs=N_GRAPHS, action_shape=action_shape)
  out = jax.block_until_ready(out)
  assert out.shape == (G, N_GRAPHS, action_shape)
  assert bool(jnp.all(jnp.isfinite(out)))
  print("KERNEL_OK")
</pallas_src>

<mosaic_0001>
module attributes {stable_mosaic.version = 11 : i64} {
  func.func @_actor_dqn_kernel(%arg0: i32, %arg1: memref<1x16x8xf32, #tpu.memory_space<vmem>>, %arg2: memref<1x32x6xf32, #tpu.memory_space<vmem>>, %arg3: memref<1x32x1xi32, #tpu.memory_space<vmem>>, %arg4: memref<1x32x1xi32, #tpu.memory_space<vmem>>, %arg5: memref<1x1x32xi32, #tpu.memory_space<vmem>>, %arg6: memref<1x16x1xi32, #tpu.memory_space<vmem>>, %arg7: memref<1x2x1xf32, #tpu.memory_space<vmem>>, %arg8: memref<9x16xf32, #tpu.memory_space<vmem>>, %arg9: memref<7x16xf32, #tpu.memory_space<vmem>>, %arg10: memref<4xf32, #tpu.memory_space<smem>>, %arg11: memref<4x16x32xf32, #tpu.memory_space<vmem>>, %arg12: memref<4x3x32xf32, #tpu.memory_space<vmem>>, %arg13: memref<4x32x16xf32, #tpu.memory_space<vmem>>, %arg14: memref<4x3x16xf32, #tpu.memory_space<vmem>>, %arg15: memref<33x128xf32, #tpu.memory_space<vmem>>, %arg16: memref<129x128xf32, #tpu.memory_space<vmem>>, %arg17: memref<1x2x128xf32, #tpu.memory_space<vmem>>) attributes {dimension_semantics = [#tpu.dimension_semantics<parallel>], iteration_bounds = array<i64: 4>, scalar_prefetch = 0 : i64, scratch_operands = 0 : i64, tpu.core_type = #tpu.core_type<tc>, window_params = [{transform_indices = @transform_0, window_bounds = array<i64: 1, 16, 8>}, {transform_indices = @transform_1, window_bounds = array<i64: 1, 32, 6>}, {transform_indices = @transform_2, window_bounds = array<i64: 1, 32, 1>}, {transform_indices = @transform_3, window_bounds = array<i64: 1, 32, 1>}, {transform_indices = @transform_4, window_bounds = array<i64: 1, 1, 32>}, {transform_indices = @transform_5, window_bounds = array<i64: 1, 16, 1>}, {transform_indices = @transform_6, window_bounds = array<i64: 1, 2, 1>}, {pipeline_mode = #tpu.pipeline_mode<synchronous>, transform_indices = @transform_7, window_bounds = array<i64: 9, 16>}, {pipeline_mode = #tpu.pipeline_mode<synchronous>, transform_indices = @transform_8, window_bounds = array<i64: 7, 16>}, {transform_indices = @transform_9, window_bounds = array<i64: 4>}, {pipeline_mode = #tpu.pipeline_mode<synchronous>, transform_indices = @transform_10, window_bounds = array<i64: 4, 16, 32>}, {pipeline_mode = #tpu.pipeline_mode<synchronous>, transform_indices = @transform_11, window_bounds = array<i64: 4, 3, 32>}, {pipeline_mode = #tpu.pipeline_mode<synchronous>, transform_indices = @transform_12, window_bounds = array<i64: 4, 32, 16>}, {pipeline_mode = #tpu.pipeline_mode<synchronous>, transform_indices = @transform_13, window_bounds = array<i64: 4, 3, 16>}, {pipeline_mode = #tpu.pipeline_mode<synchronous>, transform_indices = @transform_14, window_bounds = array<i64: 33, 128>}, {pipeline_mode = #tpu.pipeline_mode<synchronous>, transform_indices = @transform_15, window_bounds = array<i64: 129, 128>}, {transform_indices = @transform_16, window_bounds = array<i64: 1, 2, 128>}]} {
    %c0 = arith.constant 0 : index
    %c0_0 = arith.constant 0 : index
    %c0_1 = arith.constant 0 : index
    %0 = vector.load %arg1[%c0, %c0_0, %c0_1] : memref<1x16x8xf32, #tpu.memory_space<vmem>>, vector<1x16x8xf32>
    %1 = vector.shape_cast %0 : vector<1x16x8xf32> to vector<16x8xf32>
    %c0_2 = arith.constant 0 : index
    %c0_3 = arith.constant 0 : index
    %c0_4 = arith.constant 0 : index
    %2 = vector.load %arg2[%c0_2, %c0_3, %c0_4] : memref<1x32x6xf32, #tpu.memory_space<vmem>>, vector<1x32x6xf32>
    %3 = vector.shape_cast %2 : vector<1x32x6xf32> to vector<32x6xf32>
    %c0_5 = arith.constant 0 : index
    %c0_6 = arith.constant 0 : index
    %c0_7 = arith.constant 0 : index
    %4 = vector.load %arg3[%c0_5, %c0_6, %c0_7] : memref<1x32x1xi32, #tpu.memory_space<vmem>>, vector<1x32x1xi32>
    %5 = vector.shape_cast %4 : vector<1x32x1xi32> to vector<32x1xi32>
    %c0_8 = arith.constant 0 : index
    %c0_9 = arith.constant 0 : index
    %c0_10 = arith.constant 0 : index
    %6 = vector.load %arg4[%c0_8, %c0_9, %c0_10] : memref<1x32x1xi32, #tpu.memory_space<vmem>>, vector<1x32x1xi32>
    %7 = vector.shape_cast %6 : vector<1x32x1xi32> to vector<32x1xi32>
    %c0_11 = arith.constant 0 : index
    %c0_12 = arith.constant 0 : index
    %c0_13 = arith.constant 0 : index
    %8 = vector.load %arg5[%c0_11, %c0_12, %c0_13] : memref<1x1x32xi32, #tpu.memory_space<vmem>>, vector<1x1x32xi32>
    %9 = vector.shape_cast %8 : vector<1x1x32xi32> to vector<1x32xi32>
    %c0_14 = arith.constant 0 : index
    %c0_15 = arith.constant 0 : index
    %c0_16 = arith.constant 0 : index
    %10 = vector.load %arg6[%c0_14, %c0_15, %c0_16] : memref<1x16x1xi32, #tpu.memory_space<vmem>>, vector<1x16x1xi32>
    %11 = vector.shape_cast %10 : vector<1x16x1xi32> to vector<16x1xi32>
    %c0_17 = arith.constant 0 : index
    %c0_18 = arith.constant 0 : index
    %c0_19 = arith.constant 0 : index
    %12 = vector.load %arg7[%c0_17, %c0_18, %c0_19] : memref<1x2x1xf32, #tpu.memory_space<vmem>>, vector<1x2x1xf32>
    %13 = vector.shape_cast %12 : vector<1x2x1xf32> to vector<2x1xf32>
    %14 = tpu.iota {dimensions = array<i32: 1>} : vector<32x16xi32>
    %15 = vector.broadcast %5 : vector<32x1xi32> to vector<32x16xi32>
    %16 = arith.cmpi eq, %15, %14 : vector<32x16xi32>
    %17 = arith.extui %16 : vector<32x16xi1> to vector<32x16xi32>
    %18 = arith.sitofp %17 : vector<32x16xi32> to vector<32x16xf32>
    %19 = tpu.iota {dimensions = array<i32: 1>} : vector<32x16xi32>
    %20 = vector.broadcast %7 : vector<32x1xi32> to vector<32x16xi32>
    %21 = arith.cmpi eq, %20, %19 : vector<32x16xi32>
    %22 = arith.extui %21 : vector<32x16xi1> to vector<32x16xi32>
    %23 = arith.sitofp %22 : vector<32x16xi32> to vector<32x16xf32>
    %24 = tpu.iota {dimensions = array<i32: 0>} : vector<16x32xi32>
    %25 = vector.broadcast %9 : vector<1x32xi32> to vector<16x32xi32>
    %26 = arith.cmpi eq, %25, %24 : vector<16x32xi32>
    %27 = arith.extui %26 : vector<16x32xi1> to vector<16x32xi32>
    %28 = arith.sitofp %27 : vector<16x32xi32> to vector<16x32xf32>
    %29 = tpu.iota {dimensions = array<i32: 0>} : vector<16x32x1xi32>
    %30 = vector.shape_cast %7 : vector<32x1xi32> to vector<1x32x1xi32>
    %31 = vector.broadcast %30 : vector<1x32x1xi32> to vector<16x32x1xi32>
    %32 = arith.cmpi eq, %31, %29 : vector<16x32x1xi32>
    %33 = tpu.iota {dimensions = array<i32: 0>} : vector<2x16x1xi32>
    %34 = vector.shape_cast %11 : vector<16x1xi32> to vector<1x16x1xi32>
    %35 = vector.broadcast %34 : vector<1x16x1xi32> to vector<2x16x1xi32>
    %36 = arith.cmpi eq, %35, %33 : vector<2x16x1xi32>
    %c0_20 = arith.constant 0 : index
    %c0_21 = arith.constant 0 : index
    %37 = vector.load %arg8[%c0_20, %c0_21] : memref<9x16xf32, #tpu.memory_space<vmem>>, vector<8x16xf32>
    %cst = arith.constant dense<0.000000e+00> : vector<16x16xf32>
    %38 = tpu.matmul %1, %37, %cst {dimension_numbers = #tpu.dot_dimension_numbers<[1], [0], [0], [1], [0, 0, 1, 1], [], []>} : vector<16x8xf32>, vector<8x16xf32>, vector<16x16xf32> -> vector<16x16xf32>
    %c8 = arith.constant 8 : index
    %c0_22 = arith.constant 0 : index
    %39 = vector.load %arg8[%c8, %c0_22] : memref<9x16xf32, #tpu.memory_space<vmem>>, vector<1x16xf32>
    %40 = vector.broadcast %39 : vector<1x16xf32> to vector<16x16xf32>
    %41 = arith.addf %38, %40 : vector<16x16xf32>
    %c0_23 = arith.constant 0 : index
    %c0_24 = arith.constant 0 : index
    %42 = vector.load %arg9[%c0_23, %c0_24] : memref<7x16xf32, #tpu.memory_space<vmem>>, vector<6x16xf32>
    %cst_25 = arith.constant dense<0.000000e+00> : vector<32x16xf32>
    %43 = tpu.matmul %3, %42, %cst_25 {dimension_numbers = #tpu.dot_dimension_numbers<[1], [0], [0], [1], [0, 0, 1, 1], [], []>} : vector<32x6xf32>, vector<6x16xf32>, vector<32x16xf32> -> vector<32x16xf32>
    %c6 = arith.constant 6 : index
    %c0_26 = arith.constant 0 : index
    %44 = vector.load %arg9[%c6, %c0_26] : memref<7x16xf32, #tpu.memory_space<vmem>>, vector<1x16xf32>
    %45 = vector.broadcast %44 : vector<1x16xf32> to vector<32x16xf32>
    %46 = arith.addf %43, %45 : vector<32x16xf32>
    %cst_27 = arith.constant dense<0.000000e+00> : vector<32x16xf32>
    %47 = tpu.matmul %18, %41, %cst_27 {dimension_numbers = #tpu.dot_dimension_numbers<[1], [0], [0], [1], [0, 0, 1, 1], [], []>} : vector<32x16xf32>, vector<16x16xf32>, vector<32x16xf32> -> vector<32x16xf32>
    %48 = arith.addf %47, %46 : vector<32x16xf32>
    %cst_28 = arith.constant 0.000000e+00 : f32
    %49 = vector.broadcast %cst_28 : f32 to vector<32x16xf32>
    %50 = arith.maximumf %48, %49 : vector<32x16xf32>
    %cst_29 = arith.constant 1.000000e-07 : f32
    %51 = vector.broadcast %cst_29 : f32 to vector<32x16xf32>
    %52 = arith.addf %50, %51 : vector<32x16xf32>
    %c0_30 = arith.constant 0 : index
    %53 = memref.load %arg10[%c0_30] : memref<4xf32, #tpu.memory_space<smem>>
    %54 = vector.broadcast %53 : f32 to vector<32x16xf32>
    %55 = arith.mulf %52, %54 : vector<32x16xf32>
    %56 = vector.shape_cast %55 : vector<32x16xf32> to vector<1x32x16xf32>
    %cst_31 = arith.constant -1.000000e+30 : f32
    %57 = vector.shape_cast %32 : vector<16x32x1xi1> to vector<16x32x1xi1>
    %58 = vector.broadcast %57 : vector<16x32x1xi1> to vector<16x32x16xi1>
    %59 = vector.shape_cast %56 : vector<1x32x16xf32> to vector<1x32x16xf32>
    %60 = vector.broadcast %59 : vector<1x32x16xf32> to vector<16x32x16xf32>
    %61 = vector.broadcast %cst_31 : f32 to vector<16x32x16xf32>
    %62 = arith.select %58, %60, %61 : vector<16x32x16xi1>, vector<16x32x16xf32>
    %cst_32 = arith.constant dense<0xFF800000> : vector<16x16xf32>
    %63 = vector.multi_reduction <maximumf>, %62, %cst_32 [1] : vector<16x32x16xf32> to vector<16x16xf32>
    %cst_33 = arith.constant dense<0.000000e+00> : vector<32x16xf32>
    %64 = tpu.matmul %23, %63, %cst_33 {dimension_numbers = #tpu.dot_dimension_numbers<[1], [0], [0], [1], [0, 0, 1, 1], [], []>} : vector<32x16xf32>, vector<16x16xf32>, vector<32x16xf32> -> vector<32x16xf32>
    %65 = arith.subf %55, %64 : vector<32x16xf32>
    %cst_34 = arith.constant 0.000000e+00 : f32
    %66 = vector.broadcast %cst_34 : f32 to vector<32x16xf32>
    %67 = arith.minimumf %65, %66 : vector<32x16xf32>
    %68 = math.exp %67 : vector<32x16xf32>
    %cst_35 = arith.constant dense<0.000000e+00> : vector<16x16xf32>
    %69 = tpu.matmul %28, %68, %cst_35 {dimension_numbers = #tpu.dot_dimension_numbers<[1], [0], [0], [1], [0, 0, 1, 1], [], []>} : vector<16x32xf32>, vector<32x16xf32>, vector<16x16xf32> -> vector<16x16xf32>
    %70 = arith.mulf %68, %52 : vector<32x16xf32>
    %cst_36 = arith.constant dense<0.000000e+00> : vector<16x16xf32>
    %71 = tpu.matmul %28, %70, %cst_36 {dimension_numbers = #tpu.dot_dimension_numbers<[1], [0], [0], [1], [0, 0, 1, 1], [], []>} : vector<16x32xf32>, vector<32x16xf32>, vector<16x16xf32> -> vector<16x16xf32>
    %cst_37 = arith.constant 1.000000e-16 : f32
    %72 = vector.broadcast %cst_37 : f32 to vector<16x16xf32>
    %73 = arith.maximumf %69, %72 : vector<16x16xf32>
    %74 = tpu.reciprocal %73 {approx = true} : vector<16x16xf32> -> vector<16x16xf32>
    %75 = arith.mulf %71, %74 : vector<16x16xf32>
    %76 = arith.addf %75, %41 : vector<16x16xf32>
    %c0_38 = arith.constant 0 : index
    %c0_39 = arith.constant 0 : index
    %c0_40 = arith.constant 0 : index
    %77 = vector.load %arg11[%c0_38, %c0_39, %c0_40] : memref<4x16x32xf32, #tpu.memory_space<vmem>>, vector<1x16x32xf32>
    %78 = vector.shape_cast %77 : vector<1x16x32xf32> to vector<16x32xf32>
    %cst_41 = arith.constant dense<0.000000e+00> : vector<16x32xf32>
    %79 = tpu.matmul %76, %78, %cst_41 {dimension_numbers = #tpu.dot_dimension_numbers<[1], [0], [0], [1], [0, 0, 1, 1], [], []>} : vector<16x16xf32>, vector<16x32xf32>, vector<16x32xf32> -> vector<16x32xf32>
    %c0_42 = arith.constant 0 : index
    %c0_43 = arith.constant 0 : index
    %c0_44 = arith.constant 0 : index
    %80 = vector.load %arg12[%c0_42, %c0_43, %c0_44] : memref<4x3x32xf32, #tpu.memory_space<vmem>>, vector<1x1x32xf32>
    %81 = vector.shape_cast %80 : vector<1x1x32xf32> to vector<1x32xf32>
    %82 = vector.broadcast %81 : vector<1x32xf32> to vector<16x32xf32>
    %83 = arith.addf %79, %82 : vector<16x32xf32>
    %c0_45 = arith.constant 0 : index
    %c1 = arith.constant 1 : index
    %c0_46 = arith.constant 0 : index
    %84 = vector.load %arg12[%c0_45, %c1, %c0_46] : memref<4x3x32xf32, #tpu.memory_space<vmem>>, vector<1x1x32xf32>
    %85 = vector.shape_cast %84 : vector<1x1x32xf32> to vector<1x32xf32>
    %c0_47 = arith.constant 0 : index
    %c2 = arith.constant 2 : index
    %c0_48 = arith.constant 0 : index
    %86 = vector.load %arg12[%c0_47, %c2, %c0_48] : memref<4x3x32xf32, #tpu.memory_space<vmem>>, vector<1x1x32xf32>
    %87 = vector.shape_cast %86 : vector<1x1x32xf32> to vector<1x32xf32>
    %cst_49 = arith.constant dense<0.000000e+00> : vector<16xf32>
    %88 = vector.multi_reduction <add>, %83, %cst_49 [1] : vector<16x32xf32> to vector<16xf32>
    %89 = vector.shape_cast %88 : vector<16xf32> to vector<16x1xf32>
    %90 = arith.mulf %83, %83 : vector<16x32xf32>
    %cst_50 = arith.constant dense<0.000000e+00> : vector<16xf32>
    %91 = vector.multi_reduction <add>, %90, %cst_50 [1] : vector<16x32xf32> to vector<16xf32>
    %92 = vector.shape_cast %91 : vector<16xf32> to vector<16x1xf32>
    %cst_51 = arith.constant 3.125000e-02 : f32
    %93 = vector.broadcast %cst_51 : f32 to vector<16x1xf32>
    %94 = arith.mulf %89, %93 : vector<16x1xf32>
    %cst_52 = arith.constant 3.125000e-02 : f32
    %95 = vector.broadcast %cst_52 : f32 to vector<16x1xf32>
    %96 = arith.mulf %92, %95 : vector<16x1xf32>
    %97 = arith.mulf %94, %94 : vector<16x1xf32>
    %98 = arith.subf %96, %97 : vector<16x1xf32>
    %cst_53 = arith.constant 0.000000e+00 : f32
    %99 = vector.broadcast %cst_53 : f32 to vector<16x1xf32>
    %100 = arith.maximumf %98, %99 : vector<16x1xf32>
    %101 = vector.broadcast %94 : vector<16x1xf32> to vector<16x32xf32>
    %102 = arith.subf %83, %101 : vector<16x32xf32>
    %cst_54 = arith.constant 9.99999974E-6 : f32
    %103 = vector.broadcast %cst_54 : f32 to vector<16x1xf32>
    %104 = arith.addf %100, %103 : vector<16x1xf32>
    %105 = math.rsqrt %104 : vector<16x1xf32>
    %106 = vector.broadcast %105 : vector<16x1xf32> to vector<16x32xf32>
    %107 = arith.mulf %102, %106 : vector<16x32xf32>
    %108 = vector.broadcast %85 : vector<1x32xf32> to vector<16x32xf32>
    %109 = arith.mulf %107, %108 : vector<16x32xf32>
    %110 = vector.broadcast %87 : vector<1x32xf32> to vector<16x32xf32>
    %111 = arith.addf %109, %110 : vector<16x32xf32>
    %cst_55 = arith.constant 0.000000e+00 : f32
    %112 = vector.broadcast %cst_55 : f32 to vector<16x32xf32>
    %113 = arith.maximumf %111, %112 : vector<16x32xf32>
    %c0_56 = arith.constant 0 : index
    %c0_57 = arith.constant 0 : index
    %c0_58 = arith.constant 0 : index
    %114 = vector.load %arg13[%c0_56, %c0_57, %c0_58] : memref<4x32x16xf32, #tpu.memory_space<vmem>>, vector<1x32x16xf32>
    %115 = vector.shape_cast %114 : vector<1x32x16xf32> to vector<32x16xf32>
    %cst_59 = arith.constant dense<0.000000e+00> : vector<16x16xf32>
    %116 = tpu.matmul %113, %115, %cst_59 {dimension_numbers = #tpu.dot_dimension_numbers<[1], [0], [0], [1], [0, 0, 1, 1], [], []>} : vector<16x32xf32>, vector<32x16xf32>, vector<16x16xf32> -> vector<16x16xf32>
    %c0_60 = arith.constant 0 : index
    %c0_61 = arith.constant 0 : index
    %c0_62 = arith.constant 0 : index
    %117 = vector.load %arg14[%c0_60, %c0_61, %c0_62] : memref<4x3x16xf32, #tpu.memory_space<vmem>>, vector<1x1x16xf32>
    %118 = vector.shape_cast %117 : vector<1x1x16xf32> to vector<1x16xf32>
    %119 = vector.broadcast %118 : vector<1x16xf32> to vector<16x16xf32>
    %120 = arith.addf %116, %119 : vector<16x16xf32>
    %c1_63 = arith.constant 1 : index
    %c1_64 = arith.constant 1 : index
    %c0_65 = arith.constant 0 : index
    %121 = vector.load %arg14[%c1_63, %c1_64, %c0_65] : memref<4x3x16xf32, #tpu.memory_space<vmem>>, vector<1x1x16xf32>
    %122 = vector.shape_cast %121 : vector<1x1x16xf32> to vector<1x16xf32>
    %c1_66 = arith.constant 1 : index
    %c2_67 = arith.constant 2 : index
    %c0_68 = arith.constant 0 : index
    %123 = vector.load %arg14[%c1_66, %c2_67, %c0_68] : memref<4x3x16xf32, #tpu.memory_space<vmem>>, vector<1x1x16xf32>
    %124 = vector.shape_cast %123 : vector<1x1x16xf32> to vector<1x16xf32>
    %cst_69 = arith.constant dense<0.000000e+00> : vector<16xf32>
    %125 = vector.multi_reduction <add>, %120, %cst_69 [1] : vector<16x16xf32> to vector<16xf32>
    %126 = vector.shape_cast %125 : vector<16xf32> to vector<16x1xf32>
    %127 = arith.mulf %120, %120 : vector<16x16xf32>
    %cst_70 = arith.constant dense<0.000000e+00> : vector<16xf32>
    %128 = vector.multi_reduction <add>, %127, %cst_70 [1] : vector<16x16xf32> to vector<16xf32>
    %129 = vector.shape_cast %128 : vector<16xf32> to vector<16x1xf32>
    %cst_71 = arith.constant 6.250000e-02 : f32
    %130 = vector.broadcast %cst_71 : f32 to vector<16x1xf32>
    %131 = arith.mulf %126, %130 : vector<16x1xf32>
    %cst_72 = arith.constant 6.250000e-02 : f32
    %132 = vector.broadcast %cst_72 : f32 to vector<16x1xf32>
    %133 = arith.mulf %129, %132 : vector<16x1xf32>
    %134 = arith.mulf %131, %131 : vector<16x1xf32>
    %135 = arith.subf %133, %134 : vector<16x1xf32>
    %cst_73 = arith.constant 0.000000e+00 : f32
    %136 = vector.broadcast %cst_73 : f32 to vector<16x1xf32>
    %137 = arith.maximumf %135, %136 : vector<16x1xf32>
    %138 = vector.broadcast %131 : vector<16x1xf32> to vector<16x16xf32>
    %139 = arith.subf %120, %138 : vector<16x16xf32>
    %cst_74 = arith.constant 9.99999974E-6 : f32
    %140 = vector.broadcast %cst_74 : f32 to vector<16x1xf32>
    %141 = arith.addf %137, %140 : vector<16x1xf32>
    %142 = math.rsqrt %141 : vector<16x1xf32>
    %143 = vector.broadcast %142 : vector<16x1xf32> to vector<16x16xf32>
    %144 = arith.mulf %139, %143 : vector<16x16xf32>
    %145 = vector.broadcast %122 : vector<1x16xf32> to vector<16x16xf32>
    %146 = arith.mulf %144, %145 : vector<16x16xf32>
    %147 = vector.broadcast %124 : vector<1x16xf32> to vector<16x16xf32>
    %148 = arith.addf %146, %147 : vector<16x16xf32>
    %cst_75 = arith.constant 0.000000e+00 : f32
    %149 = vector.broadcast %cst_75 : f32 to vector<16x16xf32>
    %150 = arith.maximumf %148, %149 : vector<16x16xf32>
    %cst_76 = arith.constant dense<0.000000e+00> : vector<32x16xf32>
    %151 = tpu.matmul %18, %150, %cst_76 {dimension_numbers = #tpu.dot_dimension_numbers<[1], [0], [0], [1], [0, 0, 1, 1], [], []>} : vector<32x16xf32>, vector<16x16xf32>, vector<32x16xf32> -> vector<32x16xf32>
    %152 = arith.addf %151, %46 : vector<32x16xf32>
    %cst_77 = arith.constant 0.000000e+00 : f32
    %153 = vector.broadcast %cst_77 : f32 to vector<32x16xf32>
    %154 = arith.maximumf %152, %153 : vector<32x16xf32>
    %cst_78 = arith.constant 1.000000e-07 : f32
    %155 = vector.broadcast %cst_78 : f32 to vector<32x16xf32>
    %156 = arith.addf %154, %155 : vector<32x16xf32>
    %c1_79 = arith.constant 1 : index
    %157 = memref.load %arg10[%c1_79] : memref<4xf32, #tpu.memory_space<smem>>
    %158 = vector.broadcast %157 : f32 to vector<32x16xf32>
    %159 = arith.mulf %156, %158 : vector<32x16xf32>
    %160 = vector.shape_cast %159 : vector<32x16xf32> to vector<1x32x16xf32>
    %cst_80 = arith.constant -1.000000e+30 : f32
    %161 = vector.shape_cast %32 : vector<16x32x1xi1> to vector<16x32x1xi1>
    %162 = vector.broadcast %161 : vector<16x32x1xi1> to vector<16x32x16xi1>
    %163 = vector.shape_cast %160 : vector<1x32x16xf32> to vector<1x32x16xf32>
    %164 = vector.broadcast %163 : vector<1x32x16xf32> to vector<16x32x16xf32>
    %165 = vector.broadcast %cst_80 : f32 to vector<16x32x16xf32>
    %166 = arith.select %162, %164, %165 : vector<16x32x16xi1>, vector<16x32x16xf32>
    %cst_81 = arith.constant dense<0xFF800000> : vector<16x16xf32>
    %167 = vector.multi_reduction <maximumf>, %166, %cst_81 [1] : vector<16x32x16xf32> to vector<16x16xf32>
    %cst_82 = arith.constant dense<0.000000e+00> : vector<32x16xf32>
    %168 = tpu.matmul %23, %167, %cst_82 {dimension_numbers = #tpu.dot_dimension_numbers<[1], [0], [0], [1], [0, 0, 1, 1], [], []>} : vector<32x16xf32>, vector<16x16xf32>, vector<32x16xf32> -> vector<32x16xf32>
    %169 = arith.subf %159, %168 : vector<32x16xf32>
    %cst_83 = arith.constant 0.000000e+00 : f32
    %170 = vector.broadcast %cst_83 : f32 to vector<32x16xf32>
    %171 = arith.minimumf %169, %170 : vector<32x16xf32>
    %172 = math.exp %171 : vector<32x16xf32>
    %cst_84 = arith.constant dense<0.000000e+00> : vector<16x16xf32>
    %173 = tpu.matmul %28, %172, %cst_84 {dimension_numbers = #tpu.dot_dimension_numbers<[1], [0], [0], [1], [0, 0, 1, 1], [], []>} : vector<16x32xf32>, vector<32x16xf32>, vector<16x16xf32> -> vector<16x16xf32>
    %174 = arith.mulf %172, %156 : vector<32x16xf32>
    %cst_85 = arith.constant dense<0.000000e+00> : vector<16x16xf32>
    %175 = tpu.matmul %28, %174, %cst_85 {dimension_numbers = #tpu.dot_dimension_numbers<[1], [0], [0], [1], [0, 0, 1, 1], [], []>} : vector<16x32xf32>, vector<32x16xf32>, vector<16x16xf32> -> vector<16x16xf32>
    %cst_86 = arith.constant 1.000000e-16 : f32
    %176 = vector.broadcast %cst_86 : f32 to vector<16x16xf32>
    %177 = arith.maximumf %173, %176 : vector<16x16xf32>
    %178 = tpu.reciprocal %177 {approx = true} : vector<16x16xf32> -> vector<16x16xf32>
    %179 = arith.mulf %175, %178 : vector<16x16xf32>
    %180 = arith.addf %179, %150 : vector<16x16xf32>
    %c1_87 = arith.constant 1 : index
    %c0_88 = arith.constant 0 : index
    %c0_89 = arith.constant 0 : index
    %181 = vector.load %arg11[%c1_87, %c0_88, %c0_89] : memref<4x16x32xf32, #tpu.memory_space<vmem>>, vector<1x16x32xf32>
    %182 = vector.shape_cast %181 : vector<1x16x32xf32> to vector<16x32xf32>
    %cst_90 = arith.constant dense<0.000000e+00> : vector<16x32xf32>
    %183 = tpu.matmul %180, %182, %cst_90 {dimension_numbers = #tpu.dot_dimension_numbers<[1], [0], [0], [1], [0, 0, 1, 1], [], []>} : vector<16x16xf32>, vector<16x32xf32>, vector<16x32xf32> -> vector<16x32xf32>
    %c1_91 = arith.constant 1 : index
    %c0_92 = arith.constant 0 : index
    %c0_93 = arith.constant 0 : index
    %184 = vector.load %arg12[%c1_91, %c0_92, %c0_93] : memref<4x3x32xf32, #tpu.memory_space<vmem>>, vector<1x1x32xf32>
    %185 = vector.shape_cast %184 : vector<1x1x32xf32> to vector<1x32xf32>
    %186 = vector.broadcast %185 : vector<1x32xf32> to vector<16x32xf32>
    %187 = arith.addf %183, %186 : vector<16x32xf32>
    %c1_94 = arith.constant 1 : index
    %c1_95 = arith.constant 1 : index
    %c0_96 = arith.constant 0 : index
    %188 = vector.load %arg12[%c1_94, %c1_95, %c0_96] : memref<4x3x32xf32, #tpu.memory_space<vmem>>, vector<1x1x32xf32>
    %189 = vector.shape_cast %188 : vector<1x1x32xf32> to vector<1x32xf32>
    %c1_97 = arith.constant 1 : index
    %c2_98 = arith.constant 2 : index
    %c0_99 = arith.constant 0 : index
    %190 = vector.load %arg12[%c1_97, %c2_98, %c0_99] : memref<4x3x32xf32, #tpu.memory_space<vmem>>, vector<1x1x32xf32>
    %191 = vector.shape_cast %190 : vector<1x1x32xf32> to vector<1x32xf32>
    %cst_100 = arith.constant dense<0.000000e+00> : vector<16xf32>
    %192 = vector.multi_reduction <add>, %187, %cst_100 [1] : vector<16x32xf32> to vector<16xf32>
    %193 = vector.shape_cast %192 : vector<16xf32> to vector<16x1xf32>
    %194 = arith.mulf %187, %187 : vector<16x32xf32>
    %cst_101 = arith.constant dense<0.000000e+00> : vector<16xf32>
    %195 = vector.multi_reduction <add>, %194, %cst_101 [1] : vector<16x32xf32> to vector<16xf32>
    %196 = vector.shape_cast %195 : vector<16xf32> to vector<16x1xf32>
    %cst_102 = arith.constant 3.125000e-02 : f32
    %197 = vector.broadcast %cst_102 : f32 to vector<16x1xf32>
    %198 = arith.mulf %193, %197 : vector<16x1xf32>
    %cst_103 = arith.constant 3.125000e-02 : f32
    %199 = vector.broadcast %cst_103 : f32 to vector<16x1xf32>
    %200 = arith.mulf %196, %199 : vector<16x1xf32>
    %201 = arith.mulf %198, %198 : vector<16x1xf32>
    %202 = arith.subf %200, %201 : vector<16x1xf32>
    %cst_104 = arith.constant 0.000000e+00 : f32
    %203 = vector.broadcast %cst_104 : f32 to vector<16x1xf32>
    %204 = arith.maximumf %202, %203 : vector<16x1xf32>
    %205 = vector.broadcast %198 : vector<16x1xf32> to vector<16x32xf32>
    %206 = arith.subf %187, %205 : vector<16x32xf32>
    %cst_105 = arith.constant 9.99999974E-6 : f32
    %207 = vector.broadcast %cst_105 : f32 to vector<16x1xf32>
    %208 = arith.addf %204, %207 : vector<16x1xf32>
    %209 = math.rsqrt %208 : vector<16x1xf32>
    %210 = vector.broadcast %209 : vector<16x1xf32> to vector<16x32xf32>
    %211 = arith.mulf %206, %210 : vector<16x32xf32>
    %212 = vector.broadcast %189 : vector<1x32xf32> to vector<16x32xf32>
    %213 = arith.mulf %211, %212 : vector<16x32xf32>
    %214 = vector.broadcast %191 : vector<1x32xf32> to vector<16x32xf32>
    %215 = arith.addf %213, %214 : vector<16x32xf32>
    %cst_106 = arith.constant 0.000000e+00 : f32
    %216 = vector.broadcast %cst_106 : f32 to vector<16x32xf32>
    %217 = arith.maximumf %215, %216 : vector<16x32xf32>
    %c1_107 = arith.constant 1 : index
    %c0_108 = arith.constant 0 : index
    %c0_109 = arith.constant 0 : index
    %218 = vector.load %arg13[%c1_107, %c0_108, %c0_109] : memref<4x32x16xf32, #tpu.memory_space<vmem>>, vector<1x32x16xf32>
    %219 = vector.shape_cast %218 : vector<1x32x16xf32> to vector<32x16xf32>
    %cst_110 = arith.constant dense<0.000000e+00> : vector<16x16xf32>
    %220 = tpu.matmul %217, %219, %cst_110 {dimension_numbers = #tpu.dot_dimension_numbers<[1], [0], [0], [1], [0, 0, 1, 1], [], []>} : vector<16x32xf32>, vector<32x16xf32>, vector<16x16xf32> -> vector<16x16xf32>
    %c1_111 = arith.constant 1 : index
    %c0_112 = arith.constant 0 : index
    %c0_113 = arith.constant 0 : index
    %221 = vector.load %arg14[%c1_111, %c0_112, %c0_113] : memref<4x3x16xf32, #tpu.memory_space<vmem>>, vector<1x1x16xf32>
    %222 = vector.shape_cast %221 : vector<1x1x16xf32> to vector<1x16xf32>
    %223 = vector.broadcast %222 : vector<1x16xf32> to vector<16x16xf32>
    %224 = arith.addf %220, %223 : vector<16x16xf32>
    %225 = arith.addf %120, %224 : vector<16x16xf32>
    %c2_114 = arith.constant 2 : index
    %c1_115 = arith.constant 1 : index
    %c0_116 = arith.constant 0 : index
    %226 = vector.load %arg14[%c2_114, %c1_115, %c0_116] : memref<4x3x16xf32, #tpu.memory_space<vmem>>, vector<1x1x16xf32>
    %227 = vector.shape_cast %226 : vector<1x1x16xf32> to vector<1x16xf32>
    %c2_117 = arith.constant 2 : index
    %c2_118 = arith.constant 2 : index
    %c0_119 = arith.constant 0 : index
    %228 = vector.load %arg14[%c2_117, %c2_118, %c0_119] : memref<4x3x16xf32, #tpu.memory_space<vmem>>, vector<1x1x16xf32>
    %229 = vector.shape_cast %228 : vector<1x1x16xf32> to vector<1x16xf32>
    %cst_120 = arith.constant dense<0.000000e+00> : vector<16xf32>
    %230 = vector.multi_reduction <add>, %225, %cst_120 [1] : vector<16x16xf32> to vector<16xf32>
    %231 = vector.shape_cast %230 : vector<16xf32> to vector<16x1xf32>
    %232 = arith.mulf %225, %225 : vector<16x16xf32>
    %cst_121 = arith.constant dense<0.000000e+00> : vector<16xf32>
    %233 = vector.multi_reduction <add>, %232, %cst_121 [1] : vector<16x16xf32> to vector<16xf32>
    %234 = vector.shape_cast %233 : vector<16xf32> to vector<16x1xf32>
    %cst_122 = arith.constant 6.250000e-02 : f32
    %235 = vector.broadcast %cst_122 : f32 to vector<16x1xf32>
    %236 = arith.mulf %231, %235 : vector<16x1xf32>
    %cst_123 = arith.constant 6.250000e-02 : f32
    %237 = vector.broadcast %cst_123 : f32 to vector<16x1xf32>
    %238 = arith.mulf %234, %237 : vector<16x1xf32>
    %239 = arith.mulf %236, %236 : vector<16x1xf32>
    %240 = arith.subf %238, %239 : vector<16x1xf32>
    %cst_124 = arith.constant 0.000000e+00 : f32
    %241 = vector.broadcast %cst_124 : f32 to vector<16x1xf32>
    %242 = arith.maximumf %240, %241 : vector<16x1xf32>
    %243 = vector.broadcast %236 : vector<16x1xf32> to vector<16x16xf32>
    %244 = arith.subf %225, %243 : vector<16x16xf32>
    %cst_125 = arith.constant 9.99999974E-6 : f32
    %245 = vector.broadcast %cst_125 : f32 to vector<16x1xf32>
    %246 = arith.addf %242, %245 : vector<16x1xf32>
    %247 = math.rsqrt %246 : vector<16x1xf32>
    %248 = vector.broadcast %247 : vector<16x1xf32> to vector<16x16xf32>
    %249 = arith.mulf %244, %248 : vector<16x16xf32>
    %250 = vector.broadcast %227 : vector<1x16xf32> to vector<16x16xf32>
    %251 = arith.mulf %249, %250 : vector<16x16xf32>
    %252 = vector.broadcast %229 : vector<1x16xf32> to vector<16x16xf32>
    %253 = arith.addf %251, %252 : vector<16x16xf32>
    %cst_126 = arith.constant 0.000000e+00 : f32
    %254 = vector.broadcast %cst_126 : f32 to vector<16x16xf32>
    %255 = arith.maximumf %253, %254 : vector<16x16xf32>
    %cst_127 = arith.constant dense<0.000000e+00> : vector<32x16xf32>
    %256 = tpu.matmul %18, %255, %cst_127 {dimension_numbers = #tpu.dot_dimension_numbers<[1], [0], [0], [1], [0, 0, 1, 1], [], []>} : vector<32x16xf32>, vector<16x16xf32>, vector<32x16xf32> -> vector<32x16xf32>
    %257 = arith.addf %256, %46 : vector<32x16xf32>
    %cst_128 = arith.constant 0.000000e+00 : f32
    %258 = vector.broadcast %cst_128 : f32 to vector<32x16xf32>
    %259 = arith.maximumf %257, %258 : vector<32x16xf32>
    %cst_129 = arith.constant 1.000000e-07 : f32
    %260 = vector.broadcast %cst_129 : f32 to vector<32x16xf32>
    %261 = arith.addf %259, %260 : vector<32x16xf32>
    %c2_130 = arith.constant 2 : index
    %262 = memref.load %arg10[%c2_130] : memref<4xf32, #tpu.memory_space<smem>>
    %263 = vector.broadcast %262 : f32 to vector<32x16xf32>
    %264 = arith.mulf %261, %263 : vector<32x16xf32>
    %265 = vector.shape_cast %264 : vector<32x16xf32> to vector<1x32x16xf32>
    %cst_131 = arith.constant -1.000000e+30 : f32
    %266 = vector.shape_cast %32 : vector<16x32x1xi1> to vector<16x32x1xi1>
    %267 = vector.broadcast %266 : vector<16x32x1xi1> to vector<16x32x16xi1>
    %268 = vector.shape_cast %265 : vector<1x32x16xf32> to vector<1x32x16xf32>
    %269 = vector.broadcast %268 : vector<1x32x16xf32> to vector<16x32x16xf32>
    %270 = vector.broadcast %cst_131 : f32 to vector<16x32x16xf32>
    %271 = arith.select %267, %269, %270 : vector<16x32x16xi1>, vector<16x32x16xf32>
    %cst_132 = arith.constant dense<0xFF800000> : vector<16x16xf32>
    %272 = vector.multi_reduction <maximumf>, %271, %cst_132 [1] : vector<16x32x16xf32> to vector<16x16xf32>
    %cst_133 = arith.constant dense<0.000000e+00> : vector<32x16xf32>
    %273 = tpu.matmul %23, %272, %cst_133 {dimension_numbers = #tpu.dot_dimension_numbers<[1], [0], [0], [1], [0, 0, 1, 1], [], []>} : vector<32x16xf32>, vector<16x16xf32>, vector<32x16xf32> -> vector<32x16xf32>
    %274 = arith.subf %264, %273 : vector<32x16xf32>
    %cst_134 = arith.constant 0.000000e+00 : f32
    %275 = vector.broadcast %cst_134 : f32 to vector<32x16xf32>
    %276 = arith.minimumf %274, %275 : vector<32x16xf32>
    %277 = math.exp %276 : vector<32x16xf32>
    %cst_135 = arith.constant dense<0.000000e+00> : vector<16x16xf32>
    %278 = tpu.matmul %28, %277, %cst_135 {dimension_numbers = #tpu.dot_dimension_numbers<[1], [0], [0], [1], [0, 0, 1, 1], [], []>} : vector<16x32xf32>, vector<32x16xf32>, vector<16x16xf32> -> vector<16x16xf32>
    %279 = arith.mulf %277, %261 : vector<32x16xf32>
    %cst_136 = arith.constant dense<0.000000e+00> : vector<16x16xf32>
    %280 = tpu.matmul %28, %279, %cst_136 {dimension_numbers = #tpu.dot_dimension_numbers<[1], [0], [0], [1], [0, 0, 1, 1], [], []>} : vector<16x32xf32>, vector<32x16xf32>, vector<16x16xf32> -> vector<16x16xf32>
    %cst_137 = arith.constant 1.000000e-16 : f32
    %281 = vector.broadcast %cst_137 : f32 to vector<16x16xf32>
    %282 = arith.maximumf %278, %281 : vector<16x16xf32>
    %283 = tpu.reciprocal %282 {approx = true} : vector<16x16xf32> -> vector<16x16xf32>
    %284 = arith.mulf %280, %283 : vector<16x16xf32>
    %285 = arith.addf %284, %255 : vector<16x16xf32>
    %c2_138 = arith.constant 2 : index
    %c0_139 = arith.constant 0 : index
    %c0_140 = arith.constant 0 : index
    %286 = vector.load %arg11[%c2_138, %c0_139, %c0_140] : memref<4x16x32xf32, #tpu.memory_space<vmem>>, vector<1x16x32xf32>
    %287 = vector.shape_cast %286 : vector<1x16x32xf32> to vector<16x32xf32>
    %cst_141 = arith.constant dense<0.000000e+00> : vector<16x32xf32>
    %288 = tpu.matmul %285, %287, %cst_141 {dimension_numbers = #tpu.dot_dimension_numbers<[1], [0], [0], [1], [0, 0, 1, 1], [], []>} : vector<16x16xf32>, vector<16x32xf32>, vector<16x32xf32> -> vector<16x32xf32>
    %c2_142 = arith.constant 2 : index
    %c0_143 = arith.constant 0 : index
    %c0_144 = arith.constant 0 : index
    %289 = vector.load %arg12[%c2_142, %c0_143, %c0_144] : memref<4x3x32xf32, #tpu.memory_space<vmem>>, vector<1x1x32xf32>
    %290 = vector.shape_cast %289 : vector<1x1x32xf32> to vector<1x32xf32>
    %291 = vector.broadcast %290 : vector<1x32xf32> to vector<16x32xf32>
    %292 = arith.addf %288, %291 : vector<16x32xf32>
    %c2_145 = arith.constant 2 : index
    %c1_146 = arith.constant 1 : index
    %c0_147 = arith.constant 0 : index
    %293 = vector.load %arg12[%c2_145, %c1_146, %c0_147] : memref<4x3x32xf32, #tpu.memory_space<vmem>>, vector<1x1x32xf32>
    %294 = vector.shape_cast %293 : vector<1x1x32xf32> to vector<1x32xf32>
    %c2_148 = arith.constant 2 : index
    %c2_149 = arith.constant 2 : index
    %c0_150 = arith.constant 0 : index
    %295 = vector.load %arg12[%c2_148, %c2_149, %c0_150] : memref<4x3x32xf32, #tpu.memory_space<vmem>>, vector<1x1x32xf32>
    %296 = vector.shape_cast %295 : vector<1x1x32xf32> to vector<1x32xf32>
    %cst_151 = arith.constant dense<0.000000e+00> : vector<16xf32>
    %297 = vector.multi_reduction <add>, %292, %cst_151 [1] : vector<16x32xf32> to vector<16xf32>
    %298 = vector.shape_cast %297 : vector<16xf32> to vector<16x1xf32>
    %299 = arith.mulf %292, %292 : vector<16x32xf32>
    %cst_152 = arith.constant dense<0.000000e+00> : vector<16xf32>
    %300 = vector.multi_reduction <add>, %299, %cst_152 [1] : vector<16x32xf32> to vector<16xf32>
    %301 = vector.shape_cast %300 : vector<16xf32> to vector<16x1xf32>
    %cst_153 = arith.constant 3.125000e-02 : f32
    %302 = vector.broadcast %cst_153 : f32 to vector<16x1xf32>
    %303 = arith.mulf %298, %302 : vector<16x1xf32>
    %cst_154 = arith.constant 3.125000e-02 : f32
    %304 = vector.broadcast %cst_154 : f32 to vector<16x1xf32>
    %305 = arith.mulf %301, %304 : vector<16x1xf32>
    %306 = arith.mulf %303, %303 : vector<16x1xf32>
    %307 = arith.subf %305, %306 : vector<16x1xf32>
    %cst_155 = arith.constant 0.000000e+00 : f32
    %308 = vector.broadcast %cst_155 : f32 to vector<16x1xf32>
    %309 = arith.maximumf %307, %308 : vector<16x1xf32>
    %310 = vector.broadcast %303 : vector<16x1xf32> to vector<16x32xf32>
    %311 = arith.subf %292, %310 : vector<16x32xf32>
    %cst_156 = arith.constant 9.99999974E-6 : f32
    %312 = vector.broadcast %cst_156 : f32 to vector<16x1xf32>
    %313 = arith.addf %309, %312 : vector<16x1xf32>
    %314 = math.rsqrt %313 : vector<16x1xf32>
    %315 = vector.broadcast %314 : vector<16x1xf32> to vector<16x32xf32>
    %316 = arith.mulf %311, %315 : vector<16x32xf32>
    %317 = vector.broadcast %294 : vector<1x32xf32> to vector<16x32xf32>
    %318 = arith.mulf %316, %317 : vector<16x32xf32>
    %319 = vector.broadcast %296 : vector<1x32xf32> to vector<16x32xf32>
    %320 = arith.addf %318, %319 : vector<16x32xf32>
    %cst_157 = arith.constant 0.000000e+00 : f32
    %321 = vector.broadcast %cst_157 : f32 to vector<16x32xf32>
    %322 = arith.maximumf %320, %321 : vector<16x32xf32>
    %c2_158 = arith.constant 2 : index
    %c0_159 = arith.constant 0 : index
    %c0_160 = arith.constant 0 : index
    %323 = vector.load %arg13[%c2_158, %c0_159, %c0_160] : memref<4x32x16xf32, #tpu.memory_space<vmem>>, vector<1x32x16xf32>
    %324 = vector.shape_cast %323 : vector<1x32x16xf32> to vector<32x16xf32>
    %cst_161 = arith.constant dense<0.000000e+00> : vector<16x16xf32>
    %325 = tpu.matmul %322, %324, %cst_161 {dimension_numbers = #tpu.dot_dimension_numbers<[1], [0], [0], [1], [0, 0, 1, 1], [], []>} : vector<16x32xf32>, vector<32x16xf32>, vector<16x16xf32> -> vector<16x16xf32>
    %c2_162 = arith.constant 2 : index
    %c0_163 = arith.constant 0 : index
    %c0_164 = arith.constant 0 : index
    %326 = vector.load %arg14[%c2_162, %c0_163, %c0_164] : memref<4x3x16xf32, #tpu.memory_space<vmem>>, vector<1x1x16xf32>
    %327 = vector.shape_cast %326 : vector<1x1x16xf32> to vector<1x16xf32>
    %328 = vector.broadcast %327 : vector<1x16xf32> to vector<16x16xf32>
    %329 = arith.addf %325, %328 : vector<16x16xf32>
    %330 = arith.addf %225, %329 : vector<16x16xf32>
    %c3 = arith.constant 3 : index
    %c1_165 = arith.constant 1 : index
    %c0_166 = arith.constant 0 : index
    %331 = vector.load %arg14[%c3, %c1_165, %c0_166] : memref<4x3x16xf32, #tpu.memory_space<vmem>>, vector<1x1x16xf32>
    %332 = vector.shape_cast %331 : vector<1x1x16xf32> to vector<1x16xf32>
    %c3_167 = arith.constant 3 : index
    %c2_168 = arith.constant 2 : index
    %c0_169 = arith.constant 0 : index
    %333 = vector.load %arg14[%c3_167, %c2_168, %c0_169] : memref<4x3x16xf32, #tpu.memory_space<vmem>>, vector<1x1x16xf32>
    %334 = vector.shape_cast %333 : vector<1x1x16xf32> to vector<1x16xf32>
    %cst_170 = arith.constant dense<0.000000e+00> : vector<16xf32>
    %335 = vector.multi_reduction <add>, %330, %cst_170 [1] : vector<16x16xf32> to vector<16xf32>
    %336 = vector.shape_cast %335 : vector<16xf32> to vector<16x1xf32>
    %337 = arith.mulf %330, %330 : vector<16x16xf32>
    %cst_171 = arith.constant dense<0.000000e+00> : vector<16xf32>
    %338 = vector.multi_reduction <add>, %337, %cst_171 [1] : vector<16x16xf32> to vector<16xf32>
    %339 = vector.shape_cast %338 : vector<16xf32> to vector<16x1xf32>
    %cst_172 = arith.constant 6.250000e-02 : f32
    %340 = vector.broadcast %cst_172 : f32 to vector<16x1xf32>
    %341 = arith.mulf %336, %340 : vector<16x1xf32>
    %cst_173 = arith.constant 6.250000e-02 : f32
    %342 = vector.broadcast %cst_173 : f32 to vector<16x1xf32>
    %343 = arith.mulf %339, %342 : vector<16x1xf32>
    %344 = arith.mulf %341, %341 : vector<16x1xf32>
    %345 = arith.subf %343, %344 : vector<16x1xf32>
    %cst_174 = arith.constant 0.000000e+00 : f32
    %346 = vector.broadcast %cst_174 : f32 to vector<16x1xf32>
    %347 = arith.maximumf %345, %346 : vector<16x1xf32>
    %348 = vector.broadcast %341 : vector<16x1xf32> to vector<16x16xf32>
    %349 = arith.subf %330, %348 : vector<16x16xf32>
    %cst_175 = arith.constant 9.99999974E-6 : f32
    %350 = vector.broadcast %cst_175 : f32 to vector<16x1xf32>
    %351 = arith.addf %347, %350 : vector<16x1xf32>
    %352 = math.rsqrt %351 : vector<16x1xf32>
    %353 = vector.broadcast %352 : vector<16x1xf32> to vector<16x16xf32>
    %354 = arith.mulf %349, %353 : vector<16x16xf32>
    %355 = vector.broadcast %332 : vector<1x16xf32> to vector<16x16xf32>
    %356 = arith.mulf %354, %355 : vector<16x16xf32>
    %357 = vector.broadcast %334 : vector<1x16xf32> to vector<16x16xf32>
    %358 = arith.addf %356, %357 : vector<16x16xf32>
    %cst_176 = arith.constant 0.000000e+00 : f32
    %359 = vector.broadcast %cst_176 : f32 to vector<16x16xf32>
    %360 = arith.maximumf %358, %359 : vector<16x16xf32>
    %cst_177 = arith.constant dense<0.000000e+00> : vector<32x16xf32>
    %361 = tpu.matmul %18, %360, %cst_177 {dimension_numbers = #tpu.dot_dimension_numbers<[1], [0], [0], [1], [0, 0, 1, 1], [], []>} : vector<32x16xf32>, vector<16x16xf32>, vector<32x16xf32> -> vector<32x16xf32>
    %362 = arith.addf %361, %46 : vector<32x16xf32>
    %cst_178 = arith.constant 0.000000e+00 : f32
    %363 = vector.broadcast %cst_178 : f32 to vector<32x16xf32>
    %364 = arith.maximumf %362, %363 : vector<32x16xf32>
    %cst_179 = arith.constant 1.000000e-07 : f32
    %365 = vector.broadcast %cst_179 : f32 to vector<32x16xf32>
    %366 = arith.addf %364, %365 : vector<32x16xf32>
    %c3_180 = arith.constant 3 : index
    %367 = memref.load %arg10[%c3_180] : memref<4xf32, #tpu.memory_space<smem>>
    %368 = vector.broadcast %367 : f32 to vector<32x16xf32>
    %369 = arith.mulf %366, %368 : vector<32x16xf32>
    %370 = vector.shape_cast %369 : vector<32x16xf32> to vector<1x32x16xf32>
    %cst_181 = arith.constant -1.000000e+30 : f32
    %371 = vector.shape_cast %32 : vector<16x32x1xi1> to vector<16x32x1xi1>
    %372 = vector.broadcast %371 : vector<16x32x1xi1> to vector<16x32x16xi1>
    %373 = vector.shape_cast %370 : vector<1x32x16xf32> to vector<1x32x16xf32>
    %374 = vector.broadcast %373 : vector<1x32x16xf32> to vector<16x32x16xf32>
    %375 = vector.broadcast %cst_181 : f32 to vector<16x32x16xf32>
    %376 = arith.select %372, %374, %375 : vector<16x32x16xi1>, vector<16x32x16xf32>
    %cst_182 = arith.constant dense<0xFF800000> : vector<16x16xf32>
    %377 = vector.multi_reduction <maximumf>, %376, %cst_182 [1] : vector<16x32x16xf32> to vector<16x16xf32>
    %cst_183 = arith.constant dense<0.000000e+00> : vector<32x16xf32>
    %378 = tpu.matmul %23, %377, %cst_183 {dimension_numbers = #tpu.dot_dimension_numbers<[1], [0], [0], [1], [0, 0, 1, 1], [], []>} : vector<32x16xf32>, vector<16x16xf32>, vector<32x16xf32> -> vector<32x16xf32>
    %379 = arith.subf %369, %378 : vector<32x16xf32>
    %cst_184 = arith.constant 0.000000e+00 : f32
    %380 = vector.broadcast %cst_184 : f32 to vector<32x16xf32>
    %381 = arith.minimumf %379, %380 : vector<32x16xf32>
    %382 = math.exp %381 : vector<32x16xf32>
    %cst_185 = arith.constant dense<0.000000e+00> : vector<16x16xf32>
    %383 = tpu.matmul %28, %382, %cst_185 {dimension_numbers = #tpu.dot_dimension_numbers<[1], [0], [0], [1], [0, 0, 1, 1], [], []>} : vector<16x32xf32>, vector<32x16xf32>, vector<16x16xf32> -> vector<16x16xf32>
    %384 = arith.mulf %382, %366 : vector<32x16xf32>
    %cst_186 = arith.constant dense<0.000000e+00> : vector<16x16xf32>
    %385 = tpu.matmul %28, %384, %cst_186 {dimension_numbers = #tpu.dot_dimension_numbers<[1], [0], [0], [1], [0, 0, 1, 1], [], []>} : vector<16x32xf32>, vector<32x16xf32>, vector<16x16xf32> -> vector<16x16xf32>
    %cst_187 = arith.constant 1.000000e-16 : f32
    %386 = vector.broadcast %cst_187 : f32 to vector<16x16xf32>
    %387 = arith.maximumf %383, %386 : vector<16x16xf32>
    %388 = tpu.reciprocal %387 {approx = true} : vector<16x16xf32> -> vector<16x16xf32>
    %389 = arith.mulf %385, %388 : vector<16x16xf32>
    %390 = arith.addf %389, %360 : vector<16x16xf32>
    %c3_188 = arith.constant 3 : index
    %c0_189 = arith.constant 0 : index
    %c0_190 = arith.constant 0 : index
    %391 = vector.load %arg11[%c3_188, %c0_189, %c0_190] : memref<4x16x32xf32, #tpu.memory_space<vmem>>, vector<1x16x32xf32>
    %392 = vector.shape_cast %391 : vector<1x16x32xf32> to vector<16x32xf32>
    %cst_191 = arith.constant dense<0.000000e+00> : vector<16x32xf32>
    %393 = tpu.matmul %390, %392, %cst_191 {dimension_numbers = #tpu.dot_dimension_numbers<[1], [0], [0], [1], [0, 0, 1, 1], [], []>} : vector<16x16xf32>, vector<16x32xf32>, vector<16x32xf32> -> vector<16x32xf32>
    %c3_192 = arith.constant 3 : index
    %c0_193 = arith.constant 0 : index
    %c0_194 = arith.constant 0 : index
    %394 = vector.load %arg12[%c3_192, %c0_193, %c0_194] : memref<4x3x32xf32, #tpu.memory_space<vmem>>, vector<1x1x32xf32>
    %395 = vector.shape_cast %394 : vector<1x1x32xf32> to vector<1x32xf32>
    %396 = vector.broadcast %395 : vector<1x32xf32> to vector<16x32xf32>
    %397 = arith.addf %393, %396 : vector<16x32xf32>
    %c3_195 = arith.constant 3 : index
    %c1_196 = arith.constant 1 : index
    %c0_197 = arith.constant 0 : index
    %398 = vector.load %arg12[%c3_195, %c1_196, %c0_197] : memref<4x3x32xf32, #tpu.memory_space<vmem>>, vector<1x1x32xf32>
    %399 = vector.shape_cast %398 : vector<1x1x32xf32> to vector<1x32xf32>
    %c3_198 = arith.constant 3 : index
    %c2_199 = arith.constant 2 : index
    %c0_200 = arith.constant 0 : index
    %400 = vector.load %arg12[%c3_198, %c2_199, %c0_200] : memref<4x3x32xf32, #tpu.memory_space<vmem>>, vector<1x1x32xf32>
    %401 = vector.shape_cast %400 : vector<1x1x32xf32> to vector<1x32xf32>
    %cst_201 = arith.constant dense<0.000000e+00> : vector<16xf32>
    %402 = vector.multi_reduction <add>, %397, %cst_201 [1] : vector<16x32xf32> to vector<16xf32>
    %403 = vector.shape_cast %402 : vector<16xf32> to vector<16x1xf32>
    %404 = arith.mulf %397, %397 : vector<16x32xf32>
    %cst_202 = arith.constant dense<0.000000e+00> : vector<16xf32>
    %405 = vector.multi_reduction <add>, %404, %cst_202 [1] : vector<16x32xf32> to vector<16xf32>
    %406 = vector.shape_cast %405 : vector<16xf32> to vector<16x1xf32>
    %cst_203 = arith.constant 3.125000e-02 : f32
    %407 = vector.broadcast %cst_203 : f32 to vector<16x1xf32>
    %408 = arith.mulf %403, %407 : vector<16x1xf32>
    %cst_204 = arith.constant 3.125000e-02 : f32
    %409 = vector.broadcast %cst_204 : f32 to vector<16x1xf32>
    %410 = arith.mulf %406, %409 : vector<16x1xf32>
    %411 = arith.mulf %408, %408 : vector<16x1xf32>
    %412 = arith.subf %410, %411 : vector<16x1xf32>
    %cst_205 = arith.constant 0.000000e+00 : f32
    %413 = vector.broadcast %cst_205 : f32 to vector<16x1xf32>
    %414 = arith.maximumf %412, %413 : vector<16x1xf32>
    %415 = vector.broadcast %408 : vector<16x1xf32> to vector<16x32xf32>
    %416 = arith.subf %397, %415 : vector<16x32xf32>
    %cst_206 = arith.constant 9.99999974E-6 : f32
    %417 = vector.broadcast %cst_206 : f32 to vector<16x1xf32>
    %418 = arith.addf %414, %417 : vector<16x1xf32>
    %419 = math.rsqrt %418 : vector<16x1xf32>
    %420 = vector.broadcast %419 : vector<16x1xf32> to vector<16x32xf32>
    %421 = arith.mulf %416, %420 : vector<16x32xf32>
    %422 = vector.broadcast %399 : vector<1x32xf32> to vector<16x32xf32>
    %423 = arith.mulf %421, %422 : vector<16x32xf32>
    %424 = vector.broadcast %401 : vector<1x32xf32> to vector<16x32xf32>
    %425 = arith.addf %423, %424 : vector<16x32xf32>
    %cst_207 = arith.constant 0.000000e+00 : f32
    %426 = vector.broadcast %cst_207 : f32 to vector<16x32xf32>
    %427 = arith.maximumf %425, %426 : vector<16x32xf32>
    %c3_208 = arith.constant 3 : index
    %c0_209 = arith.constant 0 : index
    %c0_210 = arith.constant 0 : index
    %428 = vector.load %arg13[%c3_208, %c0_209, %c0_210] : memref<4x32x16xf32, #tpu.memory_space<vmem>>, vector<1x32x16xf32>
    %429 = vector.shape_cast %428 : vector<1x32x16xf32> to vector<32x16xf32>
    %cst_211 = arith.constant dense<0.000000e+00> : vector<16x16xf32>
    %430 = tpu.matmul %427, %429, %cst_211 {dimension_numbers = #tpu.dot_dimension_numbers<[1], [0], [0], [1], [0, 0, 1, 1], [], []>} : vector<16x32xf32>, vector<32x16xf32>, vector<16x16xf32> -> vector<16x16xf32>
    %c3_212 = arith.constant 3 : index
    %c0_213 = arith.constant 0 : index
    %c0_214 = arith.constant 0 : index
    %431 = vector.load %arg14[%c3_212, %c0_213, %c0_214] : memref<4x3x16xf32, #tpu.memory_space<vmem>>, vector<1x1x16xf32>
    %432 = vector.shape_cast %431 : vector<1x1x16xf32> to vector<1x16xf32>
    %433 = vector.broadcast %432 : vector<1x16xf32> to vector<16x16xf32>
    %434 = arith.addf %430, %433 : vector<16x16xf32>
    %435 = arith.addf %330, %434 : vector<16x16xf32>
    %c0_215 = arith.constant 0 : index
    %c1_216 = arith.constant 1 : index
    %c0_217 = arith.constant 0 : index
    %436 = vector.load %arg14[%c0_215, %c1_216, %c0_217] : memref<4x3x16xf32, #tpu.memory_space<vmem>>, vector<1x1x16xf32>
    %437 = vector.shape_cast %436 : vector<1x1x16xf32> to vector<1x16xf32>
    %c0_218 = arith.constant 0 : index
    %c2_219 = arith.constant 2 : index
    %c0_220 = arith.constant 0 : index
    %438 = vector.load %arg14[%c0_218, %c2_219, %c0_220] : memref<4x3x16xf32, #tpu.memory_space<vmem>>, vector<1x1x16xf32>
    %439 = vector.shape_cast %438 : vector<1x1x16xf32> to vector<1x16xf32>
    %cst_221 = arith.constant dense<0.000000e+00> : vector<16xf32>
    %440 = vector.multi_reduction <add>, %435, %cst_221 [1] : vector<16x16xf32> to vector<16xf32>
    %441 = vector.shape_cast %440 : vector<16xf32> to vector<16x1xf32>
    %442 = arith.mulf %435, %435 : vector<16x16xf32>
    %cst_222 = arith.constant dense<0.000000e+00> : vector<16xf32>
    %443 = vector.multi_reduction <add>, %442, %cst_222 [1] : vector<16x16xf32> to vector<16xf32>
    %444 = vector.shape_cast %443 : vector<16xf32> to vector<16x1xf32>
    %cst_223 = arith.constant 6.250000e-02 : f32
    %445 = vector.broadcast %cst_223 : f32 to vector<16x1xf32>
    %446 = arith.mulf %441, %445 : vector<16x1xf32>
    %cst_224 = arith.constant 6.250000e-02 : f32
    %447 = vector.broadcast %cst_224 : f32 to vector<16x1xf32>
    %448 = arith.mulf %444, %447 : vector<16x1xf32>
    %449 = arith.mulf %446, %446 : vector<16x1xf32>
    %450 = arith.subf %448, %449 : vector<16x1xf32>
    %cst_225 = arith.constant 0.000000e+00 : f32
    %451 = vector.broadcast %cst_225 : f32 to vector<16x1xf32>
    %452 = arith.maximumf %450, %451 : vector<16x1xf32>
    %453 = vector.broadcast %446 : vector<16x1xf32> to vector<16x16xf32>
    %454 = arith.subf %435, %453 : vector<16x16xf32>
    %cst_226 = arith.constant 9.99999974E-6 : f32
    %455 = vector.broadcast %cst_226 : f32 to vector<16x1xf32>
    %456 = arith.addf %452, %455 : vector<16x1xf32>
    %457 = math.rsqrt %456 : vector<16x1xf32>
    %458 = vector.broadcast %457 : vector<16x1xf32> to vector<16x16xf32>
    %459 = arith.mulf %454, %458 : vector<16x16xf32>
    %460 = vector.broadcast %437 : vector<1x16xf32> to vector<16x16xf32>
    %461 = arith.mulf %459, %460 : vector<16x16xf32>
    %462 = vector.broadcast %439 : vector<1x16xf32> to vector<16x16xf32>
    %463 = arith.addf %461, %462 : vector<16x16xf32>
    %cst_227 = arith.constant 0.000000e+00 : f32
    %464 = vector.broadcast %cst_227 : f32 to vector<16x16xf32>
    %465 = arith.maximumf %463, %464 : vector<16x16xf32>
    %466 = vector.shape_cast %465 : vector<16x16xf32> to vector<1x16x16xf32>
    %cst_228 = arith.constant 0.000000e+00 : f32
    %467 = vector.shape_cast %36 : vector<2x16x1xi1> to vector<2x16x1xi1>
    %468 = vector.broadcast %467 : vector<2x16x1xi1> to vector<2x16x16xi1>
    %469 = vector.shape_cast %466 : vector<1x16x16xf32> to vector<1x16x16xf32>
    %470 = vector.broadcast %469 : vector<1x16x16xf32> to vector<2x16x16xf32>
    %471 = vector.broadcast %cst_228 : f32 to vector<2x16x16xf32>
    %472 = arith.select %468, %470, %471 : vector<2x16x16xi1>, vector<2x16x16xf32>
    %cst_229 = arith.constant dense<0xFF800000> : vector<2x16xf32>
    %473 = vector.multi_reduction <maximumf>, %472, %cst_229 [1] : vector<2x16x16xf32> to vector<2x16xf32>
    %cst_230 = arith.constant dense<0.000000e+00> : vector<2x16xf32>
    %474 = vector.multi_reduction <add>, %472, %cst_230 [1] : vector<2x16x16xf32> to vector<2x16xf32>
    %475 = vector.broadcast %13 : vector<2x1xf32> to vector<2x16xf32>
    %476 = arith.mulf %474, %475 : vector<2x16xf32>
    %c0_231 = arith.constant 0 : index
    %c0_232 = arith.constant 0 : index
    %477 = vector.load %arg15[%c0_231, %c0_232] : memref<33x128xf32, #tpu.memory_space<vmem>>, vector<16x128xf32>
    %cst_233 = arith.constant dense<0.000000e+00> : vector<2x128xf32>
    %478 = tpu.matmul %473, %477, %cst_233 {dimension_numbers = #tpu.dot_dimension_numbers<[1], [0], [0], [1], [0, 0, 1, 1], [], []>} : vector<2x16xf32>, vector<16x128xf32>, vector<2x128xf32> -> vector<2x128xf32>
    %c16 = arith.constant 16 : index
    %c0_234 = arith.constant 0 : index
    %479 = vector.load %arg15[%c16, %c0_234] : memref<33x128xf32, #tpu.memory_space<vmem>>, vector<16x128xf32>
    %cst_235 = arith.constant dense<0.000000e+00> : vector<2x128xf32>
    %480 = tpu.matmul %476, %479, %cst_235 {dimension_numbers = #tpu.dot_dimension_numbers<[1], [0], [0], [1], [0, 0, 1, 1], [], []>} : vector<2x16xf32>, vector<16x128xf32>, vector<2x128xf32> -> vector<2x128xf32>
    %481 = arith.addf %478, %480 : vector<2x128xf32>
    %c32 = arith.constant 32 : index
    %c0_236 = arith.constant 0 : index
    %482 = vector.load %arg15[%c32, %c0_236] : memref<33x128xf32, #tpu.memory_space<vmem>>, vector<1x128xf32>
    %483 = vector.broadcast %482 : vector<1x128xf32> to vector<2x128xf32>
    %484 = arith.addf %481, %483 : vector<2x128xf32>
    %cst_237 = arith.constant 0.000000e+00 : f32
    %485 = vector.broadcast %cst_237 : f32 to vector<2x128xf32>
    %486 = arith.maximumf %484, %485 : vector<2x128xf32>
    %c0_238 = arith.constant 0 : index
    %c0_239 = arith.constant 0 : index
    %487 = vector.load %arg16[%c0_238, %c0_239] : memref<129x128xf32, #tpu.memory_space<vmem>>, vector<128x128xf32>
    %cst_240 = arith.constant dense<0.000000e+00> : vector<2x128xf32>
    %488 = tpu.matmul %486, %487, %cst_240 {dimension_numbers = #tpu.dot_dimension_numbers<[1], [0], [0], [1], [0, 0, 1, 1], [], []>} : vector<2x128xf32>, vector<128x128xf32>, vector<2x128xf32> -> vector<2x128xf32>
    %c128 = arith.constant 128 : index
    %c0_241 = arith.constant 0 : index
    %489 = vector.load %arg16[%c128, %c0_241] : memref<129x128xf32, #tpu.memory_space<vmem>>, vector<1x128xf32>
    %490 = vector.broadcast %489 : vector<1x128xf32> to vector<2x128xf32>
    %491 = arith.addf %488, %490 : vector<2x128xf32>
    %c0_242 = arith.constant 0 : index
    %c0_243 = arith.constant 0 : index
    %c0_244 = arith.constant 0 : index
    %492 = vector.load %arg17[%c0_242, %c0_243, %c0_244] : memref<1x2x128xf32, #tpu.memory_space<vmem>>, vector<1x2x128xf32>
    %493 = vector.shape_cast %492 : vector<1x2x128xf32> to vector<2x128xf32>
    %494 = vector.shape_cast %491 : vector<2x128xf32> to vector<1x2x128xf32>
    tpu.vector_store %arg17[%c0_242, %c0_243, %c0_244], %494 {strides = array<i32>} : memref<1x2x128xf32, #tpu.memory_space<vmem>>, vector<1x2x128xf32>,
    return
  }
  func.func @transform_0(%arg0: i32) -> (i32, i32, i32) {
    %c0_i32 = arith.constant 0 : i32
    %c0_i32_0 = arith.constant 0 : i32
    %c0_i32_1 = arith.constant 0 : i32
    return %arg0, %c0_i32, %c0_i32_0 : i32, i32, i32
  }
  func.func @transform_1(%arg0: i32) -> (i32, i32, i32) {
    %c0_i32 = arith.constant 0 : i32
    %c0_i32_0 = arith.constant 0 : i32
    %c0_i32_1 = arith.constant 0 : i32
    return %arg0, %c0_i32, %c0_i32_0 : i32, i32, i32
  }
  func.func @transform_2(%arg0: i32) -> (i32, i32, i32) {
    %c0_i32 = arith.constant 0 : i32
    %c0_i32_0 = arith.constant 0 : i32
    %c0_i32_1 = arith.constant 0 : i32
    return %arg0, %c0_i32, %c0_i32_0 : i32, i32, i32
  }
  func.func @transform_3(%arg0: i32) -> (i32, i32, i32) {
    %c0_i32 = arith.constant 0 : i32
    %c0_i32_0 = arith.constant 0 : i32
    %c0_i32_1 = arith.constant 0 : i32
    return %arg0, %c0_i32, %c0_i32_0 : i32, i32, i32
  }
  func.func @transform_4(%arg0: i32) -> (i32, i32, i32) {
    %c0_i32 = arith.constant 0 : i32
    %c0_i32_0 = arith.constant 0 : i32
    %c0_i32_1 = arith.constant 0 : i32
    return %arg0, %c0_i32, %c0_i32_0 : i32, i32, i32
  }
  func.func @transform_5(%arg0: i32) -> (i32, i32, i32) {
    %c0_i32 = arith.constant 0 : i32
    %c0_i32_0 = arith.constant 0 : i32
    %c0_i32_1 = arith.constant 0 : i32
    return %arg0, %c0_i32, %c0_i32_0 : i32, i32, i32
  }
  func.func @transform_6(%arg0: i32) -> (i32, i32, i32) {
    %c0_i32 = arith.constant 0 : i32
    %c0_i32_0 = arith.constant 0 : i32
    %c0_i32_1 = arith.constant 0 : i32
    return %arg0, %c0_i32, %c0_i32_0 : i32, i32, i32
  }
  func.func @transform_7(%arg0: i32) -> (i32, i32) {
    %c0_i32 = arith.constant 0 : i32
    %c0_i32_0 = arith.constant 0 : i32
    %c0_i32_1 = arith.constant 0 : i32
    return %c0_i32, %c0_i32_0 : i32, i32
  }
  func.func @transform_8(%arg0: i32) -> (i32, i32) {
    %c0_i32 = arith.constant 0 : i32
    %c0_i32_0 = arith.constant 0 : i32
    %c0_i32_1 = arith.constant 0 : i32
    return %c0_i32, %c0_i32_0 : i32, i32
  }
  func.func @transform_9(%arg0: i32) -> i32 {
    %c0_i32 = arith.constant 0 : i32
    %c0_i32_0 = arith.constant 0 : i32
    return %c0_i32 : i32
  }
  func.func @transform_10(%arg0: i32) -> (i32, i32, i32) {
    %c0_i32 = arith.constant 0 : i32
    %c0_i32_0 = arith.constant 0 : i32
    %c0_i32_1 = arith.constant 0 : i32
    %c0_i32_2 = arith.constant 0 : i32
    return %c0_i32, %c0_i32_0, %c0_i32_1 : i32, i32, i32
  }
  func.func @transform_11(%arg0: i32) -> (i32, i32, i32) {
    %c0_i32 = arith.constant 0 : i32
    %c0_i32_0 = arith.constant 0 : i32
    %c0_i32_1 = arith.constant 0 : i32
    %c0_i32_2 = arith.constant 0 : i32
    return %c0_i32, %c0_i32_0, %c0_i32_1 : i32, i32, i32
  }
  func.func @transform_12(%arg0: i32) -> (i32, i32, i32) {
    %c0_i32 = arith.constant 0 : i32
    %c0_i32_0 = arith.constant 0 : i32
    %c0_i32_1 = arith.constant 0 : i32
    %c0_i32_2 = arith.constant 0 : i32
    return %c0_i32, %c0_i32_0, %c0_i32_1 : i32, i32, i32
  }
  func.func @transform_13(%arg0: i32) -> (i32, i32, i32) {
    %c0_i32 = arith.constant 0 : i32
    %c0_i32_0 = arith.constant 0 : i32
    %c0_i32_1 = arith.constant 0 : i32
    %c0_i32_2 = arith.constant 0 : i32
    return %c0_i32, %c0_i32_0, %c0_i32_1 : i32, i32, i32
  }
  func.func @transform_14(%arg0: i32) -> (i32, i32) {
    %c0_i32 = arith.constant 0 : i32
    %c0_i32_0 = arith.constant 0 : i32
    %c0_i32_1 = arith.constant 0 : i32
    return %c0_i32, %c0_i32_0 : i32, i32
  }
  func.func @transform_15(%arg0: i32) -> (i32, i32) {
    %c0_i32 = arith.constant 0 : i32
    %c0_i32_0 = arith.constant 0 : i32
    %c0_i32_1 = arith.constant 0 : i32
    return %c0_i32, %c0_i32_0 : i32, i32
  }
  func.func @transform_16(%arg0: i32) -> (i32, i32, i32) {
    %c0_i32 = arith.constant 0 : i32
    %c0_i32_0 = arith.constant 0 : i32
    %c0_i32_1 = arith.constant 0 : i32
    return %arg0, %c0_i32, %c0_i32_0 : i32, i32, i32
  }
}

</mosaic_0001>

<bundles_post_ra>
// kernel: actor_dqn_forward.1
= control target key start
LH: loop header
LB: loop body
LE: loop exit
PB: predicated region body
PF: predicated region fallthrough
CT: control target
= control target key end

     0   :  { %s9777_s0 = inlined_call_operand.vmem [shape: f32[4,16,8], index: 0, kind: input, shape index: {}]   ;;  %s9778_s1 = inlined_call_operand.vmem [shape: f32[4,32,6], index: 1, kind: input, shape index: {}]   ;;  %s9779_s2 = inlined_call_operand.vmem [shape: s32[4,32,1], index: 2, kind: input, shape index: {}]   ;;  %s9780_s3 = inlined_call_operand.vmem [shape: s32[4,32,1], index: 3, kind: input, shape index: {}]   ;;  %s9781_s4 = inlined_call_operand.vmem [shape: s32[4,1,32], index: 4, kind: input, shape index: {}]   ;;  %s9782_s5 = inlined_call_operand.vmem [shape: s32[4,16,1], index: 5, kind: input, shape index: {}]   ;;  %s9783_s6 = inlined_call_operand.vmem [shape: f32[4,2,1], index: 6, kind: input, shape index: {}]   ;;  %s9784_s7 = inlined_call_operand.vmem [shape: f32[9,16], index: 7, kind: input, shape index: {}]   ;;  %s9785_s8 = inlined_call_operand.vmem [shape: f32[7,16], index: 8, kind: input, shape index: {}]   ;;  %s9786_s9 = inlined_call_operand.vmem [shape: f32[4], index: 9, kind: input, shape index: {}]   ;;  %s9787_s10 = inlined_call_operand.vmem [shape: f32[4,16,32], index: 10, kind: input, shape index: {}]   ;;  %s9788_s11 = inlined_call_operand.vmem [shape: f32[4,3,32], index: 11, kind: input, shape index: {}]   ;;  %s9789_s12 = inlined_call_operand.vmem [shape: f32[4,32,16], index: 12, kind: input, shape index: {}]   ;;  %s9790_s13 = inlined_call_operand.vmem [shape: f32[4,3,16], index: 13, kind: input, shape index: {}]   ;;  %s9791_s14 = inlined_call_operand.vmem [shape: f32[33,128], index: 14, kind: input, shape index: {}]   ;;  %s9792_s15 = inlined_call_operand.vmem [shape: f32[129,128], index: 15, kind: input, shape index: {}]   ;;  %s9793_s16 = inlined_call_operand.hbm [shape: f32[4,2,128], index: 16, kind: output, shape index: {}]  }
   0x1   :  { %10028 = sst [smem:[#allocation109_spill]] %s9777_s0 }
   0x2   :  { %10029 = sst [smem:[#allocation110_spill]] %s9786_s9 }
   0x3   :  { %21 = vsyncpa [#allocation4], 0 }
   0x4   :  { %22 = vsyncpa [#allocation3], 0 }
   0x5   :  { %24 = vsyncpa [#allocation3 + $0x1], 0  ;;  %s6735_s21 = smov 0   ;;  %s6737_s22 = smov 0  }
   0x6   :  { %s6739_s23 = smov 0   ;;  %s6741_s24 = smov 0  }
   0x7 LB: > { %10030 = sst [smem:[#allocation8_spill]] %s6630_s21  ;;  %s6756_s25 = sadd.s32 4294967295, %s6642_s24   ;;  %s6642_s24 = sphi %s6741_s24, %s11035_s24   ;;  %s6638_s23 = sphi %s6739_s23, %s11037_s23   ;;  %s6634_s22 = sphi %s6737_s22, %s11039_s22   ;;  %s6630_s21 = sphi %s6735_s21, %s11038_s21  }
   0x8   : > { %10031 = sst [smem:[#allocation9_spill]] %s6638_s23  ;;  %s5604_s26 = sadd.s32 4294967294, %s6642_s24  }
   0x9   : > { %10032 = sst [smem:[#allocation10_spill]] %s6642_s24  ;;  %s6760_s27 = sadd.s32 1, %s6642_s24  }
   0xa   : > { %10033 = sst [smem:[#allocation11_spill]] %s6760_s27  ;;  %s408_s28 = sadd.s32 1, %s6638_s23 }
   0xb   : > { %s405_s29 = ssub.s32 %s6642_s24, %s6760_s27  ;;  %p418_p0 = scmp.ne.s32.totalorder %s6638_s23, %s6634_s22 }
   0xc   : > { %p406_p1 = scmp.eq.s32.totalorder %s405_s29, 0  ;;  %p419_p2 = scmp.eq.s32.totalorder %s6756_s25, 3 }
   0xd   : > { %p424_p3 = scmp.ne.s32.totalorder %s6634_s22, %s6630_s21  ;;  %p425_p4 = scmp.eq.s32.totalorder %s5604_s26, 3 }
   0xe   : > { %s6771_s30 = scalar_select %p406_p1, %s6638_s23, %s408_s28  }
   0xf   : > { %p6773_p5 = por %p419_p2, %p418_p0  ;;  %p6777_p6 = por %p425_p4, %p424_p3 }
  0x10   : > { %10034 = sst [smem:[#allocation12_spill]] %s6771_s30  ;;  %p5605_p7 = scmp.ge.s32.totalorder %s6642_s24, 1 }
  0x11   : > { %s10036_s17 = scalar_select %p6777_p6, 1, 0 }
  0x12   : > { %p432_p8 = scmp.lt.s32.totalorder %s6642_s24, 5  ;;  %p6439_p9 = scmp.eq.s32.totalorder %s6756_s25, 0 }
  0x13   : > { %10037 = sst [smem:[#allocation13_spill]] %s10036_s17  ;;  %s10039_s9 = sld [smem:[#allocation110_spill]] }
  0x14   : > { %p6784_p10 = pnand %p5605_p7, %p432_p8 }
  0x16   : > { %p6431_p11 = pneg %p6784_p10 }
  0x18   : > { %p6432_p12 = pnand %p6439_p9, %p6431_p11 }
  0x19   : > { %s451_s26 = sshll.u32 %s10039_s9, 4  ;;  %s452_s26 = int_to_ptr.vmem [resolvable:$true] %s451_s26 }
  0x1a   : > { %s6561_s28 = scalar_lea.vmem %s452_s26, 16  ;;  %p6563_p0 = pneg %p6432_p12 }
  0x1b   : > { %p6562_p13 = scmp.ne.s32.totalorder %s452_s26, %s6561_s28  ;;  %p6569_p3 = scmp.lt.s32.totalorder %s452_s26, %s452_s26 }
  0x1c   : > { %p6570_p4 = scmp.lt.s32.totalorder %s6561_s28, %s6561_s28 }
  0x1d   : > { %p6564_p1 = pnand %p6563_p0, %p6562_p13 }
  0x1e   : > { %p6571_p7 = por %p6570_p4, %p6569_p3 }
  0x1f   : > { %p6565_p2 = pneg %p6564_p1 }
  0x21   : > { %p6572_p8 = pnand %p6571_p7, %p6565_p2 }
  0x23   : > { %6575 = shalt.err (!%p6572_p8)
}
  0x24   : > { %s6644_s29 = smov [#allocation2]   ;;  %535 = sbr.rel (%p6784_p10) target bundleno = 7156 (0x1bf4), region = 84 }
  0x25   : > { %6434 = dma.vmem_to_smem (!%p6432_p12), %s452_s26, 16, %s6644_s29, [#allocation4]  }
  0x2b   : > { %6621 = dma.done.wait (%p6439_p9), [#allocation4], 16  }
  0x2c   : > { %6623 = vsyncadd (%p6439_p9), [#allocation4], 4294967280 }
  0x2d   : > { %541 = sfence }
  0x2e   : > { %v794_v0 = vld [vmem:[%s9784_s7] sm:$0xff]  ;;  %p613_p11 = scmp.lt.s32.totalorder %s6756_s25, 3  ;;  %v9800_v1 = vmov 0   ;;  %s10040_s21 = sld [smem:[#allocation109_spill]]  ;;  %vm800_vm0 = vcmask 64512  }
  0x2f   : > { %5949 = vmatprep.subr.mxu0 %v794_v0  ;;  %6480 = vset.pattern.permute.xlu1 %v9800_v1  ;;  %v882_v51 = vld [vmem:[%s9785_s8] sm:$0x3f]  ;;  %s1096_s19 = sld [smem:[#allocation2]] }
  0x30   : > { %6479 = vset.pattern.permute.xlu0 %v9800_v1  ;;  %5950 = vmatpush3.msra.mxu0 %v794_v0  ;;  %s6808_s18 = scalar_select %p613_p11, %s6756_s25, 3 }
  0x32   : > { %s6811_s26 = sshll.u32 %s6808_s18, 5  ;;  %s5777_s28 = sshll.u32 %s6808_s18, 4 }
  0x33   : > { %s627_s20 = scalar_lea.vmem %s9779_s2, %s6811_s26  ;;  %s6822_s23 = scalar_lea.vmem %s9780_s3, %s6811_s26 }
  0x34   : > { %v653_v2 = vld [vmem:[%s627_s20 + $0x10] sm:$0xff]  ;;  %v6825_v3 = vld [vmem:[%s6822_s23 + $0x8] sm:$0xff]  ;;  %s617_s24 = scalar_lea.vmem %s10040_s21, %s5777_s28  ;;  %v6833_v4 = vld [vmem:[%s6822_s23] sm:$0xff]  ;;  %s622_s27 = scalar_lea.vmem %s9778_s1, %s6811_s26 }
  0x35   : > { %672 = vperm.xlu1 %6480, %v653_v2   ;;  %v651_v5 = vld [vmem:[%s627_s20] sm:$0xff]  ;;  %v646_v7 = vld [vmem:[%s617_s24 + $0x8] sm:$0xff]  ;;  %v654_v8 = vld [vmem:[%s627_s20 + $0x18] sm:$0xff]  ;;  %vm727_vm1 = vcmp.eq.s32.totalorder %v6825_v3, 0  ;;  %vm726_vm2 = vcmp.eq.s32.totalorder %v6833_v4, 0  ;;  %vm731_vm3 = vcmp.eq.s32.totalorder %v6825_v3, 1  ;;  %s635_s21 = scalar_lea.vmem %s9781_s4, %s6808_s18  ;;  %s640_s9 = scalar_lea.vmem %s9782_s5, %s5777_s28 }
  0x36   : > { %666 = vperm.xlu0 %6479, %v651_v5   ;;  %v645_v6 = vld [vmem:[%s617_s24] sm:$0xff]  ;;  %v652_v9 = vld [vmem:[%s627_s20 + $0x8] sm:$0xff]  ;;  %v1103_v10 = vsel %vm727_vm1, 1, %v9800_v1  ;;  %v1102_v11 = vsel %vm726_vm2, 1, %v9800_v1  ;;  %vm730_vm4 = vcmp.eq.s32.totalorder %v6833_v4, 1  ;;  %v1107_v12 = vsel %vm731_vm3, 1, %v9800_v1 }
  0x37   : > { %5951 = vmatprep.mubr.msk.f32.mxu0 %vm800_vm0, %v645_v6  ;;  %v1106_v13 = vsel %vm730_vm4, 1, %v9800_v1  ;;  %vm759_vm5 = vcmp.eq.s32.totalorder %v6825_v3, 8  ;;  %vm758_vm6 = vcmp.eq.s32.totalorder %v6833_v4, 8  ;;  %vm763_vm7 = vcmp.eq.s32.totalorder %v6825_v3, 9  ;;  %v6857_v20 = vld [vmem:[%s6822_s23 + $0x10] sm:$0xff]  ;;  %v6888_v35 = vld [vmem:[%s6822_s23 + $0x18] sm:$0xff] }
  0x38   : > { %5952 = vmatmul.mubr.msk.f32.vlgmr.msra.gmra.mrb[0].mxu0 %vm800_vm0, %v646_v7  ;;  %v1135_v14 = vsel %vm759_vm5, 1, %v9800_v1  ;;  %v1134_v15 = vsel %vm758_vm6, 1, %v9800_v1  ;;  %vm762_vm8 = vcmp.eq.s32.totalorder %v6833_v4, 9  ;;  %v1139_v16 = vsel %vm763_vm7, 1, %v9800_v1  ;;  %v647_v54 = vld [vmem:[%s622_s27] sm:$0xff]  ;;  %v648_v56 = vld [vmem:[%s622_s27 + $0x8] sm:$0xff] }
  0x39   : > { %675 = vperm.xlu1 %6480, %v654_v8   ;;  %v1138_v17 = vsel %vm762_vm8, 1, %v9800_v1  ;;  %vm735_vm9 = vcmp.eq.s32.totalorder %v6825_v3, 2  ;;  %vm734_vm10 = vcmp.eq.s32.totalorder %v6833_v4, 2  ;;  %vm767_vm11 = vcmp.eq.s32.totalorder %v6825_v3, 10  ;;  %v649_v58 = vld [vmem:[%s622_s27 + $0x10] sm:$0xff]  ;;  %v650_v60 = vld [vmem:[%s622_s27 + $0x18] sm:$0xff] }
  0x3a   : > { %669 = vperm.xlu0 %6479, %v652_v9   ;;  %v1111_v18 = vsel %vm735_vm9, 1, %v9800_v1  ;;  %v1110_v19 = vsel %vm734_vm10, 1, %v9800_v1  ;;  %vm766_vm12 = vcmp.eq.s32.totalorder %v6833_v4, 10  ;;  %v1143_v21 = vsel %vm767_vm11, 1, %v9800_v1  ;;  %s5670_s27 = sld [smem:[#allocation2 + $0x1]]  ;;  %s5705_s26 = sld [smem:[#allocation2 + $0x2]] }
  0x3b   : > { %v1142_v22 = vsel %vm766_vm12, 1, %v9800_v1  ;;  %vm732_vm13 = vcmp.eq.s32.totalorder %v6857_v20, 1  ;;  %vm728_vm14 = vcmp.eq.s32.totalorder %v6857_v20, 0  ;;  %vm739_vm15 = vcmp.eq.s32.totalorder %v6825_v3, 3  ;;  %s5740_s20 = sld [smem:[#allocation2 + $0x3]]  ;;  %s5774_s24 = sshll.u32 %s6756_s25, 5 }
  0x3c   : > { %v1108_v23 = vsel %vm732_vm13, 1, %v9800_v1  ;;  %v1104_v24 = vsel %vm728_vm14, 1, %v9800_v1  ;;  %vm738_vm0 = vcmp.eq.s32.totalorder %v6833_v4, 3  ;;  %v1115_v25 = vsel %vm739_vm15, 1, %v9800_v1  ;;  %s9735_s17 = scalar_lea.hbm %s9793_s16, %s5774_s24  ;;  %s6649_s25 = smov [#allocation5]  }
  0x3d   : > { %1170 = vperm.xlu1 %6480, %v1103_v10   ;;  %v1114_v26 = vsel %vm738_vm0, 1, %v9800_v1  ;;  %vm764_vm1 = vcmp.eq.s32.totalorder %v6857_v20, 9  ;;  %vm760_vm2 = vcmp.eq.s32.totalorder %v6857_v20, 8  ;;  %vm771_vm3 = vcmp.eq.s32.totalorder %v6825_v3, 11 }
  0x3e   : > { %1167 = vperm.xlu0 %6479, %v1102_v11   ;;  %v1140_v27 = vsel %vm764_vm1, 1, %v9800_v1  ;;  %v1136_v28 = vsel %vm760_vm2, 1, %v9800_v1  ;;  %vm770_vm4 = vcmp.eq.s32.totalorder %v6833_v4, 11  ;;  %v1147_v29 = vsel %vm771_vm3, 1, %v9800_v1 }
  0x3f   : > { %v1146_v30 = vsel %vm770_vm4, 1, %v9800_v1  ;;  %vm742_vm5 = vcmp.eq.s32.totalorder %v6833_v4, 4  ;;  %vm736_vm6 = vcmp.eq.s32.totalorder %v6857_v20, 2  ;;  %vm768_vm7 = vcmp.eq.s32.totalorder %v6857_v20, 10 }
  0x40   : > { %v1118_v31 = vsel %vm742_vm5, 1, %v9800_v1  ;;  %v1112_v32 = vsel %vm736_vm6, 1, %v9800_v1  ;;  %vm743_vm8 = vcmp.eq.s32.totalorder %v6825_v3, 4  ;;  %v1144_v33 = vsel %vm768_vm7, 1, %v9800_v1 }
  0x41   : > { %1182 = vperm.xlu1 %6480, %v1107_v12   ;;  %v1119_v34 = vsel %vm743_vm8, 1, %v9800_v1  ;;  %vm775_vm9 = vcmp.eq.s32.totalorder %v6825_v3, 12  ;;  %vm774_vm10 = vcmp.eq.s32.totalorder %v6833_v4, 12  ;;  %vm733_vm11 = vcmp.eq.s32.totalorder %v6888_v35, 1 }
  0x42   : > { %1179 = vperm.xlu0 %6479, %v1106_v13   ;;  %v1151_v36 = vsel %vm775_vm9, 1, %v9800_v1  ;;  %v1150_v37 = vsel %vm774_vm10, 1, %v9800_v1  ;;  %vm729_vm12 = vcmp.eq.s32.totalorder %v6888_v35, 0  ;;  %v1109_v38 = vsel %vm733_vm11, 1, %v9800_v1 }
  0x43   : > { %v1105_v39 = vsel %vm729_vm12, 1, %v9800_v1  ;;  %vm746_vm13 = vcmp.eq.s32.totalorder %v6833_v4, 5  ;;  %vm740_vm14 = vcmp.eq.s32.totalorder %v6857_v20, 3  ;;  %vm761_vm15 = vcmp.eq.s32.totalorder %v6888_v35, 8 }
  0x44   : > { %v1122_v40 = vsel %vm746_vm13, 1, %v9800_v1  ;;  %v1116_v41 = vsel %vm740_vm14, 1, %v9800_v1  ;;  %vm747_vm0 = vcmp.eq.s32.totalorder %v6825_v3, 5  ;;  %v1137_v42 = vsel %vm761_vm15, 1, %v9800_v1 }
  0x45   : > { %1266 = vperm.xlu1 %6480, %v1135_v14   ;;  %v1123_v43 = vsel %vm747_vm0, 1, %v9800_v1  ;;  %vm772_vm1 = vcmp.eq.s32.totalorder %v6857_v20, 11  ;;  %vm765_vm2 = vcmp.eq.s32.totalorder %v6888_v35, 9  ;;  %vm779_vm3 = vcmp.eq.s32.totalorder %v6825_v3, 13 }
  0x46   : > { %1263 = vperm.xlu0 %6479, %v1134_v15   ;;  %v1148_v44 = vsel %vm772_vm1, 1, %v9800_v1  ;;  %v1141_v45 = vsel %vm765_vm2, 1, %v9800_v1  ;;  %vm778_vm4 = vcmp.eq.s32.totalorder %v6833_v4, 13  ;;  %v1155_v46 = vsel %vm779_vm3, 1, %v9800_v1 }
  0x47   : > { %v1154_v47 = vsel %vm778_vm4, 1, %v9800_v1  ;;  %vm744_vm5 = vcmp.eq.s32.totalorder %v6857_v20, 4  ;;  %vm737_vm6 = vcmp.eq.s32.totalorder %v6888_v35, 2  ;;  %vm751_vm7 = vcmp.eq.s32.totalorder %v6825_v3, 6 }
  0x48   : > { %v1120_v48 = vsel %vm744_vm5, 1, %v9800_v1  ;;  %v1113_v49 = vsel %vm737_vm6, 1, %v9800_v1  ;;  %vm750_vm8 = vcmp.eq.s32.totalorder %v6833_v4, 6  ;;  %v1127_v50 = vsel %vm751_vm7, 1, %v9800_v1 }
  0x49   : > { %1278 = vperm.xlu1 %6480, %v1139_v16   ;;  %vm901_vm9 = vcmask 1045504   ;;  %v1126_v52 = vsel %vm750_vm8, 1, %v9800_v1  ;;  %vm776_vm10 = vcmp.eq.s32.totalorder %v6857_v20, 12  ;;  %vm769_vm11 = vcmp.eq.s32.totalorder %v6888_v35, 10 }
  0x4a   : > { %1275 = vperm.xlu0 %6479, %v1138_v17   ;;  %5954 = vmatprep.subr.msk.mxu1 %vm901_vm9, %v882_v51  ;;  %v1152_v53 = vsel %vm776_vm10, 1, %v9800_v1  ;;  %vm888_vm12 = vcmask 48128   ;;  %v1145_v55 = vsel %vm769_vm11, 1, %v9800_v1  ;;  %vm783_vm13 = vcmp.eq.s32.totalorder %v6825_v3, 14 }
  0x4b   : > { %5955 = vmatpush3.msk.msra.mxu1 %vm901_vm9, %v882_v51  ;;  %5956 = vmatprep.mubr.msk.f32.mxu1 %vm888_vm12, %v647_v54  ;;  %vm782_vm14 = vcmp.eq.s32.totalorder %v6833_v4, 14  ;;  %v1159_v57 = vsel %vm783_vm13, 1, %v9800_v1  ;;  %vm748_vm15 = vcmp.eq.s32.totalorder %v6857_v20, 5  ;;  %vm741_vm0 = vcmp.eq.s32.totalorder %v6888_v35, 3 }
  0x4c   : > { %5957 = vmatmul.mubr.msk.f32.vlgmr.msra.gmra.mrb[0].mxu1 %vm888_vm12, %v648_v56  ;;  %v1158_v59 = vsel %vm782_vm14, 1, %v9800_v1  ;;  %v1124_v61 = vsel %vm748_vm15, 1, %v9800_v1  ;;  %v1117_v62 = vsel %vm741_vm0, 1, %v9800_v1  ;;  %vm755_vm1 = vcmp.eq.s32.totalorder %v6825_v3, 7 }
  0x4d   : > { %1194 = vperm.xlu1 %6480, %v1111_v18   ;;  %5959 = vmatprep.mubr.msk.f32.mxu1 %vm888_vm12, %v649_v58  ;;  %vm754_vm2 = vcmp.eq.s32.totalorder %v6833_v4, 7  ;;  %v1131_v63 = vsel %vm755_vm1, 1, %v9800_v1  ;;  %vm780_vm3 = vcmp.eq.s32.totalorder %v6857_v20, 13  ;;  %vm773_vm4 = vcmp.eq.s32.totalorder %v6888_v35, 11 }
  0x4e   : > { %1191 = vperm.xlu0 %6479, %v1110_v19   ;;  %v1130_v0 = vsel %vm754_vm2, 1, %v9800_v1  ;;  %v1156_v2 = vsel %vm780_vm3, 1, %v9800_v1  ;;  %v1149_v5 = vsel %vm773_vm4, 1, %v9800_v1  ;;  %vm787_vm5 = vcmp.eq.s32.totalorder %v6825_v3, 15 }
  0x4f   : > { %vm786_vm6 = vcmp.eq.s32.totalorder %v6833_v4, 15  ;;  %v1163_v6 = vsel %vm787_vm5, 1, %v9800_v1  ;;  %vm752_vm7 = vcmp.eq.s32.totalorder %v6857_v20, 6  ;;  %vm745_vm8 = vcmp.eq.s32.totalorder %v6888_v35, 4 }
  0x50   : > { %5960 = vmatmul.mubr.msk.f32.gmra.mrb[2].mxu1 %vm888_vm12, %v650_v60  ;;  %v1162_v7 = vsel %vm786_vm6, 1, %v9800_v1  ;;  %v1128_v8 = vsel %vm752_vm7, 1, %v9800_v1  ;;  %v1121_v9 = vsel %vm745_vm8, 1, %v9800_v1  ;;  %vm784_vm9 = vcmp.eq.s32.totalorder %v6857_v20, 14 }
  0x51   : > { %1290 = vperm.xlu1 %6480, %v1143_v21   ;;  %vm777_vm10 = vcmp.eq.s32.totalorder %v6888_v35, 12  ;;  %v1160_v10 = vsel %vm784_vm9, 1, %v9800_v1  ;;  %vm756_vm11 = vcmp.eq.s32.totalorder %v6857_v20, 7  ;;  %vm749_vm12 = vcmp.eq.s32.totalorder %v6888_v35, 5 }
  0x52   : > { %1287 = vperm.xlu0 %6479, %v1142_v22   ;;  %v1153_v11 = vsel %vm777_vm10, 1, %v9800_v1  ;;  %v1132_v12 = vsel %vm756_vm11, 1, %v9800_v1  ;;  %v1125_v13 = vsel %vm749_vm12, 1, %v9800_v1  ;;  %vm788_vm13 = vcmp.eq.s32.totalorder %v6857_v20, 15 }
  0x53   : > { %vm781_vm14 = vcmp.eq.s32.totalorder %v6888_v35, 13  ;;  %v1164_v14 = vsel %vm788_vm13, 1, %v9800_v1  ;;  %v9802_v15 = vlaneseq  ;;  %vm785_vm15 = vcmp.eq.s32.totalorder %v6888_v35, 14 }
  0x54   : > { %v1157_v16 = vsel %vm781_vm14, 1, %v9800_v1  ;;  %vm753_vm0 = vcmp.eq.s32.totalorder %v6888_v35, 6  ;;  %v1161_v18 = vsel %vm785_vm15, 1, %v9800_v1  ;;  %vm789_vm1 = vcmp.eq.s32.totalorder %v6888_v35, 15 }
  0x55   : > { %1185 = vperm.xlu1 %6480, %v1108_v23   ;;  %v6975_v17 = vand.u32 127, %v9802_v15  ;;  %v1129_v19 = vsel %vm753_vm0, 1, %v9800_v1  ;;  %vm757_vm2 = vcmp.eq.s32.totalorder %v6888_v35, 7  ;;  %vm9831_vm3 = vcmask 130048  }
  0x56   : > { %1173 = vperm.xlu0 %6479, %v1104_v24   ;;  %v1165_v22 = vsel %vm789_vm1, 1, %v9800_v1  ;;  %v9803_v23 = vmov 0.0  }
  0x57   : > { %10041 = vst [vmem:[#allocation14_spill] sm:$0xff] %v6975_v17 }
  0x59   : > { %1206 = vperm.xlu1 %6480, %v1115_v25   ;;  %v1133_v25 = vsel %vm757_vm2, 1, %v9800_v1 }
  0x5a   : > { %1203 = vperm.xlu0 %6479, %v1114_v26  }
  0x5d   : > { %1281 = vperm.xlu1 %6480, %v1140_v27  }
  0x5e   : > { %1269 = vperm.xlu0 %6479, %v1136_v28  }
  0x61   : > { %1302 = vperm.xlu1 %6480, %v1147_v29  }
  0x62   : > { %1299 = vperm.xlu0 %6479, %v1146_v30  }
  0x65   : > { %1215 = vperm.xlu1 %6480, %v1118_v31  }
  0x66   : > { %1197 = vperm.xlu0 %6479, %v1112_v32  }
  0x69   : > { %1293 = vperm.xlu1 %6480, %v1144_v33  }
  0x6a   : > { %1218 = vperm.xlu0 %6479, %v1119_v34  }
  0x6d   : > { %1314 = vperm.xlu1 %6480, %v1151_v36  }
  0x6e   : > { %1311 = vperm.xlu0 %6479, %v1150_v37  }
  0x71   : > { %1188 = vperm.xlu1 %6480, %v1109_v38  }
  0x72   : > { %1176 = vperm.xlu0 %6479, %v1105_v39  }
  0x75   : > { %1227 = vperm.xlu1 %6480, %v1122_v40  }
  0x76   : > { %1209 = vperm.xlu0 %6479, %v1116_v41  }
  0x79   : > { %1272 = vperm.xlu1 %6480, %v1137_v42  }
  0x7a   : > { %1230 = vperm.xlu0 %6479, %v1123_v43  }
  0x7d   : > { %1305 = vperm.xlu1 %6480, %v1148_v44   ;;  %v5633_v44 = vld [vmem:[%s9784_s7 + $0x8] ss:$0 sm:$0xff] }
  0x7e   : > { %1284 = vperm.xlu0 %6479, %v1141_v45  }
  0x81   : > { %1326 = vperm.xlu1 %6480, %v1155_v46  }
  0x82   : > { %1323 = vperm.xlu0 %6479, %v1154_v47  }
  0x85   : > { %1221 = vperm.xlu1 %6480, %v1120_v48  }
  0x86   : > { %1200 = vperm.xlu0 %6479, %v1113_v49  }
  0x89   : > { %1242 = vperm.xlu1 %6480, %v1127_v50  }
  0x8a   : > { %1239 = vperm.xlu0 %6479, %v1126_v52  }
  0x8d   : > { %1317 = vperm.xlu1 %6480, %v1152_v53  }
  0x8e   : > { %1296 = vperm.xlu0 %6479, %v1145_v55  }
  0x91   : > { %1338 = vperm.xlu1 %6480, %v1159_v57  }
  0x92   : > { %1335 = vperm.xlu0 %6479, %v1158_v59  }
  0x95   : > { %1233 = vperm.xlu1 %6480, %v1124_v61  }
  0x96   : > { %1212 = vperm.xlu0 %6479, %v1117_v62  }
  0x99   : > { %1254 = vperm.xlu1 %6480, %v1131_v63  }
  0x9a   : > { %1251 = vperm.xlu0 %6479, %v1130_v0  }
  0x9d   : > { %1329 = vperm.xlu1 %6480, %v1156_v2  }
  0x9e   : > { %1308 = vperm.xlu0 %6479, %v1149_v5  }
  0xa1   : > { %1350 = vperm.xlu1 %6480, %v1163_v6  }
  0xa2   : > { %1347 = vperm.xlu0 %6479, %v1162_v7  }
  0xa5   : > { %1245 = vperm.xlu1 %6480, %v1128_v8  }
  0xa6   : > { %1224 = vperm.xlu0 %6479, %v1121_v9  }
  0xa9   : > { %1341 = vperm.xlu1 %6480, %v1160_v10  }
  0xaa   : > { %1320 = vperm.xlu0 %6479, %v1153_v11  }
  0xad   : > { %1257 = vperm.xlu1 %6480, %v1132_v12  }
  0xae   : > { %1236 = vperm.xlu0 %6479, %v1125_v13  }
  0xb1   : > { %1353 = vperm.xlu1 %6480, %v1164_v14  }
  0xb2   : > { %1332 = vperm.xlu0 %6479, %v1157_v16  }
  0xb4   : > { %v673_v50 = vpop.permute.xlu1 %672 }
  0xb5   : > { %v667_v21 = vpop.permute.xlu0 %666  ;;  %1344 = vperm.xlu1 %6480, %v1161_v18   ;;  %vm679_vm5 = vcmp.eq.s32.totalorder %v673_v50, %v6975_v17 }
  0xb6   : > { %vm677_vm4 = vcmp.eq.s32.totalorder %v667_v21, %v6975_v17  ;;  %1248 = vperm.xlu0 %6479, %v1129_v19   ;;  %v7051_v53 = vsel %vm679_vm5, 1.0, %v9803_v23 }
  0xb7   : > { %v6984_v24 = vsel %vm677_vm4, 1.0, %v9803_v23  ;;  %10067 = vst [vmem:[#allocation40_spill] sm:$0xff] %v7051_v53 }
  0xb8   : > { %10042 = vst [vmem:[#allocation15_spill] sm:$0xff] %v6984_v24  ;;  %5966 = vmatprep.mubr.msk.f32.mxu0 %vm9831_vm3, %v6984_v24  ;;  %6026 = vmatprep.mubr.msk.f32.mxu1 %vm9831_vm3, %v6984_v24  ;;  %v676_v54 = vpop.permute.xlu1 %675 }
  0xb9   : > { %v670_v26 = vpop.permute.xlu0 %669  ;;  %1356 = vperm.xlu1 %6480, %v1165_v22   ;;  %vm680_vm7 = vcmp.eq.s32.totalorder %v676_v54, %v6975_v17 }
  0xba   : > { %1260 = vperm.xlu0 %6479, %v1133_v25   ;;  %vm678_vm6 = vcmp.eq.s32.totalorder %v670_v26, %v6975_v17  ;;  %v7064_v57 = vsel %vm680_vm7, 1.0, %v9803_v23 }
  0xbb   : > { %v7054_v55 = vsel %vm678_vm6, 1.0, %v9803_v23  ;;  %10070 = vst [vmem:[#allocation43_spill] sm:$0xff] %v7064_v57 }
  0xbc   : > { %10068 = vst [vmem:[#allocation41_spill] sm:$0xff] %v7054_v55  ;;  %v7092_v8 = vpop.permute.xlu1 %1170 }
  0xbd   : > { %v6991_v27 = vpop.permute.xlu0 %1167  ;;  %693 = vperm.xlu1 %6480, %v6825_v3   ;;  %10081 = vst [vmem:[#allocation54_spill] sm:$0xff] %v7092_v8  ;;  %vm9842_vm9 = vcmp.eq.s32.totalorder %v7092_v8, 1 }
  0xbe   : > { %10043 = vst [vmem:[#allocation16_spill] sm:$0xff] %v6991_v27  ;;  %690 = vperm.xlu0 %6479, %v6833_v4   ;;  %vm9843_vm10 = vcmp.eq.s32.totalorder %v6991_v27, 1 }
  0xc0   : > { %v7094_v9 = vpop.permute.xlu1 %1182 }
  0xc1   : > { %v6995_v28 = vpop.permute.xlu0 %1179  ;;  %699 = vperm.xlu1 %6480, %v6888_v35   ;;  %10082 = vst [vmem:[#allocation55_spill] sm:$0xff] %v7094_v9  ;;  %vm9841_vm11 = vcmp.eq.s32.totalorder %v7094_v9, 1 }
  0xc2   : > { %10044 = vst [vmem:[#allocation17_spill] sm:$0xff] %v6995_v28  ;;  %696 = vperm.xlu0 %6479, %v6857_v20   ;;  %vm9852_vm12 = vcmp.eq.s32.totalorder %v6995_v28, 1 }
  0xc4   : > { %v7096_v10 = vpop.permute.xlu1 %1266 }
  0xc5   : > { %v6999_v29 = vpop.permute.xlu0 %1263  ;;  %10083 = vst [vmem:[#allocation56_spill] sm:$0xff] %v7096_v10 }
  0xc6   : > { %10045 = vst [vmem:[#allocation18_spill] sm:$0xff] %v6999_v29  ;;  %vm1390_vm6 = vcmp.eq.s32.totalorder %v6999_v29, 1 }
  0xc8   : > { %v7098_v11 = vpop.permute.xlu1 %1278 }
  0xc9   : > { %v7001_v30 = vpop.permute.xlu0 %1275  ;;  %10084 = vst [vmem:[#allocation57_spill] sm:$0xff] %v7098_v11 }
  0xca   : > { %10046 = vst [vmem:[#allocation19_spill] sm:$0xff] %v7001_v30 }
  0xcc   : > { %v7100_v14 = vpop.permute.xlu1 %1194 }
  0xcd   : > { %v7003_v31 = vpop.permute.xlu0 %1191  ;;  %10085 = vst [vmem:[#allocation58_spill] sm:$0xff] %v7100_v14  ;;  %vm9848_vm13 = vcmp.eq.s32.totalorder %v7100_v14, 1 }
  0xce   : > { %10047 = vst [vmem:[#allocation20_spill] sm:$0xff] %v7003_v31  ;;  %vm9851_vm14 = vcmp.eq.s32.totalorder %v7003_v31, 1 }
  0xd0   : > { %v7102_v16 = vpop.permute.xlu1 %1290 }
  0xd1   : > { %v7005_v32 = vpop.permute.xlu0 %1287  ;;  %10086 = vst [vmem:[#allocation59_spill] sm:$0xff] %v7102_v16 }
  0xd2   : > { %10048 = vst [vmem:[#allocation21_spill] sm:$0xff] %v7005_v32 }
  0xd4   : > { %v7104_v21 = vpop.permute.xlu1 %1185 }
  0xd5   : > { %v7007_v33 = vpop.permute.xlu0 %1173  ;;  %10087 = vst [vmem:[#allocation60_spill] sm:$0xff] %v7104_v21 }
  0xd6   : > { %10049 = vst [vmem:[#allocation22_spill] sm:$0xff] %v7007_v33 }
  0xd8   : > { %v7106_v22 = vpop.permute.xlu1 %1206 }
  0xd9   : > { %v7009_v34 = vpop.permute.xlu0 %1203  ;;  %10088 = vst [vmem:[#allocation61_spill] sm:$0xff] %v7106_v22  ;;  %vm9856_vm15 = vcmp.eq.s32.totalorder %v7106_v22, 1 }
  0xda   : > { %10050 = vst [vmem:[#allocation23_spill] sm:$0xff] %v7009_v34  ;;  %vm9853_vm0 = vcmp.eq.s32.totalorder %v7009_v34, 1 }
  0xdc   : > { %v7108_v25 = vpop.permute.xlu1 %1281 }
  0xdd   : > { %v7011_v3 = vpop.permute.xlu0 %1269  ;;  %10089 = vst [vmem:[#allocation62_spill] sm:$0xff] %v7108_v25 }
  0xde   : > { %10051 = vst [vmem:[#allocation24_spill] sm:$0xff] %v7011_v3 }
  0xe0   : > { %v7110_v26 = vpop.permute.xlu1 %1302 }
  0xe1   : > { %v7013_v4 = vpop.permute.xlu0 %1299  ;;  %10090 = vst [vmem:[#allocation63_spill] sm:$0xff] %v7110_v26 }
  0xe2   : > { %10052 = vst [vmem:[#allocation25_spill] sm:$0xff] %v7013_v4 }
  0xe5   : > { %v7015_v36 = vpop.permute.xlu0 %1197 }
  0xe6   : > { %10053 = vst [vmem:[#allocation26_spill] sm:$0xff] %v7015_v36 }
  0xe9   : > { %v7017_v35 = vpop.permute.xlu0 %1218 }
  0xea   : > { %10054 = vst [vmem:[#allocation27_spill] sm:$0xff] %v7017_v35 }
  0xed   : > { %v7019_v20 = vpop.permute.xlu0 %1311 }
  0xee   : > { %10055 = vst [vmem:[#allocation28_spill] sm:$0xff] %v7019_v20 }
  0xf1   : > { %v7021_v37 = vpop.permute.xlu0 %1176 }
  0xf2   : > { %10056 = vst [vmem:[#allocation29_spill] sm:$0xff] %v7021_v37 }
  0xf5   : > { %v7023_v38 = vpop.permute.xlu0 %1209 }
  0xf6   : > { %10057 = vst [vmem:[#allocation30_spill] sm:$0xff] %v7023_v38 }
  0xf9   : > { %v7025_v39 = vpop.permute.xlu0 %1230 }
  0xfa   : > { %10058 = vst [vmem:[#allocation31_spill] sm:$0xff] %v7025_v39 }
  0xfd   : > { %v7027_v40 = vpop.permute.xlu0 %1284 }
  0xfe   : > { %10059 = vst [vmem:[#allocation32_spill] sm:$0xff] %v7027_v40 }
 0x101   : > { %v7029_v41 = vpop.permute.xlu0 %1323 }
 0x102   : > { %10060 = vst [vmem:[#allocation33_spill] sm:$0xff] %v7029_v41 }
 0x105   : > { %v7031_v42 = vpop.permute.xlu0 %1200 }
 0x106   : > { %10061 = vst [vmem:[#allocation34_spill] sm:$0xff] %v7031_v42 }
 0x109   : > { %v7033_v43 = vpop.permute.xlu0 %1239  ;;  %v10132_v27 = vld [vmem:[#allocation33_spill] sm:$0xff] }
 0x10a   : > { %10062 = vst [vmem:[#allocation35_spill] sm:$0xff] %v7033_v43  ;;  %vm9898_vm1 = vcmp.eq.s32.totalorder %v7033_v43, 1 }
 0x10b   : > { %v5953_v45 = vpop.f32.mrb[0].mxu0 }
 0x10c   : > { %v7038_v46 = vadd.f32 %v5953_v45, %v5633_v44  ;;  %v873_v47 = vpop.f32.mrb[1].mxu0 }
 0x10d   : > { %v7040_v48 = vadd.f32 %v5633_v44, %v873_v47  ;;  %v7042_v49 = vpop.permute.xlu0 %1296  ;;  %v7112_v44 = vpop.permute.xlu1 %1215 }
 0x10e   : > { %10063 = vst [vmem:[#allocation36_spill] sm:$0xff] %v7038_v46  ;;  %10065 = vst [vmem:[#allocation38_spill] sm:$0xff] %v7042_v49 }
 0x10f   : > { %10064 = vst [vmem:[#allocation37_spill] sm:$0xff] %v7040_v48  ;;  %v6251_v51 = vpack.c.bf16 %v7038_v46, %v7040_v48  ;;  %10091 = vst [vmem:[#allocation64_spill] sm:$0xff] %v7112_v44  ;;  %v5636_v48 = vld [vmem:[%s9785_s8 + $0x6] ss:$0 sm:$0xff] }
 0x111   : > { %6252 = vmatprep.subr.bf16.mxu0 %v6251_v51  ;;  %v7048_v52 = vpop.permute.xlu0 %1335  ;;  %v7114_v45 = vpop.permute.xlu1 %1293 }
 0x112   : > { %10066 = vst [vmem:[#allocation39_spill] sm:$0xff] %v7048_v52  ;;  %6254 = vmatpush3.bf16.msra.mxu0 %v6251_v51  ;;  %10092 = vst [vmem:[#allocation65_spill] sm:$0xff] %v7114_v45 }
 0x115   : > { %5967 = vmatmul.mubr.msk.f32.vlgmr.msra.gmra.mrb[2].mxu0 %vm9831_vm3, %v7054_v55  ;;  %v7059_v56 = vpop.permute.xlu0 %1212  ;;  %v7116_v47 = vpop.permute.xlu1 %1314 }
 0x116   : > { %10069 = vst [vmem:[#allocation42_spill] sm:$0xff] %v7059_v56  ;;  %5969 = vmatprep.mubr.msk.f32.mxu0 %vm9831_vm3, %v7051_v53  ;;  %10093 = vst [vmem:[#allocation66_spill] sm:$0xff] %v7116_v47 }
 0x119   : > { %5970 = vmatmul.mubr.msk.f32.gmra.mrb[4].mxu0 %vm9831_vm3, %v7064_v57  ;;  %v7068_v58 = vpop.permute.xlu0 %1251  ;;  %v7118_v50 = vpop.permute.xlu1 %1188 }
 0x11a   : > { %10071 = vst [vmem:[#allocation44_spill] sm:$0xff] %v7068_v58  ;;  %10094 = vst [vmem:[#allocation67_spill] sm:$0xff] %v7118_v50 }
 0x11d   : > { %v7070_v59 = vpop.permute.xlu0 %1308  ;;  %v7120_v51 = vpop.permute.xlu1 %1227 }
 0x11e   : > { %10072 = vst [vmem:[#allocation45_spill] sm:$0xff] %v7070_v59  ;;  %10095 = vst [vmem:[#allocation68_spill] sm:$0xff] %v7120_v51 }
 0x11f   : > { %v5958_v12 = vpop.f32.mrb[0].mxu1 }
 0x120   : > { %v971_v13 = vpop.f32.mrb[1].mxu1 }
 0x121   : > { %v7072_v60 = vpop.permute.xlu0 %1347  ;;  %v7122_v54 = vpop.permute.xlu1 %1272 }
 0x122   : > { %10073 = vst [vmem:[#allocation46_spill] sm:$0xff] %v7072_v60  ;;  %10096 = vst [vmem:[#allocation69_spill] sm:$0xff] %v7122_v54 }
 0x123   : > { %v5961_v18 = vpop.f32.mrb[2].mxu1 }
 0x124   : > { %v981_v19 = vpop.f32.mrb[3].mxu1 }
 0x125   : > { %v7074_v61 = vpop.permute.xlu0 %1224 }
 0x126   : > { %10074 = vst [vmem:[#allocation47_spill] sm:$0xff] %v7074_v61  ;;  %vm9881_vm4 = vcmp.eq.s32.totalorder %v7074_v61, 1 }
 0x129   : > { %v7076_v62 = vpop.permute.xlu0 %1320 }
 0x12a   : > { %10075 = vst [vmem:[#allocation48_spill] sm:$0xff] %v7076_v62  ;;  %v7154_v62 = vadd.f32 %v5961_v18, %v5636_v48 }
 0x12c   : > { %10110 = vst [vmem:[#allocation83_spill] sm:$0xff] %v7154_v62 }
 0x12d   : > { %v7078_v63 = vpop.permute.xlu0 %1236 }
 0x12e   : > { %10076 = vst [vmem:[#allocation49_spill] sm:$0xff] %v7078_v63  ;;  %vm9897_vm5 = vcmp.eq.s32.totalorder %v7078_v63, 1 }
 0x131   : > { %v7080_v0 = vpop.permute.xlu0 %1332 }
 0x132   : > { %10077 = vst [vmem:[#allocation50_spill] sm:$0xff] %v7080_v0  ;;  %v7151_v0 = vadd.f32 %v5636_v48, %v971_v13 }
 0x134   : > { %10109 = vst [vmem:[#allocation82_spill] sm:$0xff] %v7151_v0 }
 0x135   : > { %v7082_v2 = vpop.permute.xlu0 %1248 }
 0x136   : > { %10078 = vst [vmem:[#allocation51_spill] sm:$0xff] %v7082_v2 }
 0x139   : > { %v7084_v5 = vpop.permute.xlu0 %1260 }
 0x13a   : > { %10079 = vst [vmem:[#allocation52_spill] sm:$0xff] %v7084_v5  ;;  %vm1389_vm7 = vcmp.eq.s32.totalorder %v7084_v5, 1 }
 0x13d   : > { %v691_v6 = vpop.permute.xlu0 %690 }
 0x13e   : > { %vm701_vm8 = vcmp.eq.s32.totalorder %v691_v6, %v6975_v17  ;;  %v7124_v6 = vpop.permute.xlu1 %1305  ;;  %v7147_v17 = vadd.f32 %v5958_v12, %v5636_v48 }
 0x13f   : > { %v7088_v7 = vsel %vm701_vm8, 1.0, %v9803_v23  ;;  %10097 = vst [vmem:[#allocation70_spill] sm:$0xff] %v7124_v6 }
 0x140   : > { %10080 = vst [vmem:[#allocation53_spill] sm:$0xff] %v7088_v7  ;;  %5976 = vmatprep.mubr.msk.f32.mxu0 %vm9831_vm3, %v7088_v7  ;;  %10107 = vst [vmem:[#allocation80_spill] sm:$0xff] %v7147_v17 }
 0x142   : > { %v7126_v1 = vpop.permute.xlu1 %1326 }
 0x143   : > { %10098 = vst [vmem:[#allocation71_spill] sm:$0xff] %v7126_v1 }
 0x146   : > { %v7128_v15 = vpop.permute.xlu1 %1221 }
 0x147   : > { %10099 = vst [vmem:[#allocation72_spill] sm:$0xff] %v7128_v15 }
 0x14a   : > { %v7130_v23 = vpop.permute.xlu1 %1242 }
 0x14b   : > { %10100 = vst [vmem:[#allocation73_spill] sm:$0xff] %v7130_v23  ;;  %vm9901_vm3 = vcmp.eq.s32.totalorder %v7130_v23, 1 }
 0x14e   : > { %v7132_v24 = vpop.permute.xlu1 %1317 }
 0x14f   : > { %10101 = vst [vmem:[#allocation74_spill] sm:$0xff] %v7132_v24 }
 0x152   : > { %v7134_v57 = vpop.permute.xlu1 %1338 }
 0x153   : > { %10102 = vst [vmem:[#allocation75_spill] sm:$0xff] %v7134_v57 }
 0x156   : > { %v7136_v53 = vpop.permute.xlu1 %1233 }
 0x157   : > { %10103 = vst [vmem:[#allocation76_spill] sm:$0xff] %v7136_v53 }
 0x15a   : > { %v7138_v55 = vpop.permute.xlu1 %1254 }
 0x15b   : > { %10104 = vst [vmem:[#allocation77_spill] sm:$0xff] %v7138_v55 }
 0x15e   : > { %v7140_v7 = vpop.permute.xlu1 %1329 }
 0x15f   : > { %10105 = vst [vmem:[#allocation78_spill] sm:$0xff] %v7140_v7 }
 0x162   : > { %v7142_v46 = vpop.permute.xlu1 %1350 }
 0x163   : > { %10106 = vst [vmem:[#allocation79_spill] sm:$0xff] %v7142_v46  ;;  %v7157_v46 = vadd.f32 %v5636_v48, %v981_v19  ;;  %v1097_v48 = vstv %s1096_s19  ;;  %s6580_s19 = sshll.u32 %s6649_s25, 4  ;;  %s6581_s19 = int_to_ptr.vmem [resolvable:$false] %s6580_s19 }
 0x165   : > { %10111 = vst [vmem:[#allocation84_spill] sm:$0xff] %v7157_v46 }
 0x166   : > { %v7149_v60 = vpop.permute.xlu1 %1245 }
 0x167   : > { %10108 = vst [vmem:[#allocation81_spill] sm:$0xff] %v7149_v60  ;;  %vm9904_vm2 = vcmp.eq.s32.totalorder %v7149_v60, 1 }
 0x16a   : > { %v7164_v13 = vpop.permute.xlu1 %1341 }
 0x1e8   : > { %v5968_v57 = vpop.f32.mrb[2].mxu0 }
 0x1e9   : > { %v1075_v52 = vadd.f32 %v5968_v57, %v7147_v17  ;;  %v1069_v41 = vpop.f32.mrb[3].mxu0 }
 0x1ea   : > { %v1070_v7 = vadd.f32 %v1069_v41, %v7151_v0 }
 0x1eb   : > { %v1089_v12 = vmax.f32 %v1075_v52, 0.0 }
 0x1ec   : > { %v1088_v57 = vmax.f32 %v1070_v7, 0.0  ;;  %v5971_v18 = vpop.f32.mrb[4].mxu0 }
 0x1ed   : > { %v7167_v41 = vadd.f32 1e-07, %v1089_v12  ;;  %v1085_v19 = vadd.f32 %v5971_v18, %v7154_v62  ;;  %v1079_v0 = vpop.f32.mrb[5].mxu0 }
 0x1ee   : > { %v7172_v52 = vadd.f32 1e-07, %v1088_v57  ;;  %v1080_v17 = vadd.f32 %v1079_v0, %v7157_v46 }
 0x1ef   : > { %10112 = vst [vmem:[#allocation85_spill] sm:$0xff] %v7167_v41  ;;  %v1091_v7 = vmax.f32 %v1085_v19, 0.0  ;;  %v7183_v12 = vmul.f32 %v1097_v48, %v7167_v41  ;;  %v7197_v19 = vpop.permute.xlu1 %1257  ;;  %v10137_v41 = vld [vmem:[#allocation78_spill] sm:$0xff] }
 0x1f0   : > { %10113 = vst [vmem:[#allocation86_spill] sm:$0xff] %v7172_v52  ;;  %v7186_v0 = vmul.f32 %v1097_v48, %v7172_v52  ;;  %v1090_v57 = vmax.f32 %v1080_v17, 0.0  ;;  %10115 = vst [vmem:[#allocation88_spill] sm:$0xff] %v7197_v19  ;;  %vm1388_vm8 = vcmp.eq.s32.totalorder %v7197_v19, 1  ;;  %v10136_v52 = vld [vmem:[#allocation39_spill] sm:$0xff] }
 0x1f1   : > { %v7191_v18 = vadd.f32 1e-07, %v1091_v7  ;;  %v7223_v62 = vsel %vm9842_vm9, %v7183_v12, -1e+30  ;;  %v7246_v9 = vsel %vm9848_vm13, %v7183_v12, -1e+30 }
 0x1f2   : > { %v7199_v46 = vadd.f32 1e-07, %v1090_v57  ;;  %v7218_v57 = vsel %vm9843_vm10, %v7186_v0, -1e+30  ;;  %v7241_v8 = vsel %vm9851_vm14, %v7186_v0, -1e+30 }
 0x1f3   : > { %10114 = vst [vmem:[#allocation87_spill] sm:$0xff] %v7191_v18  ;;  %v7207_v17 = vmul.f32 %v1097_v48, %v7191_v18  ;;  %v7228_v18 = vsel %vm9841_vm11, %v7183_v12, -1e+30  ;;  %vm9921_vm11 = vcmp.eq.s32.totalorder %v7096_v10, 1  ;;  %vm9924_vm9 = vcmp.eq.s32.totalorder %v7011_v3, 1 }
 0x1f4   : > { %10116 = vst [vmem:[#allocation89_spill] sm:$0xff] %v7199_v46  ;;  %v7213_v7 = vmul.f32 %v1097_v48, %v7199_v46  ;;  %v7236_v48 = vsel %vm9852_vm12, %v7186_v0, -1e+30  ;;  %v7254_v28 = vsel %vm9853_vm0, %v7186_v0, -1e+30  ;;  %vm10117_vm13 = vcmp.eq.s32.totalorder %v7112_v44, 1 }
 0x1f5   : > { %v7259_v31 = vsel %vm9856_vm15, %v7183_v12, -1e+30  ;;  %v7264_v14 = vsel %vm10117_vm13, %v7186_v0, -1e+30  ;;  %vm10118_vm0 = vcmp.eq.s32.totalorder %v7021_v37, 1  ;;  %vm10119_vm15 = vcmp.eq.s32.totalorder %v7118_v50, 1 }
 0x1f6   : > { %v7272_v34 = vsel %vm10118_vm0, %v7207_v17, -1e+30  ;;  %v7277_v22 = vsel %vm10119_vm15, %v7207_v17, -1e+30  ;;  %vm10120_vm13 = vcmp.eq.s32.totalorder %v7017_v35, 1  ;;  %vm10121_vm0 = vcmp.eq.s32.totalorder %v7007_v33, 1 }
 0x1f7   : > { %v7282_v44 = vsel %vm10120_vm13, %v7183_v12, -1e+30  ;;  %v7290_v37 = vsel %vm10121_vm0, %v7213_v7, -1e+30  ;;  %vm10122_vm15 = vcmp.eq.s32.totalorder %v7104_v21, 1  ;;  %vm10123_vm13 = vcmp.eq.s32.totalorder %v7031_v42, 1 }
 0x1f8   : > { %v7295_v50 = vsel %vm10122_vm15, %v7213_v7, -1e+30  ;;  %v7300_v35 = vsel %vm10123_vm13, %v7207_v17, -1e+30  ;;  %vm10124_vm0 = vcmp.eq.s32.totalorder %v7015_v36, 1  ;;  %vm10125_vm15 = vcmp.eq.s32.totalorder %v7023_v38, 1 }
 0x1f9   : > { %v7308_v33 = vsel %vm10124_vm0, %v7213_v7, -1e+30  ;;  %v7313_v21 = vsel %vm10125_vm15, %v7213_v7, -1e+30  ;;  %vm10126_vm13 = vcmp.eq.s32.totalorder %v7059_v56, 1  ;;  %vm10003_vm14 = vcmp.eq.s32.totalorder %v7110_v26, 1 }
 0x1fa   : > { %v7318_v42 = vsel %vm10126_vm13, %v7207_v17, -1e+30  ;;  %vm10127_vm0 = vcmp.eq.s32.totalorder %v7128_v15, 1  ;;  %v7331_v38 = vsel %vm9881_vm4, %v7207_v17, -1e+30  ;;  %vm10128_vm15 = vcmp.eq.s32.totalorder %v7120_v51, 1 }
 0x1fb   : > { %v7326_v36 = vsel %vm10127_vm0, %v7213_v7, -1e+30  ;;  %v7336_v56 = vsel %vm10128_vm15, %v7186_v0, -1e+30  ;;  %vm10002_vm12 = vcmp.eq.s32.totalorder %v7019_v20, 1  ;;  %vm10129_vm0 = vcmp.eq.s32.totalorder %v7025_v39, 1 }
 0x1fc   : > { %v7344_v15 = vsel %vm10129_vm0, %v7183_v12, -1e+30  ;;  %vm10130_vm4 = vcmp.eq.s32.totalorder %v7136_v53, 1  ;;  %v7354_v51 = vsel %vm9897_vm5, %v7207_v17, -1e+30  ;;  %vm9968_vm15 = vcmp.eq.s32.totalorder %v7126_v1, 1 }
 0x1fd   : > { %v7349_v61 = vsel %vm10130_vm4, %v7213_v7, -1e+30  ;;  %10131 = vst [vmem:[#allocation90_spill] sm:$0xff] %v7354_v51  ;;  %vm10000_vm13 = vcmp.eq.s32.totalorder %v10132_v27, 1  ;;  %v10133_v46 = vld [vmem:[#allocation48_spill] sm:$0xff]  ;;  %vm9967_vm0 = vcmp.eq.s32.totalorder %v10137_v41, 1 }
 0x1fe   : > { %vm10001_vm10 = vcmp.eq.s32.totalorder %v10133_v46, 1  ;;  %v7362_v39 = vsel %vm9898_vm1, %v7186_v0, -1e+30  ;;  %v7367_v53 = vsel %vm9901_vm3, %v7183_v12, -1e+30  ;;  %v10138_v51 = vld [vmem:[#allocation50_spill] sm:$0xff] }
 0x1ff   : > { %10134 = vst [vmem:[#allocation91_spill] sm:$0xff] %v7367_v53  ;;  %v7372_v63 = vsel %vm9904_vm2, %v7213_v7, -1e+30  ;;  %vm9964_vm5 = vcmp.eq.s32.totalorder %v10138_v51, 1  ;;  %vm10139_vm1 = vcmp.eq.s32.totalorder %v7082_v2, 1  ;;  %vm10140_vm3 = vcmp.eq.s32.totalorder %v7068_v58, 1 }
 0x200   : > { %10135 = vst [vmem:[#allocation92_spill] sm:$0xff] %v7372_v63  ;;  %v7380_v43 = vsel %vm10139_vm1, %v7207_v17, -1e+30  ;;  %v7385_v23 = vsel %vm10140_vm3, %v7186_v0, -1e+30  ;;  %vm10141_vm2 = vcmp.eq.s32.totalorder %v7138_v55, 1 }
 0x201   : > { %v7390_v60 = vsel %vm10141_vm2, %v7183_v12, -1e+30  ;;  %v10142_v63 = vld [vmem:[#allocation75_spill] sm:$0xff]  ;;  %v7396_v53 = vsel %vm1388_vm8, %v7213_v7, -1e+30  ;;  %vm10143_vm3 = vcmp.eq.s32.totalorder %v7122_v54, 1 }
 0x202   : > { %vm9966_vm4 = vcmp.eq.s32.totalorder %v10142_v63, 1  ;;  %v7401_v2 = vsel %vm1389_vm7, %v7207_v17, -1e+30  ;;  %v7406_v58 = vsel %vm1390_vm6, %v7186_v0, -1e+30  ;;  %vm10144_vm1 = vcmp.eq.s32.totalorder %v7001_v30, 1 }
 0x203   : > { %v7411_v55 = vsel %vm9921_vm11, %v7183_v12, -1e+30  ;;  %v7416_v19 = vsel %vm9924_vm9, %v7213_v7, -1e+30  ;;  %v7421_v5 = vsel %vm10143_vm3, %v7207_v17, -1e+30 }
 0x204   : > { %v7426_v29 = vsel %vm10144_vm1, %v7186_v0, -1e+30  ;;  %vm10145_vm2 = vcmp.eq.s32.totalorder %v7098_v11, 1  ;;  %vm10146_vm11 = vcmp.eq.s32.totalorder %v7108_v25, 1  ;;  %vm10147_vm9 = vcmp.eq.s32.totalorder %v7027_v40, 1 }
 0x205   : > { %v7431_v10 = vsel %vm10145_vm2, %v7183_v12, -1e+30  ;;  %v7436_v3 = vsel %vm10146_vm11, %v7213_v7, -1e+30  ;;  %v7441_v54 = vsel %vm10147_vm9, %v7207_v17, -1e+30 }
 0x206   : > { %vm10148_vm3 = vcmp.eq.s32.totalorder %v7005_v32, 1  ;;  %vm10149_vm1 = vcmp.eq.s32.totalorder %v7102_v16, 1  ;;  %vm10150_vm2 = vcmp.eq.s32.totalorder %v7114_v45, 1  ;;  %vm10151_vm11 = vcmp.eq.s32.totalorder %v7042_v49, 1 }
 0x207   : > { %v7446_v30 = vsel %vm10148_vm3, %v7186_v0, -1e+30  ;;  %v7451_v11 = vsel %vm10149_vm1, %v7183_v12, -1e+30  ;;  %v7456_v25 = vsel %vm10150_vm2, %v7213_v7, -1e+30 }
 0x208   : > { %v7461_v40 = vsel %vm10151_vm11, %v7207_v17, -1e+30  ;;  %vm10152_vm9 = vcmp.eq.s32.totalorder %v7013_v4, 1  ;;  %v7471_v16 = vsel %vm10003_vm14, %v7183_v12, -1e+30  ;;  %vm10153_vm3 = vcmp.eq.s32.totalorder %v7124_v6, 1 }
 0x209   : > { %v7466_v32 = vsel %vm10152_vm9, %v7186_v0, -1e+30  ;;  %v7476_v45 = vsel %vm10153_vm3, %v7213_v7, -1e+30  ;;  %vm10155_vm1 = vcmp.eq.s32.totalorder %v7070_v59, 1  ;;  %vm10156_vm2 = vcmp.eq.s32.totalorder %v7116_v47, 1 }
 0x20a   : > { %10154 = vst [vmem:[#allocation93_spill] sm:$0xff] %v7476_v45  ;;  %v7481_v49 = vsel %vm10155_vm1, %v7207_v17, -1e+30  ;;  %v7486_v4 = vsel %vm10002_vm12, %v7186_v0, -1e+30  ;;  %vm10157_vm11 = vcmp.eq.s32.totalorder %v7132_v24, 1  ;;  %v7498_v45 = vpop.permute.xlu1 %1353 }
 0x20b   : > { %v7491_v26 = vsel %vm10156_vm2, %v7183_v12, -1e+30  ;;  %v7496_v6 = vsel %vm10157_vm11, %v7213_v7, -1e+30  ;;  %v7503_v59 = vsel %vm10001_vm10, %v7207_v17, -1e+30 }
 0x20c   : > { %v7508_v20 = vsel %vm10000_vm13, %v7186_v0, -1e+30  ;;  %v7513_v47 = vsel %vm9968_vm15, %v7183_v12, -1e+30  ;;  %v7518_v24 = vsel %vm9967_vm0, %v7213_v7, -1e+30 }
 0x20d   : > { %10158 = vst [vmem:[#allocation94_spill] sm:$0xff] %v7513_v47  ;;  %10159 = vst [vmem:[#allocation95_spill] sm:$0xff] %v7518_v24  ;;  %v7523_v46 = vsel %vm9964_vm5, %v7207_v17, -1e+30  ;;  %vm10161_vm9 = vcmp.eq.s32.totalorder %v10136_v52, 1  ;;  %vm10164_vm3 = vcmask 130048  }
 0x20e   : > { %10160 = vst [vmem:[#allocation96_spill] sm:$0xff] %v7523_v46  ;;  %v7528_v27 = vsel %vm10161_vm9, %v7186_v0, -1e+30  ;;  %v7533_v1 = vsel %vm9966_vm4, %v7183_v12, -1e+30  ;;  %v1486_v41 = vsel %vm10164_vm3, %v7218_v57, -inf  ;;  %vm10165_vm1 = vmmov %vm10164_vm3  ;;  %v7557_v47 = vpop.permute.xlu1 %1344 }
 0x20f   : > { %10162 = vst [vmem:[#allocation97_spill] sm:$0xff] %v7528_v27  ;;  %10163 = vst [vmem:[#allocation98_spill] sm:$0xff] %v7533_v1  ;;  %v1487_v24 = vsel %vm10165_vm1, %v7223_v62, -inf }
 0x210   : > { %vm10166_vm2 = vmmov %vm10165_vm1  ;;  %v1488_v46 = vmax.f32 %v1486_v41, %v1487_v24 }
 0x211   : > { %v1489_v51 = vsel %vm10166_vm2, %v7290_v37, -inf  ;;  %vm10167_vm11 = vmmov %vm10165_vm1  ;;  %v1513_v37 = vsel %vm10165_vm1, %v7246_v9, -inf }
 0x212   : > { %v1499_v52 = vsel %vm10167_vm11, %v7236_v48, -inf  ;;  %vm10168_vm9 = vmmov %vm10165_vm1  ;;  %v1490_v24 = vmax.f32 %v1488_v46, %v1489_v51 }
 0x213   : > { %v1500_v27 = vsel %vm10168_vm9, %v7228_v18, -inf  ;;  %vm10169_vm5 = vmmov %vm10165_vm1 }
 0x214   : > { %v1502_v63 = vsel %vm10169_vm5, %v7295_v50, -inf  ;;  %vm10170_vm4 = vmmov %vm10165_vm1  ;;  %v1501_v57 = vmax.f32 %v1499_v52, %v1500_v27 }
 0x215   : > { %v1491_v1 = vsel %vm10170_vm4, %v7272_v34, -inf  ;;  %vm10171_vm3 = vmmov %vm10165_vm1 }
 0x216   : > { %v1512_v62 = vsel %vm10171_vm3, %v7241_v8, -inf  ;;  %vm10172_vm2 = vmmov %vm10165_vm1  ;;  %v1503_v50 = vmax.f32 %v1501_v57, %v1502_v63  ;;  %v1492_v46 = vmax.f32 %v1490_v24, %v1491_v1 }
 0x217   : > { %v1504_v41 = vsel %vm10172_vm2, %v7277_v22, -inf  ;;  %v1514_v48 = vmax.f32 %v1512_v62, %v1513_v37  ;;  %vm10173_vm11 = vmmov %vm10165_vm1  ;;  %v10181_v62 = vld [vmem:[#allocation46_spill] sm:$0xff] }
 0x218   : > { %v1515_v18 = vsel %vm10173_vm11, %v7308_v33, -inf  ;;  %vm10174_vm5 = vmmov %vm10165_vm1  ;;  %v1505_v52 = vmax.f32 %v1503_v50, %v1504_v41  ;;  %v1538_v33 = vsel %vm10165_vm1, %v7264_v14, -inf  ;;  %v1493_v1 = vrot.slane %v1492_v46, 4 }
 0x219   : > { %v1525_v27 = vsel %vm10174_vm5, %v7254_v28, -inf  ;;  %vm10175_vm4 = vmmov %vm10165_vm1  ;;  %v1516_v9 = vmax.f32 %v1514_v48, %v1515_v18  ;;  %vm9974_vm5 = vcmp.eq.s32.totalorder %v7164_v13, 1  ;;  %v1530_v14 = vsel %vm10165_vm1, %v7318_v42, -inf }
 0x21a   : > { %v1526_v34 = vsel %vm10175_vm4, %v7259_v31, -inf  ;;  %vm10176_vm9 = vmmov %vm10165_vm1  ;;  %vm9973_vm4 = vcmp.eq.s32.totalorder %v7557_v47, 1  ;;  %v1506_v37 = vrot.slane %v1505_v52, 4  ;;  %v1494_v24 = vmax.f32 %v1492_v46, %v1493_v1  ;;  %v10189_v1 = vld [vmem:[#allocation90_spill] sm:$0xff] }
 0x21b   : > { %v1528_v8 = vsel %vm10176_vm9, %v7313_v21, -inf  ;;  %vm10177_vm3 = vmmov %vm10165_vm1  ;;  %v1527_v51 = vmax.f32 %v1525_v27, %v1526_v34 }
 0x21c   : > { %v1517_v22 = vsel %vm10177_vm3, %v7300_v35, -inf  ;;  %vm10178_vm2 = vmmov %vm10165_vm1  ;;  %v10180_v35 = vld [vmem:[#allocation79_spill] sm:$0xff]  ;;  %vm9972_vm3 = vcmp.eq.s32.totalorder %v10181_v62, 1  ;;  %v1507_v50 = vmax.f32 %v1505_v52, %v1506_v37 }
 0x21d   : > { %v1539_v63 = vsel %vm10178_vm2, %v7282_v44, -inf  ;;  %vm10179_vm11 = vmmov %vm10165_vm1  ;;  %v1518_v31 = vmax.f32 %v1516_v9, %v1517_v22  ;;  %v1529_v21 = vmax.f32 %v1527_v51, %v1528_v8  ;;  %vm9969_vm9 = vcmp.eq.s32.totalorder %v10180_v35, 1 }
 0x21e   : > { %v1541_v28 = vsel %vm10179_vm11, %v7326_v36, -inf  ;;  %v1540_v57 = vmax.f32 %v1538_v33, %v1539_v63  ;;  %vm10182_vm2 = vmmov %vm10165_vm1  ;;  %v1495_v9 = vrot.slane %v1494_v24, 2  ;;  %v10187_v33 = vld [vmem:[#allocation91_spill] sm:$0xff] }
 0x21f   : > { %v1551_v44 = vsel %vm10182_vm2, %v7336_v56, -inf  ;;  %vm10183_vm11 = vmmov %vm10165_vm1  ;;  %v1519_v41 = vrot.slane %v1518_v31, 4  ;;  %v1531_v48 = vmax.f32 %v1529_v21, %v1530_v14  ;;  %v1508_v56 = vrot.slane %v1507_v50, 2  ;;  %v7594_v21 = vpop.permute.xlu1 %1356  ;;  %v10190_v14 = vld [vmem:[#allocation92_spill] sm:$0xff] }
 0x220   : > { %v1552_v36 = vsel %vm10183_vm11, %v7344_v15, -inf  ;;  %v1542_v18 = vmax.f32 %v1540_v57, %v1541_v28  ;;  %vm10184_vm0 = vmmov %vm10165_vm1  ;;  %vm9971_vm1 = vcmp.eq.s32.totalorder %v7498_v45, 1 }
 0x221   : > { %v1543_v27 = vsel %vm10184_vm0, %v7331_v38, -inf  ;;  %v1553_v34 = vmax.f32 %v1551_v44, %v1552_v36  ;;  %vm10185_vm15 = vmmov %vm10184_vm0  ;;  %v1520_v42 = vmax.f32 %v1518_v31, %v1519_v41  ;;  %v1532_v22 = vrot.slane %v1531_v48, 4 }
 0x222   : > { %v1554_v8 = vsel %vm10185_vm15, %v7349_v61, -inf  ;;  %v1544_v51 = vmax.f32 %v1542_v18, %v1543_v27  ;;  %vm10186_vm2 = vmmov %vm10184_vm0  ;;  %v1556_v61 = vsel %vm10184_vm0, %v10189_v1, -inf  ;;  %v1496_v31 = vmax.f32 %v1494_v24, %v1495_v9 }
 0x223   : > { %v1555_v15 = vmax.f32 %v1553_v34, %v1554_v8  ;;  %v1564_v46 = vsel %vm10186_vm2, %v7362_v39, -inf  ;;  %vm10188_vm11 = vmmov %vm10184_vm0  ;;  %v1521_v63 = vrot.slane %v1520_v42, 2  ;;  %v1533_v38 = vmax.f32 %v1531_v48, %v1532_v22 }
 0x224   : > { %v1565_v52 = vsel %vm10188_vm11, %v10187_v33, -inf  ;;  %v1545_v28 = vrot.slane %v1544_v51, 4  ;;  %vm10191_vm15 = vmmov %vm10184_vm0  ;;  %v1509_v36 = vmax.f32 %v1507_v50, %v1508_v56  ;;  %v7601_v48 = vsel %vm9974_vm5, %v7213_v7, -1e+30 }
 0x225   : > { %v1557_v57 = vmax.f32 %v1555_v15, %v1556_v61  ;;  %v1566_v37 = vmax.f32 %v1564_v46, %v1565_v52  ;;  %v1567_v44 = vsel %vm10191_vm15, %v10190_v14, -inf  ;;  %v1522_v41 = vmax.f32 %v1520_v42, %v1521_v63  ;;  %vm10192_vm11 = vmmov %vm10184_vm0 }
 0x226   : > { %v1534_v39 = vrot.slane %v1533_v38, 2  ;;  %v1546_v18 = vmax.f32 %v1544_v51, %v1545_v28  ;;  %v7606_v27 = vsel %vm9973_vm4, %v7207_v17, -1e+30  ;;  %vm9970_vm2 = vcmp.eq.s32.totalorder %v7594_v21, 1  ;;  %vm10193_vm15 = vmmov %vm10184_vm0 }
 0x227   : > { %v1558_v24 = vrot.slane %v1557_v57, 4  ;;  %v1568_v34 = vmax.f32 %v1566_v37, %v1567_v44  ;;  %v7612_v50 = vsel %vm9972_vm3, %v7186_v0, -1e+30  ;;  %v7617_v8 = vsel %vm9969_vm9, %v7183_v12, -1e+30  ;;  %vm10194_vm9 = vmmov %vm10184_vm0 }
 0x228   : > { %v1569_v9 = vsel %vm10192_vm11, %v7380_v43, -inf  ;;  %v1497_v42 = vrot.slane %v1496_v31, 1  ;;  %v1535_v22 = vmax.f32 %v1533_v38, %v1534_v39  ;;  %v1577_v56 = vsel %vm10184_vm0, %v7385_v23, -inf  ;;  %vm10195_vm11 = vmmov %vm10184_vm0 }
 0x229   : > { %v1570_v51 = vmax.f32 %v1568_v34, %v1569_v9  ;;  %v1510_v15 = vrot.slane %v1509_v36, 1  ;;  %v1523_v46 = vrot.slane %v1522_v41, 1  ;;  %v1547_v33 = vrot.slane %v1546_v18, 2  ;;  %vm10222_vm4 = vmmov %vm10184_vm0 }
 0x22a   : > { %v1578_v52 = vsel %vm10193_vm15, %v7390_v60, -inf  ;;  %v1559_v63 = vmax.f32 %v1557_v57, %v1558_v24  ;;  %v1580_v61 = vsel %vm10194_vm9, %v7396_v53, -inf  ;;  %v7630_v43 = vsel %vm9971_vm1, %v7213_v7, -1e+30  ;;  %vm10196_vm9 = vmmov %vm10184_vm0 }
 0x22b   : > { %v1571_v28 = vrot.slane %v1570_v51, 4  ;;  %v1579_v1 = vmax.f32 %v1577_v56, %v1578_v52  ;;  %v7635_v23 = vsel %vm9970_vm2, %v7207_v17, -1e+30  ;;  %v1590_v38 = vsel %vm10195_vm11, %v7406_v58, -inf  ;;  %vm10197_vm15 = vmmov %vm10184_vm0 }
 0x22c   : > { %v7639_v60 = vmax.f32 %v1496_v31, %v1497_v42  ;;  %v1536_v57 = vrot.slane %v1535_v22, 1  ;;  %v1591_v53 = vsel %vm10184_vm0, %v7411_v55, -inf  ;;  %v7643_v14 = vmax.f32 %v1509_v36, %v1510_v15  ;;  %vm10198_vm11 = vmmov %vm10184_vm0 }
 0x22d   : > { %v1581_v37 = vmax.f32 %v1579_v1, %v1580_v61  ;;  %v7645_v44 = vmax.f32 %v1522_v41, %v1523_v46  ;;  %v1592_v39 = vmax.f32 %v1590_v38, %v1591_v53  ;;  %v1593_v24 = vsel %vm10196_vm9, %v7416_v19, -inf  ;;  %vm10199_vm2 = vmmov %vm10184_vm0  ;;  %v10207_v53 = vld [vmem:[#allocation93_spill] sm:$0xff] }
 0x22e   : > { %v7649_v34 = vmax.f32 %v1546_v18, %v1547_v33  ;;  %v1560_v9 = vrot.slane %v1559_v63, 2  ;;  %v1572_v56 = vmax.f32 %v1570_v51, %v1571_v28  ;;  %v1603_v58 = vsel %vm10197_vm15, %v7426_v29, -inf  ;;  %vm10200_vm9 = vmmov %vm10184_vm0 }
 0x22f   : > { %v1582_v31 = vsel %vm10198_vm11, %v7401_v2, -inf  ;;  %v1594_v42 = vmax.f32 %v1592_v39, %v1593_v24  ;;  %v1604_v55 = vsel %vm10184_vm0, %v7431_v10, -inf  ;;  %v1606_v36 = vsel %vm10199_vm2, %v7436_v3, -inf  ;;  %vm10201_vm15 = vmmov %vm10184_vm0 }
 0x230   : > { %v7659_v41 = vmax.f32 %v1535_v22, %v1536_v57  ;;  %v1583_v19 = vmax.f32 %v1581_v37, %v1582_v31  ;;  %v1595_v18 = vsel %vm10200_vm9, %v7421_v5, -inf  ;;  %v1605_v51 = vmax.f32 %v1603_v58, %v1604_v55  ;;  %vm10202_vm11 = vmmov %vm10184_vm0 }
 0x231   : > { %v1596_v15 = vmax.f32 %v1594_v42, %v1595_v18  ;;  %v1616_v29 = vsel %vm10201_vm15, %v7446_v30, -inf  ;;  %v1617_v2 = vsel %vm10202_vm11, %v7451_v11, -inf  ;;  %vm10203_vm1 = vmmov %vm10184_vm0  ;;  %v1549_v46 = vrot.slane %v7649_v34, 1 }
 0x232   : > { %v1619_v10 = vsel %vm10203_vm1, %v7456_v25, -inf  ;;  %v1573_v3 = vrot.slane %v1572_v56, 2  ;;  %v1607_v22 = vmax.f32 %v1605_v51, %v1606_v36  ;;  %v1618_v33 = vmax.f32 %v1616_v29, %v1617_v2  ;;  %vm10204_vm2 = vmmov %vm10184_vm0 }
 0x233   : > { %v1597_v52 = vrot.slane %v1596_v15, 4  ;;  %v1608_v5 = vsel %vm10204_vm2, %v7441_v54, -inf  ;;  %v1629_v28 = vsel %vm10184_vm0, %v7466_v32, -inf  ;;  %vm10205_vm9 = vmmov %vm10184_vm0  ;;  %v7676_v1 = vmax.f32 %v1559_v63, %v1560_v9 }
 0x234   : > { %v1630_v30 = vsel %vm10205_vm9, %v7471_v16, -inf  ;;  %v1584_v11 = vrot.slane %v1583_v19, 4  ;;  %v1609_v61 = vmax.f32 %v1607_v22, %v1608_v5  ;;  %v1620_v25 = vmax.f32 %v1618_v33, %v1619_v10  ;;  %vm10206_vm1 = vmmov %vm10184_vm0 }
 0x235   : > { %v1598_v38 = vmax.f32 %v1596_v15, %v1597_v52  ;;  %v1621_v57 = vsel %vm10206_vm1, %v7461_v40, -inf  ;;  %v1631_v37 = vmax.f32 %v1629_v28, %v1630_v30  ;;  %vm10208_vm15 = vmmov %vm10184_vm0  ;;  %v7682_v54 = vmax.f32 %v1572_v56, %v1573_v3  ;;  %v10214_v3 = vld [vmem:[#allocation94_spill] sm:$0xff] }
 0x236   : > { %v1632_v39 = vsel %vm10208_vm15, %v10207_v53, -inf  ;;  %v1610_v24 = vrot.slane %v1609_v61, 4  ;;  %v1622_v32 = vmax.f32 %v1620_v25, %v1621_v57  ;;  %vm10209_vm11 = vmmov %vm10184_vm0  ;;  %v1645_v31 = vsel %vm10184_vm0, %v7496_v6, -inf }
 0x237   : > { %v1642_v16 = vsel %vm10209_vm11, %v7486_v4, -inf  ;;  %v1599_v63 = vrot.slane %v1598_v38, 2  ;;  %v1633_v9 = vmax.f32 %v1631_v37, %v1632_v39  ;;  %vm10210_vm2 = vmmov %vm10184_vm0  ;;  %v7692_v36 = vmax.f32 %v1583_v19, %v1584_v11  ;;  %v10215_v19 = vld [vmem:[#allocation95_spill] sm:$0xff]  ;;  %v10219_v39 = vld [vmem:[#allocation96_spill] sm:$0xff] }
 0x238   : > { %v1643_v58 = vsel %vm10210_vm2, %v7491_v26, -inf  ;;  %v1611_v40 = vmax.f32 %v1609_v61, %v1610_v24  ;;  %v1623_v42 = vrot.slane %v1622_v32, 4  ;;  %vm10211_vm9 = vmmov %vm10184_vm0  ;;  %vm1710_vm15 = vcmask 1041409   ;;  %v10217_v61 = vld [vmem:[#allocation97_spill] sm:$0xff] }
 0x239   : > { %v1634_v55 = vsel %vm10211_vm9, %v7481_v49, -inf  ;;  %v1644_v56 = vmax.f32 %v1642_v16, %v1643_v58  ;;  %v1600_v18 = vmax.f32 %v1598_v38, %v1599_v63  ;;  %vm10212_vm1 = vmmov %vm10184_vm0  ;;  %vm1712_vm2 = vcmask 1042434  }
 0x23a   : > { %v1635_v51 = vmax.f32 %v1633_v9, %v1634_v55  ;;  %v1655_v4 = vsel %vm10212_vm1, %v7508_v20, -inf  ;;  %v1612_v15 = vrot.slane %v1611_v40, 2  ;;  %v1624_v29 = vmax.f32 %v1622_v32, %v1623_v42  ;;  %vm10213_vm11 = vmmov %vm10184_vm0  ;;  %v10220_v32 = vld [vmem:[#allocation98_spill] sm:$0xff] }
 0x23b   : > { %v1646_v26 = vmax.f32 %v1644_v56, %v1645_v31  ;;  %v1647_v6 = vsel %vm10213_vm11, %v7503_v59, -inf  ;;  %v1601_v2 = vrot.slane %v1600_v18, 1  ;;  %v1656_v49 = vsel %vm10184_vm0, %v10214_v3, -inf  ;;  %vm10216_vm9 = vmmov %vm10184_vm0 }
 0x23c   : > { %v1636_v10 = vrot.slane %v1635_v51, 4  ;;  %v1658_v22 = vsel %vm10216_vm9, %v10215_v19, -inf  ;;  %vm1714_vm3 = vcmask 1043459   ;;  %v1613_v33 = vmax.f32 %v1611_v40, %v1612_v15  ;;  %vm10218_vm1 = vmmov %vm10184_vm0 }
 0x23d   : > { %v1625_v52 = vrot.slane %v1624_v29, 2  ;;  %v1648_v20 = vmax.f32 %v1646_v26, %v1647_v6  ;;  %v1657_v5 = vmax.f32 %v1655_v4, %v1656_v49  ;;  %v1586_v28 = vrot.slane %v7692_v36, 2  ;;  %vm10221_vm9 = vmmov %vm10184_vm0 }
 0x23e   : > { %v1602_v30 = vmax.f32 %v1600_v18, %v1601_v2  ;;  %v1637_v11 = vmax.f32 %v1635_v51, %v1636_v10  ;;  %v1668_v59 = vsel %vm10218_vm1, %v10217_v61, -inf  ;;  %v1614_v25 = vrot.slane %v1613_v33, 1  ;;  %vm10223_vm1 = vmmov %vm10184_vm0 }
 0x23f   : > { %v1626_v38 = vmax.f32 %v1624_v29, %v1625_v52  ;;  %v1649_v57 = vrot.slane %v1648_v20, 4  ;;  %v1659_v37 = vmax.f32 %v1657_v5, %v1658_v22  ;;  %vm9978_vm11 = vcmask 1044484   ;;  %vm10224_vm5 = vmmov %vm10184_vm0 }
 0x240   : > { %v1638_v53 = vrot.slane %v1637_v11, 2  ;;  %v1660_v24 = vsel %vm10184_vm0, %v10219_v39, -inf  ;;  %v1669_v16 = vsel %vm10221_vm9, %v10220_v32, -inf  ;;  %v1671_v63 = vsel %vm10222_vm4, %v7601_v48, -inf  ;;  %vm10225_vm4 = vmmov %vm10184_vm0 }
 0x241   : > { %v1615_v9 = vmax.f32 %v1613_v33, %v1614_v25  ;;  %v1627_v58 = vrot.slane %v1626_v38, 1  ;;  %v1650_v31 = vmax.f32 %v1648_v20, %v1649_v57  ;;  %v1661_v40 = vmax.f32 %v1659_v37, %v1660_v24 }
 0x242   : > { %v1639_v42 = vmax.f32 %v1637_v11, %v1638_v53  ;;  %v1670_v55 = vmax.f32 %v1668_v59, %v1669_v16  ;;  %v1681_v56 = vsel %vm10223_vm1, %v7612_v50, -inf  ;;  %v1682_v18 = vsel %vm10224_vm5, %v7617_v8, -inf  ;;  %vm10226_vm5 = vmmov %vm10184_vm0 }
 0x243   : > { %v1651_v51 = vrot.slane %v1650_v31, 2  ;;  %v1662_v4 = vrot.slane %v1661_v40, 4  ;;  %v1673_v15 = vsel %vm10184_vm0, %v7606_v27, -inf  ;;  %v1683_v29 = vmax.f32 %v1681_v56, %v1682_v18  ;;  %v694_v56 = vpop.permute.xlu1 %693 }
 0x244   : > { %v1628_v26 = vmax.f32 %v1626_v38, %v1627_v58  ;;  %v1640_v48 = vrot.slane %v1639_v42, 1  ;;  %v1672_v6 = vmax.f32 %v1670_v55, %v1671_v63  ;;  %v1684_v2 = vsel %vm10225_vm4, %v7630_v43, -inf }
 0x245   : > { %v1652_v10 = vmax.f32 %v1650_v31, %v1651_v51  ;;  %v1663_v3 = vmax.f32 %v1661_v40, %v1662_v4  ;;  %v1685_v49 = vmax.f32 %v1683_v29, %v1684_v2  ;;  %v1711_v50 = vsel %vm1710_vm15, %v7643_v14, %v7639_v60 }
 0x246   : > { %v1674_v8 = vmax.f32 %v1672_v6, %v1673_v15  ;;  %v1686_v19 = vsel %vm10226_vm5, %v7635_v23, -inf  ;;  %v1713_v27 = vsel %vm1712_vm2, %v7645_v44, %v1711_v50  ;;  %v1724_v22 = vsel %vm1710_vm15, %v1615_v9, %v1602_v30  ;;  %v697_v15 = vpop.permute.xlu0 %696 }
 0x247   : > { %v1562_v33 = vrot.slane %v7676_v1, 1  ;;  %v1664_v52 = vrot.slane %v1663_v3, 2  ;;  %v1687_v43 = vmax.f32 %v1685_v49, %v1686_v19  ;;  %v1715_v20 = vsel %vm1714_vm3, %v7659_v41, %v1713_v27 }
 0x248   : > { %v1550_v60 = vmax.f32 %v7649_v34, %v1549_v46  ;;  %v1653_v14 = vrot.slane %v1652_v10, 1  ;;  %v1675_v5 = vrot.slane %v1674_v8, 4  ;;  %v1725_v23 = vsel %vm1712_vm2, %v1628_v26, %v1724_v22  ;;  %v10227_v26 = vld [vmem:[#allocation14_spill] sm:$0xff] }
 0x249   : > { %v1587_v11 = vmax.f32 %v7692_v36, %v1586_v28  ;;  %v1641_v44 = vmax.f32 %v1639_v42, %v1640_v48  ;;  %v1665_v61 = vmax.f32 %v1663_v3, %v1664_v52  ;;  %v1688_v30 = vrot.slane %v1687_v43, 4  ;;  %v700_v48 = vpop.permute.xlu1 %699 }
 0x24a   : > { %v1575_v59 = vrot.slane %v7682_v54, 1  ;;  %v1676_v25 = vmax.f32 %v1674_v8, %v1675_v5  ;;  %v1717_v38 = vsel %vm9978_vm11, %v1550_v60, %v1715_v20  ;;  %vm9975_vm9 = vcmask 1045509   ;;  %v5630_v8 = vld [vmem:[%s635_s21] ss:$0 sm:$0xff]  ;;  %s5621_s21 = sshll.u32 %s6808_s18, 1 }
 0x24b   : > { %v1563_v41 = vmax.f32 %v7676_v1, %v1562_v33  ;;  %v1666_v57 = vrot.slane %v1665_v61, 1  ;;  %v1689_v37 = vmax.f32 %v1687_v43, %v1688_v30  ;;  %v1726_v34 = vsel %vm1714_vm3, %v1641_v44, %v1725_v23 }
 0x24c   : > { %v1654_v46 = vmax.f32 %v1652_v10, %v1653_v14  ;;  %v1677_v53 = vrot.slane %v1676_v25, 2  ;;  %v1588_v39 = vrot.slane %v1587_v11, 1  ;;  %vm9976_vm1 = vcmask 1046534  }
 0x24d   : > { %v1690_v24 = vrot.slane %v1689_v37, 2  ;;  %v1719_v36 = vsel %vm9975_vm9, %v1563_v41, %v1717_v38  ;;  %v1576_v28 = vmax.f32 %v7682_v54, %v1575_v59  ;;  %v1667_v63 = vmax.f32 %v1665_v61, %v1666_v57  ;;  %v10237_v41 = vld [vmem:[#allocation85_spill] sm:$0xff] }
 0x24e   : > { %v1678_v32 = vmax.f32 %v1676_v25, %v1677_v53  ;;  %v1727_v16 = vsel %vm9978_vm11, %v1654_v46, %v1726_v34  ;;  %vm9977_vm0 = vcmask 1047559   ;;  %v1589_v31 = vmax.f32 %v1587_v11, %v1588_v39  ;;  %v10238_v34 = vld [vmem:[#allocation86_spill] sm:$0xff] }
 0x24f   : > { %v1691_v9 = vmax.f32 %v1689_v37, %v1690_v24  ;;  %v1721_v1 = vsel %vm9976_vm1, %v1576_v28, %v1719_v36  ;;  %v1728_v42 = vsel %vm9975_vm9, %v1667_v63, %v1727_v16  ;;  %vm702_vm4 = vcmp.eq.s32.totalorder %v694_v56, %v10227_v26  ;;  %v10240_v28 = vld [vmem:[#allocation89_spill] sm:$0xff] }
 0x250   : > { %v1679_v58 = vrot.slane %v1678_v32, 1  ;;  %v1723_v51 = vsel %vm9977_vm0, %v1589_v31, %v1721_v1  ;;  %vm703_vm5 = vcmp.eq.s32.totalorder %v697_v15, %v10227_v26  ;;  %v10228_v6 = vmov 0.0  }
 0x251   : > { %v1692_v40 = vrot.slane %v1691_v9, 1  ;;  %v7750_v2 = vsel %vm702_vm4, 1.0, %v10228_v6  ;;  %vm704_vm9 = vcmp.eq.s32.totalorder %v700_v48, %v10227_v26  ;;  %v7754_v10 = vsel %vm703_vm5, 1.0, %v10228_v6  ;;  %v10243_v48 = vld [vmem:[#allocation36_spill] sm:$0xff] }
 0x252   : > { %v1680_v55 = vmax.f32 %v1678_v32, %v1679_v58  ;;  %10229 = vst [vmem:[#allocation79_spill] sm:$0xff] %v7750_v2  ;;  %10230 = vst [vmem:[#allocation46_spill] sm:$0xff] %v7754_v10  ;;  %v7761_v3 = vsel %vm704_vm9, 1.0, %v10228_v6  ;;  %v10235_v49 = vlaneseq  ;;  %vm1846_vm4 = vcmask 261120   ;;  %v2016_v58 = vld [vmem:[%s9787_s10 + $0x8] sm:$0xff] }
 0x253   : > { %v1693_v18 = vmax.f32 %v1691_v9, %v1692_v40  ;;  %10233 = vst [vmem:[#allocation91_spill] sm:$0xff] %v7761_v3  ;;  %v2015_v9 = vld [vmem:[%s9787_s10] sm:$0xff] }
 0x254   : > { %v1729_v54 = vsel %vm9976_vm1, %v1680_v55, %v1728_v42  ;;  %vm10231_vm1 = vcmask 130048   ;;  %v714_v50 = vshrl.u32 %v10235_v49, 7  ;;  %v6275_v1 = vpack.c.bf16 %v2016_v58, %v2015_v9  ;;  %v5657_v9 = vld [vmem:[%s9788_s11 + $0x1] ss:$0 sm:$0xff] }
 0x255   : > { %v1730_v4 = vsel %vm9977_vm0, %v1693_v18, %v1729_v54  ;;  %vm10232_vm0 = vmmov %vm10231_vm1 }
 0x256   : > { %v6255_v29 = vpack.c.bf16 %v1730_v4, %v1723_v51  ;;  %vm10234_vm11 = vmmov %vm10232_vm0  ;;  %vm720_vm5 = vcmp.eq.s32.totalorder %v5630_v8, %v714_v50  ;;  %v715_v19 = vadd.s32 8, %v714_v50  ;;  %v5654_v50 = vld [vmem:[%s9788_s11] ss:$0 sm:$0xff] }
 0x257   : > { %v7771_v27 = vsel %vm720_vm5, 1.0, %v10228_v6  ;;  %vm10249_vm5 = vmmov %vm10232_vm0 }
 0x258   : > { %6256 = vmatprep.subr.bf16.mxu0 %v6255_v29  ;;  %10236 = vst [vmem:[#allocation90_spill] sm:$0xff] %v7771_v27  ;;  %vm721_vm9 = vcmp.eq.s32.totalorder %v5630_v8, %v715_v19 }
 0x259   : > { %6258 = vmatpush3.bf16.msra.mxu0 %v6255_v29  ;;  %v7785_v63 = vsel %vm721_vm9, 1.0, %v10228_v6  ;;  %v10242_v29 = vld [vmem:[#allocation37_spill] sm:$0xff]  ;;  %vm10250_vm9 = vmmov %vm10232_vm0  ;;  %v10300_v6 = vld [vmem:[#allocation30_spill] sm:$0xff] }
 0x25a   : > { %10241 = vst [vmem:[#allocation92_spill] sm:$0xff] %v7785_v63 }
 0x25c   : > { %5977 = vmatmul.mubr.msk.f32.vlgmr.msra.gmra.mrb[6].mxu0 %vm10231_vm1, %v7750_v2  ;;  %vm10245_vm1 = vmmov %vm10232_vm0  ;;  %v10367_v2 = vld [vmem:[#allocation66_spill] sm:$0xff] }
 0x25d   : > { %5979 = vmatprep.mubr.msk.f32.mxu0 %vm10232_vm0, %v7754_v10 }
 0x260   : > { %5980 = vmatmul.mubr.msk.f32.gmra.mrb[8].mxu0 %vm10234_vm11, %v7761_v3  ;;  %vm10244_vm11 = vmmov %vm10232_vm0  ;;  %v10362_v3 = vld [vmem:[#allocation45_spill] sm:$0xff] }
 0x261   : > { %5990 = vmatprep.mubr.msk.f32.mxu0 %vm1846_vm4, %v7771_v27 }
 0x32f   : > { %v5978_v22 = vpop.f32.mrb[6].mxu0 }
 0x330   : > { %v1831_v33 = vsub.f32 %v7183_v12, %v5978_v22  ;;  %v1811_v52 = vpop.f32.mrb[7].mxu0 }
 0x331   : > { %v1830_v43 = vsub.f32 %v7186_v0, %v1811_v52 }
 0x332   : > { %v1835_v20 = vmin.f32 %v1831_v33, 0.0 }
 0x333   : > { %v1834_v60 = vmin.f32 %v1830_v43, 0.0  ;;  %v5981_v14 = vpop.f32.mrb[8].mxu0 }
 0x334   : > { %v1840_v5 = vmul.f32 1.442695, %v1835_v20  ;;  %v1833_v23 = vsub.f32 %v7207_v17, %v5981_v14  ;;  %v1821_v11 = vpop.f32.mrb[9].mxu0 }
 0x335   : > { %v1838_v44 = vmul.f32 1.442695, %v1834_v60  ;;  %v1832_v61 = vsub.f32 %v7213_v7, %v1821_v11  ;;  %v10239_v7 = vld [vmem:[#allocation87_spill] sm:$0xff] }
 0x336   : > { %6481 = vpow2.f32 %v1840_v5  ;;  %v1837_v30 = vmin.f32 %v1833_v23, 0.0  ;;  %v2151_v23 = vld [vmem:[%s9789_s12] sm:$0xff]  ;;  %v2152_v11 = vld [vmem:[%s9789_s12 + $0x8] sm:$0xff] }
 0x337   : > { %6483 = vpow2.f32 %v1838_v44  ;;  %v1836_v59 = vmin.f32 %v1832_v61, 0.0  ;;  %v2153_v44 = vld [vmem:[%s9789_s12 + $0x10] sm:$0xff]  ;;  %v6279_v61 = vpack.c.bf16 %v2152_v11, %v2151_v23 }
 0x338   : > { %v1844_v25 = vmul.f32 1.442695, %v1837_v30  ;;  %v2154_v30 = vld [vmem:[%s9789_s12 + $0x18] sm:$0xff] }
 0x339   : > { %v1842_v38 = vmul.f32 1.442695, %v1836_v59  ;;  %v6283_v59 = vpack.c.bf16 %v2154_v30, %v2153_v44 }
 0x33a   : > { %6485 = vpow2.f32 %v1844_v25 }
 0x33b   : > { %6487 = vpow2.f32 %v1842_v38 }
 0x340   : > { %v6482_v12 = vpop.eup %6481 }
 0x341   : > { %v6484_v0 = vpop.eup %6483  ;;  %v1929_v57 = vmul.f32 %v6482_v12, %v10237_v41 }
 0x342   : > { %v6259_v37 = vpack.c.bf16 %v6482_v12, %v6484_v0  ;;  %v1928_v46 = vmul.f32 %v6484_v0, %v10238_v34 }
 0x344   : > { %v6486_v17 = vpop.eup %6485  ;;  %6260 = vmatprep.subr.bf16.mxu0 %v6259_v37  ;;  %v6267_v53 = vpack.c.bf16 %v1929_v57, %v1928_v46 }
 0x345   : > { %v6488_v39 = vpop.eup %6487  ;;  %6262 = vmatpush3.bf16.msra.mxu0 %v6259_v37  ;;  %v1931_v24 = vmul.f32 %v6486_v17, %v10239_v7 }
 0x346   : > { %v6263_v36 = vpack.c.bf16 %v6486_v17, %v6488_v39  ;;  %v1930_v32 = vmul.f32 %v6488_v39, %v10240_v28 }
 0x348   : > { %6264 = vmatprep.subr.bf16.mxu0 %v6263_v36  ;;  %v6271_v16 = vpack.c.bf16 %v1931_v24, %v1930_v32 }
 0x349   : > { %6266 = vmatpush3.bf16.msra.mxu0 %v6263_v36 }
 0x34a   : > { %6268 = vmatprep.subr.bf16.mxu0 %v6267_v53 }
 0x34c   : > { %5991 = vmatmul.mubr.msk.f32.vlgmr.msra.gmra.mrb[10].mxu0 %vm1846_vm4, %v7785_v63 }
 0x34d   : > { %6270 = vmatpush3.bf16.msra.mxu0 %v6267_v53  ;;  %6001 = vmatprep.mubr.msk.f32.mxu0 %vm1846_vm4, %v7771_v27 }
 0x34e   : > { %6272 = vmatprep.subr.bf16.mxu0 %v6271_v16 }
 0x351   : > { %6274 = vmatpush3.bf16.msra.mxu0 %v6271_v16 }
 0x352   : > { %6276 = vmatprep.subr.bf16.mxu0 %v6275_v1 }
 0x354   : > { %6002 = vmatmul.mubr.msk.f32.vlgmr.msra.gmra.mrb[12].mxu0 %vm1846_vm4, %v7785_v63  ;;  %v10347_v63 = vld [vmem:[#allocation59_spill] sm:$0xff] }
 0x355   : > { %6278 = vmatpush3.bf16.msra.mxu0 %v6275_v1  ;;  %v5658_v1 = vld [vmem:[%s9788_s11 + $0x2] ss:$0 sm:$0xff] }
 0x356   : > { %6280 = vmatprep.subr.bf16.mxu0 %v6279_v61 }
 0x41f   : > { %v5992_v31 = vpop.f32.mrb[10].mxu0 }
 0x420   : > { %v2008_v40 = vmax.f32 %v5992_v31, 1e-16  ;;  %v1919_v42 = vpop.f32.mrb[11].mxu0 }
 0x421   : > { %v2007_v55 = vmax.f32 %v1919_v42, 1e-16 }
 0x422   : > { %6489 = vrcp.f32 %v2008_v40 }
 0x423   : > { %6491 = vrcp.f32 %v2007_v55 }
 0x427   : > { %v6003_v56 = vpop.f32.mrb[12].mxu0 }
 0x428   : > { %v1998_v18 = vpop.f32.mrb[13].mxu0 }
 0x42c   : > { %v6490_v51 = vpop.eup %6489 }
 0x42d   : > { %v6492_v54 = vpop.eup %6491  ;;  %v2012_v4 = vmul.f32 %v6490_v51, %v6003_v56 }
 0x42e   : > { %v2011_v15 = vmul.f32 %v6492_v54, %v1998_v18 }
 0x42f   : > { %v2014_v49 = vadd.f32 %v2012_v4, %v10243_v48 }
 0x430   : > { %v2013_v26 = vadd.f32 %v2011_v15, %v10242_v29  ;;  %v10246_v15 = vld [vmem:[#allocation53_spill] sm:$0xff] }
 0x431   : > { %v5659_v29 = vld [vmem:[%s9790_s13] ss:$0 sm:$0xff] }
 0x432   : > { %6008 = vmatprep.mubr.msk.f32.mxu0 %vm10244_vm11, %v2013_v26  ;;  %vm10251_vm11 = vmmov %vm10232_vm0 }
 0x433   : > { %6009 = vmatmul.mubr.msk.f32.vlgmr.msra.gmra.mrb[14].mxu0 %vm10245_vm1, %v2014_v49  ;;  %vm10252_vm1 = vmmov %vm10232_vm0 }
 0x434   : > { %6282 = vmatpush3.bf16.msra.mxu0 %v6279_v61 }
 0x435   : > { %6284 = vmatprep.subr.bf16.mxu0 %v6283_v59 }
 0x438   : > { %6286 = vmatpush3.bf16.msra.mxu0 %v6283_v59 }
 0x506   : > { %v6010_v8 = vpop.f32.mrb[14].mxu0 }
 0x507   : > { %v2100_v19 = vadd.f32 %v6010_v8, %v5654_v50  ;;  %v2094_v22 = vpop.f32.mrb[15].mxu0 }
 0x508   : > { %v2095_v33 = vadd.f32 %v5654_v50, %v2094_v22 }
 0x509   : > { %v2108_v52 = vsel %vm1846_vm4, %v2100_v19, 0.0  ;;  %v2112_v14 = vmul.f32 %v2100_v19, %v2100_v19 }
 0x50a   : > { %2109 = vadd.xlane.f32.xlu1 %v2108_v52  ;;  %v2105_v43 = vsel %vm1846_vm4, %v2095_v33, 0.0  ;;  %v2111_v20 = vmul.f32 %v2095_v33, %v2095_v33 }
 0x50b   : > { %2106 = vadd.xlane.f32.xlu0 %v2105_v43  ;;  %v2116_v5 = vsel %vm1846_vm4, %v2112_v14, 0.0 }
 0x50c   : > { %v2113_v60 = vsel %vm1846_vm4, %v2111_v20, 0.0 }
 0x50f   : > { %2114 = vadd.xlane.f32.xlu0 %v2113_v60 }
 0x513   : > { %2117 = vadd.xlane.f32.xlu0 %v2116_v5 }
 0x597   : > { %v2110_v12 = vpop.xlane.xlu1 %2109 }
 0x598   : > { %v2107_v25 = vpop.xlane.xlu0 %2106  ;;  %v2120_v41 = vmul.f32 0.03125, %v2110_v12 }
 0x599   : > { %v2119_v38 = vmul.f32 0.03125, %v2107_v25 }
 0x59a   : > { %v2124_v17 = vmul.f32 %v2120_v41, %v2120_v41  ;;  %v2130_v31 = vsub.f32 %v2100_v19, %v2120_v41 }
 0x59b   : > { %v2123_v57 = vmul.f32 %v2119_v38, %v2119_v38  ;;  %v2129_v32 = vsub.f32 %v2095_v33, %v2119_v38 }
 0x59c   : > { %v2115_v0 = vpop.xlane.xlu0 %2114 }
 0x59d   : > { %v2121_v37 = vmul.f32 0.03125, %v2115_v0 }
 0x59f   : > { %v2125_v34 = vsub.f32 %v2121_v37, %v2123_v57 }
 0x5a0   : > { %v2118_v46 = vpop.xlane.xlu0 %2117 }
 0x5a1   : > { %v2127_v53 = vmax.f32 %v2125_v34, 0.0  ;;  %v2122_v39 = vmul.f32 0.03125, %v2118_v46 }
 0x5a3   : > { %v2131_v7 = vadd.f32 1e-05, %v2127_v53  ;;  %v2126_v24 = vsub.f32 %v2122_v39, %v2124_v17  ;;  %v5664_v17 = vld [vmem:[%s9790_s13 + $0x5] ss:$0 sm:$0xff] }
 0x5a5   : > { %6493 = vrsqrt.f32 %v2131_v7  ;;  %v2128_v36 = vmax.f32 %v2126_v24, 0.0  ;;  %v5665_v7 = vld [vmem:[%s9790_s13 + $0x6] ss:$0 sm:$0xff] }
 0x5a7   : > { %v2132_v28 = vadd.f32 1e-05, %v2128_v36 }
 0x5a9   : > { %6495 = vrsqrt.f32 %v2132_v28 }
 0x5af   : > { %v6494_v16 = vpop.eup %6493 }
 0x5b0   : > { %v2135_v58 = vmul.f32 %v6494_v16, %v2129_v32 }
 0x5b2   : > { %v2141_v40 = vmul.f32 %v5657_v9, %v2135_v58 }
 0x5b3   : > { %v6496_v42 = vpop.eup %6495 }
 0x5b4   : > { %v2136_v55 = vmul.f32 %v6496_v42, %v2130_v31  ;;  %v2147_v56 = vadd.f32 %v5658_v1, %v2141_v40  ;;  %v10255_v31 = vld [vmem:[#allocation41_spill] sm:$0xff]  ;;  %v10256_v40 = vld [vmem:[#allocation40_spill] sm:$0xff]  ;;  %v10258_v42 = vld [vmem:[#allocation43_spill] sm:$0xff] }
 0x5b6   : > { %v2142_v18 = vmul.f32 %v5657_v9, %v2136_v55  ;;  %v2149_v51 = vmax.f32 %v2147_v56, 0.0  ;;  %v10260_v56 = vld [vmem:[#allocation80_spill] sm:$0xff] }
 0x5b8   : > { %v2148_v54 = vadd.f32 %v5658_v1, %v2142_v18  ;;  %6019 = vmatprep.mubr.msk.f32.mxu0 %vm1846_vm4, %v2149_v51 }
 0x5ba   : > { %v2150_v4 = vmax.f32 %v2148_v54, 0.0  ;;  %v10261_v54 = vld [vmem:[#allocation82_spill] sm:$0xff] }
 0x5bc   : > { %6020 = vmatmul.mubr.msk.f32.vlgmr.msra.gmra.mrb[16].mxu0 %vm1846_vm4, %v2150_v4 }
 0x5bd   : > { %6036 = vmatprep.mubr.msk.f32.mxu0 %vm10232_vm0, %v10246_v15  ;;  %v10341_v15 = vld [vmem:[#allocation62_spill] sm:$0xff] }
 0x68f   : > { %v6021_v26 = vpop.f32.mrb[16].mxu0 }
 0x690   : > { %v7835_v48 = vadd.f32 %v6021_v26, %v5659_v29  ;;  %v2232_v49 = vpop.f32.mrb[17].mxu0 }
 0x691   : > { %v7837_v50 = vadd.f32 %v5659_v29, %v2232_v49 }
 0x692   : > { %10247 = vst [vmem:[#allocation93_spill] sm:$0xff] %v7835_v48  ;;  %v2247_v8 = vsel %vm10249_vm5, %v7835_v48, 0.0  ;;  %v2251_v19 = vmul.f32 %v7835_v48, %v7835_v48  ;;  %vm10257_vm5 = vmmov %vm10232_vm0 }
 0x693   : > { %10248 = vst [vmem:[#allocation94_spill] sm:$0xff] %v7837_v50  ;;  %2248 = vadd.xlane.f32.xlu0 %v2247_v8  ;;  %v2244_v22 = vsel %vm10250_vm9, %v7837_v50, 0.0  ;;  %v2250_v33 = vmul.f32 %v7837_v50, %v7837_v50  ;;  %vm10259_vm9 = vmmov %vm10232_vm0 }
 0x694   : > { %2245 = vadd.xlane.f32.xlu1 %v2244_v22  ;;  %v2255_v52 = vsel %vm10251_vm11, %v2251_v19, 0.0  ;;  %v2384_v19 = vstv %s5670_s27  ;;  %v10263_v22 = vld [vmem:[#allocation83_spill] sm:$0xff]  ;;  %s644_s27 = scalar_lea.vmem %s9783_s6, %s5621_s21 }
 0x695   : > { %v2252_v43 = vsel %vm10252_vm1, %v2250_v33, 0.0 }
 0x697   : > { %2256 = vadd.xlane.f32.xlu0 %v2255_v52 }
 0x698   : > { %2253 = vadd.xlane.f32.xlu1 %v2252_v43 }
 0x720   : > { %v2249_v20 = vpop.xlane.xlu0 %2248 }
 0x721   : > { %v2259_v60 = vmul.f32 0.0625, %v2249_v20  ;;  %v2246_v14 = vpop.xlane.xlu1 %2245  ;;  %v10265_v20 = vld [vmem:[#allocation84_spill] sm:$0xff] }
 0x722   : > { %v2258_v5 = vmul.f32 0.0625, %v2246_v14 }
 0x723   : > { %v2263_v11 = vmul.f32 %v2259_v60, %v2259_v60  ;;  %v2269_v37 = vsub.f32 %v7835_v48, %v2259_v60  ;;  %v10339_v48 = vld [vmem:[#allocation57_spill] sm:$0xff] }
 0x724   : > { %v2257_v23 = vpop.xlane.xlu0 %2256  ;;  %v2262_v30 = vmul.f32 %v2258_v5, %v2258_v5  ;;  %v2268_v46 = vsub.f32 %v7837_v50, %v2258_v5  ;;  %v10337_v50 = vld [vmem:[#allocation19_spill] sm:$0xff] }
 0x725   : > { %v2261_v44 = vmul.f32 0.0625, %v2257_v23  ;;  %v2254_v61 = vpop.xlane.xlu1 %2253 }
 0x726   : > { %v2260_v59 = vmul.f32 0.0625, %v2254_v61 }
 0x727   : > { %v2265_v25 = vsub.f32 %v2261_v44, %v2263_v11 }
 0x728   : > { %v2264_v38 = vsub.f32 %v2260_v59, %v2262_v30 }
 0x729   : > { %v2267_v12 = vmax.f32 %v2265_v25, 0.0  ;;  %v10268_v25 = vld [vmem:[#allocation16_spill] sm:$0xff] }
 0x72a   : > { %v2266_v0 = vmax.f32 %v2264_v38, 0.0  ;;  %vm10269_vm11 = vcmp.eq.s32.totalorder %v10268_v25, 1  ;;  %v10324_v25 = vld [vmem:[#allocation44_spill] sm:$0xff] }
 0x72b   : > { %v2271_v41 = vadd.f32 1e-05, %v2267_v12  ;;  %v10270_v12 = vld [vmem:[#allocation54_spill] sm:$0xff] }
 0x72c   : > { %v2270_v57 = vadd.f32 1e-05, %v2266_v0  ;;  %vm10271_vm1 = vcmp.eq.s32.totalorder %v10270_v12, 1  ;;  %v10322_v12 = vld [vmem:[#allocation51_spill] sm:$0xff] }
 0x72d   : > { %6497 = vrsqrt.f32 %v2271_v41  ;;  %v10272_v41 = vld [vmem:[#allocation55_spill] sm:$0xff] }
 0x72e   : > { %6499 = vrsqrt.f32 %v2270_v57 }
 0x737   : > { %v6498_v34 = vpop.eup %6497 }
 0x738   : > { %v6500_v53 = vpop.eup %6499  ;;  %v2275_v39 = vmul.f32 %v6498_v34, %v2269_v37  ;;  %v10274_v37 = vld [vmem:[#allocation17_spill] sm:$0xff] }
 0x739   : > { %v2274_v24 = vmul.f32 %v6500_v53, %v2268_v46  ;;  %v10276_v46 = vld [vmem:[#allocation20_spill] sm:$0xff]  ;;  %v10278_v53 = vld [vmem:[#allocation58_spill] sm:$0xff] }
 0x73a   : > { %v2281_v36 = vmul.f32 %v5664_v17, %v2275_v39 }
 0x73b   : > { %v2280_v28 = vmul.f32 %v5664_v17, %v2274_v24 }
 0x73c   : > { %v7857_v32 = vadd.f32 %v5665_v7, %v2281_v36  ;;  %v10282_v36 = vld [vmem:[#allocation61_spill] sm:$0xff] }
 0x73d   : > { %v7859_v16 = vadd.f32 %v5665_v7, %v2280_v28  ;;  %v10280_v7 = vld [vmem:[#allocation23_spill] sm:$0xff] }
 0x73e   : > { %10253 = vst [vmem:[#allocation95_spill] sm:$0xff] %v7857_v32  ;;  %v9979_v9 = vmax.f32 %v7857_v32, 0.0  ;;  %v10343_v32 = vld [vmem:[#allocation32_spill] sm:$0xff] }
 0x73f   : > { %10254 = vst [vmem:[#allocation97_spill] sm:$0xff] %v7859_v16  ;;  %v9980_v58 = vmax.f32 %v7859_v16, 0.0  ;;  %v10345_v16 = vld [vmem:[#allocation21_spill] sm:$0xff] }
 0x741   : > { %v6287_v1 = vpack.c.bf16 %v9979_v9, %v9980_v58  ;;  %v10298_v9 = vld [vmem:[#allocation26_spill] sm:$0xff] }
 0x743   : > { %6288 = vmatprep.subr.bf16.mxu1 %v6287_v1 }
 0x744   : > { %6290 = vmatpush3.bf16.msra.mxu1 %v6287_v1  ;;  %v10284_v1 = vld [vmem:[#allocation64_spill] sm:$0xff] }
 0x747   : > { %6027 = vmatmul.mubr.msk.f32.vlgmr.msra.gmra.mrb[4].mxu1 %vm10232_vm0, %v10255_v31  ;;  %vm10273_vm0 = vcmp.eq.s32.totalorder %v10272_v41, 1  ;;  %v10320_v41 = vld [vmem:[#allocation81_spill] sm:$0xff] }
 0x748   : > { %6029 = vmatprep.mubr.msk.f32.mxu1 %vm10257_vm5, %v10256_v40  ;;  %vm10275_vm5 = vcmp.eq.s32.totalorder %v10274_v37, 1  ;;  %v10318_v37 = vld [vmem:[#allocation73_spill] sm:$0xff]  ;;  %v10333_v40 = vld [vmem:[#allocation24_spill] sm:$0xff] }
 0x749   : > { %v10335_v31 = vld [vmem:[#allocation69_spill] sm:$0xff] }
 0x74b   : > { %6030 = vmatmul.mubr.msk.f32.gmra.mrb[6].mxu1 %vm10259_vm9, %v10258_v42  ;;  %vm10277_vm9 = vcmp.eq.s32.totalorder %v10276_v46, 1  ;;  %v10316_v46 = vld [vmem:[#allocation35_spill] sm:$0xff]  ;;  %v10331_v42 = vld [vmem:[#allocation56_spill] sm:$0xff] }
 0x74c   : > { %6050 = vmatprep.mubr.msk.f32.mxu1 %vm1846_vm4, %v7771_v27  ;;  %v10359_v27 = vld [vmem:[#allocation70_spill] sm:$0xff] }
 0x81a   : > { %v6028_v55 = vpop.f32.mrb[4].mxu1 }
 0x81b   : > { %v2362_v18 = vadd.f32 %v6028_v55, %v10260_v56  ;;  %v2356_v51 = vpop.f32.mrb[5].mxu1 }
 0x81c   : > { %v2357_v4 = vadd.f32 %v2356_v51, %v10261_v54 }
 0x81d   : > { %v2376_v29 = vmax.f32 %v2362_v18, 0.0  ;;  %v10286_v18 = vld [vmem:[#allocation29_spill] sm:$0xff] }
 0x81e   : > { %v2375_v26 = vmax.f32 %v2357_v4, 0.0  ;;  %v6031_v49 = vpop.f32.mrb[6].mxu1  ;;  %v10288_v4 = vld [vmem:[#allocation67_spill] sm:$0xff] }
 0x81f   : > { %v7877_v8 = vadd.f32 1e-07, %v2376_v29  ;;  %v2372_v33 = vadd.f32 %v6031_v49, %v10263_v22  ;;  %v2366_v52 = vpop.f32.mrb[7].mxu1 }
 0x820   : > { %v7880_v43 = vadd.f32 1e-07, %v2375_v26  ;;  %v2367_v60 = vadd.f32 %v2366_v52, %v10265_v20  ;;  %v10290_v26 = vld [vmem:[#allocation27_spill] sm:$0xff]  ;;  %v10294_v52 = vld [vmem:[#allocation60_spill] sm:$0xff]  ;;  %v10326_v20 = vld [vmem:[#allocation77_spill] sm:$0xff] }
 0x821   : > { %10262 = vst [vmem:[#allocation96_spill] sm:$0xff] %v7877_v8  ;;  %v2378_v14 = vmax.f32 %v2372_v33, 0.0  ;;  %v7884_v5 = vmul.f32 %v2384_v19, %v7877_v8 }
 0x822   : > { %10264 = vst [vmem:[#allocation98_spill] sm:$0xff] %v7880_v43  ;;  %v7887_v23 = vmul.f32 %v2384_v19, %v7880_v43  ;;  %v2377_v11 = vmax.f32 %v2367_v60, 0.0  ;;  %v10354_v43 = vld [vmem:[#allocation25_spill] sm:$0xff] }
 0x823   : > { %v7889_v44 = vadd.f32 1e-07, %v2378_v14  ;;  %v2390_v0 = vsel %vm10271_vm1, %v7884_v5, -1e+30  ;;  %v2394_v57 = vsel %vm10273_vm0, %v7884_v5, -1e+30 }
 0x824   : > { %v7891_v61 = vadd.f32 1e-07, %v2377_v11  ;;  %v2389_v38 = vsel %vm10269_vm11, %v7887_v23, -1e+30  ;;  %v2393_v34 = vsel %vm10275_vm5, %v7887_v23, -1e+30 }
 0x825   : > { %10266 = vst [vmem:[#allocation14_spill] sm:$0xff] %v7889_v44  ;;  %v7894_v30 = vmul.f32 %v2384_v19, %v7889_v44  ;;  %v7914_v17 = vsel %vm10277_vm9, %v7887_v23, -1e+30  ;;  %vm10279_vm11 = vcmp.eq.s32.totalorder %v10278_v53, 1  ;;  %vm10281_vm1 = vcmp.eq.s32.totalorder %v10280_v7, 1  ;;  %v10296_v14 = vld [vmem:[#allocation34_spill] sm:$0xff] }
 0x826   : > { %10267 = vst [vmem:[#allocation85_spill] sm:$0xff] %v7891_v61  ;;  %v7897_v59 = vmul.f32 %v2384_v19, %v7891_v61  ;;  %v7919_v39 = vsel %vm10279_vm11, %v7884_v5, -1e+30  ;;  %v7924_v24 = vsel %vm10281_vm1, %v7887_v23, -1e+30  ;;  %vm10283_vm0 = vcmp.eq.s32.totalorder %v10282_v36, 1 }
 0x827   : > { %v7929_v28 = vsel %vm10283_vm0, %v7884_v5, -1e+30  ;;  %vm10285_vm5 = vcmp.eq.s32.totalorder %v10284_v1, 1  ;;  %vm10287_vm9 = vcmp.eq.s32.totalorder %v10286_v18, 1  ;;  %vm10289_vm11 = vcmp.eq.s32.totalorder %v10288_v4, 1  ;;  %v10292_v19 = vld [vmem:[#allocation22_spill] sm:$0xff] }
 0x828   : > { %v7934_v55 = vsel %vm10285_vm5, %v7887_v23, -1e+30  ;;  %v2392_v51 = vsel %vm10287_vm9, %v7894_v30, -1e+30  ;;  %v2396_v29 = vsel %vm10289_vm11, %v7894_v30, -1e+30 }
 0x829   : > { %vm10291_vm1 = vcmp.eq.s32.totalorder %v10290_v26, 1  ;;  %vm10293_vm0 = vcmp.eq.s32.totalorder %v10292_v19, 1  ;;  %vm10295_vm5 = vcmp.eq.s32.totalorder %v10294_v52, 1  ;;  %vm10297_vm9 = vcmp.eq.s32.totalorder %v10296_v14, 1  ;;  %v10302_v19 = vld [vmem:[#allocation42_spill] sm:$0xff]  ;;  %v10304_v52 = vld [vmem:[#allocation72_spill] sm:$0xff] }
 0x82a   : > { %v7945_v49 = vsel %vm10291_vm1, %v7884_v5, -1e+30  ;;  %v2391_v33 = vsel %vm10293_vm0, %v7897_v59, -1e+30  ;;  %v2395_v60 = vsel %vm10295_vm5, %v7897_v59, -1e+30 }
 0x82b   : > { %v7956_v11 = vsel %vm10297_vm9, %v7894_v30, -1e+30  ;;  %vm10299_vm11 = vcmp.eq.s32.totalorder %v10298_v9, 1  ;;  %vm10301_vm1 = vcmp.eq.s32.totalorder %v10300_v6, 1  ;;  %vm10303_vm0 = vcmp.eq.s32.totalorder %v10302_v19, 1  ;;  %v10306_v14 = vld [vmem:[#allocation47_spill] sm:$0xff] }
 0x82c   : > { %v2399_v58 = vsel %vm10299_vm11, %v7897_v59, -1e+30  ;;  %v2403_v26 = vsel %vm10301_vm1, %v7897_v59, -1e+30  ;;  %v7967_v4 = vsel %vm10303_vm0, %v7894_v30, -1e+30 }
 0x82d   : > { %vm10305_vm5 = vcmp.eq.s32.totalorder %v10304_v52, 1  ;;  %vm10307_vm9 = vcmp.eq.s32.totalorder %v10306_v14, 1  ;;  %v10308_v9 = vld [vmem:[#allocation68_spill] sm:$0xff]  ;;  %v10310_v36 = vld [vmem:[#allocation31_spill] sm:$0xff]  ;;  %v10314_v53 = vld [vmem:[#allocation49_spill] sm:$0xff] }
 0x82e   : > { %v7972_v18 = vsel %vm10305_vm5, %v7897_v59, -1e+30  ;;  %v7977_v1 = vsel %vm10307_vm9, %v7894_v30, -1e+30  ;;  %vm10309_vm11 = vcmp.eq.s32.totalorder %v10308_v9, 1  ;;  %vm10311_vm1 = vcmp.eq.s32.totalorder %v10310_v36, 1 }
 0x82f   : > { %v7982_v6 = vsel %vm10309_vm11, %v7887_v23, -1e+30  ;;  %v7987_v19 = vsel %vm10311_vm1, %v7884_v5, -1e+30  ;;  %v10312_v7 = vld [vmem:[#allocation76_spill] sm:$0xff]  ;;  %vm10315_vm5 = vcmp.eq.s32.totalorder %v10314_v53, 1 }
 0x830   : > { %vm10313_vm0 = vcmp.eq.s32.totalorder %v10312_v7, 1  ;;  %v7997_v14 = vsel %vm10315_vm5, %v7894_v30, -1e+30  ;;  %vm10317_vm9 = vcmp.eq.s32.totalorder %v10316_v46, 1  ;;  %vm10319_vm11 = vcmp.eq.s32.totalorder %v10318_v37, 1  ;;  %v10349_v61 = vld [vmem:[#allocation65_spill] sm:$0xff] }
 0x831   : > { %v7992_v52 = vsel %vm10313_vm0, %v7897_v59, -1e+30  ;;  %v8002_v9 = vsel %vm10317_vm9, %v7887_v23, -1e+30  ;;  %v8007_v36 = vsel %vm10319_vm11, %v7884_v5, -1e+30 }
 0x832   : > { %vm10321_vm1 = vcmp.eq.s32.totalorder %v10320_v41, 1  ;;  %vm10323_vm0 = vcmp.eq.s32.totalorder %v10322_v12, 1  ;;  %vm10325_vm5 = vcmp.eq.s32.totalorder %v10324_v25, 1  ;;  %vm10327_vm9 = vcmp.eq.s32.totalorder %v10326_v20, 1  ;;  %v10351_v44 = vld [vmem:[#allocation38_spill] sm:$0xff] }
 0x833   : > { %v8012_v7 = vsel %vm10321_vm1, %v7897_v59, -1e+30  ;;  %v8017_v53 = vsel %vm10323_vm0, %v7894_v30, -1e+30  ;;  %v8022_v46 = vsel %vm10325_vm5, %v7887_v23, -1e+30 }
 0x834   : > { %v8027_v37 = vsel %vm10327_vm9, %v7884_v5, -1e+30  ;;  %v8032_v41 = vsel %vm1388_vm8, %v7897_v59, -1e+30  ;;  %v8037_v12 = vsel %vm1389_vm7, %v7894_v30, -1e+30 }
 0x835   : > { %v8042_v25 = vsel %vm1390_vm6, %v7887_v23, -1e+30  ;;  %vm10332_vm11 = vcmp.eq.s32.totalorder %v10331_v42, 1  ;;  %vm10334_vm1 = vcmp.eq.s32.totalorder %v10333_v40, 1  ;;  %vm10336_vm0 = vcmp.eq.s32.totalorder %v10335_v31, 1 }
 0x836   : > { %v8047_v20 = vsel %vm10332_vm11, %v7884_v5, -1e+30  ;;  %v8052_v22 = vsel %vm10334_vm1, %v7897_v59, -1e+30  ;;  %v8057_v54 = vsel %vm10336_vm0, %v7894_v30, -1e+30 }
 0x837   : > { %vm10338_vm5 = vcmp.eq.s32.totalorder %v10337_v50, 1  ;;  %vm10340_vm9 = vcmp.eq.s32.totalorder %v10339_v48, 1  ;;  %vm10342_vm11 = vcmp.eq.s32.totalorder %v10341_v15, 1  ;;  %vm10344_vm1 = vcmp.eq.s32.totalorder %v10343_v32, 1 }
 0x838   : > { %v8062_v56 = vsel %vm10338_vm5, %v7887_v23, -1e+30  ;;  %v8067_v42 = vsel %vm10340_vm9, %v7884_v5, -1e+30  ;;  %v8072_v40 = vsel %vm10342_vm11, %v7897_v59, -1e+30 }
 0x839   : > { %v8077_v31 = vsel %vm10344_vm1, %v7894_v30, -1e+30  ;;  %vm10346_vm0 = vcmp.eq.s32.totalorder %v10345_v16, 1  ;;  %vm10348_vm5 = vcmp.eq.s32.totalorder %v10347_v63, 1  ;;  %vm10350_vm9 = vcmp.eq.s32.totalorder %v10349_v61, 1 }
 0x83a   : > { %v8082_v50 = vsel %vm10346_vm0, %v7887_v23, -1e+30  ;;  %v8087_v48 = vsel %vm10348_vm5, %v7884_v5, -1e+30  ;;  %v8092_v15 = vsel %vm10350_vm9, %v7897_v59, -1e+30 }
 0x83b   : > { %vm10352_vm11 = vcmp.eq.s32.totalorder %v10351_v44, 1  ;;  %vm10355_vm1 = vcmp.eq.s32.totalorder %v10354_v43, 1  ;;  %v8107_v63 = vsel %vm10003_vm14, %v7884_v5, -1e+30  ;;  %vm10360_vm0 = vcmp.eq.s32.totalorder %v10359_v27, 1 }
 0x83c   : > { %v8097_v32 = vsel %vm10352_vm11, %v7894_v30, -1e+30  ;;  %v8102_v16 = vsel %vm10355_vm1, %v7887_v23, -1e+30  ;;  %10358 = vst [vmem:[#allocation89_spill] sm:$0xff] %v8107_v63  ;;  %vm10363_vm5 = vcmp.eq.s32.totalorder %v10362_v3, 1 }
 0x83d   : > { %10353 = vst [vmem:[#allocation86_spill] sm:$0xff] %v8097_v32  ;;  %10356 = vst [vmem:[#allocation87_spill] sm:$0xff] %v8102_v16  ;;  %v8112_v61 = vsel %vm10360_vm0, %v7897_v59, -1e+30  ;;  %v8117_v44 = vsel %vm10363_vm5, %v7894_v30, -1e+30 }
 0x83e   : > { %10361 = vst [vmem:[#allocation37_spill] sm:$0xff] %v8112_v61  ;;  %10364 = vst [vmem:[#allocation36_spill] sm:$0xff] %v8117_v44  ;;  %v8122_v43 = vsel %vm10002_vm12, %v7887_v23, -1e+30  ;;  %vm10368_vm9 = vcmp.eq.s32.totalorder %v10367_v2, 1  ;;  %v10370_v32 = vld [vmem:[#allocation74_spill] sm:$0xff] }
 0x83f   : > { %10366 = vst [vmem:[#allocation99_spill] sm:$0xff] %v8122_v43  ;;  %v8127_v8 = vsel %vm10368_vm9, %v7884_v5, -1e+30  ;;  %vm10371_vm11 = vcmp.eq.s32.totalorder %v10370_v32, 1  ;;  %v8137_v3 = vsel %vm10001_vm10, %v7894_v30, -1e+30 }
 0x840   : > { %10369 = vst [vmem:[#allocation100_spill] sm:$0xff] %v8127_v8  ;;  %v8132_v27 = vsel %vm10371_vm11, %v7897_v59, -1e+30  ;;  %10374 = vst [vmem:[#allocation102_spill] sm:$0xff] %v8137_v3  ;;  %v8142_v10 = vsel %vm10000_vm13, %v7887_v23, -1e+30 }
 0x841   : > { %10372 = vst [vmem:[#allocation101_spill] sm:$0xff] %v8132_v27  ;;  %10376 = vst [vmem:[#allocation103_spill] sm:$0xff] %v8142_v10  ;;  %v10377_v43 = vld [vmem:[#allocation71_spill] sm:$0xff]  ;;  %v10380_v8 = vld [vmem:[#allocation78_spill] sm:$0xff] }
 0x842   : > { %vm10378_vm1 = vcmp.eq.s32.totalorder %v10377_v43, 1  ;;  %vm10381_vm0 = vcmp.eq.s32.totalorder %v10380_v8, 1  ;;  %v10383_v27 = vld [vmem:[#allocation50_spill] sm:$0xff]  ;;  %v10386_v3 = vld [vmem:[#allocation39_spill] sm:$0xff] }
 0x843   : > { %v8147_v2 = vsel %vm10378_vm1, %v7884_v5, -1e+30  ;;  %v8152_v32 = vsel %vm10381_vm0, %v7897_v59, -1e+30  ;;  %vm10384_vm5 = vcmp.eq.s32.totalorder %v10383_v27, 1  ;;  %vm10387_vm9 = vcmp.eq.s32.totalorder %v10386_v3, 1 }
 0x844   : > { %10379 = vst [vmem:[#allocation104_spill] sm:$0xff] %v8147_v2  ;;  %10382 = vst [vmem:[#allocation105_spill] sm:$0xff] %v8152_v32  ;;  %v8157_v61 = vsel %vm10384_vm5, %v7894_v30, -1e+30  ;;  %v8162_v44 = vsel %vm10387_vm9, %v7887_v23, -1e+30 }
 0x845   : > { %10385 = vst [vmem:[#allocation106_spill] sm:$0xff] %v8157_v61  ;;  %10388 = vst [vmem:[#allocation107_spill] sm:$0xff] %v8162_v44  ;;  %v10389_v10 = vld [vmem:[#allocation75_spill] sm:$0xff]  ;;  %vm10392_vm1 = vcmask 130048  }
 0x846   : > { %vm10390_vm11 = vcmp.eq.s32.totalorder %v10389_v10, 1  ;;  %v2453_v2 = vsel %vm10392_vm1, %v2389_v38, -inf  ;;  %vm10393_vm13 = vmmov %vm10392_vm1 }
 0x847   : > { %v8167_v43 = vsel %vm10390_vm11, %v7884_v5, -1e+30  ;;  %v2454_v8 = vsel %vm10393_vm13, %v2390_v0, -inf  ;;  %vm10394_vm0 = vmmov %vm10392_vm1 }
 0x848   : > { %10391 = vst [vmem:[#allocation108_spill] sm:$0xff] %v8167_v43  ;;  %v2456_v32 = vsel %vm10394_vm0, %v2391_v33, -inf  ;;  %v2455_v63 = vmax.f32 %v2453_v2, %v2454_v8  ;;  %vm10395_vm10 = vmmov %vm10394_vm0 }
 0x849   : > { %v2466_v27 = vsel %vm10395_vm10, %v2393_v34, -inf  ;;  %vm10396_vm5 = vmmov %vm10394_vm0 }
 0x84a   : > { %v2467_v61 = vsel %vm10396_vm5, %v2394_v57, -inf  ;;  %vm10397_vm12 = vmmov %vm10394_vm0  ;;  %v2457_v43 = vmax.f32 %v2455_v63, %v2456_v32 }
 0x84b   : > { %v2469_v3 = vsel %vm10397_vm12, %v2395_v60, -inf  ;;  %vm10398_vm9 = vmmov %vm10394_vm0  ;;  %v2468_v16 = vmax.f32 %v2466_v27, %v2467_v61  ;;  %v2495_v27 = vsel %vm10394_vm0, %v2403_v26, -inf }
 0x84c   : > { %v2458_v44 = vsel %vm10398_vm9, %v2392_v51, -inf  ;;  %vm10399_vm14 = vmmov %vm10394_vm0 }
 0x84d   : > { %v2479_v10 = vsel %vm10399_vm14, %v7914_v17, -inf  ;;  %vm10400_vm11 = vmmov %vm10394_vm0  ;;  %v2470_v8 = vmax.f32 %v2468_v16, %v2469_v3  ;;  %v2459_v61 = vmax.f32 %v2457_v43, %v2458_v44 }
 0x84e   : > { %v2480_v38 = vsel %vm10400_vm11, %v7919_v39, -inf  ;;  %vm10401_vm13 = vmmov %vm10394_vm0 }
 0x84f   : > { %v2471_v0 = vsel %vm10401_vm13, %v2396_v29, -inf  ;;  %v2481_v33 = vmax.f32 %v2479_v10, %v2480_v38  ;;  %vm10402_vm1 = vmmov %vm10394_vm0 }
 0x850   : > { %v2482_v2 = vsel %vm10402_vm1, %v2399_v58, -inf  ;;  %vm10403_vm10 = vmmov %vm10394_vm0  ;;  %v2472_v32 = vmax.f32 %v2470_v8, %v2471_v0  ;;  %v2460_v58 = vrot.slane %v2459_v61, 4 }
 0x851   : > { %v2492_v57 = vsel %vm10403_vm10, %v7924_v24, -inf  ;;  %vm10404_vm12 = vmmov %vm10394_vm0  ;;  %v2483_v17 = vmax.f32 %v2481_v33, %v2482_v2  ;;  %v2521_v33 = vsel %vm10394_vm0, %v7992_v52, -inf }
 0x852   : > { %v2493_v34 = vsel %vm10404_vm12, %v7929_v28, -inf  ;;  %vm10405_vm14 = vmmov %vm10394_vm0  ;;  %v2473_v43 = vrot.slane %v2472_v32, 4  ;;  %v2461_v26 = vmax.f32 %v2459_v61, %v2460_v58 }
 0x853   : > { %v2484_v39 = vsel %vm10405_vm14, %v7956_v11, -inf  ;;  %v2494_v63 = vmax.f32 %v2492_v57, %v2493_v34  ;;  %vm10406_vm5 = vmmov %vm10394_vm0 }
 0x854   : > { %v2505_v10 = vsel %vm10406_vm5, %v7934_v55, -inf  ;;  %vm10407_vm9 = vmmov %vm10394_vm0  ;;  %v2485_v24 = vmax.f32 %v2483_v17, %v2484_v39  ;;  %v2474_v38 = vmax.f32 %v2472_v32, %v2473_v43  ;;  %v2462_v2 = vrot.slane %v2461_v26, 2 }
 0x855   : > { %v2506_v3 = vsel %vm10407_vm9, %v7945_v49, -inf  ;;  %vm10408_vm11 = vmmov %vm10394_vm0  ;;  %v2496_v28 = vmax.f32 %v2494_v63, %v2495_v27  ;;  %v2536_v43 = vsel %vm10394_vm0, %v8017_v53, -inf }
 0x856   : > { %v2508_v16 = vsel %vm10408_vm11, %v7972_v18, -inf  ;;  %v2507_v51 = vmax.f32 %v2505_v10, %v2506_v3  ;;  %vm10409_vm13 = vmmov %vm10394_vm0  ;;  %v2486_v60 = vrot.slane %v2485_v24, 4  ;;  %v2463_v63 = vmax.f32 %v2461_v26, %v2462_v2 }
 0x857   : > { %v2497_v44 = vsel %vm10409_vm13, %v7967_v4, -inf  ;;  %vm10410_vm1 = vmmov %vm10394_vm0  ;;  %vm10417_vm13 = vcmp.eq.s32.totalorder %v7164_v13, 1 }
 0x858   : > { %v2518_v29 = vsel %vm10410_vm1, %v7982_v6, -inf  ;;  %vm10411_vm10 = vmmov %vm10394_vm0  ;;  %v2498_v49 = vmax.f32 %v2496_v28, %v2497_v44  ;;  %v2509_v11 = vmax.f32 %v2507_v51, %v2508_v16  ;;  %v2487_v4 = vmax.f32 %v2485_v24, %v2486_v60 }
 0x859   : > { %v2519_v55 = vsel %vm10411_vm10, %v7987_v19, -inf  ;;  %vm10412_vm12 = vmmov %vm10394_vm0  ;;  %v2475_v6 = vrot.slane %v2474_v38, 2  ;;  %vm10418_vm1 = vcmp.eq.s32.totalorder %v7557_v47, 1  ;;  %vm10419_vm10 = vcmp.eq.s32.totalorder %v10181_v62, 1 }
 0x85a   : > { %v2510_v18 = vsel %vm10412_vm12, %v7977_v1, -inf  ;;  %v2520_v0 = vmax.f32 %v2518_v29, %v2519_v55  ;;  %v2499_v8 = vrot.slane %v2498_v49, 4  ;;  %vm10413_vm14 = vmmov %vm10394_vm0  ;;  %v2488_v61 = vrot.slane %v2487_v4, 2 }
 0x85b   : > { %v2511_v57 = vmax.f32 %v2509_v11, %v2510_v18  ;;  %v2531_v19 = vsel %vm10413_vm14, %v8002_v9, -inf  ;;  %vm10414_vm5 = vmmov %vm10394_vm0  ;;  %v2476_v3 = vmax.f32 %v2474_v38, %v2475_v6  ;;  %v8216_v9 = vsel %vm10417_vm13, %v7897_v59, -1e+30 }
 0x85c   : > { %v2522_v34 = vmax.f32 %v2520_v0, %v2521_v33  ;;  %v2532_v27 = vsel %vm10414_vm5, %v8007_v36, -inf  ;;  %v2500_v17 = vmax.f32 %v2498_v49, %v2499_v8  ;;  %vm10415_vm9 = vmmov %vm10394_vm0  ;;  %v2489_v16 = vmax.f32 %v2487_v4, %v2488_v61 }
 0x85d   : > { %v2512_v39 = vrot.slane %v2511_v57, 4  ;;  %v2523_v1 = vsel %vm10415_vm9, %v7997_v14, -inf  ;;  %v2533_v32 = vmax.f32 %v2531_v19, %v2532_v27  ;;  %vm10416_vm11 = vmmov %vm10394_vm0  ;;  %v8221_v36 = vsel %vm10418_vm1, %v7894_v30, -1e+30 }
 0x85e   : > { %v2524_v52 = vmax.f32 %v2522_v34, %v2523_v1  ;;  %v2534_v10 = vsel %vm10416_vm11, %v8012_v7, -inf  ;;  %v2501_v58 = vrot.slane %v2500_v17, 2  ;;  %v8226_v7 = vsel %vm10419_vm10, %v7887_v23, -1e+30  ;;  %vm10421_vm14 = vmmov %vm10394_vm0 }
 0x85f   : > { %v2513_v24 = vmax.f32 %v2511_v57, %v2512_v39  ;;  %v2535_v28 = vmax.f32 %v2533_v32, %v2534_v10  ;;  %vm10420_vm12 = vcmp.eq.s32.totalorder %v10180_v35, 1  ;;  %v2464_v44 = vrot.slane %v2463_v63, 1  ;;  %vm10422_vm5 = vmmov %vm10394_vm0 }
 0x860   : > { %v2525_v14 = vrot.slane %v2524_v52, 4  ;;  %v8231_v51 = vsel %vm10420_vm12, %v7884_v5, -1e+30  ;;  %v2502_v29 = vmax.f32 %v2500_v17, %v2501_v58  ;;  %v2544_v26 = vsel %vm10421_vm14, %v8022_v46, -inf  ;;  %vm10423_vm9 = vmmov %vm10394_vm0 }
 0x861   : > { %v2537_v55 = vmax.f32 %v2535_v28, %v2536_v43  ;;  %v2477_v60 = vrot.slane %v2476_v3, 1  ;;  %v2490_v49 = vrot.slane %v2489_v16, 1  ;;  %v2514_v11 = vrot.slane %v2513_v24, 2  ;;  %vm10426_vm1 = vmmov %vm10394_vm0  ;;  %v10437_v43 = vld [vmem:[#allocation87_spill] sm:$0xff] }
 0x862   : > { %v2545_v38 = vsel %vm10422_vm5, %v8027_v37, -inf  ;;  %v2526_v18 = vmax.f32 %v2524_v52, %v2525_v14  ;;  %v2547_v2 = vsel %vm10423_vm9, %v8032_v41, -inf  ;;  %vm10424_vm11 = vcmp.eq.s32.totalorder %v7498_v45, 1  ;;  %vm10427_vm10 = vmmov %vm10394_vm0 }
 0x863   : > { %v2538_v0 = vrot.slane %v2537_v55, 4  ;;  %v2546_v33 = vmax.f32 %v2544_v26, %v2545_v38  ;;  %v8244_v53 = vsel %vm10424_vm11, %v7897_v59, -1e+30  ;;  %vm10425_vm13 = vcmp.eq.s32.totalorder %v7594_v21, 1  ;;  %vm10428_vm12 = vmmov %vm10394_vm0 }
 0x864   : > { %v8249_v46 = vsel %vm10425_vm13, %v7894_v30, -1e+30  ;;  %v2557_v4 = vsel %vm10426_vm1, %v8042_v25, -inf  ;;  %v8253_v37 = vmax.f32 %v2463_v63, %v2464_v44  ;;  %v2503_v8 = vrot.slane %v2502_v29, 1  ;;  %vm10429_vm14 = vmmov %vm10394_vm0 }
 0x865   : > { %v2548_v57 = vmax.f32 %v2546_v33, %v2547_v2  ;;  %v2558_v41 = vsel %vm10427_vm10, %v8047_v20, -inf  ;;  %v8257_v6 = vmax.f32 %v2476_v3, %v2477_v60  ;;  %v8259_v34 = vmax.f32 %v2489_v16, %v2490_v49  ;;  %vm10430_vm5 = vmmov %vm10394_vm0  ;;  %v10440_v49 = vld [vmem:[#allocation86_spill] sm:$0xff] }
 0x866   : > { %v2559_v19 = vmax.f32 %v2557_v4, %v2558_v41  ;;  %v2560_v27 = vsel %vm10428_vm12, %v8052_v22, -inf  ;;  %v8263_v61 = vmax.f32 %v2513_v24, %v2514_v11  ;;  %v2527_v17 = vrot.slane %v2526_v18, 2  ;;  %vm10431_vm9 = vmmov %vm10394_vm0 }
 0x867   : > { %v2539_v39 = vmax.f32 %v2537_v55, %v2538_v0  ;;  %v2570_v25 = vsel %vm10394_vm0, %v8062_v56, -inf  ;;  %v2549_v1 = vsel %vm10429_vm14, %v8037_v12, -inf  ;;  %v2571_v20 = vsel %vm10430_vm5, %v8067_v42, -inf  ;;  %vm10432_vm11 = vmmov %vm10394_vm0  ;;  %v10442_v0 = vld [vmem:[#allocation37_spill] sm:$0xff] }
 0x868   : > { %v2561_v63 = vmax.f32 %v2559_v19, %v2560_v27  ;;  %v2573_v52 = vsel %vm10431_vm9, %v8072_v40, -inf  ;;  %v8273_v32 = vmax.f32 %v2502_v29, %v2503_v8  ;;  %v2550_v22 = vmax.f32 %v2548_v57, %v2549_v1  ;;  %vm10433_vm13 = vmmov %vm10394_vm0  ;;  %v10438_v29 = vld [vmem:[#allocation89_spill] sm:$0xff]  ;;  %v10444_v8 = vld [vmem:[#allocation99_spill] sm:$0xff] }
 0x869   : > { %v2562_v10 = vsel %vm10432_vm11, %v8057_v54, -inf  ;;  %v2572_v3 = vmax.f32 %v2570_v25, %v2571_v20  ;;  %v2583_v56 = vsel %vm10433_vm13, %v8082_v50, -inf  ;;  %vm10434_vm1 = vmmov %vm10394_vm0  ;;  %v2516_v58 = vrot.slane %v8263_v61, 1  ;;  %v10446_v19 = vld [vmem:[#allocation100_spill] sm:$0xff] }
 0x86a   : > { %v2563_v16 = vmax.f32 %v2561_v63, %v2562_v10  ;;  %v2584_v12 = vsel %vm10434_vm1, %v8087_v48, -inf  ;;  %vm10435_vm10 = vmmov %vm10394_vm0  ;;  %v2540_v40 = vrot.slane %v2539_v39, 2  ;;  %v2596_v44 = vsel %vm10394_vm0, %v10437_v43, -inf  ;;  %v10450_v20 = vld [vmem:[#allocation36_spill] sm:$0xff] }
 0x86b   : > { %v2586_v42 = vsel %vm10435_vm10, %v8092_v15, -inf  ;;  %v2574_v24 = vmax.f32 %v2572_v3, %v2573_v52  ;;  %v2585_v14 = vmax.f32 %v2583_v56, %v2584_v12  ;;  %vm10436_vm12 = vmmov %vm10394_vm0  ;;  %v8290_v55 = vmax.f32 %v2526_v18, %v2527_v17  ;;  %v10448_v17 = vld [vmem:[#allocation101_spill] sm:$0xff]  ;;  %v10452_v56 = vld [vmem:[#allocation103_spill] sm:$0xff] }
 0x86c   : > { %v2564_v28 = vrot.slane %v2563_v16, 4  ;;  %v2575_v54 = vsel %vm10436_vm12, %v8077_v31, -inf  ;;  %vm10439_vm14 = vmmov %vm10394_vm0  ;;  %v2551_v48 = vrot.slane %v2550_v22, 4  ;;  %v8296_v31 = vmax.f32 %v2539_v39, %v2540_v40 }
 0x86d   : > { %v2597_v50 = vsel %vm10439_vm14, %v10438_v29, -inf  ;;  %v2576_v26 = vmax.f32 %v2574_v24, %v2575_v54  ;;  %v2587_v15 = vmax.f32 %v2585_v14, %v2586_v42  ;;  %vm10441_vm5 = vmmov %vm10394_vm0  ;;  %v10454_v14 = vld [vmem:[#allocation102_spill] sm:$0xff] }
 0x86e   : > { %v2565_v60 = vmax.f32 %v2563_v16, %v2564_v28  ;;  %v2588_v11 = vsel %vm10441_vm5, %v10440_v49, -inf  ;;  %v2598_v38 = vmax.f32 %v2596_v44, %v2597_v50  ;;  %vm10443_vm9 = vmmov %vm10394_vm0  ;;  %v2552_v10 = vmax.f32 %v2550_v22, %v2551_v48  ;;  %v10455_v44 = vld [vmem:[#allocation104_spill] sm:$0xff]  ;;  %v10457_v50 = vld [vmem:[#allocation105_spill] sm:$0xff] }
 0x86f   : > { %v2599_v33 = vsel %vm10443_vm9, %v10442_v0, -inf  ;;  %v2577_v2 = vrot.slane %v2576_v26, 4  ;;  %v2589_v4 = vmax.f32 %v2587_v15, %v2588_v11  ;;  %vm10445_vm11 = vmmov %vm10394_vm0  ;;  %v2614_v28 = vsel %vm10394_vm0, %v10454_v14, -inf  ;;  %v10459_v0 = vld [vmem:[#allocation107_spill] sm:$0xff] }
 0x870   : > { %v2609_v57 = vsel %vm10445_vm11, %v10444_v8, -inf  ;;  %v2566_v18 = vrot.slane %v2565_v60, 2  ;;  %v2600_v41 = vmax.f32 %v2598_v38, %v2599_v33  ;;  %vm10447_vm13 = vmmov %vm10394_vm0  ;;  %v2553_v49 = vrot.slane %v2552_v10, 2 }
 0x871   : > { %v2610_v27 = vsel %vm10447_vm13, %v10446_v19, -inf  ;;  %vm10449_vm1 = vmmov %vm10394_vm0  ;;  %v2578_v1 = vmax.f32 %v2576_v26, %v2577_v2  ;;  %v2590_v63 = vrot.slane %v2589_v4, 4 }
 0x872   : > { %v2612_v25 = vsel %vm10449_vm1, %v10448_v17, -inf  ;;  %vm10451_vm10 = vmmov %vm10394_vm0  ;;  %v2611_v39 = vmax.f32 %v2609_v57, %v2610_v27  ;;  %v2567_v3 = vmax.f32 %v2565_v60, %v2566_v18  ;;  %v10463_v27 = vld [vmem:[#allocation108_spill] sm:$0xff] }
 0x873   : > { %v2601_v52 = vsel %vm10451_vm10, %v10450_v20, -inf  ;;  %vm10453_vm12 = vmmov %vm10394_vm0  ;;  %v2579_v42 = vrot.slane %v2578_v1, 2  ;;  %v2591_v40 = vmax.f32 %v2589_v4, %v2590_v63 }
 0x874   : > { %v2602_v16 = vmax.f32 %v2600_v41, %v2601_v52  ;;  %v2622_v12 = vsel %vm10453_vm12, %v10452_v56, -inf  ;;  %v2613_v24 = vmax.f32 %v2611_v39, %v2612_v25  ;;  %v2568_v54 = vrot.slane %v2567_v3, 1  ;;  %vm10456_vm14 = vmmov %vm10394_vm0  ;;  %v10461_v41 = vld [vmem:[#allocation106_spill] sm:$0xff] }
 0x875   : > { %v2623_v29 = vsel %vm10456_vm14, %v10455_v44, -inf  ;;  %vm10458_vm5 = vmmov %vm10394_vm0  ;;  %v2580_v22 = vmax.f32 %v2578_v1, %v2579_v42  ;;  %v2592_v48 = vrot.slane %v2591_v40, 2 }
 0x876   : > { %v2603_v43 = vrot.slane %v2602_v16, 4  ;;  %v2625_v26 = vsel %vm10458_vm5, %v10457_v50, -inf  ;;  %v2615_v15 = vmax.f32 %v2613_v24, %v2614_v28  ;;  %v2624_v60 = vmax.f32 %v2622_v12, %v2623_v29  ;;  %vm10460_vm9 = vmmov %vm10394_vm0 }
 0x877   : > { %v2569_v11 = vmax.f32 %v2567_v3, %v2568_v54  ;;  %v2635_v33 = vsel %vm10460_vm9, %v10459_v0, -inf  ;;  %v2581_v2 = vrot.slane %v2580_v22, 1  ;;  %v2593_v4 = vmax.f32 %v2591_v40, %v2592_v48  ;;  %vm10462_vm11 = vmmov %vm10394_vm0 }
 0x878   : > { %v2604_v38 = vmax.f32 %v2602_v16, %v2603_v43  ;;  %v2616_v8 = vrot.slane %v2615_v15, 4  ;;  %v2626_v57 = vmax.f32 %v2624_v60, %v2625_v26  ;;  %v2627_v19 = vsel %vm10462_vm11, %v10461_v41, -inf  ;;  %vm10464_vm13 = vmmov %vm10394_vm0 }
 0x879   : > { %v2636_v17 = vsel %vm10464_vm13, %v10463_v27, -inf  ;;  %vm10465_vm1 = vmmov %vm10394_vm0  ;;  %v2582_v1 = vmax.f32 %v2580_v22, %v2581_v2  ;;  %v2594_v63 = vrot.slane %v2593_v4, 1  ;;  %v2640_v40 = vsel %vm10394_vm0, %v8221_v36, -inf }
 0x87a   : > { %v2605_v18 = vrot.slane %v2604_v38, 2  ;;  %v2638_v25 = vsel %vm10465_vm1, %v8216_v9, -inf  ;;  %v2617_v20 = vmax.f32 %v2615_v15, %v2616_v8  ;;  %v2628_v52 = vmax.f32 %v2626_v57, %v2627_v19  ;;  %vm10466_vm10 = vmmov %vm10394_vm0 }
 0x87b   : > { %v2637_v3 = vmax.f32 %v2635_v33, %v2636_v17  ;;  %v2648_v16 = vsel %vm10466_vm10, %v8226_v7, -inf  ;;  %vm10467_vm12 = vmmov %vm10394_vm0  ;;  %v2595_v14 = vmax.f32 %v2593_v4, %v2594_v63  ;;  %v2677_v7 = vsel %vm1710_vm15, %v8257_v6, %v8253_v37 }
 0x87c   : > { %v2606_v39 = vmax.f32 %v2604_v38, %v2605_v18  ;;  %v2649_v56 = vsel %vm10467_vm12, %v8231_v51, -inf  ;;  %v2618_v12 = vrot.slane %v2617_v20, 2  ;;  %v2629_v42 = vrot.slane %v2628_v52, 4  ;;  %vm10468_vm14 = vmmov %vm10394_vm0 }
 0x87d   : > { %v2650_v24 = vmax.f32 %v2648_v16, %v2649_v56  ;;  %v2639_v28 = vmax.f32 %v2637_v3, %v2638_v25  ;;  %v2651_v54 = vsel %vm10468_vm14, %v8244_v53, -inf  ;;  %vm10469_vm5 = vmmov %vm10394_vm0  ;;  %v2678_v36 = vsel %vm1712_vm2, %v8259_v34, %v2677_v7 }
 0x87e   : > { %v2607_v9 = vrot.slane %v2606_v39, 1  ;;  %v2619_v43 = vmax.f32 %v2617_v20, %v2618_v12  ;;  %v2630_v44 = vmax.f32 %v2628_v52, %v2629_v42  ;;  %v2653_v50 = vsel %vm10469_vm5, %v8249_v46, -inf }
 0x87f   : > { %v2652_v29 = vmax.f32 %v2650_v24, %v2651_v54  ;;  %v2641_v51 = vmax.f32 %v2639_v28, %v2640_v40  ;;  %v2684_v26 = vsel %vm1710_vm15, %v2582_v1, %v2569_v11  ;;  %v2529_v22 = vrot.slane %v8290_v55, 1  ;;  %v10478_v40 = vld [vmem:[#allocation79_spill] sm:$0xff]  ;;  %v10479_v24 = vld [vmem:[#allocation46_spill] sm:$0xff] }
 0x880   : > { %v2631_v48 = vrot.slane %v2630_v44, 2  ;;  %v2679_v15 = vsel %vm1714_vm3, %v8273_v32, %v2678_v36  ;;  %v2517_v37 = vmax.f32 %v8263_v61, %v2516_v58  ;;  %v2620_v6 = vrot.slane %v2619_v43, 1 }
 0x881   : > { %v2654_v53 = vmax.f32 %v2652_v29, %v2653_v50  ;;  %v2642_v60 = vrot.slane %v2641_v51, 4  ;;  %v2685_v46 = vsel %vm1712_vm2, %v2595_v14, %v2684_v26  ;;  %v2554_v38 = vmax.f32 %v2552_v10, %v2553_v49  ;;  %v10481_v14 = vld [vmem:[#allocation91_spill] sm:$0xff] }
 0x882   : > { %v2608_v0 = vmax.f32 %v2606_v39, %v2607_v9  ;;  %v2632_v34 = vmax.f32 %v2630_v44, %v2631_v48  ;;  %v2542_v11 = vrot.slane %v8296_v31, 1  ;;  %vm10470_vm9 = vcmask 1044484   ;;  %v10483_v9 = vld [vmem:[#allocation90_spill] sm:$0xff] }
 0x883   : > { %v2655_v33 = vrot.slane %v2654_v53, 4  ;;  %v2643_v2 = vmax.f32 %v2641_v51, %v2642_v60  ;;  %v2680_v4 = vsel %vm10470_vm9, %v2517_v37, %v2679_v15  ;;  %v2530_v8 = vmax.f32 %v8290_v55, %v2529_v22  ;;  %vm10472_vm13 = vmmov %vm10470_vm9  ;;  %v10484_v60 = vld [vmem:[#allocation96_spill] sm:$0xff] }
 0x884   : > { %v2633_v32 = vrot.slane %v2632_v34, 1  ;;  %v2686_v18 = vsel %vm1714_vm3, %v2608_v0, %v2685_v46  ;;  %v2621_v61 = vmax.f32 %v2619_v43, %v2620_v6  ;;  %v2555_v41 = vrot.slane %v2554_v38, 1  ;;  %vm10480_vm9 = vmmov %vm10469_vm5  ;;  %v10485_v0 = vld [vmem:[#allocation98_spill] sm:$0xff] }
 0x885   : > { %v2656_v57 = vmax.f32 %v2654_v53, %v2655_v33  ;;  %v2644_v58 = vrot.slane %v2643_v2, 2  ;;  %vm10471_vm11 = vcmask 1045509   ;;  %v2543_v49 = vmax.f32 %v8296_v31, %v2542_v11 }
 0x886   : > { %v2681_v10 = vsel %vm10471_vm11, %v2530_v8, %v2680_v4  ;;  %v2687_v17 = vsel %vm10472_vm13, %v2621_v61, %v2686_v18  ;;  %v2634_v25 = vmax.f32 %v2632_v34, %v2633_v32  ;;  %vm10473_vm1 = vcmask 1046534   ;;  %vm10474_vm10 = vmmov %vm10471_vm11  ;;  %v10487_v8 = vld [vmem:[#allocation85_spill] sm:$0xff]  ;;  %v10488_v18 = vld [vmem:[#allocation92_spill] sm:$0xff] }
 0x887   : > { %v2657_v19 = vrot.slane %v2656_v57, 2  ;;  %v2645_v27 = vmax.f32 %v2643_v2, %v2644_v58  ;;  %v2682_v55 = vsel %vm10473_vm1, %v2543_v49, %v2681_v10  ;;  %v2556_v20 = vmax.f32 %v2554_v38, %v2555_v41  ;;  %vm10476_vm0 = vmmov %vm10473_vm1  ;;  %v10489_v61 = vld [vmem:[#allocation15_spill] sm:$0xff]  ;;  %v5680_v41 = vld [vmem:[%s9787_s10 + $0x18] sm:$0xff] }
 0x888   : > { %v2688_v39 = vsel %vm10474_vm10, %v2634_v25, %v2687_v17  ;;  %vm10475_vm12 = vcmask 1047559   ;;  %vm10482_vm11 = vmmov %vm10469_vm5  ;;  %v5679_v58 = vld [vmem:[%s9787_s10 + $0x10] sm:$0xff] }
 0x889   : > { %v2658_v1 = vmax.f32 %v2656_v57, %v2657_v19  ;;  %v2646_v63 = vrot.slane %v2645_v27, 1  ;;  %v2683_v56 = vsel %vm10475_vm12, %v2556_v20, %v2682_v55  ;;  %vm10477_vm14 = vmmov %vm10475_vm12  ;;  %v6311_v19 = vpack.c.bf16 %v5680_v41, %v5679_v58 }
 0x88a   : > { %vm10490_vm13 = vmmov %vm10469_vm5 }
 0x88b   : > { %v2659_v52 = vrot.slane %v2658_v1, 1  ;;  %v2647_v3 = vmax.f32 %v2645_v27, %v2646_v63  ;;  %vm10495_vm1 = vmmov %vm10469_vm5 }
 0x88c   : > { %vm10496_vm10 = vmmov %vm10495_vm1 }
 0x88d   : > { %v2660_v16 = vmax.f32 %v2658_v1, %v2659_v52  ;;  %v2689_v12 = vsel %vm10476_vm0, %v2647_v3, %v2688_v39  ;;  %v10491_v39 = vld [vmem:[#allocation97_spill] sm:$0xff]  ;;  %vm10498_vm12 = vmmov %vm10495_vm1 }
 0x88e   : > { %v10492_v3 = vmax.f32 %v10491_v39, 0.0  ;;  %vm10503_vm0 = vmmov %vm10495_vm1 }
 0x88f   : > { %v2690_v31 = vsel %vm10477_vm14, %v2660_v16, %v2689_v12  ;;  %vm10504_vm14 = vmmov %vm10503_vm0 }
 0x890   : > { %v6291_v42 = vpack.c.bf16 %v2690_v31, %v2683_v56  ;;  %v10493_v56 = vld [vmem:[#allocation95_spill] sm:$0xff] }
 0x891   : > { %v10494_v12 = vmax.f32 %v10493_v56, 0.0 }
 0x892   : > { %6292 = vmatprep.subr.bf16.mxu0 %v6291_v42 }
 0x893   : > { %6294 = vmatpush3.bf16.msra.mxu0 %v6291_v42  ;;  %v5682_v42 = vld [vmem:[%s9788_s11 + $0x4] ss:$0 sm:$0xff] }
 0x896   : > { %6037 = vmatmul.mubr.msk.f32.vlgmr.msra.gmra.mrb[18].mxu0 %vm10469_vm5, %v10478_v40  ;;  %vm10505_vm5 = vmmov %vm10503_vm0  ;;  %v10624_v40 = vld [vmem:[#allocation66_spill] sm:$0xff] }
 0x897   : > { %6039 = vmatprep.mubr.msk.f32.mxu0 %vm10480_vm9, %v10479_v24  ;;  %vm10506_vm9 = vmmov %vm10503_vm0  ;;  %v10621_v24 = vld [vmem:[#allocation28_spill] sm:$0xff] }
 0x89a   : > { %6040 = vmatmul.mubr.msk.f32.gmra.mrb[20].mxu0 %vm10482_vm11, %v10481_v14  ;;  %vm10510_vm11 = vmmov %vm10503_vm0  ;;  %v10618_v14 = vld [vmem:[#allocation45_spill] sm:$0xff] }
 0x89b   : > { %6061 = vmatprep.mubr.msk.f32.mxu0 %vm1846_vm4, %v10483_v9 }
 0x969   : > { %v6038_v28 = vpop.f32.mrb[18].mxu0 }
 0x96a   : > { %v2779_v54 = vsub.f32 %v7884_v5, %v6038_v28  ;;  %v2759_v43 = vpop.f32.mrb[19].mxu0 }
 0x96b   : > { %v2778_v44 = vsub.f32 %v7887_v23, %v2759_v43 }
 0x96c   : > { %v2783_v29 = vmin.f32 %v2779_v54, 0.0 }
 0x96d   : > { %v2782_v7 = vmin.f32 %v2778_v44, 0.0  ;;  %v6041_v51 = vpop.f32.mrb[20].mxu0 }
 0x96e   : > { %v2788_v50 = vmul.f32 1.442695, %v2783_v29  ;;  %v2781_v36 = vsub.f32 %v7894_v30, %v6041_v51  ;;  %v2769_v26 = vpop.f32.mrb[21].mxu0 }
 0x96f   : > { %v2786_v22 = vmul.f32 1.442695, %v2782_v7  ;;  %v2780_v48 = vsub.f32 %v7897_v59, %v2769_v26  ;;  %v10486_v59 = vld [vmem:[#allocation14_spill] sm:$0xff] }
 0x970   : > { %6501 = vpow2.f32 %v2788_v50  ;;  %v2785_v53 = vmin.f32 %v2781_v36, 0.0 }
 0x971   : > { %6503 = vpow2.f32 %v2786_v22  ;;  %v2784_v15 = vmin.f32 %v2780_v48, 0.0  ;;  %v5689_v22 = vld [vmem:[%s9789_s12 + $0x20] sm:$0xff]  ;;  %v5690_v48 = vld [vmem:[%s9789_s12 + $0x28] sm:$0xff] }
 0x972   : > { %v2792_v37 = vmul.f32 1.442695, %v2785_v53  ;;  %v5691_v53 = vld [vmem:[%s9789_s12 + $0x30] sm:$0xff] }
 0x973   : > { %v2790_v6 = vmul.f32 1.442695, %v2784_v15  ;;  %v6315_v15 = vpack.c.bf16 %v5690_v48, %v5689_v22 }
 0x974   : > { %6505 = vpow2.f32 %v2792_v37  ;;  %v5692_v37 = vld [vmem:[%s9789_s12 + $0x38] sm:$0xff] }
 0x975   : > { %6507 = vpow2.f32 %v2790_v6  ;;  %v6319_v6 = vpack.c.bf16 %v5692_v37, %v5691_v53 }
 0x97a   : > { %v6502_v5 = vpop.eup %6501 }
 0x97b   : > { %v6504_v23 = vpop.eup %6503  ;;  %v2870_v46 = vmul.f32 %v6502_v5, %v10484_v60 }
 0x97c   : > { %v6295_v38 = vpack.c.bf16 %v6502_v5, %v6504_v23  ;;  %v2869_v34 = vmul.f32 %v6504_v23, %v10485_v0 }
 0x97e   : > { %v6506_v30 = vpop.eup %6505  ;;  %6296 = vmatprep.subr.bf16.mxu1 %v6295_v38  ;;  %v6303_v33 = vpack.c.bf16 %v2870_v46, %v2869_v34 }
 0x97f   : > { %v6508_v11 = vpop.eup %6507  ;;  %6298 = vmatpush3.bf16.msra.mxu1 %v6295_v38  ;;  %v2872_v2 = vmul.f32 %v6506_v30, %v10486_v59 }
 0x980   : > { %6304 = vmatprep.subr.bf16.mxu0 %v6303_v33  ;;  %v6299_v4 = vpack.c.bf16 %v6506_v30, %v6508_v11  ;;  %v2871_v32 = vmul.f32 %v6508_v11, %v10487_v8 }
 0x981   : > { %6306 = vmatpush3.bf16.msra.mxu0 %v6303_v33 }
 0x982   : > { %6300 = vmatprep.subr.bf16.mxu1 %v6299_v4  ;;  %v6307_v57 = vpack.c.bf16 %v2872_v2, %v2871_v32 }
 0x983   : > { %6302 = vmatpush3.bf16.msra.mxu1 %v6299_v4 }
 0x984   : > { %6308 = vmatprep.subr.bf16.mxu0 %v6307_v57  ;;  %6312 = vmatprep.subr.bf16.mxu1 %v6311_v19 }
 0x985   : > { %6310 = vmatpush3.bf16.msra.mxu0 %v6307_v57 }
 0x986   : > { %6051 = vmatmul.mubr.msk.f32.vlgmr.msra.gmra.mrb[8].mxu1 %vm1846_vm4, %v10488_v18 }
 0x987   : > { %6314 = vmatpush3.bf16.msra.mxu1 %v6311_v19 }
 0x988   : > { %6062 = vmatmul.mubr.msk.f32.vlgmr.msra.gmra.mrb[22].mxu0 %vm1846_vm4, %v10488_v18  ;;  %6316 = vmatprep.subr.bf16.mxu1 %v6315_v15  ;;  %v10602_v18 = vld [vmem:[#allocation59_spill] sm:$0xff] }
 0x989   : > { %6086 = vmatprep.mubr.msk.f32.mxu0 %vm10490_vm13, %v10489_v61  ;;  %vm10512_vm13 = vmmov %vm10503_vm0  ;;  %v10600_v61 = vld [vmem:[#allocation21_spill] sm:$0xff] }
 0xa59   : > { %v6052_v10 = vpop.f32.mrb[8].mxu1 }
 0xa5a   : > { %v2949_v49 = vmax.f32 %v6052_v10, 1e-16  ;;  %v2860_v27 = vpop.f32.mrb[9].mxu1  ;;  %v5687_v10 = vld [vmem:[%s9788_s11 + $0x5] ss:$0 sm:$0xff] }
 0xa5b   : > { %v2948_v17 = vmax.f32 %v2860_v27, 1e-16  ;;  %v6063_v25 = vpop.f32.mrb[22].mxu0 }
 0xa5c   : > { %6509 = vrcp.f32 %v2949_v49  ;;  %v2939_v1 = vpop.f32.mrb[23].mxu0 }
 0xa5d   : > { %6511 = vrcp.f32 %v2948_v17  ;;  %v5688_v17 = vld [vmem:[%s9788_s11 + $0x6] ss:$0 sm:$0xff] }
 0xa66   : > { %v6510_v63 = vpop.eup %6509 }
 0xa67   : > { %v6512_v55 = vpop.eup %6511  ;;  %v2953_v20 = vmul.f32 %v6510_v63, %v6063_v25 }
 0xa68   : > { %v2952_v52 = vmul.f32 %v6512_v55, %v2939_v1 }
 0xa69   : > { %v2955_v31 = vadd.f32 %v2953_v20, %v10494_v12 }
 0xa6a   : > { %v2954_v16 = vadd.f32 %v2952_v52, %v10492_v3  ;;  %v10497_v3 = vld [vmem:[#allocation53_spill] sm:$0xff] }
 0xa6c   : > { %6068 = vmatprep.mubr.msk.f32.mxu1 %vm10495_vm1, %v2954_v16  ;;  %v5694_v16 = vld [vmem:[%s9790_s13 + $0x4] ss:$0 sm:$0xff]  ;;  %vm10514_vm1 = vmmov %vm10503_vm0 }
 0xa6d   : > { %6069 = vmatmul.mubr.msk.f32.vlgmr.msra.gmra.mrb[10].mxu1 %vm10496_vm10, %v2955_v31 }
 0xa6e   : > { %6318 = vmatpush3.bf16.msra.mxu1 %v6315_v15 }
 0xa6f   : > { %6320 = vmatprep.subr.bf16.mxu1 %v6319_v6 }
 0xa72   : > { %6322 = vmatpush3.bf16.msra.mxu1 %v6319_v6 }
 0xb40   : > { %v6070_v28 = vpop.f32.mrb[10].mxu1 }
 0xb41   : > { %v3043_v54 = vadd.f32 %v6070_v28, %v5682_v42  ;;  %v3037_v43 = vpop.f32.mrb[11].mxu1  ;;  %v10499_v28 = vld [vmem:[#allocation93_spill] sm:$0xff] }
 0xb42   : > { %v3038_v44 = vadd.f32 %v5682_v42, %v3037_v43  ;;  %v10501_v43 = vld [vmem:[#allocation94_spill] sm:$0xff] }
 0xb43   : > { %v3051_v29 = vsel %vm1846_vm4, %v3043_v54, 0.0  ;;  %v3055_v7 = vmul.f32 %v3043_v54, %v3043_v54 }
 0xb44   : > { %3052 = vadd.xlane.f32.xlu0 %v3051_v29  ;;  %v3048_v51 = vsel %vm1846_vm4, %v3038_v44, 0.0  ;;  %v3054_v50 = vmul.f32 %v3038_v44, %v3038_v44 }
 0xb45   : > { %3049 = vadd.xlane.f32.xlu1 %v3048_v51  ;;  %v3059_v36 = vsel %vm1846_vm4, %v3055_v7, 0.0 }
 0xb46   : > { %v3056_v26 = vsel %vm1846_vm4, %v3054_v50, 0.0 }
 0xb48   : > { %3060 = vadd.xlane.f32.xlu0 %v3059_v36 }
 0xb49   : > { %3057 = vadd.xlane.f32.xlu1 %v3056_v26 }
 0xbd1   : > { %v3053_v5 = vpop.xlane.xlu0 %3052 }
 0xbd2   : > { %v3063_v23 = vmul.f32 0.03125, %v3053_v5  ;;  %v3050_v60 = vpop.xlane.xlu1 %3049 }
 0xbd3   : > { %v3062_v46 = vmul.f32 0.03125, %v3050_v60 }
 0xbd4   : > { %v3067_v0 = vmul.f32 %v3063_v23, %v3063_v23  ;;  %v3073_v58 = vsub.f32 %v3043_v54, %v3063_v23 }
 0xbd5   : > { %v3061_v38 = vpop.xlane.xlu0 %3060  ;;  %v3066_v33 = vmul.f32 %v3062_v46, %v3062_v46  ;;  %v3072_v19 = vsub.f32 %v3038_v44, %v3062_v46 }
 0xbd6   : > { %v3065_v34 = vmul.f32 0.03125, %v3061_v38  ;;  %v3058_v30 = vpop.xlane.xlu1 %3057 }
 0xbd7   : > { %v3064_v11 = vmul.f32 0.03125, %v3058_v30 }
 0xbd8   : > { %v3069_v59 = vsub.f32 %v3065_v34, %v3067_v0 }
 0xbd9   : > { %v3068_v2 = vsub.f32 %v3064_v11, %v3066_v33 }
 0xbda   : > { %v3071_v4 = vmax.f32 %v3069_v59, 0.0 }
 0xbdb   : > { %v3070_v8 = vmax.f32 %v3068_v2, 0.0 }
 0xbdc   : > { %v3075_v32 = vadd.f32 1e-05, %v3071_v4 }
 0xbdd   : > { %v3074_v57 = vadd.f32 1e-05, %v3070_v8  ;;  %v5699_v8 = vld [vmem:[%s9790_s13 + $0x9] ss:$0 sm:$0xff] }
 0xbde   : > { %6513 = vrsqrt.f32 %v3075_v32 }
 0xbdf   : > { %6515 = vrsqrt.f32 %v3074_v57 }
 0xbe8   : > { %v6514_v41 = vpop.eup %6513 }
 0xbe9   : > { %v6516_v49 = vpop.eup %6515  ;;  %v3079_v27 = vmul.f32 %v6514_v41, %v3073_v58  ;;  %v5700_v58 = vld [vmem:[%s9790_s13 + $0xa] ss:$0 sm:$0xff] }
 0xbea   : > { %v3078_v25 = vmul.f32 %v6516_v49, %v3072_v19 }
 0xbeb   : > { %v3085_v1 = vmul.f32 %v5687_v10, %v3079_v27 }
 0xbec   : > { %v3084_v63 = vmul.f32 %v5687_v10, %v3078_v25 }
 0xbed   : > { %v3091_v55 = vadd.f32 %v5688_v17, %v3085_v1 }
 0xbee   : > { %v3090_v20 = vadd.f32 %v5688_v17, %v3084_v63  ;;  %v10509_v63 = vld [vmem:[#allocation41_spill] sm:$0xff] }
 0xbef   : > { %v3093_v39 = vmax.f32 %v3091_v55, 0.0  ;;  %v10511_v55 = vld [vmem:[#allocation40_spill] sm:$0xff] }
 0xbf0   : > { %v3092_v52 = vmax.f32 %v3090_v20, 0.0  ;;  %v10513_v20 = vld [vmem:[#allocation43_spill] sm:$0xff] }
 0xbf2   : > { %6079 = vmatprep.mubr.msk.f32.mxu1 %vm1846_vm4, %v3092_v52 }
 0xbf3   : > { %6080 = vmatmul.mubr.msk.f32.vlgmr.msra.gmra.mrb[12].mxu1 %vm1846_vm4, %v3093_v39  ;;  %v10515_v39 = vld [vmem:[#allocation80_spill] sm:$0xff] }
 0xbf4   : > { %6096 = vmatprep.mubr.msk.f32.mxu1 %vm10498_vm12, %v10497_v3  ;;  %v10594_v3 = vld [vmem:[#allocation57_spill] sm:$0xff] }
 0xcc6   : > { %v6081_v56 = vpop.f32.mrb[12].mxu1 }
 0xcc7   : > { %v3182_v12 = vadd.f32 %v6081_v56, %v5694_v16  ;;  %v3176_v31 = vpop.f32.mrb[13].mxu1 }
 0xcc8   : > { %v3177_v42 = vadd.f32 %v5694_v16, %v3176_v31 }
 0xcc9   : > { %v8424_v54 = vadd.f32 %v3182_v12, %v10499_v28  ;;  %v10516_v12 = vld [vmem:[#allocation82_spill] sm:$0xff] }
 0xcca   : > { %v8427_v44 = vadd.f32 %v3177_v42, %v10501_v43 }
 0xccb   : > { %10500 = vst [vmem:[#allocation87_spill] sm:$0xff] %v8424_v54  ;;  %v3193_v29 = vsel %vm10503_vm0, %v8424_v54, 0.0  ;;  %v3197_v7 = vmul.f32 %v8424_v54, %v8424_v54 }
 0xccc   : > { %10502 = vst [vmem:[#allocation89_spill] sm:$0xff] %v8427_v44  ;;  %3194 = vadd.xlane.f32.xlu0 %v3193_v29  ;;  %v3190_v51 = vsel %vm10504_vm14, %v8427_v44, 0.0  ;;  %v3196_v50 = vmul.f32 %v8427_v44, %v8427_v44 }
 0xccd   : > { %3191 = vadd.xlane.f32.xlu1 %v3190_v51  ;;  %v3201_v36 = vsel %vm10505_vm5, %v3197_v7, 0.0  ;;  %v3330_v7 = vstv %s5705_s26  ;;  %v10518_v51 = vld [vmem:[#allocation83_spill] sm:$0xff] }
 0xcce   : > { %v3198_v26 = vsel %vm10506_vm9, %v3196_v50, 0.0 }
 0xcd0   : > { %3202 = vadd.xlane.f32.xlu0 %v3201_v36 }
 0xcd1   : > { %3199 = vadd.xlane.f32.xlu1 %v3198_v26 }
 0xd59   : > { %v3195_v22 = vpop.xlane.xlu0 %3194 }
 0xd5a   : > { %v3205_v48 = vmul.f32 0.0625, %v3195_v22  ;;  %v3192_v53 = vpop.xlane.xlu1 %3191  ;;  %v10520_v22 = vld [vmem:[#allocation84_spill] sm:$0xff] }
 0xd5b   : > { %v3204_v15 = vmul.f32 0.0625, %v3192_v53 }
 0xd5c   : > { %v3209_v6 = vmul.f32 %v3205_v48, %v3205_v48  ;;  %v3215_v59 = vsub.f32 %v8424_v54, %v3205_v48  ;;  %v10592_v54 = vld [vmem:[#allocation19_spill] sm:$0xff] }
 0xd5d   : > { %v3203_v37 = vpop.xlane.xlu0 %3202  ;;  %v3208_v60 = vmul.f32 %v3204_v15, %v3204_v15  ;;  %v3214_v4 = vsub.f32 %v8427_v44, %v3204_v15  ;;  %v10590_v44 = vld [vmem:[#allocation69_spill] sm:$0xff] }
 0xd5e   : > { %v3207_v5 = vmul.f32 0.0625, %v3203_v37  ;;  %v3200_v23 = vpop.xlane.xlu1 %3199 }
 0xd5f   : > { %v3206_v46 = vmul.f32 0.0625, %v3200_v23 }
 0xd60   : > { %v3211_v38 = vsub.f32 %v3207_v5, %v3209_v6 }
 0xd61   : > { %v3210_v0 = vsub.f32 %v3206_v46, %v3208_v60 }
 0xd62   : > { %v3213_v34 = vmax.f32 %v3211_v38, 0.0  ;;  %v10523_v38 = vld [vmem:[#allocation16_spill] sm:$0xff] }
 0xd63   : > { %v3212_v30 = vmax.f32 %v3210_v0, 0.0  ;;  %vm10524_vm10 = vcmp.eq.s32.totalorder %v10523_v38, 1  ;;  %v10577_v38 = vld [vmem:[#allocation51_spill] sm:$0xff] }
 0xd64   : > { %v3217_v33 = vadd.f32 1e-05, %v3213_v34  ;;  %v10525_v34 = vld [vmem:[#allocation54_spill] sm:$0xff] }
 0xd65   : > { %v3216_v11 = vadd.f32 1e-05, %v3212_v30  ;;  %vm10526_vm12 = vcmp.eq.s32.totalorder %v10525_v34, 1  ;;  %v10575_v34 = vld [vmem:[#allocation81_spill] sm:$0xff] }
 0xd66   : > { %6517 = vrsqrt.f32 %v3217_v33  ;;  %v10527_v33 = vld [vmem:[#allocation55_spill] sm:$0xff] }
 0xd67   : > { %6519 = vrsqrt.f32 %v3216_v11  ;;  %vm10528_vm0 = vcmp.eq.s32.totalorder %v10527_v33, 1  ;;  %v10573_v33 = vld [vmem:[#allocation73_spill] sm:$0xff] }
 0xd70   : > { %v6518_v2 = vpop.eup %6517 }
 0xd71   : > { %v6520_v32 = vpop.eup %6519  ;;  %v3221_v57 = vmul.f32 %v6518_v2, %v3215_v59  ;;  %v10529_v59 = vld [vmem:[#allocation17_spill] sm:$0xff] }
 0xd72   : > { %v3220_v41 = vmul.f32 %v6520_v32, %v3214_v4  ;;  %vm10530_vm14 = vcmp.eq.s32.totalorder %v10529_v59, 1  ;;  %v10531_v4 = vld [vmem:[#allocation20_spill] sm:$0xff]  ;;  %v10533_v32 = vld [vmem:[#allocation58_spill] sm:$0xff]  ;;  %v10571_v59 = vld [vmem:[#allocation35_spill] sm:$0xff] }
 0xd73   : > { %v3227_v19 = vmul.f32 %v5699_v8, %v3221_v57  ;;  %vm10532_vm5 = vcmp.eq.s32.totalorder %v10531_v4, 1  ;;  %vm10534_vm9 = vcmp.eq.s32.totalorder %v10533_v32, 1  ;;  %v10567_v32 = vld [vmem:[#allocation76_spill] sm:$0xff]  ;;  %v10569_v4 = vld [vmem:[#allocation49_spill] sm:$0xff] }
 0xd74   : > { %v3226_v10 = vmul.f32 %v5699_v8, %v3220_v41 }
 0xd75   : > { %v8447_v49 = vadd.f32 %v5700_v58, %v3227_v19  ;;  %v10537_v19 = vld [vmem:[#allocation61_spill] sm:$0xff] }
 0xd76   : > { %v8449_v27 = vadd.f32 %v5700_v58, %v3226_v10  ;;  %v10535_v58 = vld [vmem:[#allocation23_spill] sm:$0xff] }
 0xd77   : > { %10507 = vst [vmem:[#allocation86_spill] sm:$0xff] %v8447_v49  ;;  %v10004_v17 = vmax.f32 %v8447_v49, 0.0  ;;  %v10596_v49 = vld [vmem:[#allocation62_spill] sm:$0xff] }
 0xd78   : > { %10508 = vst [vmem:[#allocation37_spill] sm:$0xff] %v8449_v27  ;;  %v10005_v25 = vmax.f32 %v8449_v27, 0.0  ;;  %v10598_v27 = vld [vmem:[#allocation32_spill] sm:$0xff] }
 0xd7a   : > { %v6323_v1 = vpack.c.bf16 %v10004_v17, %v10005_v25  ;;  %v10553_v17 = vld [vmem:[#allocation26_spill] sm:$0xff] }
 0xd7c   : > { %6324 = vmatprep.subr.bf16.mxu0 %v6323_v1 }
 0xd7d   : > { %6326 = vmatpush3.bf16.msra.mxu0 %v6323_v1  ;;  %v10539_v1 = vld [vmem:[#allocation64_spill] sm:$0xff] }
 0xd80   : > { %6087 = vmatmul.mubr.msk.f32.vlgmr.msra.gmra.mrb[24].mxu0 %vm10510_vm11, %v10509_v63  ;;  %vm10536_vm11 = vcmp.eq.s32.totalorder %v10535_v58, 1  ;;  %v10565_v58 = vld [vmem:[#allocation31_spill] sm:$0xff]  ;;  %v10588_v63 = vld [vmem:[#allocation24_spill] sm:$0xff] }
 0xd81   : > { %6089 = vmatprep.mubr.msk.f32.mxu0 %vm10512_vm13, %v10511_v55  ;;  %vm10538_vm13 = vcmp.eq.s32.totalorder %v10537_v19, 1  ;;  %v10586_v55 = vld [vmem:[#allocation56_spill] sm:$0xff] }
 0xd84   : > { %6090 = vmatmul.mubr.msk.f32.gmra.mrb[26].mxu0 %vm10514_vm1, %v10513_v20  ;;  %vm10540_vm1 = vcmp.eq.s32.totalorder %v10539_v1, 1 }
 0xd85   : > { %6110 = vmatprep.mubr.msk.f32.mxu0 %vm1846_vm4, %v10483_v9  ;;  %v10615_v9 = vld [vmem:[#allocation70_spill] sm:$0xff] }
 0xe53   : > { %v6088_v52 = vpop.f32.mrb[24].mxu0 }
 0xe54   : > { %v3308_v16 = vadd.f32 %v6088_v52, %v10515_v39  ;;  %v3302_v56 = vpop.f32.mrb[25].mxu0 }
 0xe55   : > { %v3303_v31 = vadd.f32 %v3302_v56, %v10516_v12 }
 0xe56   : > { %v3322_v42 = vmax.f32 %v3308_v16, 0.0  ;;  %v10541_v16 = vld [vmem:[#allocation29_spill] sm:$0xff] }
 0xe57   : > { %v3321_v28 = vmax.f32 %v3303_v31, 0.0  ;;  %v6091_v43 = vpop.f32.mrb[26].mxu0  ;;  %v10543_v31 = vld [vmem:[#allocation67_spill] sm:$0xff] }
 0xe58   : > { %v8467_v29 = vadd.f32 1e-07, %v3322_v42  ;;  %v3318_v50 = vadd.f32 %v6091_v43, %v10518_v51  ;;  %v3312_v36 = vpop.f32.mrb[27].mxu0  ;;  %v10581_v51 = vld [vmem:[#allocation77_spill] sm:$0xff] }
 0xe59   : > { %v8470_v26 = vadd.f32 1e-07, %v3321_v28  ;;  %v3313_v48 = vadd.f32 %v3312_v36, %v10520_v22  ;;  %v10545_v28 = vld [vmem:[#allocation27_spill] sm:$0xff]  ;;  %v10549_v36 = vld [vmem:[#allocation60_spill] sm:$0xff] }
 0xe5a   : > { %10517 = vst [vmem:[#allocation99_spill] sm:$0xff] %v8467_v29  ;;  %v3324_v53 = vmax.f32 %v3318_v50, 0.0  ;;  %v8474_v15 = vmul.f32 %v3330_v7, %v8467_v29  ;;  %v10579_v22 = vld [vmem:[#allocation44_spill] sm:$0xff]  ;;  %v10612_v29 = vld [vmem:[#allocation63_spill] sm:$0xff] }
 0xe5b   : > { %10519 = vst [vmem:[#allocation100_spill] sm:$0xff] %v8470_v26  ;;  %v8477_v37 = vmul.f32 %v3330_v7, %v8470_v26  ;;  %v3323_v6 = vmax.f32 %v3313_v48, 0.0  ;;  %v10609_v26 = vld [vmem:[#allocation25_spill] sm:$0xff] }
 0xe5c   : > { %v8479_v5 = vadd.f32 1e-07, %v3324_v53  ;;  %v3336_v30 = vsel %vm10526_vm12, %v8474_v15, -1e+30  ;;  %v3340_v11 = vsel %vm10528_vm0, %v8474_v15, -1e+30 }
 0xe5d   : > { %v8481_v23 = vadd.f32 1e-07, %v3323_v6  ;;  %v3335_v0 = vsel %vm10524_vm10, %v8477_v37, -1e+30  ;;  %v3339_v2 = vsel %vm10530_vm14, %v8477_v37, -1e+30 }
 0xe5e   : > { %10521 = vst [vmem:[#allocation101_spill] sm:$0xff] %v8479_v5  ;;  %v8484_v60 = vmul.f32 %v3330_v7, %v8479_v5  ;;  %v8504_v8 = vsel %vm10532_vm5, %v8477_v37, -1e+30  ;;  %v8509_v57 = vsel %vm10534_vm9, %v8474_v15, -1e+30  ;;  %vm10542_vm10 = vcmp.eq.s32.totalorder %v10541_v16, 1 }
 0xe5f   : > { %10522 = vst [vmem:[#allocation36_spill] sm:$0xff] %v8481_v23  ;;  %v8487_v46 = vmul.f32 %v3330_v7, %v8481_v23  ;;  %v8514_v41 = vsel %vm10536_vm11, %v8477_v37, -1e+30  ;;  %v8519_v10 = vsel %vm10538_vm13, %v8474_v15, -1e+30  ;;  %vm10544_vm12 = vcmp.eq.s32.totalorder %v10543_v31, 1 }
 0xe60   : > { %v8524_v52 = vsel %vm10540_vm1, %v8477_v37, -1e+30  ;;  %v3338_v56 = vsel %vm10542_vm10, %v8484_v60, -1e+30  ;;  %v3342_v42 = vsel %vm10544_vm12, %v8484_v60, -1e+30 }
 0xe61   : > { %vm10546_vm0 = vcmp.eq.s32.totalorder %v10545_v28, 1  ;;  %v10547_v7 = vld [vmem:[#allocation22_spill] sm:$0xff]  ;;  %vm10550_vm5 = vcmp.eq.s32.totalorder %v10549_v36, 1  ;;  %vm10554_vm11 = vcmp.eq.s32.totalorder %v10553_v17, 1  ;;  %v10559_v36 = vld [vmem:[#allocation72_spill] sm:$0xff]  ;;  %v10604_v23 = vld [vmem:[#allocation65_spill] sm:$0xff] }
 0xe62   : > { %v8535_v43 = vsel %vm10546_vm0, %v8474_v15, -1e+30  ;;  %vm10548_vm14 = vcmp.eq.s32.totalorder %v10547_v7, 1  ;;  %v3341_v48 = vsel %vm10550_vm5, %v8487_v46, -1e+30  ;;  %v10551_v53 = vld [vmem:[#allocation34_spill] sm:$0xff] }
 0xe63   : > { %v3337_v50 = vsel %vm10548_vm14, %v8487_v46, -1e+30  ;;  %vm10552_vm9 = vcmp.eq.s32.totalorder %v10551_v53, 1  ;;  %v3345_v25 = vsel %vm10554_vm11, %v8487_v46, -1e+30  ;;  %v10555_v28 = vld [vmem:[#allocation30_spill] sm:$0xff] }
 0xe64   : > { %v8546_v6 = vsel %vm10552_vm9, %v8484_v60, -1e+30  ;;  %vm10556_vm13 = vcmp.eq.s32.totalorder %v10555_v28, 1  ;;  %v10557_v7 = vld [vmem:[#allocation42_spill] sm:$0xff]  ;;  %vm10560_vm10 = vcmp.eq.s32.totalorder %v10559_v36, 1  ;;  %v10561_v53 = vld [vmem:[#allocation47_spill] sm:$0xff] }
 0xe65   : > { %v3349_v31 = vsel %vm10556_vm13, %v8487_v46, -1e+30  ;;  %vm10558_vm1 = vcmp.eq.s32.totalorder %v10557_v7, 1  ;;  %v8562_v1 = vsel %vm10560_vm10, %v8487_v46, -1e+30  ;;  %vm10562_vm12 = vcmp.eq.s32.totalorder %v10561_v53, 1 }
 0xe66   : > { %v8557_v16 = vsel %vm10558_vm1, %v8484_v60, -1e+30  ;;  %v8567_v19 = vsel %vm10562_vm12, %v8484_v60, -1e+30  ;;  %v10563_v17 = vld [vmem:[#allocation68_spill] sm:$0xff]  ;;  %vm10566_vm14 = vcmp.eq.s32.totalorder %v10565_v58, 1 }
 0xe67   : > { %vm10564_vm0 = vcmp.eq.s32.totalorder %v10563_v17, 1  ;;  %v8577_v7 = vsel %vm10566_vm14, %v8474_v15, -1e+30  ;;  %vm10568_vm5 = vcmp.eq.s32.totalorder %v10567_v32, 1  ;;  %vm10570_vm9 = vcmp.eq.s32.totalorder %v10569_v4, 1  ;;  %v10606_v5 = vld [vmem:[#allocation38_spill] sm:$0xff] }
 0xe68   : > { %v8572_v28 = vsel %vm10564_vm0, %v8477_v37, -1e+30  ;;  %v8582_v36 = vsel %vm10568_vm5, %v8487_v46, -1e+30  ;;  %v8587_v53 = vsel %vm10570_vm9, %v8484_v60, -1e+30 }
 0xe69   : > { %vm10572_vm11 = vcmp.eq.s32.totalorder %v10571_v59, 1  ;;  %vm10574_vm13 = vcmp.eq.s32.totalorder %v10573_v33, 1  ;;  %vm10576_vm1 = vcmp.eq.s32.totalorder %v10575_v34, 1  ;;  %vm10578_vm10 = vcmp.eq.s32.totalorder %v10577_v38, 1 }
 0xe6a   : > { %v8592_v17 = vsel %vm10572_vm11, %v8477_v37, -1e+30  ;;  %v8597_v58 = vsel %vm10574_vm13, %v8474_v15, -1e+30  ;;  %v8602_v32 = vsel %vm10576_vm1, %v8487_v46, -1e+30 }
 0xe6b   : > { %v8607_v4 = vsel %vm10578_vm10, %v8484_v60, -1e+30  ;;  %vm10580_vm12 = vcmp.eq.s32.totalorder %v10579_v22, 1  ;;  %vm10582_vm0 = vcmp.eq.s32.totalorder %v10581_v51, 1  ;;  %v8622_v34 = vsel %vm1388_vm8, %v8487_v46, -1e+30 }
 0xe6c   : > { %v8612_v59 = vsel %vm10580_vm12, %v8477_v37, -1e+30  ;;  %v8617_v33 = vsel %vm10582_vm0, %v8474_v15, -1e+30  ;;  %v8627_v38 = vsel %vm1389_vm7, %v8484_v60, -1e+30 }
 0xe6d   : > { %v8632_v22 = vsel %vm1390_vm6, %v8477_v37, -1e+30  ;;  %vm10587_vm14 = vcmp.eq.s32.totalorder %v10586_v55, 1  ;;  %vm10589_vm5 = vcmp.eq.s32.totalorder %v10588_v63, 1  ;;  %vm10591_vm9 = vcmp.eq.s32.totalorder %v10590_v44, 1 }
 0xe6e   : > { %v8637_v51 = vsel %vm10587_vm14, %v8474_v15, -1e+30  ;;  %v8642_v12 = vsel %vm10589_vm5, %v8487_v46, -1e+30  ;;  %v8647_v39 = vsel %vm10591_vm9, %v8484_v60, -1e+30 }
 0xe6f   : > { %vm10593_vm11 = vcmp.eq.s32.totalorder %v10592_v54, 1  ;;  %vm10595_vm13 = vcmp.eq.s32.totalorder %v10594_v3, 1  ;;  %vm10597_vm1 = vcmp.eq.s32.totalorder %v10596_v49, 1  ;;  %vm10599_vm10 = vcmp.eq.s32.totalorder %v10598_v27, 1 }
 0xe70   : > { %v8652_v20 = vsel %vm10593_vm11, %v8477_v37, -1e+30  ;;  %v8657_v55 = vsel %vm10595_vm13, %v8474_v15, -1e+30  ;;  %v8662_v63 = vsel %vm10597_vm1, %v8487_v46, -1e+30 }
 0xe71   : > { %v8667_v44 = vsel %vm10599_vm10, %v8484_v60, -1e+30  ;;  %vm10601_vm12 = vcmp.eq.s32.totalorder %v10600_v61, 1  ;;  %vm10603_vm0 = vcmp.eq.s32.totalorder %v10602_v18, 1  ;;  %vm10605_vm14 = vcmp.eq.s32.totalorder %v10604_v23, 1 }
 0xe72   : > { %v8672_v54 = vsel %vm10601_vm12, %v8477_v37, -1e+30  ;;  %v8677_v3 = vsel %vm10603_vm0, %v8474_v15, -1e+30  ;;  %v8682_v49 = vsel %vm10605_vm14, %v8487_v46, -1e+30 }
 0xe73   : > { %vm10607_vm5 = vcmp.eq.s32.totalorder %v10606_v5, 1  ;;  %vm10610_vm9 = vcmp.eq.s32.totalorder %v10609_v26, 1  ;;  %vm10613_vm11 = vcmp.eq.s32.totalorder %v10612_v29, 1  ;;  %vm10616_vm13 = vcmp.eq.s32.totalorder %v10615_v9, 1 }
 0xe74   : > { %v8687_v27 = vsel %vm10607_vm5, %v8484_v60, -1e+30  ;;  %v8692_v61 = vsel %vm10610_vm9, %v8477_v37, -1e+30  ;;  %v8697_v18 = vsel %vm10613_vm11, %v8474_v15, -1e+30 }
 0xe75   : > { %10608 = vst [vmem:[#allocation103_spill] sm:$0xff] %v8687_v27  ;;  %10611 = vst [vmem:[#allocation102_spill] sm:$0xff] %v8692_v61  ;;  %v8702_v23 = vsel %vm10616_vm13, %v8487_v46, -1e+30  ;;  %vm10619_vm1 = vcmp.eq.s32.totalorder %v10618_v14, 1  ;;  %vm10622_vm10 = vcmp.eq.s32.totalorder %v10621_v24, 1 }
 0xe76   : > { %10614 = vst [vmem:[#allocation104_spill] sm:$0xff] %v8697_v18  ;;  %10617 = vst [vmem:[#allocation105_spill] sm:$0xff] %v8702_v23  ;;  %v8707_v5 = vsel %vm10619_vm1, %v8484_v60, -1e+30  ;;  %v8712_v26 = vsel %vm10622_vm10, %v8477_v37, -1e+30 }
 0xe77   : > { %10620 = vst [vmem:[#allocation107_spill] sm:$0xff] %v8707_v5  ;;  %10623 = vst [vmem:[#allocation106_spill] sm:$0xff] %v8712_v26  ;;  %vm10625_vm12 = vcmp.eq.s32.totalorder %v10624_v40, 1  ;;  %v10627_v27 = vld [vmem:[#allocation74_spill] sm:$0xff]  ;;  %v10630_v23 = vld [vmem:[#allocation48_spill] sm:$0xff] }
 0xe78   : > { %v8717_v29 = vsel %vm10625_vm12, %v8474_v15, -1e+30  ;;  %vm10628_vm0 = vcmp.eq.s32.totalorder %v10627_v27, 1  ;;  %vm10631_vm14 = vcmp.eq.s32.totalorder %v10630_v23, 1  ;;  %v10633_v5 = vld [vmem:[#allocation33_spill] sm:$0xff]  ;;  %v10636_v26 = vld [vmem:[#allocation71_spill] sm:$0xff] }
 0xe79   : > { %10626 = vst [vmem:[#allocation108_spill] sm:$0xff] %v8717_v29  ;;  %v8722_v9 = vsel %vm10628_vm0, %v8487_v46, -1e+30  ;;  %v8727_v14 = vsel %vm10631_vm14, %v8484_v60, -1e+30  ;;  %vm10634_vm5 = vcmp.eq.s32.totalorder %v10633_v5, 1 }
 0xe7a   : > { %10629 = vst [vmem:[#allocation96_spill] sm:$0xff] %v8722_v9  ;;  %10632 = vst [vmem:[#allocation98_spill] sm:$0xff] %v8727_v14  ;;  %v8732_v24 = vsel %vm10634_vm5, %v8477_v37, -1e+30  ;;  %vm10637_vm9 = vcmp.eq.s32.totalorder %v10636_v26, 1  ;;  %v10639_v29 = vld [vmem:[#allocation78_spill] sm:$0xff] }
 0xe7b   : > { %10635 = vst [vmem:[#allocation14_spill] sm:$0xff] %v8732_v24  ;;  %v8737_v40 = vsel %vm10637_vm9, %v8474_v15, -1e+30  ;;  %vm10640_vm11 = vcmp.eq.s32.totalorder %v10639_v29, 1  ;;  %v10642_v9 = vld [vmem:[#allocation50_spill] sm:$0xff]  ;;  %v10645_v14 = vld [vmem:[#allocation39_spill] sm:$0xff] }
 0xe7c   : > { %10638 = vst [vmem:[#allocation85_spill] sm:$0xff] %v8737_v40  ;;  %v8742_v27 = vsel %vm10640_vm11, %v8487_v46, -1e+30  ;;  %vm10643_vm13 = vcmp.eq.s32.totalorder %v10642_v9, 1  ;;  %vm10646_vm1 = vcmp.eq.s32.totalorder %v10645_v14, 1  ;;  %v10648_v24 = vld [vmem:[#allocation75_spill] sm:$0xff] }
 0xe7d   : > { %10641 = vst [vmem:[#allocation97_spill] sm:$0xff] %v8742_v27  ;;  %v8747_v23 = vsel %vm10643_vm13, %v8484_v60, -1e+30  ;;  %v8752_v5 = vsel %vm10646_vm1, %v8477_v37, -1e+30  ;;  %vm10649_vm10 = vcmp.eq.s32.totalorder %v10648_v24, 1 }
 0xe7e   : > { %10644 = vst [vmem:[#allocation95_spill] sm:$0xff] %v8747_v23  ;;  %10647 = vst [vmem:[#allocation93_spill] sm:$0xff] %v8752_v5  ;;  %v8757_v26 = vsel %vm10649_vm10, %v8474_v15, -1e+30  ;;  %vm10651_vm12 = vcmask 130048  }
 0xe7f   : > { %10650 = vst [vmem:[#allocation94_spill] sm:$0xff] %v8757_v26  ;;  %v3399_v40 = vsel %vm10651_vm12, %v3335_v0, -inf  ;;  %vm10652_vm0 = vmmov %vm10651_vm12 }
 0xe80   : > { %v3400_v29 = vsel %vm10652_vm0, %v3336_v30, -inf  ;;  %vm10653_vm14 = vmmov %vm10652_vm0 }
 0xe81   : > { %v3402_v27 = vsel %vm10653_vm14, %v3337_v50, -inf  ;;  %v3401_v18 = vmax.f32 %v3399_v40, %v3400_v29  ;;  %vm10654_vm5 = vmmov %vm10652_vm0  ;;  %v3428_v40 = vsel %vm10652_vm0, %v3345_v25, -inf }
 0xe82   : > { %v3412_v9 = vsel %vm10654_vm5, %v3339_v2, -inf  ;;  %vm10655_vm9 = vmmov %vm10652_vm0 }
 0xe83   : > { %v3413_v23 = vsel %vm10655_vm9, %v3340_v11, -inf  ;;  %vm10656_vm11 = vmmov %vm10652_vm0  ;;  %v3403_v26 = vmax.f32 %v3401_v18, %v3402_v27 }
 0xe84   : > { %v3415_v14 = vsel %vm10656_vm11, %v3341_v48, -inf  ;;  %vm10657_vm13 = vmmov %vm10652_vm0  ;;  %v3414_v61 = vmax.f32 %v3412_v9, %v3413_v23 }
 0xe85   : > { %v3404_v5 = vsel %vm10657_vm13, %v3338_v56, -inf  ;;  %vm10658_vm1 = vmmov %vm10652_vm0 }
 0xe86   : > { %v3425_v24 = vsel %vm10658_vm1, %v8504_v8, -inf  ;;  %vm10659_vm10 = vmmov %vm10652_vm0  ;;  %v3416_v29 = vmax.f32 %v3414_v61, %v3415_v14  ;;  %v3405_v23 = vmax.f32 %v3403_v26, %v3404_v5 }
 0xe87   : > { %v3426_v0 = vsel %vm10659_vm10, %v8509_v57, -inf  ;;  %vm10660_vm12 = vmmov %vm10652_vm0 }
 0xe88   : > { %v3417_v30 = vsel %vm10660_vm12, %v3342_v42, -inf  ;;  %v3427_v50 = vmax.f32 %v3425_v24, %v3426_v0  ;;  %vm10661_vm14 = vmmov %vm10652_vm0  ;;  %v3406_v25 = vrot.slane %v3405_v23, 4 }
 0xe89   : > { %v3438_v11 = vsel %vm10661_vm14, %v8514_v41, -inf  ;;  %vm10662_vm5 = vmmov %vm10652_vm0  ;;  %v3418_v27 = vmax.f32 %v3416_v29, %v3417_v30 }
 0xe8a   : > { %v3439_v2 = vsel %vm10662_vm5, %v8519_v10, -inf  ;;  %vm10663_vm9 = vmmov %vm10652_vm0  ;;  %v3429_v8 = vmax.f32 %v3427_v50, %v3428_v40  ;;  %v3407_v42 = vmax.f32 %v3405_v23, %v3406_v25 }
 0xe8b   : > { %v3441_v9 = vsel %vm10663_vm9, %v3349_v31, -inf  ;;  %vm10664_vm11 = vmmov %vm10652_vm0  ;;  %v3440_v18 = vmax.f32 %v3438_v11, %v3439_v2  ;;  %v3419_v26 = vrot.slane %v3418_v27, 4  ;;  %v3464_v31 = vsel %vm10652_vm0, %v8572_v28, -inf }
 0xe8c   : > { %v3430_v57 = vsel %vm10664_vm11, %v8546_v6, -inf  ;;  %vm10665_vm13 = vmmov %vm10652_vm0  ;;  %v3408_v40 = vrot.slane %v3407_v42, 2 }
 0xe8d   : > { %v3451_v24 = vsel %vm10665_vm13, %v8524_v52, -inf  ;;  %vm10666_vm1 = vmmov %vm10652_vm0  ;;  %v3431_v41 = vmax.f32 %v3429_v8, %v3430_v57  ;;  %v3442_v10 = vmax.f32 %v3440_v18, %v3441_v9  ;;  %v3420_v0 = vmax.f32 %v3418_v27, %v3419_v26 }
 0xe8e   : > { %v3452_v14 = vsel %vm10666_vm1, %v8535_v43, -inf  ;;  %vm10667_vm10 = vmmov %vm10652_vm0  ;;  %v3409_v18 = vmax.f32 %v3407_v42, %v3408_v40 }
 0xe8f   : > { %v3454_v61 = vsel %vm10667_vm10, %v8562_v1, -inf  ;;  %v3453_v56 = vmax.f32 %v3451_v24, %v3452_v14  ;;  %vm10668_vm12 = vmmov %vm10652_vm0  ;;  %v3432_v48 = vrot.slane %v3431_v41, 4  ;;  %v3421_v28 = vrot.slane %v3420_v0, 2 }
 0xe90   : > { %v3443_v5 = vsel %vm10668_vm12, %v8557_v16, -inf  ;;  %vm10669_vm14 = vmmov %vm10652_vm0  ;;  %vm10676_vm12 = vcmp.eq.s32.totalorder %v7164_v13, 1 }
 0xe91   : > { %v3465_v52 = vsel %vm10669_vm14, %v8577_v7, -inf  ;;  %v3444_v43 = vmax.f32 %v3442_v10, %v3443_v5  ;;  %v3455_v6 = vmax.f32 %v3453_v56, %v3454_v61  ;;  %vm10670_vm5 = vmmov %vm10652_vm0  ;;  %v3433_v16 = vmax.f32 %v3431_v41, %v3432_v48 }
 0xe92   : > { %v3456_v1 = vsel %vm10670_vm5, %v8567_v19, -inf  ;;  %v3466_v30 = vmax.f32 %v3464_v31, %v3465_v52  ;;  %vm10671_vm9 = vmmov %vm10652_vm0  ;;  %v3422_v14 = vmax.f32 %v3420_v0, %v3421_v28  ;;  %vm10678_vm14 = vcmp.eq.s32.totalorder %v10181_v62, 1 }
 0xe93   : > { %v3467_v50 = vsel %vm10671_vm9, %v8582_v36, -inf  ;;  %v3445_v29 = vrot.slane %v3444_v43, 4  ;;  %v3457_v11 = vmax.f32 %v3455_v6, %v3456_v1  ;;  %vm10672_vm11 = vmmov %vm10652_vm0  ;;  %v3434_v23 = vrot.slane %v3433_v16, 2 }
 0xe94   : > { %v3468_v2 = vmax.f32 %v3466_v30, %v3467_v50  ;;  %v3477_v7 = vsel %vm10672_vm11, %v8592_v17, -inf  ;;  %vm10673_vm13 = vmmov %vm10652_vm0  ;;  %v8806_v17 = vsel %vm10676_vm12, %v8487_v46, -1e+30  ;;  %vm10679_vm5 = vcmp.eq.s32.totalorder %v10180_v35, 1 }
 0xe95   : > { %v3478_v9 = vsel %vm10673_vm13, %v8597_v58, -inf  ;;  %v3446_v8 = vmax.f32 %v3444_v43, %v3445_v29  ;;  %v3458_v57 = vrot.slane %v3457_v11, 4  ;;  %vm10674_vm1 = vmmov %vm10652_vm0  ;;  %v3435_v61 = vmax.f32 %v3433_v16, %v3434_v23 }
 0xe96   : > { %v3469_v19 = vsel %vm10674_vm1, %v8587_v53, -inf  ;;  %v3479_v27 = vmax.f32 %v3477_v7, %v3478_v9  ;;  %vm10675_vm10 = vmmov %vm10652_vm0  ;;  %vm10677_vm0 = vcmp.eq.s32.totalorder %v7557_v47, 1  ;;  %v8821_v56 = vsel %vm10679_vm5, %v8474_v15, -1e+30 }
 0xe97   : > { %v3470_v36 = vmax.f32 %v3468_v2, %v3469_v19  ;;  %v3480_v24 = vsel %vm10675_vm10, %v8602_v32, -inf  ;;  %v3447_v25 = vrot.slane %v3446_v8, 2  ;;  %v3459_v41 = vmax.f32 %v3457_v11, %v3458_v57  ;;  %vm10680_vm9 = vmmov %vm10674_vm1 }
 0xe98   : > { %v8811_v58 = vsel %vm10677_vm0, %v8484_v60, -1e+30  ;;  %v3481_v10 = vmax.f32 %v3479_v27, %v3480_v24  ;;  %v8816_v32 = vsel %vm10678_vm14, %v8477_v37, -1e+30  ;;  %v3482_v26 = vsel %vm10680_vm9, %v8607_v4, -inf  ;;  %vm10681_vm11 = vmmov %vm10674_vm1 }
 0xe99   : > { %v3471_v53 = vrot.slane %v3470_v36, 4  ;;  %v3410_v5 = vrot.slane %v3409_v18, 1  ;;  %v3448_v31 = vmax.f32 %v3446_v8, %v3447_v25  ;;  %v3490_v42 = vsel %vm10681_vm11, %v8612_v59, -inf  ;;  %vm10682_vm13 = vmmov %vm10674_vm1 }
 0xe9a   : > { %v3483_v52 = vmax.f32 %v3481_v10, %v3482_v26  ;;  %v3423_v48 = vrot.slane %v3422_v14, 1  ;;  %v3436_v43 = vrot.slane %v3435_v61, 1  ;;  %v3460_v6 = vrot.slane %v3459_v41, 2  ;;  %vm10685_vm0 = vmmov %vm10674_vm1  ;;  %v10696_v26 = vld [vmem:[#allocation102_spill] sm:$0xff] }
 0xe9b   : > { %v3491_v0 = vsel %vm10682_vm13, %v8617_v33, -inf  ;;  %v3472_v1 = vmax.f32 %v3470_v36, %v3471_v53  ;;  %v3493_v40 = vsel %vm10674_vm1, %v8622_v34, -inf  ;;  %vm10683_vm10 = vcmp.eq.s32.totalorder %v7498_v45, 1  ;;  %vm10686_vm14 = vmmov %vm10685_vm0 }
 0xe9c   : > { %v3484_v30 = vrot.slane %v3483_v52, 4  ;;  %v3492_v50 = vmax.f32 %v3490_v42, %v3491_v0  ;;  %v8834_v4 = vsel %vm10683_vm10, %v8487_v46, -1e+30  ;;  %vm10684_vm12 = vcmp.eq.s32.totalorder %v7594_v21, 1  ;;  %vm10687_vm5 = vmmov %vm10685_vm0 }
 0xe9d   : > { %v8839_v59 = vsel %vm10684_vm12, %v8484_v60, -1e+30  ;;  %v3503_v16 = vsel %vm10685_vm0, %v8632_v22, -inf  ;;  %v8843_v33 = vmax.f32 %v3409_v18, %v3410_v5  ;;  %v3449_v29 = vrot.slane %v3448_v31, 1  ;;  %vm10688_vm9 = vmmov %vm10685_vm0 }
 0xe9e   : > { %v3494_v11 = vmax.f32 %v3492_v50, %v3493_v40  ;;  %v3504_v34 = vsel %vm10686_vm14, %v8637_v51, -inf  ;;  %v8847_v28 = vmax.f32 %v3422_v14, %v3423_v48  ;;  %v8849_v2 = vmax.f32 %v3435_v61, %v3436_v43  ;;  %vm10689_vm11 = vmmov %vm10685_vm0  ;;  %v10700_v43 = vld [vmem:[#allocation103_spill] sm:$0xff] }
 0xe9f   : > { %v3505_v7 = vmax.f32 %v3503_v16, %v3504_v34  ;;  %v3506_v9 = vsel %vm10687_vm5, %v8642_v12, -inf  ;;  %v8853_v23 = vmax.f32 %v3459_v41, %v3460_v6  ;;  %v3473_v8 = vrot.slane %v3472_v1, 2  ;;  %vm10690_vm13 = vmmov %vm10685_vm0 }
 0xea0   : > { %v3485_v57 = vmax.f32 %v3483_v52, %v3484_v30  ;;  %v3516_v22 = vsel %vm10688_vm9, %v8652_v20, -inf  ;;  %v3495_v19 = vsel %vm10689_vm11, %v8627_v38, -inf  ;;  %v3517_v51 = vsel %vm10690_vm13, %v8657_v55, -inf  ;;  %vm10691_vm1 = vmmov %vm10685_vm0  ;;  %v10702_v30 = vld [vmem:[#allocation105_spill] sm:$0xff] }
 0xea1   : > { %v3507_v18 = vmax.f32 %v3505_v7, %v3506_v9  ;;  %v3519_v36 = vsel %vm10691_vm1, %v8662_v63, -inf  ;;  %v8863_v27 = vmax.f32 %v3448_v31, %v3449_v29  ;;  %v3496_v12 = vmax.f32 %v3494_v11, %v3495_v19  ;;  %vm10692_vm10 = vmmov %vm10685_vm0  ;;  %v10698_v31 = vld [vmem:[#allocation104_spill] sm:$0xff]  ;;  %v10704_v29 = vld [vmem:[#allocation106_spill] sm:$0xff] }
 0xea2   : > { %v3508_v24 = vsel %vm10692_vm10, %v8647_v39, -inf  ;;  %v3518_v14 = vmax.f32 %v3516_v22, %v3517_v51  ;;  %vm10693_vm12 = vmmov %vm10685_vm0  ;;  %v3530_v38 = vsel %vm10685_vm0, %v8677_v3, -inf  ;;  %v3462_v25 = vrot.slane %v8853_v23, 1  ;;  %v10706_v7 = vld [vmem:[#allocation108_spill] sm:$0xff]  ;;  %v10709_v51 = vld [vmem:[#allocation107_spill] sm:$0xff] }
 0xea3   : > { %v3509_v61 = vmax.f32 %v3507_v18, %v3508_v24  ;;  %v3529_v20 = vsel %vm10693_vm12, %v8672_v54, -inf  ;;  %vm10694_vm14 = vmmov %vm10685_vm0  ;;  %v3486_v63 = vrot.slane %v3485_v57, 2  ;;  %v8880_v52 = vmax.f32 %v3472_v1, %v3473_v8  ;;  %v10708_v8 = vld [vmem:[#allocation96_spill] sm:$0xff] }
 0xea4   : > { %v3532_v55 = vsel %vm10694_vm14, %v8682_v49, -inf  ;;  %v3520_v41 = vmax.f32 %v3518_v14, %v3519_v36  ;;  %v3531_v53 = vmax.f32 %v3529_v20, %v3530_v38  ;;  %vm10695_vm5 = vmmov %vm10685_vm0  ;;  %v3497_v3 = vrot.slane %v3496_v12, 4  ;;  %v10711_v20 = vld [vmem:[#allocation14_spill] sm:$0xff] }
 0xea5   : > { %v3510_v10 = vrot.slane %v3509_v61, 4  ;;  %v3521_v39 = vsel %vm10695_vm5, %v8667_v44, -inf  ;;  %vm10697_vm9 = vmmov %vm10685_vm0  ;;  %v8886_v44 = vmax.f32 %v3485_v57, %v3486_v63  ;;  %v3558_v22 = vsel %vm10685_vm0, %v10708_v8, -inf }
 0xea6   : > { %v3542_v5 = vsel %vm10697_vm9, %v10696_v26, -inf  ;;  %vm10699_vm11 = vmmov %vm10685_vm0  ;;  %v3522_v42 = vmax.f32 %v3520_v41, %v3521_v39  ;;  %v3533_v49 = vmax.f32 %v3531_v53, %v3532_v55  ;;  %v3498_v24 = vmax.f32 %v3496_v12, %v3497_v3  ;;  %v10713_v53 = vld [vmem:[#allocation98_spill] sm:$0xff] }
 0xea7   : > { %v3543_v54 = vsel %vm10699_vm11, %v10698_v31, -inf  ;;  %v3511_v48 = vmax.f32 %v3509_v61, %v3510_v10  ;;  %vm10701_vm13 = vmmov %vm10685_vm0 }
 0xea8   : > { %v3534_v6 = vsel %vm10701_vm13, %v10700_v43, -inf  ;;  %v3544_v0 = vmax.f32 %v3542_v5, %v3543_v54  ;;  %vm10703_vm1 = vmmov %vm10685_vm0  ;;  %v3523_v40 = vrot.slane %v3522_v42, 4  ;;  %v10715_v5 = vld [vmem:[#allocation85_spill] sm:$0xff]  ;;  %v3499_v43 = vrot.slane %v3498_v24, 2 }
 0xea9   : > { %v3545_v50 = vsel %vm10703_vm1, %v10702_v30, -inf  ;;  %v3535_v16 = vmax.f32 %v3533_v49, %v3534_v6  ;;  %vm10705_vm10 = vmmov %vm10685_vm0  ;;  %v3512_v1 = vrot.slane %v3511_v48, 2  ;;  %v10717_v54 = vld [vmem:[#allocation97_spill] sm:$0xff] }
 0xeaa   : > { %v3555_v11 = vsel %vm10705_vm10, %v10704_v29, -inf  ;;  %v3546_v34 = vmax.f32 %v3544_v0, %v3545_v50  ;;  %vm10707_vm12 = vmmov %vm10685_vm0  ;;  %v3524_v19 = vmax.f32 %v3522_v42, %v3523_v40  ;;  %v10719_v30 = vld [vmem:[#allocation93_spill] sm:$0xff] }
 0xeab   : > { %v3556_v9 = vsel %vm10707_vm12, %v10706_v7, -inf  ;;  %v3536_v18 = vrot.slane %v3535_v16, 4  ;;  %vm10710_vm14 = vmmov %vm10685_vm0  ;;  %v3513_v14 = vmax.f32 %v3511_v48, %v3512_v1 }
 0xeac   : > { %v3547_v36 = vsel %vm10710_vm14, %v10709_v51, -inf  ;;  %v3557_v57 = vmax.f32 %v3555_v11, %v3556_v9  ;;  %vm10712_vm5 = vmmov %vm10685_vm0  ;;  %v3525_v55 = vrot.slane %v3524_v19, 2  ;;  %v10723_v9 = vld [vmem:[#allocation94_spill] sm:$0xff] }
 0xead   : > { %v3548_v61 = vmax.f32 %v3546_v34, %v3547_v36  ;;  %v3568_v38 = vsel %vm10712_vm5, %v10711_v20, -inf  ;;  %v3537_v63 = vmax.f32 %v3535_v16, %v3536_v18  ;;  %vm10714_vm9 = vmmov %vm10685_vm0  ;;  %v3514_v39 = vrot.slane %v3513_v14, 1  ;;  %v10721_v34 = vld [vmem:[#allocation95_spill] sm:$0xff] }
 0xeae   : > { %v3559_v41 = vmax.f32 %v3557_v57, %v3558_v22  ;;  %v3560_v10 = vsel %vm10714_vm9, %v10713_v53, -inf  ;;  %vm10716_vm11 = vmmov %vm10685_vm0  ;;  %v3526_v12 = vmax.f32 %v3524_v19, %v3525_v55  ;;  %v3584_v22 = vsel %vm10685_vm0, %v8806_v17, -inf }
 0xeaf   : > { %v3549_v26 = vrot.slane %v3548_v61, 4  ;;  %v3569_v31 = vsel %vm10716_vm11, %v10715_v5, -inf  ;;  %vm10718_vm13 = vmmov %vm10685_vm0  ;;  %v3538_v3 = vrot.slane %v3537_v63, 2  ;;  %v3515_v6 = vmax.f32 %v3513_v14, %v3514_v39 }
 0xeb0   : > { %v3571_v42 = vsel %vm10718_vm13, %v10717_v54, -inf  ;;  %v3561_v49 = vmax.f32 %v3559_v41, %v3560_v10  ;;  %v3570_v48 = vmax.f32 %v3568_v38, %v3569_v31  ;;  %vm10720_vm1 = vmmov %vm10685_vm0  ;;  %v3527_v40 = vrot.slane %v3526_v12, 1 }
 0xeb1   : > { %v3550_v0 = vmax.f32 %v3548_v61, %v3549_v26  ;;  %v3581_v50 = vsel %vm10720_vm1, %v10719_v30, -inf  ;;  %v3539_v16 = vmax.f32 %v3537_v63, %v3538_v3  ;;  %vm10722_vm10 = vmmov %vm10685_vm0  ;;  %vm10730_vm1 = vcmask 1044484  }
 0xeb2   : > { %v3562_v29 = vrot.slane %v3561_v49, 4  ;;  %v3572_v11 = vmax.f32 %v3570_v48, %v3571_v42  ;;  %v3573_v7 = vsel %vm10722_vm10, %v10721_v34, -inf  ;;  %vm10724_vm12 = vmmov %vm10685_vm0  ;;  %v3528_v19 = vmax.f32 %v3526_v12, %v3527_v40 }
 0xeb3   : > { %v3551_v1 = vrot.slane %v3550_v0, 2  ;;  %v3582_v8 = vsel %vm10724_vm12, %v10723_v9, -inf  ;;  %v3540_v18 = vrot.slane %v3539_v16, 1  ;;  %vm10725_vm14 = vmmov %vm10685_vm0  ;;  %v3475_v12 = vrot.slane %v8880_v52, 1 }
 0xeb4   : > { %v3563_v51 = vmax.f32 %v3561_v49, %v3562_v29  ;;  %v3574_v36 = vmax.f32 %v3572_v11, %v3573_v7  ;;  %v3583_v14 = vmax.f32 %v3581_v50, %v3582_v8  ;;  %v3594_v61 = vsel %vm10725_vm14, %v8816_v32, -inf  ;;  %vm10726_vm5 = vmmov %vm10685_vm0 }
 0xeb5   : > { %v3552_v57 = vmax.f32 %v3550_v0, %v3551_v1  ;;  %v3595_v20 = vsel %vm10726_vm5, %v8821_v56, -inf  ;;  %vm10727_vm9 = vmmov %vm10685_vm0  ;;  %v3541_v53 = vmax.f32 %v3539_v16, %v3540_v18  ;;  %v3623_v32 = vsel %vm1710_vm15, %v8847_v28, %v8843_v33 }
 0xeb6   : > { %v3564_v38 = vrot.slane %v3563_v51, 2  ;;  %v3575_v55 = vrot.slane %v3574_v36, 4  ;;  %v3586_v63 = vsel %vm10727_vm9, %v8811_v58, -inf  ;;  %v3596_v41 = vmax.f32 %v3594_v61, %v3595_v20  ;;  %vm10728_vm11 = vmmov %vm10685_vm0 }
 0xeb7   : > { %v3553_v17 = vrot.slane %v3552_v57, 1  ;;  %v3585_v10 = vmax.f32 %v3583_v14, %v3584_v22  ;;  %v3597_v39 = vsel %vm10728_vm11, %v8834_v4, -inf  ;;  %vm10729_vm13 = vmmov %vm10685_vm0  ;;  %v3624_v58 = vsel %vm1712_vm2, %v8849_v2, %v3623_v32 }
 0xeb8   : > { %v3565_v26 = vmax.f32 %v3563_v51, %v3564_v38  ;;  %v3576_v5 = vmax.f32 %v3574_v36, %v3575_v55  ;;  %v3598_v31 = vmax.f32 %v3596_v41, %v3597_v39  ;;  %v3599_v54 = vsel %vm10729_vm13, %v8839_v59, -inf  ;;  %vm10732_vm12 = vmmov %vm10730_vm1  ;;  %v10739_v41 = vld [vmem:[#allocation46_spill] sm:$0xff] }
 0xeb9   : > { %v3587_v56 = vmax.f32 %v3585_v10, %v3586_v63  ;;  %v3630_v42 = vsel %vm1710_vm15, %v3528_v19, %v3515_v6  ;;  %v3625_v49 = vsel %vm1714_vm3, %v8863_v27, %v3624_v58  ;;  %v3463_v33 = vmax.f32 %v8853_v23, %v3462_v25  ;;  %v10738_v63 = vld [vmem:[#allocation79_spill] sm:$0xff] }
 0xeba   : > { %v3577_v3 = vrot.slane %v3576_v5, 2  ;;  %v3600_v4 = vmax.f32 %v3598_v31, %v3599_v54  ;;  %v3566_v28 = vrot.slane %v3565_v26, 1  ;;  %v3631_v59 = vsel %vm1712_vm2, %v3541_v53, %v3630_v42  ;;  %v10741_v53 = vld [vmem:[#allocation91_spill] sm:$0xff] }
 0xebb   : > { %v3588_v48 = vrot.slane %v3587_v56, 4  ;;  %v3500_v0 = vmax.f32 %v3498_v24, %v3499_v43  ;;  %v3554_v30 = vmax.f32 %v3552_v57, %v3553_v17  ;;  %v3488_v6 = vrot.slane %v8886_v44, 1  ;;  %v10743_v17 = vld [vmem:[#allocation90_spill] sm:$0xff] }
 0xebc   : > { %v3578_v2 = vmax.f32 %v3576_v5, %v3577_v3  ;;  %v3601_v50 = vrot.slane %v3600_v4, 4  ;;  %v3626_v16 = vsel %vm10730_vm1, %v3463_v33, %v3625_v49  ;;  %v3476_v29 = vmax.f32 %v8880_v52, %v3475_v12  ;;  %vm10740_vm1 = vmmov %vm10729_vm13 }
 0xebd   : > { %v3589_v40 = vmax.f32 %v3587_v56, %v3588_v48  ;;  %v3632_v1 = vsel %vm1714_vm3, %v3554_v30, %v3631_v59  ;;  %v3567_v23 = vmax.f32 %v3565_v26, %v3566_v28  ;;  %v3501_v34 = vrot.slane %v3500_v0, 1  ;;  %v10744_v48 = vld [vmem:[#allocation99_spill] sm:$0xff]  ;;  %v10745_v30 = vld [vmem:[#allocation100_spill] sm:$0xff] }
 0xebe   : > { %v3579_v27 = vrot.slane %v3578_v2, 1  ;;  %v3602_v11 = vmax.f32 %v3600_v4, %v3601_v50  ;;  %vm10731_vm10 = vcmask 1045509   ;;  %v3489_v43 = vmax.f32 %v8886_v44, %v3488_v6 }
 0xebf   : > { %v3590_v25 = vrot.slane %v3589_v40, 2  ;;  %v3627_v24 = vsel %vm10731_vm10, %v3476_v29, %v3626_v16  ;;  %v3633_v8 = vsel %vm10732_vm12, %v3567_v23, %v3632_v1  ;;  %vm10733_vm0 = vcmask 1046534   ;;  %vm10734_vm14 = vmmov %vm10731_vm10  ;;  %v10747_v29 = vld [vmem:[#allocation36_spill] sm:$0xff]  ;;  %v10749_v23 = vld [vmem:[#allocation15_spill] sm:$0xff] }
 0xec0   : > { %v3603_v7 = vrot.slane %v3602_v11, 2  ;;  %v3580_v22 = vmax.f32 %v3578_v2, %v3579_v27  ;;  %v3628_v52 = vsel %vm10733_vm0, %v3489_v43, %v3627_v24  ;;  %v3502_v51 = vmax.f32 %v3500_v0, %v3501_v34  ;;  %vm10736_vm9 = vmmov %vm10733_vm0  ;;  %v10748_v1 = vld [vmem:[#allocation92_spill] sm:$0xff]  ;;  %v5715_v34 = vld [vmem:[%s9787_s10 + $0x28] sm:$0xff] }
 0xec1   : > { %v3591_v9 = vmax.f32 %v3589_v40, %v3590_v25  ;;  %vm10735_vm5 = vcmask 1047559   ;;  %vm10742_vm10 = vmmov %vm10740_vm1  ;;  %v5714_v25 = vld [vmem:[%s9787_s10 + $0x20] sm:$0xff] }
 0xec2   : > { %v3604_v19 = vmax.f32 %v3602_v11, %v3603_v7  ;;  %v3634_v57 = vsel %vm10734_vm14, %v3580_v22, %v3633_v8  ;;  %v3629_v20 = vsel %vm10735_vm5, %v3502_v51, %v3628_v52  ;;  %vm10737_vm11 = vmmov %vm10735_vm5  ;;  %v6347_v7 = vpack.c.bf16 %v5715_v34, %v5714_v25 }
 0xec3   : > { %v3592_v18 = vrot.slane %v3591_v9, 1  ;;  %vm10750_vm12 = vmmov %vm10740_vm1 }
 0xec4   : > { %v3605_v36 = vrot.slane %v3604_v19, 1  ;;  %vm10755_vm0 = vmmov %vm10740_vm1 }
 0xec5   : > { %v3593_v14 = vmax.f32 %v3591_v9, %v3592_v18  ;;  %vm10756_vm14 = vmmov %vm10755_vm0 }
 0xec6   : > { %v3606_v61 = vmax.f32 %v3604_v19, %v3605_v36  ;;  %vm10758_vm5 = vmmov %vm10755_vm0 }
 0xec7   : > { %v3635_v38 = vsel %vm10736_vm9, %v3593_v14, %v3634_v57  ;;  %v10751_v57 = vld [vmem:[#allocation37_spill] sm:$0xff]  ;;  %vm10763_vm9 = vmmov %vm10755_vm0 }
 0xec8   : > { %v3636_v44 = vsel %vm10737_vm11, %v3606_v61, %v3635_v38  ;;  %v10752_v14 = vmax.f32 %v10751_v57, 0.0  ;;  %v10757_v57 = vld [vmem:[#allocation53_spill] sm:$0xff]  ;;  %vm10764_vm11 = vmmov %vm10755_vm0 }
 0xec9   : > { %v6327_v55 = vpack.c.bf16 %v3636_v44, %v3629_v20  ;;  %v10753_v20 = vld [vmem:[#allocation86_spill] sm:$0xff] }
 0xeca   : > { %v10754_v38 = vmax.f32 %v10753_v20, 0.0 }
 0xecb   : > { %6328 = vmatprep.subr.bf16.mxu1 %v6327_v55 }
 0xecc   : > { %6330 = vmatpush3.bf16.msra.mxu1 %v6327_v55  ;;  %v5717_v55 = vld [vmem:[%s9788_s11 + $0x8] ss:$0 sm:$0xff] }
 0xecf   : > { %6097 = vmatmul.mubr.msk.f32.vlgmr.msra.gmra.mrb[14].mxu1 %vm10729_vm13, %v10738_v63  ;;  %vm10765_vm13 = vmmov %vm10755_vm0  ;;  %v10883_v63 = vld [vmem:[#allocation66_spill] sm:$0xff] }
 0xed0   : > { %6099 = vmatprep.mubr.msk.f32.mxu1 %vm10740_vm1, %v10739_v41  ;;  %vm10766_vm1 = vmmov %vm10755_vm0  ;;  %v10880_v41 = vld [vmem:[#allocation28_spill] sm:$0xff] }
 0xed3   : > { %6100 = vmatmul.mubr.msk.f32.gmra.mrb[16].mxu1 %vm10742_vm10, %v10741_v53  ;;  %vm10770_vm10 = vmmov %vm10755_vm0  ;;  %v10877_v53 = vld [vmem:[#allocation45_spill] sm:$0xff] }
 0xed4   : > { %6121 = vmatprep.mubr.msk.f32.mxu1 %vm1846_vm4, %v10743_v17 }
 0xfa2   : > { %v6098_v10 = vpop.f32.mrb[14].mxu1 }
 0xfa3   : > { %v3725_v39 = vsub.f32 %v8474_v15, %v6098_v10  ;;  %v3705_v26 = vpop.f32.mrb[15].mxu1 }
 0xfa4   : > { %v3724_v5 = vsub.f32 %v8477_v37, %v3705_v26 }
 0xfa5   : > { %v3729_v31 = vmin.f32 %v3725_v39, 0.0 }
 0xfa6   : > { %v3728_v32 = vmin.f32 %v3724_v5, 0.0  ;;  %v6101_v56 = vpop.f32.mrb[16].mxu1 }
 0xfa7   : > { %v3734_v54 = vmul.f32 1.442695, %v3729_v31  ;;  %v3727_v58 = vsub.f32 %v8484_v60, %v6101_v56  ;;  %v3715_v42 = vpop.f32.mrb[17].mxu1 }
 0xfa8   : > { %v3732_v12 = vmul.f32 1.442695, %v3728_v32  ;;  %v3726_v3 = vsub.f32 %v8487_v46, %v3715_v42  ;;  %v10746_v46 = vld [vmem:[#allocation101_spill] sm:$0xff] }
 0xfa9   : > { %6521 = vpow2.f32 %v3734_v54  ;;  %v3731_v4 = vmin.f32 %v3727_v58, 0.0 }
 0xfaa   : > { %6523 = vpow2.f32 %v3732_v12  ;;  %v3730_v49 = vmin.f32 %v3726_v3, 0.0  ;;  %v5724_v12 = vld [vmem:[%s9789_s12 + $0x40] sm:$0xff]  ;;  %v5725_v3 = vld [vmem:[%s9789_s12 + $0x48] sm:$0xff] }
 0xfab   : > { %v3738_v33 = vmul.f32 1.442695, %v3731_v4  ;;  %v5726_v4 = vld [vmem:[%s9789_s12 + $0x50] sm:$0xff] }
 0xfac   : > { %v3736_v28 = vmul.f32 1.442695, %v3730_v49  ;;  %v6351_v49 = vpack.c.bf16 %v5725_v3, %v5724_v12 }
 0xfad   : > { %6525 = vpow2.f32 %v3738_v33  ;;  %v5727_v33 = vld [vmem:[%s9789_s12 + $0x58] sm:$0xff] }
 0xfae   : > { %6527 = vpow2.f32 %v3736_v28  ;;  %v6355_v28 = vpack.c.bf16 %v5727_v33, %v5726_v4 }
 0xfb3   : > { %v6522_v15 = vpop.eup %6521 }
 0xfb4   : > { %v6524_v37 = vpop.eup %6523  ;;  %v3816_v59 = vmul.f32 %v6522_v15, %v10744_v48 }
 0xfb5   : > { %v6331_v0 = vpack.c.bf16 %v6522_v15, %v6524_v37  ;;  %v3815_v2 = vmul.f32 %v6524_v37, %v10745_v30 }
 0xfb7   : > { %v6526_v60 = vpop.eup %6525  ;;  %6332 = vmatprep.subr.bf16.mxu0 %v6331_v0  ;;  %v6339_v50 = vpack.c.bf16 %v3816_v59, %v3815_v2 }
 0xfb8   : > { %v6528_v6 = vpop.eup %6527  ;;  %6334 = vmatpush3.bf16.msra.mxu0 %v6331_v0  ;;  %v3818_v40 = vmul.f32 %v6526_v60, %v10746_v46 }
 0xfb9   : > { %6340 = vmatprep.subr.bf16.mxu1 %v6339_v50  ;;  %v6335_v16 = vpack.c.bf16 %v6526_v60, %v6528_v6  ;;  %v3817_v27 = vmul.f32 %v6528_v6, %v10747_v29 }
 0xfba   : > { %6342 = vmatpush3.bf16.msra.mxu1 %v6339_v50 }
 0xfbb   : > { %6336 = vmatprep.subr.bf16.mxu0 %v6335_v16  ;;  %v6343_v11 = vpack.c.bf16 %v3818_v40, %v3817_v27 }
 0xfbc   : > { %6338 = vmatpush3.bf16.msra.mxu0 %v6335_v16 }
 0xfbd   : > { %6344 = vmatprep.subr.bf16.mxu1 %v6343_v11  ;;  %6348 = vmatprep.subr.bf16.mxu0 %v6347_v7 }
 0xfbe   : > { %6346 = vmatpush3.bf16.msra.mxu1 %v6343_v11 }
 0xfbf   : > { %6111 = vmatmul.mubr.msk.f32.vlgmr.msra.gmra.mrb[28].mxu0 %vm1846_vm4, %v10748_v1 }
 0xfc0   : > { %6350 = vmatpush3.bf16.msra.mxu0 %v6347_v7  ;;  %v5722_v7 = vld [vmem:[%s9788_s11 + $0x9] ss:$0 sm:$0xff] }
 0xfc1   : > { %6122 = vmatmul.mubr.msk.f32.vlgmr.msra.gmra.mrb[18].mxu1 %vm1846_vm4, %v10748_v1  ;;  %6352 = vmatprep.subr.bf16.mxu0 %v6351_v49  ;;  %v10861_v1 = vld [vmem:[#allocation59_spill] sm:$0xff] }
 0xfc2   : > { %6146 = vmatprep.mubr.msk.f32.mxu1 %vm10750_vm12, %v10749_v23  ;;  %vm10772_vm12 = vmmov %vm10755_vm0 }
0x1092   : > { %v6112_v24 = vpop.f32.mrb[28].mxu0 }
0x1093   : > { %v3895_v43 = vmax.f32 %v6112_v24, 1e-16  ;;  %v3806_v9 = vpop.f32.mrb[29].mxu0 }
0x1094   : > { %v3894_v8 = vmax.f32 %v3806_v9, 1e-16  ;;  %v6123_v22 = vpop.f32.mrb[18].mxu1  ;;  %v5723_v9 = vld [vmem:[%s9788_s11 + $0xa] ss:$0 sm:$0xff] }
0x1095   : > { %6529 = vrcp.f32 %v3895_v43  ;;  %v3885_v19 = vpop.f32.mrb[19].mxu1 }
0x1096   : > { %6531 = vrcp.f32 %v3894_v8 }
0x109f   : > { %v6530_v18 = vpop.eup %6529 }
0x10a0   : > { %v6532_v52 = vpop.eup %6531  ;;  %v3899_v51 = vmul.f32 %v6530_v18, %v6123_v22 }
0x10a1   : > { %v3898_v36 = vmul.f32 %v6532_v52, %v3885_v19 }
0x10a2   : > { %v3901_v44 = vadd.f32 %v3899_v51, %v10754_v38 }
0x10a3   : > { %v3900_v61 = vadd.f32 %v3898_v36, %v10752_v14  ;;  %v5729_v14 = vld [vmem:[%s9790_s13 + $0x8] ss:$0 sm:$0xff] }
0x10a5   : > { %6128 = vmatprep.mubr.msk.f32.mxu0 %vm10755_vm0, %v3900_v61 }
0x10a6   : > { %6129 = vmatmul.mubr.msk.f32.vlgmr.msra.gmra.mrb[30].mxu0 %vm10756_vm14, %v3901_v44 }
0x10a7   : > { %6354 = vmatpush3.bf16.msra.mxu0 %v6351_v49 }
0x10a8   : > { %6356 = vmatprep.subr.bf16.mxu0 %v6355_v28 }
0x10ab   : > { %6358 = vmatpush3.bf16.msra.mxu0 %v6355_v28 }
0x1179   : > { %v6130_v10 = vpop.f32.mrb[30].mxu0 }
0x117a   : > { %v3989_v39 = vadd.f32 %v6130_v10, %v5717_v55  ;;  %v3983_v26 = vpop.f32.mrb[31].mxu0 }
0x117b   : > { %v3984_v5 = vadd.f32 %v5717_v55, %v3983_v26  ;;  %v10759_v55 = vld [vmem:[#allocation87_spill] sm:$0xff] }
0x117c   : > { %v3997_v31 = vsel %vm1846_vm4, %v3989_v39, 0.0  ;;  %v4001_v32 = vmul.f32 %v3989_v39, %v3989_v39 }
0x117d   : > { %3998 = vadd.xlane.f32.xlu0 %v3997_v31  ;;  %v3994_v56 = vsel %vm1846_vm4, %v3984_v5, 0.0  ;;  %v4000_v54 = vmul.f32 %v3984_v5, %v3984_v5 }
0x117e   : > { %3995 = vadd.xlane.f32.xlu1 %v3994_v56  ;;  %v4005_v58 = vsel %vm1846_vm4, %v4001_v32, 0.0 }
0x117f   : > { %v4002_v42 = vsel %vm1846_vm4, %v4000_v54, 0.0 }
0x1181   : > { %4006 = vadd.xlane.f32.xlu0 %v4005_v58 }
0x1182   : > { %4003 = vadd.xlane.f32.xlu1 %v4002_v42 }
0x120a   : > { %v3999_v15 = vpop.xlane.xlu0 %3998 }
0x120b   : > { %v4009_v37 = vmul.f32 0.03125, %v3999_v15  ;;  %v3996_v48 = vpop.xlane.xlu1 %3995 }
0x120c   : > { %v4008_v59 = vmul.f32 0.03125, %v3996_v48 }
0x120d   : > { %v4013_v30 = vmul.f32 %v4009_v37, %v4009_v37  ;;  %v4019_v23 = vsub.f32 %v3989_v39, %v4009_v37  ;;  %v10761_v39 = vld [vmem:[#allocation89_spill] sm:$0xff] }
0x120e   : > { %v4007_v0 = vpop.xlane.xlu0 %4006  ;;  %v4012_v50 = vmul.f32 %v4008_v59, %v4008_v59  ;;  %v4018_v34 = vsub.f32 %v3984_v5, %v4008_v59 }
0x120f   : > { %v4011_v2 = vmul.f32 0.03125, %v4007_v0  ;;  %v4004_v60 = vpop.xlane.xlu1 %4003 }
0x1210   : > { %v4010_v6 = vmul.f32 0.03125, %v4004_v60 }
0x1211   : > { %v4015_v46 = vsub.f32 %v4011_v2, %v4013_v30 }
0x1212   : > { %v4014_v40 = vsub.f32 %v4010_v6, %v4012_v50 }
0x1213   : > { %v4017_v16 = vmax.f32 %v4015_v46, 0.0 }
0x1214   : > { %v4016_v29 = vmax.f32 %v4014_v40, 0.0 }
0x1215   : > { %v4021_v27 = vadd.f32 1e-05, %v4017_v16  ;;  %v5734_v16 = vld [vmem:[%s9790_s13 + $0xd] ss:$0 sm:$0xff] }
0x1216   : > { %v4020_v11 = vadd.f32 1e-05, %v4016_v29 }
0x1217   : > { %6533 = vrsqrt.f32 %v4021_v27 }
0x1218   : > { %6535 = vrsqrt.f32 %v4020_v11  ;;  %v5735_v11 = vld [vmem:[%s9790_s13 + $0xe] ss:$0 sm:$0xff] }
0x1221   : > { %v6534_v25 = vpop.eup %6533 }
0x1222   : > { %v6536_v24 = vpop.eup %6535  ;;  %v4025_v43 = vmul.f32 %v6534_v25, %v4019_v23 }
0x1223   : > { %v4024_v8 = vmul.f32 %v6536_v24, %v4018_v34 }
0x1224   : > { %v4031_v22 = vmul.f32 %v5722_v7, %v4025_v43 }
0x1225   : > { %v4030_v19 = vmul.f32 %v5722_v7, %v4024_v8 }
0x1226   : > { %v4037_v18 = vadd.f32 %v5723_v9, %v4031_v22  ;;  %v10769_v22 = vld [vmem:[#allocation41_spill] sm:$0xff] }
0x1227   : > { %v4036_v52 = vadd.f32 %v5723_v9, %v4030_v19  ;;  %v10771_v19 = vld [vmem:[#allocation40_spill] sm:$0xff] }
0x1228   : > { %v4039_v36 = vmax.f32 %v4037_v18, 0.0  ;;  %v10773_v18 = vld [vmem:[#allocation43_spill] sm:$0xff] }
0x1229   : > { %v4038_v51 = vmax.f32 %v4036_v52, 0.0 }
0x122b   : > { %6139 = vmatprep.mubr.msk.f32.mxu0 %vm1846_vm4, %v4038_v51  ;;  %v10774_v51 = vld [vmem:[#allocation80_spill] sm:$0xff] }
0x122c   : > { %6140 = vmatmul.mubr.msk.f32.vlgmr.msra.gmra.mrb[32].mxu0 %vm1846_vm4, %v4039_v36 }
0x122d   : > { %6156 = vmatprep.mubr.msk.f32.mxu0 %vm10758_vm5, %v10757_v57 }
0x12ff   : > { %v6141_v61 = vpop.f32.mrb[32].mxu0 }
0x1300   : > { %v4128_v20 = vadd.f32 %v6141_v61, %v5729_v14  ;;  %v4122_v38 = vpop.f32.mrb[33].mxu0 }
0x1301   : > { %v4123_v44 = vadd.f32 %v5729_v14, %v4122_v38  ;;  %v10775_v14 = vld [vmem:[#allocation82_spill] sm:$0xff] }
0x1302   : > { %v9014_v10 = vadd.f32 %v4128_v20, %v10759_v55 }
0x1303   : > { %v9017_v26 = vadd.f32 %v4123_v44, %v10761_v39  ;;  %v4276_v39 = vstv %s5740_s20  ;;  %s610_s20 = sand.u32 1, %s6634_s22  }
0x1304   : > { %10760 = vst [vmem:[#allocation102_spill] sm:$0xff] %v9014_v10  ;;  %v4139_v5 = vsel %vm10763_vm9, %v9014_v10, 0.0  ;;  %v4143_v31 = vmul.f32 %v9014_v10, %v9014_v10  ;;  %s5451_s26 = scalar_lea.sflag [#allocation3], %s610_s20 }
0x1305   : > { %10762 = vst [vmem:[#allocation104_spill] sm:$0xff] %v9017_v26  ;;  %4140 = vadd.xlane.f32.xlu0 %v4139_v5  ;;  %v4136_v32 = vsel %vm10764_vm11, %v9017_v26, 0.0  ;;  %v4142_v56 = vmul.f32 %v9017_v26, %v9017_v26  ;;  %v10777_v5 = vld [vmem:[#allocation83_spill] sm:$0xff] }
0x1306   : > { %4137 = vadd.xlane.f32.xlu1 %v4136_v32  ;;  %v4147_v54 = vsel %vm10765_vm13, %v4143_v31, 0.0 }
0x1307   : > { %v4144_v58 = vsel %vm10766_vm1, %v4142_v56, 0.0 }
0x1309   : > { %4148 = vadd.xlane.f32.xlu0 %v4147_v54  ;;  %v10779_v54 = vld [vmem:[#allocation84_spill] sm:$0xff] }
0x130a   : > { %4145 = vadd.xlane.f32.xlu1 %v4144_v58 }
0x1392   : > { %v4141_v42 = vpop.xlane.xlu0 %4140 }
0x1393   : > { %v4151_v12 = vmul.f32 0.0625, %v4141_v42  ;;  %v4138_v3 = vpop.xlane.xlu1 %4137 }
0x1394   : > { %v4150_v4 = vmul.f32 0.0625, %v4138_v3 }
0x1395   : > { %v4155_v33 = vmul.f32 %v4151_v12, %v4151_v12  ;;  %v4161_v6 = vsub.f32 %v9014_v10, %v4151_v12  ;;  %v10855_v10 = vld [vmem:[#allocation62_spill] sm:$0xff] }
0x1396   : > { %v4149_v49 = vpop.xlane.xlu0 %4148  ;;  %v4154_v37 = vmul.f32 %v4150_v4, %v4150_v4  ;;  %v4160_v40 = vsub.f32 %v9017_v26, %v4150_v4  ;;  %v10853_v26 = vld [vmem:[#allocation57_spill] sm:$0xff] }
0x1397   : > { %v4153_v28 = vmul.f32 0.0625, %v4149_v49  ;;  %v4146_v15 = vpop.xlane.xlu1 %4145 }
0x1398   : > { %v4152_v48 = vmul.f32 0.0625, %v4146_v15 }
0x1399   : > { %v4157_v59 = vsub.f32 %v4153_v28, %v4155_v33 }
0x139a   : > { %v4156_v0 = vsub.f32 %v4152_v48, %v4154_v37  ;;  %v10782_v37 = vld [vmem:[#allocation16_spill] sm:$0xff] }
0x139b   : > { %v4159_v30 = vmax.f32 %v4157_v59, 0.0  ;;  %vm10783_vm14 = vcmp.eq.s32.totalorder %v10782_v37, 1  ;;  %v10784_v59 = vld [vmem:[#allocation54_spill] sm:$0xff] }
0x139c   : > { %v4158_v2 = vmax.f32 %v4156_v0, 0.0  ;;  %vm10785_vm5 = vcmp.eq.s32.totalorder %v10784_v59, 1  ;;  %v10822_v59 = vld [vmem:[#allocation68_spill] sm:$0xff] }
0x139d   : > { %v4163_v60 = vadd.f32 1e-05, %v4159_v30  ;;  %v10786_v30 = vld [vmem:[#allocation55_spill] sm:$0xff] }
0x139e   : > { %v4162_v50 = vadd.f32 1e-05, %v4158_v2  ;;  %vm10787_vm9 = vcmp.eq.s32.totalorder %v10786_v30, 1 }
0x139f   : > { %6537 = vrsqrt.f32 %v4163_v60  ;;  %v10788_v60 = vld [vmem:[#allocation17_spill] sm:$0xff] }
0x13a0   : > { %6539 = vrsqrt.f32 %v4162_v50  ;;  %vm10789_vm11 = vcmp.eq.s32.totalorder %v10788_v60, 1  ;;  %v10824_v60 = vld [vmem:[#allocation31_spill] sm:$0xff] }
0x13a9   : > { %v6538_v46 = vpop.eup %6537 }
0x13aa   : > { %v6540_v29 = vpop.eup %6539  ;;  %v4167_v27 = vmul.f32 %v6538_v46, %v4161_v6  ;;  %v10790_v6 = vld [vmem:[#allocation20_spill] sm:$0xff] }
0x13ab   : > { %v4166_v23 = vmul.f32 %v6540_v29, %v4160_v40  ;;  %vm10791_vm13 = vcmp.eq.s32.totalorder %v10790_v6, 1  ;;  %v10792_v40 = vld [vmem:[#allocation58_spill] sm:$0xff]  ;;  %v10794_v29 = vld [vmem:[#allocation23_spill] sm:$0xff] }
0x13ac   : > { %v4173_v25 = vmul.f32 %v5734_v16, %v4167_v27  ;;  %vm10793_vm1 = vcmp.eq.s32.totalorder %v10792_v40, 1  ;;  %v10826_v40 = vld [vmem:[#allocation76_spill] sm:$0xff] }
0x13ad   : > { %v4172_v34 = vmul.f32 %v5734_v16, %v4166_v23 }
0x13ae   : > { %v9037_v7 = vadd.f32 %v5735_v11, %v4173_v25  ;;  %v10798_v25 = vld [vmem:[#allocation64_spill] sm:$0xff] }
0x13af   : > { %v9039_v24 = vadd.f32 %v5735_v11, %v4172_v34  ;;  %v10796_v11 = vld [vmem:[#allocation61_spill] sm:$0xff] }
0x13b0   : > { %10767 = vst [vmem:[#allocation103_spill] sm:$0xff] %v9037_v7  ;;  %v10016_v43 = vmax.f32 %v9037_v7, 0.0  ;;  %v10857_v7 = vld [vmem:[#allocation32_spill] sm:$0xff] }
0x13b1   : > { %10768 = vst [vmem:[#allocation105_spill] sm:$0xff] %v9039_v24  ;;  %v10017_v9 = vmax.f32 %v9039_v24, 0.0  ;;  %v10859_v24 = vld [vmem:[#allocation21_spill] sm:$0xff] }
0x13b3   : > { %v6359_v8 = vpack.c.bf16 %v10016_v43, %v10017_v9  ;;  %v10849_v43 = vld [vmem:[#allocation69_spill] sm:$0xff]  ;;  %v10851_v9 = vld [vmem:[#allocation19_spill] sm:$0xff] }
0x13b5   : > { %6360 = vmatprep.subr.bf16.mxu1 %v6359_v8 }
0x13b6   : > { %6362 = vmatpush3.bf16.msra.mxu1 %v6359_v8  ;;  %v10800_v8 = vld [vmem:[#allocation29_spill] sm:$0xff] }
0x13b9   : > { %6147 = vmatmul.mubr.msk.f32.vlgmr.msra.gmra.mrb[20].mxu1 %vm10770_vm10, %v10769_v22  ;;  %vm10795_vm10 = vcmp.eq.s32.totalorder %v10794_v29, 1 }
0x13ba   : > { %6149 = vmatprep.mubr.msk.f32.mxu1 %vm10772_vm12, %v10771_v19  ;;  %vm10797_vm12 = vcmp.eq.s32.totalorder %v10796_v11, 1  ;;  %v10802_v19 = vld [vmem:[#allocation67_spill] sm:$0xff]  ;;  %v10828_v11 = vld [vmem:[#allocation49_spill] sm:$0xff] }
0x13bd   : > { %6150 = vmatmul.mubr.msk.f32.gmra.mrb[22].mxu1 %vm10755_vm0, %v10773_v18  ;;  %vm10799_vm0 = vcmp.eq.s32.totalorder %v10798_v25, 1 }
0x13be   : > { %6170 = vmatprep.mubr.msk.f32.mxu1 %vm1846_vm4, %v10743_v17  ;;  %v10874_v17 = vld [vmem:[#allocation70_spill] sm:$0xff] }
0x148c   : > { %v6148_v52 = vpop.f32.mrb[20].mxu1 }
0x148d   : > { %v4254_v36 = vadd.f32 %v6148_v52, %v10774_v51  ;;  %v4248_v57 = vpop.f32.mrb[21].mxu1  ;;  %v10804_v52 = vld [vmem:[#allocation27_spill] sm:$0xff] }
0x148e   : > { %v4249_v61 = vadd.f32 %v4248_v57, %v10775_v14  ;;  %v10808_v14 = vld [vmem:[#allocation60_spill] sm:$0xff] }
0x148f   : > { %v4268_v20 = vmax.f32 %v4254_v36, 0.0  ;;  %v10806_v36 = vld [vmem:[#allocation22_spill] sm:$0xff] }
0x1490   : > { %v4267_v38 = vmax.f32 %v4249_v61, 0.0  ;;  %v6151_v44 = vpop.f32.mrb[22].mxu1 }
0x1491   : > { %v9057_v55 = vadd.f32 1e-07, %v4268_v20  ;;  %v4264_v31 = vadd.f32 %v6151_v44, %v10777_v5  ;;  %v4258_v32 = vpop.f32.mrb[23].mxu1  ;;  %v10810_v20 = vld [vmem:[#allocation34_spill] sm:$0xff] }
0x1492   : > { %v9060_v56 = vadd.f32 1e-07, %v4267_v38  ;;  %v4259_v58 = vadd.f32 %v4258_v32, %v10779_v54  ;;  %v10812_v44 = vld [vmem:[#allocation26_spill] sm:$0xff] }
0x1493   : > { %10776 = vst [vmem:[#allocation106_spill] sm:$0xff] %v9057_v55  ;;  %v4270_v42 = vmax.f32 %v4264_v31, 0.0  ;;  %v9064_v12 = vmul.f32 %v4276_v39, %v9057_v55  ;;  %v10814_v5 = vld [vmem:[#allocation30_spill] sm:$0xff]  ;;  %v10871_v55 = vld [vmem:[#allocation63_spill] sm:$0xff] }
0x1494   : > { %10778 = vst [vmem:[#allocation108_spill] sm:$0xff] %v9060_v56  ;;  %v9067_v3 = vmul.f32 %v4276_v39, %v9060_v56  ;;  %v4269_v4 = vmax.f32 %v4259_v58, 0.0  ;;  %v10816_v32 = vld [vmem:[#allocation42_spill] sm:$0xff]  ;;  %v10818_v58 = vld [vmem:[#allocation72_spill] sm:$0xff]  ;;  %v10868_v56 = vld [vmem:[#allocation25_spill] sm:$0xff] }
0x1495   : > { %v9069_v49 = vadd.f32 1e-07, %v4270_v42  ;;  %v4282_v0 = vsel %vm10785_vm5, %v9064_v12, -1e+30  ;;  %v4286_v2 = vsel %vm10787_vm9, %v9064_v12, -1e+30 }
0x1496   : > { %v9071_v33 = vadd.f32 1e-07, %v4269_v4  ;;  %v4281_v48 = vsel %vm10783_vm14, %v9067_v3, -1e+30  ;;  %v4285_v50 = vsel %vm10789_vm11, %v9067_v3, -1e+30 }
0x1497   : > { %10780 = vst [vmem:[#allocation96_spill] sm:$0xff] %v9069_v49  ;;  %v9074_v28 = vmul.f32 %v4276_v39, %v9069_v49  ;;  %v9094_v46 = vsel %vm10791_vm13, %v9067_v3, -1e+30  ;;  %v9099_v16 = vsel %vm10793_vm1, %v9064_v12, -1e+30  ;;  %vm10801_vm14 = vcmp.eq.s32.totalorder %v10800_v8, 1 }
0x1498   : > { %10781 = vst [vmem:[#allocation107_spill] sm:$0xff] %v9071_v33  ;;  %v9077_v15 = vmul.f32 %v4276_v39, %v9071_v33  ;;  %v9104_v27 = vsel %vm10795_vm10, %v9067_v3, -1e+30  ;;  %v9109_v23 = vsel %vm10797_vm12, %v9064_v12, -1e+30  ;;  %vm10803_vm5 = vcmp.eq.s32.totalorder %v10802_v19, 1 }
0x1499   : > { %v9114_v34 = vsel %vm10799_vm0, %v9067_v3, -1e+30  ;;  %v4284_v22 = vsel %vm10801_vm14, %v9074_v28, -1e+30  ;;  %v4288_v18 = vsel %vm10803_vm5, %v9074_v28, -1e+30 }
0x149a   : > { %vm10805_vm9 = vcmp.eq.s32.totalorder %v10804_v52, 1  ;;  %vm10807_vm11 = vcmp.eq.s32.totalorder %v10806_v36, 1  ;;  %vm10809_vm13 = vcmp.eq.s32.totalorder %v10808_v14, 1  ;;  %vm10811_vm1 = vcmp.eq.s32.totalorder %v10810_v20, 1  ;;  %v10820_v4 = vld [vmem:[#allocation47_spill] sm:$0xff]  ;;  %v10832_v52 = vld [vmem:[#allocation73_spill] sm:$0xff] }
0x149b   : > { %v9125_v51 = vsel %vm10805_vm9, %v9064_v12, -1e+30  ;;  %v4283_v57 = vsel %vm10807_vm11, %v9077_v15, -1e+30  ;;  %v4287_v61 = vsel %vm10809_vm13, %v9077_v15, -1e+30 }
0x149c   : > { %v9136_v38 = vsel %vm10811_vm1, %v9074_v28, -1e+30  ;;  %vm10813_vm10 = vcmp.eq.s32.totalorder %v10812_v44, 1  ;;  %vm10815_vm12 = vcmp.eq.s32.totalorder %v10814_v5, 1  ;;  %vm10817_vm0 = vcmp.eq.s32.totalorder %v10816_v32, 1  ;;  %v10830_v8 = vld [vmem:[#allocation35_spill] sm:$0xff] }
0x149d   : > { %v4291_v39 = vsel %vm10813_vm10, %v9077_v15, -1e+30  ;;  %v4295_v31 = vsel %vm10815_vm12, %v9077_v15, -1e+30  ;;  %v9147_v54 = vsel %vm10817_vm0, %v9074_v28, -1e+30 }
0x149e   : > { %vm10819_vm14 = vcmp.eq.s32.totalorder %v10818_v58, 1  ;;  %vm10821_vm5 = vcmp.eq.s32.totalorder %v10820_v4, 1  ;;  %vm10823_vm9 = vcmp.eq.s32.totalorder %v10822_v59, 1  ;;  %vm10825_vm11 = vcmp.eq.s32.totalorder %v10824_v60, 1  ;;  %v10834_v14 = vld [vmem:[#allocation81_spill] sm:$0xff]  ;;  %v10836_v44 = vld [vmem:[#allocation51_spill] sm:$0xff] }
0x149f   : > { %v9152_v42 = vsel %vm10819_vm14, %v9077_v15, -1e+30  ;;  %v9157_v37 = vsel %vm10821_vm5, %v9074_v28, -1e+30  ;;  %v9162_v30 = vsel %vm10823_vm9, %v9067_v3, -1e+30 }
0x14a0   : > { %v9167_v6 = vsel %vm10825_vm11, %v9064_v12, -1e+30  ;;  %vm10827_vm13 = vcmp.eq.s32.totalorder %v10826_v40, 1  ;;  %vm10829_vm1 = vcmp.eq.s32.totalorder %v10828_v11, 1  ;;  %vm10831_vm10 = vcmp.eq.s32.totalorder %v10830_v8, 1  ;;  %v10838_v32 = vld [vmem:[#allocation44_spill] sm:$0xff] }
0x14a1   : > { %v9172_v29 = vsel %vm10827_vm13, %v9077_v15, -1e+30  ;;  %v9177_v25 = vsel %vm10829_vm1, %v9074_v28, -1e+30  ;;  %v9182_v19 = vsel %vm10831_vm10, %v9067_v3, -1e+30 }
0x14a2   : > { %vm10833_vm12 = vcmp.eq.s32.totalorder %v10832_v52, 1  ;;  %vm10835_vm0 = vcmp.eq.s32.totalorder %v10834_v14, 1  ;;  %vm10837_vm14 = vcmp.eq.s32.totalorder %v10836_v44, 1  ;;  %vm10839_vm5 = vcmp.eq.s32.totalorder %v10838_v32, 1  ;;  %v10840_v4 = vld [vmem:[#allocation77_spill] sm:$0xff]  ;;  %v10845_v44 = vld [vmem:[#allocation56_spill] sm:$0xff] }
0x14a3   : > { %v9187_v36 = vsel %vm10833_vm12, %v9064_v12, -1e+30  ;;  %v9192_v20 = vsel %vm10835_vm0, %v9077_v15, -1e+30  ;;  %v9197_v5 = vsel %vm10837_vm14, %v9074_v28, -1e+30 }
0x14a4   : > { %v9202_v58 = vsel %vm10839_vm5, %v9067_v3, -1e+30  ;;  %vm10841_vm9 = vcmp.eq.s32.totalorder %v10840_v4, 1  ;;  %v9212_v40 = vsel %vm1388_vm8, %v9077_v15, -1e+30  ;;  %vm10846_vm11 = vcmp.eq.s32.totalorder %v10845_v44, 1 }
0x14a5   : > { %v9207_v59 = vsel %vm10841_vm9, %v9064_v12, -1e+30  ;;  %v9217_v8 = vsel %vm1389_vm7, %v9074_v28, -1e+30  ;;  %v9222_v14 = vsel %vm1390_vm6, %v9067_v3, -1e+30 }
0x14a6   : > { %v9227_v32 = vsel %vm10846_vm11, %v9064_v12, -1e+30  ;;  %v10847_v4 = vld [vmem:[#allocation24_spill] sm:$0xff]  ;;  %vm10850_vm8 = vcmp.eq.s32.totalorder %v10849_v43, 1  ;;  %vm10852_vm7 = vcmp.eq.s32.totalorder %v10851_v9, 1  ;;  %vm10854_vm6 = vcmp.eq.s32.totalorder %v10853_v26, 1 }
0x14a7   : > { %vm10848_vm13 = vcmp.eq.s32.totalorder %v10847_v4, 1  ;;  %v9237_v11 = vsel %vm10850_vm8, %v9074_v28, -1e+30  ;;  %v9242_v52 = vsel %vm10852_vm7, %v9067_v3, -1e+30  ;;  %vm10856_vm1 = vcmp.eq.s32.totalorder %v10855_v10, 1 }
0x14a8   : > { %v9232_v60 = vsel %vm10848_vm13, %v9077_v15, -1e+30  ;;  %v9247_v44 = vsel %vm10854_vm6, %v9064_v12, -1e+30  ;;  %v9252_v4 = vsel %vm10856_vm1, %v9077_v15, -1e+30 }
0x14a9   : > { %vm10858_vm10 = vcmp.eq.s32.totalorder %v10857_v7, 1  ;;  %vm10860_vm12 = vcmp.eq.s32.totalorder %v10859_v24, 1  ;;  %vm10862_vm0 = vcmp.eq.s32.totalorder %v10861_v1, 1  ;;  %v10863_v33 = vld [vmem:[#allocation65_spill] sm:$0xff]  ;;  %v10865_v49 = vld [vmem:[#allocation38_spill] sm:$0xff]  ;;  %vm10869_vm9 = vcmp.eq.s32.totalorder %v10868_v56, 1 }
0x14aa   : > { %v9257_v43 = vsel %vm10858_vm10, %v9074_v28, -1e+30  ;;  %v9262_v9 = vsel %vm10860_vm12, %v9067_v3, -1e+30  ;;  %v9267_v26 = vsel %vm10862_vm0, %v9064_v12, -1e+30 }
0x14ab   : > { %vm10864_vm14 = vcmp.eq.s32.totalorder %v10863_v33, 1  ;;  %vm10866_vm5 = vcmp.eq.s32.totalorder %v10865_v49, 1  ;;  %v9282_v24 = vsel %vm10869_vm9, %v9067_v3, -1e+30  ;;  %vm10872_vm11 = vcmp.eq.s32.totalorder %v10871_v55, 1 }
0x14ac   : > { %v9272_v10 = vsel %vm10864_vm14, %v9077_v15, -1e+30  ;;  %v9277_v7 = vsel %vm10866_vm5, %v9074_v28, -1e+30  ;;  %10870 = vst [vmem:[#allocation98_spill] sm:$0xff] %v9282_v24  ;;  %vm10875_vm13 = vcmp.eq.s32.totalorder %v10874_v17, 1 }
0x14ad   : > { %10867 = vst [vmem:[#allocation14_spill] sm:$0xff] %v9277_v7  ;;  %v9287_v1 = vsel %vm10872_vm11, %v9064_v12, -1e+30  ;;  %v9292_v33 = vsel %vm10875_vm13, %v9077_v15, -1e+30  ;;  %vm10878_vm8 = vcmp.eq.s32.totalorder %v10877_v53, 1 }
0x14ae   : > { %10873 = vst [vmem:[#allocation85_spill] sm:$0xff] %v9287_v1  ;;  %10876 = vst [vmem:[#allocation97_spill] sm:$0xff] %v9292_v33  ;;  %v9297_v49 = vsel %vm10878_vm8, %v9074_v28, -1e+30  ;;  %vm10881_vm7 = vcmp.eq.s32.totalorder %v10880_v41, 1  ;;  %vm10884_vm6 = vcmp.eq.s32.totalorder %v10883_v63, 1 }
0x14af   : > { %10879 = vst [vmem:[#allocation93_spill] sm:$0xff] %v9297_v49  ;;  %v9302_v56 = vsel %vm10881_vm7, %v9067_v3, -1e+30  ;;  %v9307_v55 = vsel %vm10884_vm6, %v9064_v12, -1e+30  ;;  %v10886_v7 = vld [vmem:[#allocation74_spill] sm:$0xff] }
0x14b0   : > { %10882 = vst [vmem:[#allocation95_spill] sm:$0xff] %v9302_v56  ;;  %10885 = vst [vmem:[#allocation94_spill] sm:$0xff] %v9307_v55  ;;  %vm10887_vm1 = vcmp.eq.s32.totalorder %v10886_v7, 1  ;;  %v10889_v33 = vld [vmem:[#allocation48_spill] sm:$0xff]  ;;  %v10892_v49 = vld [vmem:[#allocation33_spill] sm:$0xff]  ;;  %vm10910_vm13 = vcmask 130048  }
0x14b1   : > { %v9312_v17 = vsel %vm10887_vm1, %v9077_v15, -1e+30  ;;  %vm10890_vm10 = vcmp.eq.s32.totalorder %v10889_v33, 1  ;;  %vm10893_vm12 = vcmp.eq.s32.totalorder %v10892_v49, 1  ;;  %v10895_v56 = vld [vmem:[#allocation71_spill] sm:$0xff]  ;;  %v10898_v55 = vld [vmem:[#allocation78_spill] sm:$0xff]  ;;  %vm10911_vm8 = vmmov %vm10910_vm13 }
0x14b2   : > { %10888 = vst [vmem:[#allocation99_spill] sm:$0xff] %v9312_v17  ;;  %v9317_v53 = vsel %vm10890_vm10, %v9074_v28, -1e+30  ;;  %v9322_v41 = vsel %vm10893_vm12, %v9067_v3, -1e+30  ;;  %vm10896_vm0 = vcmp.eq.s32.totalorder %v10895_v56, 1  ;;  %vm10912_vm7 = vmmov %vm10911_vm8 }
0x14b3   : > { %10891 = vst [vmem:[#allocation100_spill] sm:$0xff] %v9317_v53  ;;  %10894 = vst [vmem:[#allocation101_spill] sm:$0xff] %v9322_v41  ;;  %v9327_v63 = vsel %vm10896_vm0, %v9064_v12, -1e+30  ;;  %vm10899_vm14 = vcmp.eq.s32.totalorder %v10898_v55, 1  ;;  %v10901_v17 = vld [vmem:[#allocation50_spill] sm:$0xff] }
0x14b4   : > { %10897 = vst [vmem:[#allocation36_spill] sm:$0xff] %v9327_v63  ;;  %v9332_v7 = vsel %vm10899_vm14, %v9077_v15, -1e+30  ;;  %vm10902_vm5 = vcmp.eq.s32.totalorder %v10901_v17, 1  ;;  %v10904_v53 = vld [vmem:[#allocation39_spill] sm:$0xff]  ;;  %v4345_v63 = vsel %vm10910_vm13, %v4281_v48, -inf  ;;  %vm10913_vm6 = vmmov %vm10912_vm7 }
0x14b5   : > { %10900 = vst [vmem:[#allocation15_spill] sm:$0xff] %v9332_v7  ;;  %v9337_v33 = vsel %vm10902_vm5, %v9074_v28, -1e+30  ;;  %vm10905_vm9 = vcmp.eq.s32.totalorder %v10904_v53, 1  ;;  %v10907_v41 = vld [vmem:[#allocation75_spill] sm:$0xff]  ;;  %v4346_v55 = vsel %vm10911_vm8, %v4282_v0, -inf  ;;  %vm10914_vm1 = vmmov %vm10913_vm6 }
0x14b6   : > { %10903 = vst [vmem:[#allocation37_spill] sm:$0xff] %v9337_v33  ;;  %v9342_v49 = vsel %vm10905_vm9, %v9067_v3, -1e+30  ;;  %vm10908_vm11 = vcmp.eq.s32.totalorder %v10907_v41, 1  ;;  %v4348_v7 = vsel %vm10912_vm7, %v4283_v57, -inf  ;;  %v4347_v1 = vmax.f32 %v4345_v63, %v4346_v55  ;;  %vm10915_vm10 = vmmov %vm10914_vm1 }
0x14b7   : > { %10906 = vst [vmem:[#allocation86_spill] sm:$0xff] %v9342_v49  ;;  %v9347_v56 = vsel %vm10908_vm11, %v9064_v12, -1e+30  ;;  %v4358_v17 = vsel %vm10913_vm6, %v4285_v50, -inf  ;;  %v4359_v33 = vsel %vm10914_vm1, %v4286_v2, -inf  ;;  %v4361_v53 = vsel %vm10915_vm10, %v4287_v61, -inf  ;;  %vm10916_vm12 = vmmov %vm10914_vm1 }
0x14b8   : > { %10909 = vst [vmem:[#allocation53_spill] sm:$0xff] %v9347_v56  ;;  %v4350_v49 = vsel %vm10916_vm12, %v4284_v22, -inf  ;;  %v4360_v24 = vmax.f32 %v4358_v17, %v4359_v33  ;;  %vm10917_vm0 = vmmov %vm10914_vm1  ;;  %v4349_v56 = vmax.f32 %v4347_v1, %v4348_v7 }
0x14b9   : > { %v4371_v41 = vsel %vm10917_vm0, %v9094_v46, -inf  ;;  %vm10918_vm14 = vmmov %vm10917_vm0 }
0x14ba   : > { %v4372_v48 = vsel %vm10918_vm14, %v9099_v16, -inf  ;;  %vm10919_vm5 = vmmov %vm10917_vm0  ;;  %v4362_v50 = vmax.f32 %v4360_v24, %v4361_v53  ;;  %v4351_v33 = vmax.f32 %v4349_v56, %v4350_v49 }
0x14bb   : > { %v4363_v0 = vsel %vm10919_vm5, %v4288_v18, -inf  ;;  %v4373_v57 = vmax.f32 %v4371_v41, %v4372_v48  ;;  %vm10920_vm9 = vmmov %vm10917_vm0 }
0x14bc   : > { %v4374_v63 = vsel %vm10920_vm9, %v4291_v39, -inf  ;;  %vm10921_vm11 = vmmov %vm10917_vm0  ;;  %v4364_v7 = vmax.f32 %v4362_v50, %v4363_v0  ;;  %v4352_v24 = vrot.slane %v4351_v33, 4 }
0x14bd   : > { %v4384_v2 = vsel %vm10921_vm11, %v9104_v27, -inf  ;;  %vm10922_vm13 = vmmov %vm10917_vm0  ;;  %v4375_v46 = vmax.f32 %v4373_v57, %v4374_v63 }
0x14be   : > { %v4385_v22 = vsel %vm10922_vm13, %v9109_v23, -inf  ;;  %vm10923_vm8 = vmmov %vm10917_vm0  ;;  %v4365_v49 = vrot.slane %v4364_v7, 4  ;;  %v4353_v17 = vmax.f32 %v4351_v33, %v4352_v24 }
0x14bf   : > { %v4387_v61 = vsel %vm10923_vm8, %v4295_v31, -inf  ;;  %vm10924_vm7 = vmmov %vm10917_vm0  ;;  %v4386_v1 = vmax.f32 %v4384_v2, %v4385_v22 }
0x14c0   : > { %v4376_v16 = vsel %vm10924_vm7, %v9136_v38, -inf  ;;  %vm10925_vm6 = vmmov %vm10917_vm0  ;;  %v4410_v38 = vsel %vm10917_vm0, %v9162_v30, -inf  ;;  %v4366_v48 = vmax.f32 %v4364_v7, %v4365_v49  ;;  %v4354_v63 = vrot.slane %v4353_v17, 2 }
0x14c1   : > { %v4397_v18 = vsel %vm10925_vm6, %v9114_v34, -inf  ;;  %vm10926_vm1 = vmmov %vm10917_vm0  ;;  %v4377_v23 = vmax.f32 %v4375_v46, %v4376_v16  ;;  %v4388_v55 = vmax.f32 %v4386_v1, %v4387_v61  ;;  %vm10936_vm6 = vcmp.eq.s32.totalorder %v7164_v13, 1 }
0x14c2   : > { %v4398_v39 = vsel %vm10926_vm1, %v9125_v51, -inf  ;;  %vm10927_vm10 = vmmov %vm10917_vm0  ;;  %v4367_v30 = vrot.slane %v4366_v48, 2  ;;  %v4355_v1 = vmax.f32 %v4353_v17, %v4354_v63  ;;  %vm10937_vm1 = vcmp.eq.s32.totalorder %v7557_v47, 1 }
0x14c3   : > { %v4400_v27 = vsel %vm10927_vm10, %v9152_v42, -inf  ;;  %v4399_v31 = vmax.f32 %v4397_v18, %v4398_v39  ;;  %vm10928_vm12 = vmmov %vm10917_vm0  ;;  %v4378_v53 = vrot.slane %v4377_v23, 4  ;;  %vm10938_vm10 = vcmp.eq.s32.totalorder %v10181_v62, 1 }
0x14c4   : > { %v4389_v56 = vsel %vm10928_vm12, %v9147_v54, -inf  ;;  %vm10929_vm14 = vmmov %vm10917_vm0  ;;  %v4368_v39 = vmax.f32 %v4366_v48, %v4367_v30  ;;  %vm10939_vm12 = vcmp.eq.s32.totalorder %v10180_v35, 1  ;;  %v4428_v13 = vsel %vm10917_vm0, %v9197_v5, -inf }
0x14c5   : > { %v4411_v34 = vsel %vm10929_vm14, %v9167_v6, -inf  ;;  %v4390_v51 = vmax.f32 %v4388_v55, %v4389_v56  ;;  %v4401_v41 = vmax.f32 %v4399_v31, %v4400_v27  ;;  %vm10930_vm5 = vmmov %vm10917_vm0  ;;  %v4379_v54 = vmax.f32 %v4377_v23, %v4378_v53 }
0x14c6   : > { %v4402_v42 = vsel %vm10930_vm5, %v9157_v37, -inf  ;;  %v4412_v0 = vmax.f32 %v4410_v38, %v4411_v34  ;;  %vm10931_vm9 = vmmov %vm10917_vm0  ;;  %v9411_v31 = vsel %vm10939_vm12, %v9064_v12, -1e+30  ;;  %v4356_v49 = vrot.slane %v4355_v1, 1 }
0x14c7   : > { %v4413_v57 = vsel %vm10931_vm9, %v9172_v29, -inf  ;;  %v4391_v50 = vrot.slane %v4390_v51, 4  ;;  %v4403_v2 = vmax.f32 %v4401_v41, %v4402_v42  ;;  %vm10932_vm11 = vmmov %vm10917_vm0  ;;  %v4380_v33 = vrot.slane %v4379_v54, 2 }
0x14c8   : > { %v4414_v22 = vmax.f32 %v4412_v0, %v4413_v57  ;;  %v4423_v6 = vsel %vm10932_vm11, %v9182_v19, -inf  ;;  %vm10933_vm13 = vmmov %vm10917_vm0  ;;  %v9396_v19 = vsel %vm10936_vm6, %v9077_v15, -1e+30  ;;  %v4369_v34 = vrot.slane %v4368_v39, 1 }
0x14c9   : > { %v4424_v61 = vsel %vm10933_vm13, %v9187_v36, -inf  ;;  %v4392_v46 = vmax.f32 %v4390_v51, %v4391_v50  ;;  %v4404_v16 = vrot.slane %v4403_v2, 4  ;;  %vm10934_vm8 = vmmov %vm10917_vm0  ;;  %v4381_v27 = vmax.f32 %v4379_v54, %v4380_v33 }
0x14ca   : > { %v4415_v37 = vsel %vm10934_vm8, %v9177_v25, -inf  ;;  %v4425_v7 = vmax.f32 %v4423_v6, %v4424_v61  ;;  %vm10935_vm7 = vmmov %vm10917_vm0  ;;  %v9401_v36 = vsel %vm10937_vm1, %v9074_v28, -1e+30  ;;  %vm10943_vm11 = vcmp.eq.s32.totalorder %v7498_v45, 1 }
0x14cb   : > { %v4416_v29 = vmax.f32 %v4414_v22, %v4415_v37  ;;  %v4426_v18 = vsel %vm10935_vm7, %v9192_v20, -inf  ;;  %v4393_v24 = vrot.slane %v4392_v46, 2  ;;  %v4405_v23 = vmax.f32 %v4403_v2, %v4404_v16  ;;  %vm10940_vm14 = vmmov %vm10917_vm0 }
0x14cc   : > { %v4427_v55 = vmax.f32 %v4425_v7, %v4426_v18  ;;  %v9406_v20 = vsel %vm10938_vm10, %v9067_v3, -1e+30  ;;  %v4436_v38 = vsel %vm10940_vm14, %v9202_v58, -inf  ;;  %v4382_v17 = vrot.slane %v4381_v27, 1  ;;  %vm10941_vm5 = vmmov %vm10917_vm0 }
0x14cd   : > { %v4417_v25 = vrot.slane %v4416_v29, 4  ;;  %v4394_v56 = vmax.f32 %v4392_v46, %v4393_v24  ;;  %v4406_v53 = vrot.slane %v4405_v23, 2  ;;  %v4437_v62 = vsel %vm10941_vm5, %v9207_v59, -inf  ;;  %vm10942_vm9 = vmmov %vm10917_vm0  ;;  %v10958_v24 = vld [vmem:[#allocation85_spill] sm:$0xff] }
0x14ce   : > { %v4429_v47 = vmax.f32 %v4427_v55, %v4428_v13  ;;  %v4438_v35 = vmax.f32 %v4436_v38, %v4437_v62  ;;  %v4439_v48 = vsel %vm10942_vm9, %v9212_v40, -inf  ;;  %v9424_v5 = vsel %vm10943_vm11, %v9077_v15, -1e+30  ;;  %vm10945_vm8 = vmmov %vm10917_vm0  ;;  %v10960_v13 = vld [vmem:[#allocation14_spill] sm:$0xff] }
0x14cf   : > { %v4418_v51 = vmax.f32 %v4416_v29, %v4417_v25  ;;  %vm10944_vm13 = vcmp.eq.s32.totalorder %v7594_v21, 1  ;;  %v4449_v42 = vsel %vm10945_vm8, %v9222_v14, -inf  ;;  %v9433_v59 = vmax.f32 %v4355_v1, %v4356_v49  ;;  %vm10946_vm7 = vmmov %vm10917_vm0 }
0x14d0   : > { %v4430_v41 = vrot.slane %v4429_v47, 4  ;;  %v9429_v58 = vsel %vm10944_vm13, %v9074_v28, -1e+30  ;;  %v4395_v0 = vrot.slane %v4394_v56, 1  ;;  %v4440_v57 = vmax.f32 %v4438_v35, %v4439_v48  ;;  %vm10947_vm6 = vmmov %vm10917_vm0  ;;  %v10966_v35 = vld [vmem:[#allocation94_spill] sm:$0xff] }
0x14d1   : > { %v4450_v40 = vsel %vm10946_vm7, %v9227_v32, -inf  ;;  %v9437_v63 = vmax.f32 %v4368_v39, %v4369_v34  ;;  %v9439_v45 = vmax.f32 %v4381_v27, %v4382_v17  ;;  %v4452_v21 = vsel %vm10947_vm6, %v9232_v60, -inf  ;;  %vm10948_vm1 = vmmov %vm10917_vm0  ;;  %v10956_v39 = vld [vmem:[#allocation98_spill] sm:$0xff] }
0x14d2   : > { %v4451_v54 = vmax.f32 %v4449_v42, %v4450_v40  ;;  %v9443_v50 = vmax.f32 %v4405_v23, %v4406_v53  ;;  %v4419_v2 = vrot.slane %v4418_v51, 2  ;;  %v4431_v30 = vmax.f32 %v4429_v47, %v4430_v41  ;;  %vm10949_vm10 = vmmov %vm10917_vm0  ;;  %v10962_v47 = vld [vmem:[#allocation97_spill] sm:$0xff]  ;;  %v10964_v53 = vld [vmem:[#allocation95_spill] sm:$0xff] }
0x14d3   : > { %v4462_v14 = vsel %vm10948_vm1, %v9242_v52, -inf  ;;  %v4441_v22 = vsel %vm10949_vm10, %v9217_v8, -inf  ;;  %vm10950_vm12 = vmmov %vm10917_vm0  ;;  %v4465_v61 = vsel %vm10917_vm0, %v9252_v4, -inf  ;;  %v9453_v33 = vmax.f32 %v4394_v56, %v4395_v0  ;;  %v10968_v42 = vld [vmem:[#allocation99_spill] sm:$0xff] }
0x14d4   : > { %v4453_v6 = vmax.f32 %v4451_v54, %v4452_v21  ;;  %v4463_v32 = vsel %vm10950_vm12, %v9247_v44, -inf  ;;  %v4442_v60 = vmax.f32 %v4440_v57, %v4441_v22  ;;  %vm10951_vm14 = vmmov %vm10917_vm0  ;;  %v4408_v1 = vrot.slane %v9443_v50, 1  ;;  %v10969_v54 = vld [vmem:[#allocation93_spill] sm:$0xff] }
0x14d5   : > { %v4454_v46 = vsel %vm10951_vm14, %v9237_v11, -inf  ;;  %v4464_v16 = vmax.f32 %v4462_v14, %v4463_v32  ;;  %vm10952_vm5 = vmmov %vm10917_vm0  ;;  %v4432_v4 = vrot.slane %v4431_v30, 2  ;;  %v9470_v23 = vmax.f32 %v4418_v51, %v4419_v2 }
0x14d6   : > { %v4455_v37 = vmax.f32 %v4453_v6, %v4454_v46  ;;  %v4475_v52 = vsel %vm10952_vm5, %v9262_v9, -inf  ;;  %vm10953_vm9 = vmmov %vm10917_vm0  ;;  %v4504_v0 = vsel %vm10917_vm0, %v10968_v42, -inf  ;;  %v10971_v6 = vld [vmem:[#allocation101_spill] sm:$0xff] }
0x14d7   : > { %v4476_v8 = vsel %vm10953_vm9, %v9267_v26, -inf  ;;  %vm10954_vm11 = vmmov %vm10917_vm0  ;;  %v4466_v29 = vmax.f32 %v4464_v16, %v4465_v61  ;;  %v4443_v26 = vrot.slane %v4442_v60, 4 }
0x14d8   : > { %v4478_v44 = vsel %vm10954_vm11, %v9272_v10, -inf  ;;  %v4477_v7 = vmax.f32 %v4475_v52, %v4476_v8  ;;  %v4456_v18 = vrot.slane %v4455_v37, 4  ;;  %vm10955_vm13 = vmmov %vm10917_vm0 }
0x14d9   : > { %v4467_v11 = vsel %vm10955_vm13, %v9257_v43, -inf  ;;  %vm10957_vm8 = vmmov %vm10917_vm0  ;;  %v9476_v43 = vmax.f32 %v4431_v30, %v4432_v4  ;;  %v4444_v30 = vmax.f32 %v4442_v60, %v4443_v26  ;;  %v10975_v4 = vld [vmem:[#allocation36_spill] sm:$0xff] }
0x14da   : > { %v4488_v27 = vsel %vm10957_vm8, %v10956_v39, -inf  ;;  %vm10959_vm7 = vmmov %vm10917_vm0  ;;  %v4468_v25 = vmax.f32 %v4466_v29, %v4467_v11  ;;  %v4479_v10 = vmax.f32 %v4477_v7, %v4478_v44  ;;  %v4457_v55 = vmax.f32 %v4455_v37, %v4456_v18  ;;  %v10973_v37 = vld [vmem:[#allocation100_spill] sm:$0xff]  ;;  %v10977_v7 = vld [vmem:[#allocation15_spill] sm:$0xff] }
0x14db   : > { %v4489_v9 = vsel %vm10959_vm7, %v10958_v24, -inf  ;;  %vm10961_vm6 = vmmov %vm10917_vm0  ;;  %v4445_v24 = vrot.slane %v4444_v30, 2 }
0x14dc   : > { %v4480_v49 = vsel %vm10961_vm6, %v10960_v13, -inf  ;;  %v4490_v56 = vmax.f32 %v4488_v27, %v4489_v9  ;;  %vm10963_vm1 = vmmov %vm10917_vm0  ;;  %v4469_v34 = vrot.slane %v4468_v25, 4  ;;  %v4458_v51 = vrot.slane %v4457_v55, 2 }
0x14dd   : > { %v4491_v38 = vsel %vm10963_vm1, %v10962_v47, -inf  ;;  %v4481_v17 = vmax.f32 %v4479_v10, %v4480_v49  ;;  %vm10965_vm10 = vmmov %vm10917_vm0 }
0x14de   : > { %v4501_v62 = vsel %vm10965_vm10, %v10964_v53, -inf  ;;  %v4492_v41 = vmax.f32 %v4490_v56, %v4491_v38  ;;  %vm10967_vm12 = vmmov %vm10917_vm0  ;;  %v4470_v57 = vmax.f32 %v4468_v25, %v4469_v34  ;;  %v4459_v14 = vmax.f32 %v4457_v55, %v4458_v51  ;;  %v10979_v25 = vld [vmem:[#allocation86_spill] sm:$0xff]  ;;  %v10981_v38 = vld [vmem:[#allocation37_spill] sm:$0xff] }
0x14df   : > { %v4502_v48 = vsel %vm10967_vm12, %v10966_v35, -inf  ;;  %v4482_v40 = vrot.slane %v4481_v17, 4  ;;  %vm10970_vm14 = vmmov %vm10917_vm0 }
0x14e0   : > { %v4493_v21 = vsel %vm10970_vm14, %v10969_v54, -inf  ;;  %v4503_v2 = vmax.f32 %v4501_v62, %v4502_v48  ;;  %vm10972_vm5 = vmmov %vm10917_vm0  ;;  %v4471_v61 = vrot.slane %v4470_v57, 2  ;;  %v4460_v8 = vrot.slane %v4459_v14, 1 }
0x14e1   : > { %v4494_v22 = vmax.f32 %v4492_v41, %v4493_v21  ;;  %v4514_v32 = vsel %vm10972_vm5, %v10971_v6, -inf  ;;  %v4483_v46 = vmax.f32 %v4481_v17, %v4482_v40  ;;  %vm10974_vm9 = vmmov %vm10917_vm0  ;;  %v10983_v17 = vld [vmem:[#allocation53_spill] sm:$0xff] }
0x14e2   : > { %v4505_v16 = vmax.f32 %v4503_v2, %v4504_v0  ;;  %v4506_v52 = vsel %vm10974_vm9, %v10973_v37, -inf  ;;  %vm10976_vm11 = vmmov %vm10917_vm0  ;;  %v4472_v60 = vmax.f32 %v4470_v57, %v4471_v61  ;;  %v4461_v9 = vmax.f32 %v4459_v14, %v4460_v8 }
0x14e3   : > { %v4495_v44 = vrot.slane %v4494_v22, 4  ;;  %v4515_v29 = vsel %vm10976_vm11, %v10975_v4, -inf  ;;  %vm10978_vm13 = vmmov %vm10917_vm0  ;;  %v4484_v11 = vrot.slane %v4483_v46, 2  ;;  %v4532_v2 = vsel %vm10917_vm0, %v9401_v36, -inf }
0x14e4   : > { %v4517_v18 = vsel %vm10978_vm13, %v10977_v7, -inf  ;;  %v4507_v39 = vmax.f32 %v4505_v16, %v4506_v52  ;;  %v4516_v27 = vmax.f32 %v4514_v32, %v4515_v29  ;;  %vm10980_vm8 = vmmov %vm10917_vm0  ;;  %v4473_v55 = vrot.slane %v4472_v60, 1 }
0x14e5   : > { %v4496_v26 = vmax.f32 %v4494_v22, %v4495_v44  ;;  %v4527_v10 = vsel %vm10980_vm8, %v10979_v25, -inf  ;;  %v4485_v13 = vmax.f32 %v4483_v46, %v4484_v11  ;;  %vm10982_vm7 = vmmov %vm10917_vm0  ;;  %v4421_v8 = vrot.slane %v9470_v23, 1 }
0x14e6   : > { %v4508_v49 = vrot.slane %v4507_v39, 4  ;;  %v4518_v56 = vmax.f32 %v4516_v27, %v4517_v18  ;;  %v4519_v34 = vsel %vm10982_vm7, %v10981_v38, -inf  ;;  %vm10984_vm6 = vmmov %vm10917_vm0  ;;  %v4474_v51 = vmax.f32 %v4472_v60, %v4473_v55 }
0x14e7   : > { %v4497_v47 = vrot.slane %v4496_v26, 2  ;;  %v4528_v53 = vsel %vm10984_vm6, %v10983_v17, -inf  ;;  %vm10985_vm1 = vmmov %vm10917_vm0  ;;  %v4486_v41 = vrot.slane %v4485_v13, 1  ;;  %v4446_v7 = vmax.f32 %v4444_v30, %v4445_v24 }
0x14e8   : > { %v4530_v62 = vsel %vm10985_vm1, %v9396_v19, -inf  ;;  %v4509_v35 = vmax.f32 %v4507_v39, %v4508_v49  ;;  %v4520_v48 = vmax.f32 %v4518_v56, %v4519_v34  ;;  %v4529_v0 = vmax.f32 %v4527_v10, %v4528_v53  ;;  %vm10986_vm10 = vmmov %vm10917_vm0 }
0x14e9   : > { %v4498_v42 = vmax.f32 %v4496_v26, %v4497_v47  ;;  %v4540_v57 = vsel %vm10986_vm10, %v9406_v20, -inf  ;;  %vm10987_vm12 = vmmov %vm10917_vm0  ;;  %v4487_v22 = vmax.f32 %v4485_v13, %v4486_v41  ;;  %v4569_v20 = vsel %vm1710_vm15, %v9437_v63, %v9433_v59 }
0x14ea   : > { %v4541_v40 = vsel %vm10987_vm12, %v9411_v31, -inf  ;;  %v4510_v54 = vrot.slane %v4509_v35, 2  ;;  %v4521_v21 = vrot.slane %v4520_v48, 4  ;;  %v4531_v6 = vmax.f32 %v4529_v0, %v4530_v62  ;;  %vm10988_vm14 = vmmov %vm10917_vm0  ;;  %v11000_v0 = vld [vmem:[#allocation46_spill] sm:$0xff] }
0x14eb   : > { %v4542_v14 = vmax.f32 %v4540_v57, %v4541_v40  ;;  %v4499_v19 = vrot.slane %v4498_v42, 1  ;;  %v4543_v32 = vsel %vm10988_vm14, %v9424_v5, -inf  ;;  %vm10989_vm5 = vmmov %vm10917_vm0  ;;  %v4570_v36 = vsel %vm1712_vm2, %v9439_v45, %v4569_v20  ;;  %v11002_v57 = vld [vmem:[#allocation91_spill] sm:$0xff]  ;;  %v11004_v40 = vld [vmem:[#allocation90_spill] sm:$0xff] }
0x14ec   : > { %v4511_v61 = vmax.f32 %v4509_v35, %v4510_v54  ;;  %v4522_v46 = vmax.f32 %v4520_v48, %v4521_v21  ;;  %v4533_v31 = vmax.f32 %v4531_v6, %v4532_v2  ;;  %v4545_v37 = vsel %vm10989_vm5, %v9429_v58, -inf  ;;  %vm10999_vm1 = vmmov %vm10917_vm0 }
0x14ed   : > { %v4544_v16 = vmax.f32 %v4542_v14, %v4543_v32  ;;  %v4576_v52 = vsel %vm1710_vm15, %v4474_v51, %v4461_v9  ;;  %v4571_v4 = vsel %vm1714_vm3, %v9453_v33, %v4570_v36  ;;  %v4409_v59 = vmax.f32 %v9443_v50, %v4408_v1  ;;  %vm11001_vm10 = vmmov %vm10917_vm0 }
0x14ee   : > { %v4523_v44 = vrot.slane %v4522_v46, 2  ;;  %v4512_v63 = vrot.slane %v4511_v61, 1  ;;  %v4534_v29 = vrot.slane %v4533_v31, 4  ;;  %v4577_v58 = vsel %vm1712_vm2, %v4487_v22, %v4576_v52  ;;  %vm11003_vm12 = vmmov %vm10917_vm0 }
0x14ef   : > { %v4546_v5 = vmax.f32 %v4544_v16, %v4545_v37  ;;  %v4500_v18 = vmax.f32 %v4498_v42, %v4499_v19  ;;  %v4434_v11 = vrot.slane %v9476_v43, 1  ;;  %vm10990_vm9 = vcmask 1044484   ;;  %v10998_v42 = vld [vmem:[#allocation79_spill] sm:$0xff]  ;;  %vm11014_vm14 = vmmov %vm10917_vm0 }
0x14f0   : > { %v4524_v45 = vmax.f32 %v4522_v46, %v4523_v44  ;;  %v4535_v39 = vmax.f32 %v4533_v31, %v4534_v29  ;;  %v4572_v27 = vsel %vm10990_vm9, %v4409_v59, %v4571_v4  ;;  %v4422_v9 = vmax.f32 %v9470_v23, %v4421_v8  ;;  %vm10992_vm11 = vmmov %vm10990_vm9  ;;  %v11005_v8 = vld [vmem:[#allocation106_spill] sm:$0xff]  ;;  %v11006_v4 = vld [vmem:[#allocation108_spill] sm:$0xff] }
0x14f1   : > { %v4547_v60 = vrot.slane %v4546_v5, 4  ;;  %v4578_v25 = vsel %vm1714_vm3, %v4500_v18, %v4577_v58  ;;  %v4513_v50 = vmax.f32 %v4511_v61, %v4512_v63  ;;  %v4447_v10 = vrot.slane %v4446_v7, 1  ;;  %v11008_v18 = vld [vmem:[#allocation107_spill] sm:$0xff]  ;;  %vm11017_vm5 = vmmov %vm10917_vm0 }
0x14f2   : > { %v4525_v33 = vrot.slane %v4524_v45, 1  ;;  %v4536_v1 = vrot.slane %v4535_v39, 2  ;;  %vm10991_vm2 = vcmask 1045509   ;;  %v4435_v24 = vmax.f32 %v9476_v43, %v4434_v11  ;;  %v11009_v11 = vld [vmem:[#allocation92_spill] sm:$0xff]  ;;  %vm11019_vm9 = vmmov %vm10917_vm0 }
0x14f3   : > { %v4548_v26 = vmax.f32 %v4546_v5, %v4547_v60  ;;  %v4573_v30 = vsel %vm10991_vm2, %v4422_v9, %v4572_v27  ;;  %v4579_v49 = vsel %vm10992_vm11, %v4513_v50, %v4578_v25  ;;  %vm10993_vm13 = vcmask 1046534   ;;  %vm10994_vm8 = vmmov %vm10991_vm2  ;;  %v5750_v27 = vld [vmem:[%s9787_s10 + $0x38] sm:$0xff] }
0x14f4   : > { %v4537_v13 = vmax.f32 %v4535_v39, %v4536_v1  ;;  %v4526_v56 = vmax.f32 %v4524_v45, %v4525_v33  ;;  %v4574_v23 = vsel %vm10993_vm13, %v4435_v24, %v4573_v30  ;;  %v4448_v34 = vmax.f32 %v4446_v7, %v4447_v10  ;;  %vm10996_vm7 = vmmov %vm10993_vm13  ;;  %v5749_v39 = vld [vmem:[%s9787_s10 + $0x30] sm:$0xff] }
0x14f5   : > { %v4549_v55 = vrot.slane %v4548_v26, 2  ;;  %vm10995_vm3 = vcmask 1047559   ;;  %v6383_v9 = vpack.c.bf16 %v5750_v27, %v5749_v39 }
0x14f6   : > { %v4538_v38 = vrot.slane %v4537_v13, 1  ;;  %v4580_v53 = vsel %vm10994_vm8, %v4526_v56, %v4579_v49  ;;  %v4575_v41 = vsel %vm10995_vm3, %v4448_v34, %v4574_v23  ;;  %vm10997_vm6 = vmmov %vm10995_vm3  ;;  %v11010_v49 = vld [vmem:[#allocation105_spill] sm:$0xff] }
0x14f7   : > { %v4550_v47 = vmax.f32 %v4548_v26, %v4549_v55  ;;  %v11011_v56 = vmax.f32 %v11010_v49, 0.0  ;;  %vm11021_vm8 = vmmov %vm10917_vm0 }
0x14f8   : > { %v4539_v62 = vmax.f32 %v4537_v13, %v4538_v38  ;;  %v11012_v38 = vld [vmem:[#allocation103_spill] sm:$0xff] }
0x14f9   : > { %v4551_v17 = vrot.slane %v4550_v47, 1  ;;  %v11013_v23 = vmax.f32 %v11012_v38, 0.0  ;;  %v11020_v38 = vmov 0  }
0x14fa   : > { %v4581_v35 = vsel %vm10996_vm7, %v4539_v62, %v4580_v53  ;;  %vm6648_vm7 = vmmov 0  }
0x14fb   : > { %v4552_v51 = vmax.f32 %v4550_v47, %v4551_v17  ;;  %v5752_v17 = vld [vmem:[%s9788_s11 + $0xc] ss:$0 sm:$0xff] }
0x14fd   : > { %v4582_v43 = vsel %vm10997_vm6, %v4552_v51, %v4581_v35 }
0x14fe   : > { %v6363_v48 = vpack.c.bf16 %v4582_v43, %v4575_v41 }
0x1500   : > { %6364 = vmatprep.subr.bf16.mxu0 %v6363_v48 }
0x1501   : > { %6366 = vmatpush3.bf16.msra.mxu0 %v6363_v48 }
0x1504   : > { %6157 = vmatmul.mubr.msk.f32.vlgmr.msra.gmra.mrb[34].mxu0 %vm10999_vm1, %v10998_v42 }
0x1505   : > { %6159 = vmatprep.mubr.msk.f32.mxu0 %vm11001_vm10, %v11000_v0 }
0x1508   : > { %6160 = vmatmul.mubr.msk.f32.gmra.mrb[36].mxu0 %vm11003_vm12, %v11002_v57 }
0x1509   : > { %6181 = vmatprep.mubr.msk.f32.mxu0 %vm1846_vm4, %v11004_v40  ;;  %v5759_v40 = vld [vmem:[%s9789_s12 + $0x60] sm:$0xff] }
0x15d7   : > { %v6158_v54 = vpop.f32.mrb[34].mxu0 }
0x15d8   : > { %v4671_v21 = vsub.f32 %v9064_v12, %v6158_v54  ;;  %v4651_v2 = vpop.f32.mrb[35].mxu0  ;;  %v5760_v54 = vld [vmem:[%s9789_s12 + $0x68] sm:$0xff] }
0x15d9   : > { %v4670_v14 = vsub.f32 %v9067_v3, %v4651_v2  ;;  %v6387_v2 = vpack.c.bf16 %v5760_v54, %v5759_v40  ;;  %v5358_v40 = vld [vmem:[%s9792_s15] sm:$0xff]  ;;  %v5359_v54 = vld [vmem:[%s9792_s15 + $0x8] sm:$0xff] }
0x15da   : > { %v4675_v22 = vmin.f32 %v4671_v21, 0.0  ;;  %v5761_v21 = vld [vmem:[%s9789_s12 + $0x70] sm:$0xff] }
0x15db   : > { %v4674_v19 = vmin.f32 %v4670_v14, 0.0  ;;  %v6161_v6 = vpop.f32.mrb[36].mxu0  ;;  %v5762_v14 = vld [vmem:[%s9789_s12 + $0x78] sm:$0xff] }
0x15dc   : > { %v4680_v32 = vmul.f32 1.442695, %v4675_v22  ;;  %v4673_v61 = vsub.f32 %v9074_v28, %v6161_v6  ;;  %v4661_v46 = vpop.f32.mrb[37].mxu0  ;;  %v6391_v22 = vpack.c.bf16 %v5762_v14, %v5761_v21  ;;  %v5360_v21 = vld [vmem:[%s9792_s15 + $0x10] sm:$0xff]  ;;  %v5361_v14 = vld [vmem:[%s9792_s15 + $0x18] sm:$0xff] }
0x15dd   : > { %v4678_v16 = vmul.f32 1.442695, %v4674_v19  ;;  %v4672_v20 = vsub.f32 %v9077_v15, %v4661_v46  ;;  %v11007_v15 = vld [vmem:[#allocation96_spill] sm:$0xff] }
0x15de   : > { %6541 = vpow2.f32 %v4680_v32  ;;  %v4677_v31 = vmin.f32 %v4673_v61, 0.0 }
0x15df   : > { %6543 = vpow2.f32 %v4678_v16  ;;  %v4676_v37 = vmin.f32 %v4672_v20, 0.0 }
0x15e0   : > { %v4684_v36 = vmul.f32 1.442695, %v4677_v31 }
0x15e1   : > { %v4682_v52 = vmul.f32 1.442695, %v4676_v37 }
0x15e2   : > { %6545 = vpow2.f32 %v4684_v36 }
0x15e3   : > { %6547 = vpow2.f32 %v4682_v52 }
0x15e8   : > { %v6542_v12 = vpop.eup %6541 }
0x15e9   : > { %v6544_v3 = vpop.eup %6543  ;;  %v4762_v44 = vmul.f32 %v6542_v12, %v11005_v8 }
0x15ea   : > { %v6367_v5 = vpack.c.bf16 %v6542_v12, %v6544_v3  ;;  %v4761_v59 = vmul.f32 %v6544_v3, %v11006_v4 }
0x15ec   : > { %v6546_v28 = vpop.eup %6545  ;;  %6368 = vmatprep.subr.bf16.mxu1 %v6367_v5  ;;  %v6375_v63 = vpack.c.bf16 %v4762_v44, %v4761_v59 }
0x15ed   : > { %v6548_v29 = vpop.eup %6547  ;;  %6370 = vmatpush3.bf16.msra.mxu1 %v6367_v5  ;;  %v4764_v58 = vmul.f32 %v6546_v28, %v11007_v15 }
0x15ee   : > { %6376 = vmatprep.subr.bf16.mxu0 %v6375_v63  ;;  %v6371_v7 = vpack.c.bf16 %v6546_v28, %v6548_v29  ;;  %v4763_v45 = vmul.f32 %v6548_v29, %v11008_v18 }
0x15ef   : > { %6378 = vmatpush3.bf16.msra.mxu0 %v6375_v63  ;;  %v5757_v63 = vld [vmem:[%s9788_s11 + $0xd] ss:$0 sm:$0xff] }
0x15f0   : > { %6372 = vmatprep.subr.bf16.mxu1 %v6371_v7  ;;  %v6379_v60 = vpack.c.bf16 %v4764_v58, %v4763_v45  ;;  %v5758_v58 = vld [vmem:[%s9788_s11 + $0xe] ss:$0 sm:$0xff] }
0x15f1   : > { %6374 = vmatpush3.bf16.msra.mxu1 %v6371_v7 }
0x15f2   : > { %6380 = vmatprep.subr.bf16.mxu0 %v6379_v60  ;;  %6384 = vmatprep.subr.bf16.mxu1 %v6383_v9 }
0x15f3   : > { %6382 = vmatpush3.bf16.msra.mxu0 %v6379_v60 }
0x15f4   : > { %6171 = vmatmul.mubr.msk.f32.vlgmr.msra.gmra.mrb[24].mxu1 %vm1846_vm4, %v11009_v11 }
0x15f5   : > { %6386 = vmatpush3.bf16.msra.mxu1 %v6383_v9  ;;  %v5764_v9 = vld [vmem:[%s9790_s13 + $0xc] ss:$0 sm:$0xff] }
0x15f6   : > { %6182 = vmatmul.mubr.msk.f32.vlgmr.msra.gmra.mrb[38].mxu0 %vm1846_vm4, %v11009_v11  ;;  %6388 = vmatprep.subr.bf16.mxu1 %v6387_v2 }
0x16c7   : > { %v6172_v33 = vpop.f32.mrb[24].mxu1 }
0x16c8   : > { %v4841_v26 = vmax.f32 %v6172_v33, 1e-16  ;;  %v4752_v25 = vpop.f32.mrb[25].mxu1 }
0x16c9   : > { %v4840_v50 = vmax.f32 %v4752_v25, 1e-16  ;;  %v6183_v1 = vpop.f32.mrb[38].mxu0 }
0x16ca   : > { %6549 = vrcp.f32 %v4841_v26  ;;  %v4831_v10 = vpop.f32.mrb[39].mxu0 }
0x16cb   : > { %6551 = vrcp.f32 %v4840_v50 }
0x16d4   : > { %v6550_v55 = vpop.eup %6549 }
0x16d5   : > { %v6552_v30 = vpop.eup %6551  ;;  %v4845_v24 = vmul.f32 %v6550_v55, %v6183_v1  ;;  %v11015_v1 = vld [vmem:[#allocation102_spill] sm:$0xff]  ;;  %v11016_v55 = vld [vmem:[#allocation104_spill] sm:$0xff] }
0x16d6   : > { %v4844_v13 = vmul.f32 %v6552_v30, %v4831_v10 }
0x16d7   : > { %v4847_v34 = vadd.f32 %v4845_v24, %v11013_v23 }
0x16d8   : > { %v4846_v47 = vadd.f32 %v4844_v13, %v11011_v56 }
0x16da   : > { %6188 = vmatprep.mubr.msk.f32.mxu1 %vm10917_vm0, %v4846_v47  ;;  %v660_v47 = vld [vmem:[%s640_s9] sm:$0xff] }
0x16db   : > { %6189 = vmatmul.mubr.msk.f32.vlgmr.msra.gmra.mrb[26].mxu1 %vm11014_vm14, %v4847_v34  ;;  %vm792_vm2 = vcmp.eq.s32.totalorder %v660_v47, 1  ;;  %vm790_vm11 = vcmp.eq.s32.totalorder %v660_v47, 0  ;;  %v661_v34 = vld [vmem:[%s640_s9 + $0x8] sm:$0xff]  ;;  %vm11023_vm14 = vmmov %vm10917_vm0  ;;  %s5610_s9 = sshll.u32 %s610_s20, 1 }
0x16dc   : > { %6390 = vmatpush3.bf16.msra.mxu1 %v6387_v2  ;;  %v5129_v23 = vsel %vm792_vm2, 1, %v11020_v38  ;;  %vm793_vm13 = vcmp.eq.s32.totalorder %v661_v34, 1  ;;  %vm791_vm3 = vcmp.eq.s32.totalorder %v661_v34, 0  ;;  %v6402_v2 = vpack.c.bf16 %v5359_v54, %v5358_v40  ;;  %vm11027_vm2 = vmmov %vm10917_vm0 }
0x16dd   : > { %6392 = vmatprep.subr.bf16.mxu1 %v6391_v22 }
0x16e0   : > { %6394 = vmatpush3.bf16.msra.mxu1 %v6391_v22  ;;  %v6405_v22 = vpack.c.bf16 %v5361_v14, %v5360_v21 }
0x17ae   : > { %v6190_v53 = vpop.f32.mrb[26].mxu1 }
0x17af   : > { %v4935_v62 = vadd.f32 %v6190_v53, %v5752_v17  ;;  %v4929_v51 = vpop.f32.mrb[27].mxu1  ;;  %v5130_v53 = vsel %vm793_vm13, 1, %v11020_v38  ;;  %vm11029_vm13 = vmmov %vm10917_vm0 }
0x17b0   : > { %v4930_v41 = vadd.f32 %v5752_v17, %v4929_v51  ;;  %v5127_v17 = vsel %vm790_vm11, 1, %v11020_v38  ;;  %vm11028_vm11 = vmmov %vm10917_vm0 }
0x17b1   : > { %v4943_v35 = vsel %vm1846_vm4, %v4935_v62, 0.0  ;;  %v4947_v43 = vmul.f32 %v4935_v62, %v4935_v62 }
0x17b2   : > { %4944 = vadd.xlane.f32.xlu0 %v4943_v35  ;;  %v4940_v48 = vsel %vm1846_vm4, %v4930_v41, 0.0  ;;  %v4946_v42 = vmul.f32 %v4930_v41, %v4930_v41  ;;  %v5128_v35 = vsel %vm791_vm3, 1, %v11020_v38  ;;  %vm11031_vm3 = vmmov %vm10917_vm0 }
0x17b3   : > { %4941 = vadd.xlane.f32.xlu1 %v4940_v48  ;;  %v4951_v0 = vsel %vm1846_vm4, %v4947_v43, 0.0  ;;  %v5198_v43 = vld [vmem:[%s9791_s14 + $0x10] sm:$0xff]  ;;  %v5199_v48 = vld [vmem:[%s9791_s14 + $0x18] sm:$0xff] }
0x17b4   : > { %v4948_v57 = vsel %vm1846_vm4, %v4946_v42, 0.0  ;;  %v6647_v42 = vmov 0.0|0.0  }
0x17b5   : > { %6395 = vmatprep.subr.bf16.mxu0 %v6647_v42  ;;  %6401 = vmatprep.subr.bf16.mxu1 %v6647_v42 }
0x17b6   : > { %4952 = vadd.xlane.f32.xlu0 %v4951_v0  ;;  %v6396_v0 = vpack.c.bf16 %v5199_v48, %v5198_v43 }
0x17b7   : > { %4949 = vadd.xlane.f32.xlu1 %v4948_v57  ;;  %v11022_v57 = vmov 0.0  }
0x17b8   : > { %6206 = vmatprep.mubr.msk.f32.mxu0 %vm6648_vm7, %v11022_v57  ;;  %6397 = vmatpush3.bf16.msra.mxu0 %v6396_v0 }
0x17b9   : > { %6398 = vmatprep.subr.bf16.mxu0 %v6647_v42 }
0x183f   : > { %v4945_v19 = vpop.xlane.xlu0 %4944 }
0x1840   : > { %v4955_v6 = vmul.f32 0.03125, %v4945_v19  ;;  %v4942_v32 = vpop.xlane.xlu1 %4941  ;;  %v5362_v19 = vld [vmem:[%s9792_s15 + $0x20] sm:$0xff] }
0x1841   : > { %v4954_v61 = vmul.f32 0.03125, %v4942_v32 }
0x1842   : > { %v4959_v16 = vmul.f32 %v4955_v6, %v4955_v6  ;;  %v4965_v4 = vsub.f32 %v4935_v62, %v4955_v6  ;;  %v662_v62 = vld [vmem:[%s644_s27] sm:$0x3]  ;;  %v5363_v6 = vld [vmem:[%s9792_s15 + $0x28] sm:$0xff]  ;;  %s612_s27 = scalar_lea.vmem [#allocation5], %s5610_s9  ;;  %s6582_s9 = scalar_lea.vmem %s6581_s19, 64 }
0x1843   : > { %v4953_v46 = vpop.xlane.xlu0 %4952  ;;  %v4958_v37 = vmul.f32 %v4954_v61, %v4954_v61  ;;  %v4964_v28 = vsub.f32 %v4930_v41, %v4954_v61  ;;  %v6408_v32 = vpack.c.bf16 %v5363_v6, %v5362_v19  ;;  %v5364_v61 = vld [vmem:[%s9792_s15 + $0x30] sm:$0xff]  ;;  %s5464_s18 = sshll.u32 %s612_s27, 4  ;;  %s9737_s18 = int_to_ptr.vmem [resolvable:$true] %s5464_s18 }
0x1844   : > { %v4957_v20 = vmul.f32 0.03125, %v4953_v46  ;;  %v4950_v31 = vpop.xlane.xlu1 %4949  ;;  %v5365_v46 = vld [vmem:[%s9792_s15 + $0x38] sm:$0xff]  ;;  %s6576_s29 = scalar_lea.vmem %s9737_s18, 32  ;;  %p6583_p13 = scmp.lt.s32.totalorder %s9737_s18, %s6581_s19 }
0x1845   : > { %v4956_v36 = vmul.f32 0.03125, %v4950_v31  ;;  %v5367_v31 = vld [vmem:[%s9792_s15 + $0x48] sm:$0xff]  ;;  %p6577_p9 = scmp.ne.s32.totalorder %s9737_s18, %s6576_s29  ;;  %p6584_p0 = scmp.lt.s32.totalorder %s6582_s9, %s6576_s29 }
0x1846   : > { %v4961_v52 = vsub.f32 %v4957_v20, %v4959_v16  ;;  %v6411_v16 = vpack.c.bf16 %v5365_v46, %v5364_v61  ;;  %v5366_v20 = vld [vmem:[%s9792_s15 + $0x40] sm:$0xff] }
0x1847   : > { %v4960_v12 = vsub.f32 %v4956_v36, %v4958_v37  ;;  %v6414_v37 = vpack.c.bf16 %v5367_v31, %v5366_v20  ;;  %p6578_p10 = pnand %p6577_p9, %p6773_p5  ;;  %p6585_p1 = por %p6584_p0, %p6583_p13 }
0x1848   : > { %v4963_v3 = vmax.f32 %v4961_v52, 0.0 }
0x1849   : > { %v4962_v8 = vmax.f32 %v4960_v12, 0.0  ;;  %p6579_p12 = pneg %p6578_p10 }
0x184a   : > { %v4967_v44 = vadd.f32 1e-05, %v4963_v3 }
0x184b   : > { %v4966_v5 = vadd.f32 1e-05, %v4962_v8  ;;  %p6586_p2 = pnand %p6585_p1, %p6579_p12 }
0x184c   : > { %6553 = vrsqrt.f32 %v4967_v44 }
0x184d   : > { %6555 = vrsqrt.f32 %v4966_v5 }
0x1856   : > { %v6554_v59 = vpop.eup %6553 }
0x1857   : > { %v6556_v29 = vpop.eup %6555  ;;  %v4971_v15 = vmul.f32 %v6554_v59, %v4965_v4 }
0x1858   : > { %v4970_v7 = vmul.f32 %v6556_v29, %v4964_v28 }
0x1859   : > { %v4977_v18 = vmul.f32 %v5757_v63, %v4971_v15 }
0x185a   : > { %v4976_v45 = vmul.f32 %v5757_v63, %v4970_v7 }
0x185b   : > { %v4983_v60 = vadd.f32 %v5758_v58, %v4977_v18 }
0x185c   : > { %v4982_v11 = vadd.f32 %v5758_v58, %v4976_v45 }
0x185d   : > { %v4985_v27 = vmax.f32 %v4983_v60, 0.0 }
0x185e   : > { %v4984_v39 = vmax.f32 %v4982_v11, 0.0 }
0x1860   : > { %6199 = vmatprep.mubr.msk.f32.mxu1 %vm1846_vm4, %v4984_v39 }
0x1861   : > { %6200 = vmatmul.mubr.msk.f32.vlgmr.msra.gmra.mrb[28].mxu1 %vm1846_vm4, %v4985_v27  ;;  %vm11018_vm4 = vmmov %vm10917_vm0 }
0x1862   : > { %6248 = vmatprep.mubr.msk.f32.mxu1 %vm6648_vm7, %v11022_v57  ;;  %6403 = vmatpush3.bf16.msra.mxu1 %v6402_v2 }
0x1863   : > { %6404 = vmatprep.subr.bf16.mxu1 %v6647_v42 }
0x1866   : > { %6406 = vmatpush3.bf16.msra.mxu1 %v6405_v22 }
0x1867   : > { %6407 = vmatprep.subr.bf16.mxu1 %v6647_v42 }
0x186a   : > { %6409 = vmatpush3.bf16.msra.mxu1 %v6408_v32 }
0x186b   : > { %6410 = vmatprep.subr.bf16.mxu1 %v6647_v42 }
0x186e   : > { %6412 = vmatpush3.bf16.msra.mxu1 %v6411_v16 }
0x186f   : > { %6413 = vmatprep.subr.bf16.mxu1 %v6647_v42 }
0x1872   : > { %6415 = vmatpush3.bf16.msra.mxu1 %v6414_v37 }
0x1873   : > { %6416 = vmatprep.subr.bf16.mxu1 %v6647_v42 }
0x1934   : > { %v6201_v33 = vpop.f32.mrb[28].mxu1 }
0x1935   : > { %v5074_v26 = vadd.f32 %v6201_v33, %v5764_v9  ;;  %v5068_v25 = vpop.f32.mrb[29].mxu1 }
0x1936   : > { %v5069_v50 = vadd.f32 %v5764_v9, %v5068_v25  ;;  %v5767_v9 = vld [vmem:[%s9790_s13 + $0x1] ss:$0 sm:$0xff] }
0x1937   : > { %v9600_v10 = vadd.f32 %v5074_v26, %v11015_v1  ;;  %v5768_v26 = vld [vmem:[%s9790_s13 + $0x2] ss:$0 sm:$0xff] }
0x1938   : > { %v9603_v30 = vadd.f32 %v5069_v50, %v11016_v55 }
0x1939   : > { %v5084_v24 = vsel %vm11017_vm5, %v9600_v10, 0.0  ;;  %v5088_v13 = vmul.f32 %v9600_v10, %v9600_v10  ;;  %vm11024_vm5 = vmmov %vm10917_vm0 }
0x193a   : > { %5085 = vadd.xlane.f32.xlu0 %v5084_v24  ;;  %v5081_v49 = vsel %vm11018_vm4, %v9603_v30, 0.0  ;;  %v5087_v51 = vmul.f32 %v9603_v30, %v9603_v30  ;;  %vm11025_vm4 = vmmov %vm10917_vm0 }
0x193b   : > { %5082 = vadd.xlane.f32.xlu1 %v5081_v49  ;;  %v5092_v56 = vsel %vm11019_vm9, %v5088_v13, 0.0  ;;  %vm11026_vm9 = vmmov %vm10917_vm0 }
0x193c   : > { %v5089_v41 = vsel %vm11021_vm8, %v5087_v51, 0.0  ;;  %vm11030_vm8 = vmmov %vm10917_vm0 }
0x193e   : > { %5093 = vadd.xlane.f32.xlu0 %v5092_v56 }
0x194c   : > { %5138 = vperm.xlu1 %6480, %v5129_v23  }
0x1950   : > { %5132 = vperm.xlu1 %6480, %v5127_v17  }
0x1954   : > { %5141 = vperm.xlu0 %6479, %v5130_v53  }
0x1958   : > { %5189 = vperm.xlu0 %6479, %v662_v62  }
0x1974   : > { %5090 = vadd.xlane.f32.xlu1 %v5089_v41 }
0x1985   : > { %5135 = vperm.xlu1 %6480, %v5128_v35  }
0x19c7   : > { %v5086_v36 = vpop.xlane.xlu0 %5085 }
0x19c8   : > { %v5096_v12 = vmul.f32 0.0625, %v5086_v36  ;;  %v5083_v5 = vpop.xlane.xlu1 %5082 }
0x19c9   : > { %v5095_v29 = vmul.f32 0.0625, %v5083_v5 }
0x19ca   : > { %v5100_v8 = vmul.f32 %v5096_v12, %v5096_v12  ;;  %v5106_v11 = vsub.f32 %v9600_v10, %v5096_v12 }
0x19cb   : > { %v5094_v52 = vpop.xlane.xlu0 %5093  ;;  %v5099_v58 = vmul.f32 %v5095_v29, %v5095_v29  ;;  %v5105_v50 = vsub.f32 %v9603_v30, %v5095_v29  ;;  %v5197_v29 = vld [vmem:[%s9791_s14 + $0x8] sm:$0xff] }
0x19cc   : > { %v5098_v3 = vmul.f32 0.0625, %v5094_v52  ;;  %v5139_v59 = vpop.permute.xlu1 %5138 }
0x19cd   : > { %vm5145_vm10 = vcmp.eq.s32.totalorder %v5139_v59, 1 }
0x19ce   : > { %v5102_v44 = vsub.f32 %v5098_v3, %v5100_v8 }
0x19d0   : > { %v5104_v4 = vmax.f32 %v5102_v44, 0.0  ;;  %v5133_v63 = vpop.permute.xlu1 %5132 }
0x19d1   : > { %vm5143_vm12 = vcmp.eq.s32.totalorder %v5133_v63, 1  ;;  %v5196_v63 = vld [vmem:[%s9791_s14] sm:$0xff] }
0x19d2   : > { %v5108_v28 = vadd.f32 1e-05, %v5104_v4 }
0x19d3   : > { %v5142_v13 = vpop.permute.xlu0 %5141 }
0x19d4   : > { %6557 = vrsqrt.f32 %v5108_v28  ;;  %vm5146_vm1 = vcmp.eq.s32.totalorder %v5142_v13, 1 }
0x19d7   : > { %v5190_v12 = vpop.permute.xlu0 %5189 }
0x19d8   : > { %v5191_v4 = vrot.slane %v5190_v12, 1 }
0x19de   : > { %v6558_v45 = vpop.eup %6557 }
0x19df   : > { %v5112_v27 = vmul.f32 %v6558_v45, %v5106_v11 }
0x19e1   : > { %v5118_v33 = vmul.f32 %v5767_v9, %v5112_v27 }
0x19e3   : > { %v5124_v25 = vadd.f32 %v5768_v26, %v5118_v33  ;;  %v5368_v33 = vld [vmem:[%s9792_s15 + $0x50] sm:$0xff] }
0x19e5   : > { %v5126_v24 = vmax.f32 %v5124_v25, 0.0 }
0x19e7   : > { %v5150_v56 = vsel %vm5146_vm1, %v5126_v24, 0.0 }
0x19e8   : > { %v5161_v34 = vsel %vm10917_vm0, %v5150_v56, -inf  ;;  %v5179_v17 = vsel %vm11023_vm14, %v5150_v56, 0.0 }
0x1a01   : > { %v5091_v15 = vpop.xlane.xlu1 %5090 }
0x1a02   : > { %v5097_v7 = vmul.f32 0.0625, %v5091_v15 }
0x1a04   : > { %v5101_v18 = vsub.f32 %v5097_v7, %v5099_v58 }
0x1a05   : > { %v5136_v55 = vpop.permute.xlu1 %5135 }
0x1a06   : > { %v5103_v60 = vmax.f32 %v5101_v18, 0.0  ;;  %vm5144_vm6 = vcmp.eq.s32.totalorder %v5136_v55, 1 }
0x1a07   : > { %v5148_v38 = vsel %vm5144_vm6, %v5126_v24, 0.0  ;;  %v5373_v24 = vld [vmem:[%s9792_s15 + $0x78] sm:$0xff] }
0x1a08   : > { %v5107_v39 = vadd.f32 1e-05, %v5103_v60  ;;  %v5152_v62 = vsel %vm11024_vm5, %v5148_v38, -inf  ;;  %v5170_v51 = vsel %vm11025_vm4, %v5148_v38, 0.0  ;;  %v6399_v60 = vpack.c.bf16 %v5197_v29, %v5196_v63 }
0x1a0a   : > { %6559 = vrsqrt.f32 %v5107_v39 }
0x1a14   : > { %v6560_v1 = vpop.eup %6559 }
0x1a15   : > { %v5111_v10 = vmul.f32 %v6560_v1, %v5105_v50  ;;  %v5371_v50 = vld [vmem:[%s9792_s15 + $0x68] sm:$0xff]  ;;  %v5372_v1 = vld [vmem:[%s9792_s15 + $0x70] sm:$0xff] }
0x1a16   : > { %v6423_v13 = vpack.c.bf16 %v5373_v24, %v5372_v1 }
0x1a17   : > { %v5117_v49 = vmul.f32 %v5767_v9, %v5111_v10 }
0x1a19   : > { %v5123_v47 = vadd.f32 %v5768_v26, %v5117_v49  ;;  %v5369_v26 = vld [vmem:[%s9792_s15 + $0x58] sm:$0xff] }
0x1a1a   : > { %v6417_v25 = vpack.c.bf16 %v5369_v26, %v5368_v33 }
0x1a1b   : > { %v5125_v23 = vmax.f32 %v5123_v47, 0.0  ;;  %v5771_v47 = vld [vmem:[%s9791_s14 + $0x20] ss:$0 sm:$0xff] }
0x1a1c   : > { %6418 = vmatpush3.bf16.msra.mxu1 %v6417_v25 }
0x1a1d   : > { %v5147_v53 = vsel %vm5143_vm12, %v5125_v23, 0.0  ;;  %v5149_v30 = vsel %vm5145_vm10, %v5125_v23, 0.0  ;;  %6419 = vmatprep.subr.bf16.mxu1 %v6647_v42 }
0x1a1e   : > { %v5151_v41 = vsel %vm11026_vm9, %v5147_v53, -inf  ;;  %v5160_v35 = vsel %vm11027_vm2, %v5149_v30, -inf  ;;  %v5169_v43 = vsel %vm11028_vm11, %v5147_v53, 0.0  ;;  %v5178_v48 = vsel %vm11029_vm13, %v5149_v30, 0.0 }
0x1a1f   : > { %v5162_v0 = vmax.f32 %v5160_v35, %v5161_v34  ;;  %v5180_v40 = vadd.f32 %v5179_v17, %v5178_v48  ;;  %v5153_v54 = vmax.f32 %v5151_v41, %v5152_v62  ;;  %v5171_v21 = vadd.f32 %v5170_v51, %v5169_v43 }
0x1a21   : > { %v5163_v2 = vrot.slane %v5162_v0, 4  ;;  %v5181_v14 = vrot.slane %v5180_v40, 4  ;;  %v5154_v22 = vrot.slane %v5153_v54, 4  ;;  %v5172_v19 = vrot.slane %v5171_v21, 4 }
0x1a23   : > { %v5164_v6 = vmax.f32 %v5162_v0, %v5163_v2  ;;  %v5182_v32 = vadd.f32 %v5181_v14, %v5180_v40  ;;  %v5155_v61 = vmax.f32 %v5153_v54, %v5154_v22  ;;  %v5173_v46 = vadd.f32 %v5172_v19, %v5171_v21 }
0x1a25   : > { %v5183_v16 = vrot.slane %v5182_v32, 2  ;;  %v5156_v20 = vrot.slane %v5155_v61, 2  ;;  %v5174_v31 = vrot.slane %v5173_v46, 2  ;;  %v5165_v37 = vrot.slane %v5164_v6, 2 }
0x1a27   : > { %v5175_v36 = vadd.f32 %v5174_v31, %v5173_v46  ;;  %v5184_v52 = vadd.f32 %v5183_v16, %v5182_v32  ;;  %v5157_v3 = vmax.f32 %v5155_v61, %v5156_v20  ;;  %v5166_v5 = vmax.f32 %v5164_v6, %v5165_v37 }
0x1a29   : > { %v5176_v8 = vrot.slane %v5175_v36, 1  ;;  %v5185_v44 = vrot.slane %v5184_v52, 1  ;;  %v5158_v15 = vrot.slane %v5157_v3, 1  ;;  %v5167_v7 = vrot.slane %v5166_v5, 1 }
0x1a2b   : > { %v5177_v59 = vadd.f32 %v5176_v8, %v5175_v36  ;;  %v5186_v28 = vadd.f32 %v5185_v44, %v5184_v52  ;;  %v5159_v11 = vmax.f32 %v5157_v3, %v5158_v15  ;;  %v5168_v27 = vmax.f32 %v5166_v5, %v5167_v7 }
0x1a2d   : > { %v5195_v58 = vmul.f32 %v5191_v4, %v5186_v28  ;;  %v5194_v18 = vmul.f32 %v5190_v12, %v5177_v59  ;;  %v5278_v9 = vsel %vm1710_vm15, %v5168_v27, %v5159_v11 }
0x1a2f   : > { %v5202_v45 = vrot.slane %v5195_v58, 7 }
0x1a31   : > { %v5203_v39 = vsel %vm1710_vm15, %v5202_v45, %v5194_v18 }
0x1a32   : > { %6207 = vmatmul.mubr.msk.f32.vlgmr.msra.gmra.mrb[40].mxu0 %vm11030_vm8, %v5203_v39 }
0x1a33   : > { %6400 = vmatpush3.bf16.msra.mxu0 %v6399_v60  ;;  %6213 = vmatprep.mubr.msk.f32.mxu0 %vm6648_vm7, %v11022_v57  ;;  %v5370_v57 = vld [vmem:[%s9792_s15 + $0x60] sm:$0xff] }
0x1a34   : > { %v6420_v55 = vpack.c.bf16 %v5371_v50, %v5370_v57 }
0x1a36   : > { %6214 = vmatmul.mubr.msk.f32.vlgmr.msra.gmra.mrb[42].mxu0 %vm11031_vm3, %v5278_v9  ;;  %6421 = vmatpush3.bf16.msra.mxu1 %v6420_v55 }
0x1a37   : > { %6422 = vmatprep.subr.bf16.mxu1 %v6647_v42  ;;  %v5772_v42 = vld [vmem:[%s9792_s15 + $0x80] ss:$0 sm:$0xff] }
0x1a3a   : > { %6424 = vmatpush3.bf16.msra.mxu1 %v6423_v13 }
0x1b05   : > { %v5272_v10 = vpop.f32.mrb[40].mxu0 }
0x1b06   : > { %v6208_v49 = vpop.f32.mrb[41].mxu0 }
0x1b09   : > { %v5347_v56 = vpop.f32.mrb[42].mxu0 }
0x1b0a   : > { %v5348_v38 = vadd.f32 %v5347_v56, %v5272_v10  ;;  %v6215_v23 = vpop.f32.mrb[43].mxu0 }
0x1b0c   : > { %v5356_v34 = vadd.f32 %v5771_v47, %v5348_v38 }
0x1b0e   : > { %v5357_v17 = vmax.f32 %v5356_v34, 0.0 }
0x1b10   : > { %6249 = vmatmul.mubr.f32.vlgmr.msra.gmra.mrb[30].mxu1 %v5357_v17 }
0x1be3   : > { %v5445_v53 = vpop.f32.mrb[30].mxu1 }
0x1be4   : > { %v5446_v30 = vadd.f32 %v5772_v42, %v5445_v53  ;;  %v6250_v62 = vpop.f32.mrb[31].mxu1 }
0x1be6   : > { %5449 = vst [vmem:[%s612_s27] sm:$0x3] %v5446_v30 }
0x1be7   : > { %6589 = shalt.err (!%p6586_p2)
}
0x1be8   : > { %s6590_s20 = scalar_lea.hbm %s9735_s17, 32  ;;  %s6594_s24 = scalar_lea.hbm %s9793_s16, 128 }
0x1be9   : > { %p6591_p3 = scmp.ne.s32.totalorder %s9735_s17, %s6590_s20  ;;  %p6595_p8 = scmp.lt.u32.totalorder %s9735_s17, %s9793_s16 }
0x1bea   : > { %p6596_p11 = scmp.lt.u32.totalorder %s6594_s24, %s6590_s20  ;;  %p6598_p10 = scmp.lt.u32.totalorder %s6590_s20, %s9735_s17 }
0x1beb   : > { %p6592_p4 = pnand %p6591_p3, %p6773_p5 }
0x1bec   : > { %p6597_p9 = por %p6596_p11, %p6595_p8 }
0x1bed   : > { %p6593_p7 = pneg %p6592_p4 }
0x1bee   : > { %p6599_p12 = por %p6598_p10, %p6597_p9 }
0x1bf0   : > { %p6600_p13 = pnand %p6599_p12, %p6593_p7 }
0x1bf2   : > { %6603 = shalt.err (!%p6600_p13)
}
0x1bf3   : > { %6429 = dma.vmem_to_hbm [thread:$0]  (%p6773_p5), %s9737_s18, 32, %s9735_s17, %s5451_s26  }
0x1bf4 PF: > { %s11032_s30 = sld [smem:[#allocation10_spill]]  ;;  %s11033_s29 = sld [smem:[#allocation8_spill]] }
0x1bfa   : > { %p6441_p0 = scmp.ge.s32.totalorder %s11032_s30, 2  ;;  %s5476_s19 = sand.u32 1, %s11033_s29  }
0x1bfb   : > { %s5477_s9 = scalar_lea.sflag [#allocation3], %s5476_s19 }
0x1bfc   : > { %p6436_p1 = pnand %p6441_p0, %p6777_p6 }
0x1bfe   : > { %6625 = dma.done.wait (!%p6436_p1), %s5477_s9, 32  }
0x1bff   : > { %6627 = vsyncadd (!%p6436_p1), %s5477_s9, 4294967264  ;;  %s11035_s24 = sld [smem:[#allocation11_spill]]  ;;  %s11036_s20 = sld [smem:[#allocation9_spill]] }
0x1c00   : > { %s11037_s23 = sld [smem:[#allocation12_spill]]  ;;  %s11038_s21 = smov %s6634_s22 }
0x1c05   : > { %p27_p2 = scmp.ge.s32.totalorder %s11035_s24, 6   ;;  %s11039_s22 = smov %s11036_s20 }
0x1c07   :  { %29 = sbr.rel (!%p27_p2) target bundleno = 7 (0x7), region = 154 }
0x1c0e   :  { %5482 = vsyncpa [#allocation3], 1 }
0x1c0f   :  { %5484 = vsyncpa [#allocation3 + $0x1], 1 }
0x1c10   :  { %5485 = vsyncpa [#allocation4], 1 }
0x1c11   :  { %5487 = vsyncpa [#allocation4 + $0x1], 1 }

</bundles_post_ra>
